<compile_context>
chip_gen: v6e
topology: v6e:2x2x1
jax: 0.10.0
libtpu: 0.0.40
codegen_flags: <defaults>
</compile_context>

<pallas_src>
import jax
import jax.numpy as jnp
from jax import lax
from jax.experimental import pallas as pl
from jax.experimental.pallas import tpu as pltpu

HID = 512          # fixed by the module definition (conv(C, 512, k=1))
PADL = 8           # sublane-aligned left padding of the halo scratch
HEAD_CHUNK = 256   # hidden-dim chunk for the fused heads (1024 / 256 = 4)


# ----------------------------------------------------------------------------
# Fused kernel: one image per grid step.
#   trunk: 3 x (conv3x3 + bias + ReLU), each as ONE deep-K im2col matmul.
#   heads: relu(t @ [hm0|paf0] + b) @ blockdiag(hm1, paf1) + b, hidden-chunked.
# ----------------------------------------------------------------------------
def _initial_stage_kernel(x_ref, wt_ref, bt_ref, w1_ref, b1_ref, w2_ref,
                          b2_ref, o_ref, xpad_ref):
    # x_ref:    (1, H, W, C)        f32   input image (NHWC)
    # wt_ref:   (3, 9*C, C)         bf16  trunk weights, im2col row order
    #                                     row = (dy*3 + dx)*C + cin
    # bt_ref:   (3, 1, C)           f32   trunk biases
    # w1_ref:   (C, 2*HID)          bf16  [hm0_w | paf0_w]
    # b1_ref:   (1, 2*HID)          f32   [hm0_b | paf0_b]
    # w2_ref:   (2*HID, KP)         bf16  blockdiag(hm1_w, paf1_w), zero pad
    # b2_ref:   (1, KP)             f32   [hm1_b | paf1_b | 0...]
    # o_ref:    (1, H, W, KP)       f32   heatmaps | pafs | zero pad
    # xpad_ref: (H+2, W+2*PADL, C)  bf16  zero-halo scratch; interior stored
    #                                     at rows 1..H, cols PADL..PADL+W-1
    _, H, W, C = x_ref.shape
    KP = o_ref.shape[-1]
    HID2 = w1_ref.shape[1]

    # --- zero only the halo border (row 0, row H+1, col PADL-1, col PADL+W).
    # Unconditional per step: cheap, and safe under core-parallel grid
    # sharding (scratch is per-core, so a program_id==0 gate would be unsafe).
    zrow = jnp.zeros((1, W + 2 * PADL, C), xpad_ref.dtype)
    zcol = jnp.zeros((H + 2, 1, C), xpad_ref.dtype)
    xpad_ref[0:1, :, :] = zrow
    xpad_ref[H + 1:H + 2, :, :] = zrow
    xpad_ref[:, PADL - 1:PADL, :] = zcol
    xpad_ref[:, PADL + W:PADL + W + 1, :] = zcol

    # --- trunk: three (conv3x3 + bias + ReLU) layers, each as ONE K=9C matmul
    cur = x_ref[0].astype(jnp.bfloat16)                        # (H, W, C)
    for layer in range(3):
        xpad_ref[1:H + 1, PADL:PADL + W, :] = cur              # aligned store
        xp = xpad_ref[...]                                     # (H+2, W+2P, C)
        pieces = []
        for dy in range(3):
            rowblk = xp[dy:dy + H]                             # (H, W+2P, C)
            for dx in range(3):
                pieces.append(rowblk[:, PADL - 1 + dx:PADL - 1 + dx + W, :])
        patch = jnp.concatenate(pieces, axis=-1)               # (H, W, 9C) bf16
        patch = patch.reshape(H * W, 9 * C)
        acc = jnp.dot(patch, wt_ref[layer],
                      preferred_element_type=jnp.float32)      # (H*W, C) f32
        cur = jnp.maximum(acc + bt_ref[layer], 0.0)
        cur = cur.reshape(H, W, C).astype(jnp.bfloat16)

    # --- heads: both heads / both 1x1 layers; hidden dim in 256-wide chunks
    # so the (H*W, 1024) intermediate is never materialised.
    tfeat = cur.reshape(H * W, C)                              # bf16
    out = jnp.zeros((H * W, KP), jnp.float32)
    for c0 in range(0, HID2, HEAD_CHUNK):
        h = jnp.dot(tfeat, w1_ref[:, c0:c0 + HEAD_CHUNK],
                    preferred_element_type=jnp.float32)
        h = jnp.maximum(h + b1_ref[:, c0:c0 + HEAD_CHUNK], 0.0)
        h = h.astype(jnp.bfloat16)
        out = out + jnp.dot(h, w2_ref[c0:c0 + HEAD_CHUNK, :],
                            preferred_element_type=jnp.float32)
    out = out + b2_ref[...]
    # Output kept f32 to match the PyTorch module's dtype.
    o_ref[0] = out.reshape(H, W, KP).astype(o_ref.dtype)


def _vmem_limit_bytes(H, W, C, KP, HID2):
    blocks = 2 * (H * W * C * 4 + H * W * KP * 4)              # dbl-buffered IO
    weights = 2 * (3 * 9 * C * C * 2 + 3 * C * 4 + C * HID2 * 2
                   + HID2 * 4 + HID2 * KP * 2 + KP * 4)
    scratch = (H + 2) * (W + 2 * PADL) * C * 2
    temps = (2 * H * W * 9 * C * 2 + H * W * C * 4
             + H * W * HEAD_CHUNK * 4 + 2 * H * W * KP * 4)
    need = blocks + weights + scratch + temps
    return int(min(max(2 * need, 32 * 1024 * 1024), 64 * 1024 * 1024))


def initial_stage_pallas(x_nhwc, params):
    """Fused trunk + heads.  x_nhwc f32 (N,H,W,C).  Returns (hm, paf) NHWC."""
    N, H, W, C = x_nhwc.shape
    num_heatmaps = params["hm1_w"].shape[1]
    num_pafs = params["paf1_w"].shape[1]
    K = num_heatmaps + num_pafs
    KP = ((K + 127) // 128) * 128                # lane-dense output width
    HID2 = 2 * HID

    # trunk weights -> im2col layout (9C, C); biases -> (1, C)
    wt = jnp.stack([params[f"trunk{i}_w"].reshape(9 * C, C) for i in range(3)])
    wt = wt.astype(jnp.bfloat16)
    bt = jnp.stack([params[f"trunk{i}_b"].reshape(1, C) for i in range(3)])
    bt = bt.astype(jnp.float32)

    # heads layer 1: concat the two C->512 heads into one C->1024 matmul
    w1 = jnp.concatenate([params["hm0_w"], params["paf0_w"]], axis=1)
    w1 = w1.astype(jnp.bfloat16)
    b1 = jnp.concatenate([params["hm0_b"], params["paf0_b"]])
    b1 = b1.reshape(1, HID2).astype(jnp.float32)

    # heads layer 2: block-diagonal, zero-padded to a 128-lane-dense output
    w2 = jnp.zeros((HID2, KP), jnp.float32)
    w2 = w2.at[:HID, :num_heatmaps].set(params["hm1_w"])
    w2 = w2.at[HID:, num_heatmaps:K].set(params["paf1_w"])
    w2 = w2.astype(jnp.bfloat16)
    b2 = jnp.zeros((1, KP), jnp.float32)
    b2 = b2.at[0, :num_heatmaps].set(params["hm1_b"])
    b2 = b2.at[0, num_heatmaps:K].set(params["paf1_b"])

    flops = 2 * N * H * W * (3 * 9 * C * C + C * HID2 + HID2 * KP)
    bytes_accessed = (N * H * W * C * 4 + N * H * W * KP * 4
                      + wt.size * 2 + w1.size * 2 + w2.size * 2
                      + (bt.size + b1.size + b2.size) * 4)

    # TODO(synk): at production sizes (H*W ~ 2k, C=128, N=1) also tile the
    # spatial axis (row blocks with a 3-row halo recompute) so there are >=2
    # grid steps per image for pipelining / v7x 2-TC sharding and the per-step
    # working set shrinks further.
    out = pl.pallas_call(
        _initial_stage_kernel,
        out_shape=jax.ShapeDtypeStruct((N, H, W, KP), jnp.float32),
        grid=(N,),
        in_specs=[
            pl.BlockSpec((1, H, W, C), lambda n: (n, 0, 0, 0)),
            pl.BlockSpec((3, 9 * C, C), lambda n: (0, 0, 0)),
            pl.BlockSpec((3, 1, C), lambda n: (0, 0, 0)),
            pl.BlockSpec((C, HID2), lambda n: (0, 0)),
            pl.BlockSpec((1, HID2), lambda n: (0, 0)),
            pl.BlockSpec((HID2, KP), lambda n: (0, 0)),
            pl.BlockSpec((1, KP), lambda n: (0, 0)),
        ],
        out_specs=pl.BlockSpec((1, H, W, KP), lambda n: (n, 0, 0, 0)),
        scratch_shapes=[pltpu.VMEM((H + 2, W + 2 * PADL, C), jnp.bfloat16)],
        compiler_params=pltpu.CompilerParams(
            dimension_semantics=("parallel",),
            vmem_limit_bytes=_vmem_limit_bytes(H, W, C, KP, HID2)),
        cost_estimate=pl.CostEstimate(
            flops=flops, transcendentals=0, bytes_accessed=bytes_accessed),
    )(x_nhwc, wt, bt, w1, b1, w2, b2)

    hm = out[..., :num_heatmaps]                   # (N, H, W, K_hm)
    paf = out[..., num_heatmaps:K]                 # (N, H, W, K_paf)
    return hm, paf


# ----------------------------------------------------------------------------
# Parameter construction (deterministic, synthetic).
# ----------------------------------------------------------------------------
def init_params(key, num_channels, num_heatmaps, num_pafs):
    ks = jax.random.split(key, 14)
    p = {}
    scale = 0.05
    for i in range(3):
        p[f"trunk{i}_w"] = scale * jax.random.normal(
            ks[2 * i], (3, 3, num_channels, num_channels), jnp.float32)
        p[f"trunk{i}_b"] = scale * jax.random.normal(
            ks[2 * i + 1], (num_channels,), jnp.float32)
    p["hm0_w"] = scale * jax.random.normal(ks[6], (num_channels, HID), jnp.float32)
    p["hm0_b"] = scale * jax.random.normal(ks[7], (HID,), jnp.float32)
    p["hm1_w"] = scale * jax.random.normal(ks[8], (HID, num_heatmaps), jnp.float32)
    p["hm1_b"] = scale * jax.random.normal(ks[9], (num_heatmaps,), jnp.float32)
    p["paf0_w"] = scale * jax.random.normal(ks[10], (num_channels, HID), jnp.float32)
    p["paf0_b"] = scale * jax.random.normal(ks[11], (HID,), jnp.float32)
    p["paf1_w"] = scale * jax.random.normal(ks[12], (HID, num_pafs), jnp.float32)
    p["paf1_b"] = scale * jax.random.normal(ks[13], (num_pafs,), jnp.float32)
    return p


# ----------------------------------------------------------------------------
# Forward pass (matches InitialStage.forward).  Input / outputs are NCHW.
# ----------------------------------------------------------------------------
@jax.jit
def initial_stage_forward(x_nchw, params):
    x = jnp.transpose(x_nchw, (0, 2, 3, 1))        # NCHW -> NHWC
    hm, paf = initial_stage_pallas(x, params)
    heatmaps = jnp.transpose(hm, (0, 3, 1, 2))     # NHWC -> NCHW
    pafs = jnp.transpose(paf, (0, 3, 1, 2))
    return [heatmaps, pafs]


# Pure-JAX f32 reference of the same module (for a tolerance check).
def _reference_forward(x_nchw, params):
    x = jnp.transpose(x_nchw, (0, 2, 3, 1)).astype(jnp.float32)
    t = x
    for i in range(3):
        t = lax.conv_general_dilated(
            t, params[f"trunk{i}_w"], window_strides=(1, 1),
            padding=((1, 1), (1, 1)),
            dimension_numbers=("NHWC", "HWIO", "NHWC"))
        t = jnp.maximum(t + params[f"trunk{i}_b"], 0.0)
    h = jnp.maximum(t @ params["hm0_w"] + params["hm0_b"], 0.0)
    hm = h @ params["hm1_w"] + params["hm1_b"]
    h = jnp.maximum(t @ params["paf0_w"] + params["paf0_b"], 0.0)
    paf = h @ params["paf1_w"] + params["paf1_b"]
    return [jnp.transpose(hm, (0, 3, 1, 2)), jnp.transpose(paf, (0, 3, 1, 2))]


if __name__ == "__main__":
    # Small shapes consistent with the module.
    N, C, H, W = 2, 32, 16, 16
    num_heatmaps, num_pafs = 8, 16

    key = jax.random.PRNGKey(0)
    kx, kparams = jax.random.split(key)
    x = jax.random.normal(kx, (N, C, H, W), jnp.float32)
    params = init_params(kparams, C, num_heatmaps, num_pafs)

    heatmaps, pafs = initial_stage_forward(x, params)
    jax.block_until_ready(heatmaps)
    jax.block_until_ready(pafs)

    assert heatmaps.shape == (N, num_heatmaps, H, W), heatmaps.shape
    assert pafs.shape == (N, num_pafs, H, W), pafs.shape

    # Tolerance check vs the f32 reference (kernel uses bf16 MXU operands with
    # f32 accumulation, so compare loosely, not bitwise).
    ref_hm, ref_paf = _reference_forward(x, params)
    err = max(float(jnp.max(jnp.abs(heatmaps - ref_hm))),
              float(jnp.max(jnp.abs(pafs - ref_paf))))
    assert err < 6e-2, f"max abs error vs reference: {err}"

    print("KERNEL_OK")
</pallas_src>

<mosaic_0001>
module attributes {stable_mosaic.version = 11 : i64} {
  func.func @_initial_stage_kernel(%arg0: i32, %arg1: memref<1x16x16x32xf32, #tpu.memory_space<vmem>>, %arg2: memref<3x288x32xbf16, #tpu.memory_space<vmem>>, %arg3: memref<3x1x32xf32, #tpu.memory_space<vmem>>, %arg4: memref<32x1024xbf16, #tpu.memory_space<vmem>>, %arg5: memref<1x1024xf32, #tpu.memory_space<vmem>>, %arg6: memref<1024x128xbf16, #tpu.memory_space<vmem>>, %arg7: memref<1x128xf32, #tpu.memory_space<vmem>>, %arg8: memref<1x16x16x128xf32, #tpu.memory_space<vmem>>, %arg9: memref<18x32x32xbf16, #tpu.memory_space<vmem>>) attributes {dimension_semantics = [#tpu.dimension_semantics<parallel>], iteration_bounds = array<i64: 2>, scalar_prefetch = 0 : i64, scratch_operands = 1 : i64, tpu.core_type = #tpu.core_type<tc>, window_params = [{transform_indices = @transform_0, window_bounds = array<i64: 1, 16, 16, 32>}, {pipeline_mode = #tpu.pipeline_mode<synchronous>, transform_indices = @transform_1, window_bounds = array<i64: 3, 288, 32>}, {pipeline_mode = #tpu.pipeline_mode<synchronous>, transform_indices = @transform_2, window_bounds = array<i64: 3, 1, 32>}, {pipeline_mode = #tpu.pipeline_mode<synchronous>, transform_indices = @transform_3, window_bounds = array<i64: 32, 1024>}, {pipeline_mode = #tpu.pipeline_mode<synchronous>, transform_indices = @transform_4, window_bounds = array<i64: 1, 1024>}, {pipeline_mode = #tpu.pipeline_mode<synchronous>, transform_indices = @transform_5, window_bounds = array<i64: 1024, 128>}, {pipeline_mode = #tpu.pipeline_mode<synchronous>, transform_indices = @transform_6, window_bounds = array<i64: 1, 128>}, {transform_indices = @transform_7, window_bounds = array<i64: 1, 16, 16, 128>}]} {
    %cst = arith.constant 0.000000e+00 : bf16
    %0 = vector.broadcast %cst : bf16 to vector<1x32x32xbf16>
    %cst_0 = arith.constant 0.000000e+00 : bf16
    %1 = vector.broadcast %cst_0 : bf16 to vector<18x1x32xbf16>
    %c0 = arith.constant 0 : index
    %c0_1 = arith.constant 0 : index
    %c0_2 = arith.constant 0 : index
    %2 = vector.load %arg9[%c0, %c0_1, %c0_2] : memref<18x32x32xbf16, #tpu.memory_space<vmem>>, vector<1x32x32xbf16>
    tpu.vector_store %arg9[%c0, %c0_1, %c0_2], %0 {strides = array<i32>} : memref<18x32x32xbf16, #tpu.memory_space<vmem>>, vector<1x32x32xbf16>,
    %c17 = arith.constant 17 : index
    %c0_3 = arith.constant 0 : index
    %c0_4 = arith.constant 0 : index
    %3 = vector.load %arg9[%c17, %c0_3, %c0_4] : memref<18x32x32xbf16, #tpu.memory_space<vmem>>, vector<1x32x32xbf16>
    tpu.vector_store %arg9[%c17, %c0_3, %c0_4], %0 {strides = array<i32>} : memref<18x32x32xbf16, #tpu.memory_space<vmem>>, vector<1x32x32xbf16>,
    %c0_5 = arith.constant 0 : index
    %c7 = arith.constant 7 : index
    %c0_6 = arith.constant 0 : index
    %4 = vector.load %arg9[%c0_5, %c7, %c0_6] : memref<18x32x32xbf16, #tpu.memory_space<vmem>>, vector<18x1x32xbf16>
    tpu.vector_store %arg9[%c0_5, %c7, %c0_6], %1 {strides = array<i32>} : memref<18x32x32xbf16, #tpu.memory_space<vmem>>, vector<18x1x32xbf16>,
    %c0_7 = arith.constant 0 : index
    %c24 = arith.constant 24 : index
    %c0_8 = arith.constant 0 : index
    %5 = vector.load %arg9[%c0_7, %c24, %c0_8] : memref<18x32x32xbf16, #tpu.memory_space<vmem>>, vector<18x1x32xbf16>
    tpu.vector_store %arg9[%c0_7, %c24, %c0_8], %1 {strides = array<i32>} : memref<18x32x32xbf16, #tpu.memory_space<vmem>>, vector<18x1x32xbf16>,
    %c0_9 = arith.constant 0 : index
    %c0_10 = arith.constant 0 : index
    %c0_11 = arith.constant 0 : index
    %c0_12 = arith.constant 0 : index
    %6 = vector.load %arg1[%c0_9, %c0_10, %c0_11, %c0_12] : memref<1x16x16x32xf32, #tpu.memory_space<vmem>>, vector<1x16x16x32xf32>
    %7 = vector.shape_cast %6 : vector<1x16x16x32xf32> to vector<16x16x32xf32>
    %8 = arith.truncf %7 : vector<16x16x32xf32> to vector<16x16x32xbf16>
    %c1 = arith.constant 1 : index
    %c8 = arith.constant 8 : index
    %c0_13 = arith.constant 0 : index
    %9 = vector.load %arg9[%c1, %c8, %c0_13] : memref<18x32x32xbf16, #tpu.memory_space<vmem>>, vector<16x16x32xbf16>
    tpu.vector_store %arg9[%c1, %c8, %c0_13], %8 {strides = array<i32>} : memref<18x32x32xbf16, #tpu.memory_space<vmem>>, vector<16x16x32xbf16>,
    %c0_14 = arith.constant 0 : index
    %c0_15 = arith.constant 0 : index
    %c0_16 = arith.constant 0 : index
    %10 = vector.load %arg9[%c0_14, %c0_15, %c0_16] : memref<18x32x32xbf16, #tpu.memory_space<vmem>>, vector<18x32x32xbf16>
    %11 = vector.extract_strided_slice %10 {offsets = [0, 0, 0], sizes = [16, 32, 32], strides = [1, 1, 1]} : vector<18x32x32xbf16> to vector<16x32x32xbf16>
    %12 = vector.extract_strided_slice %11 {offsets = [0, 7, 0], sizes = [16, 16, 32], strides = [1, 1, 1]} : vector<16x32x32xbf16> to vector<16x16x32xbf16>
    %13 = vector.extract_strided_slice %11 {offsets = [0, 8, 0], sizes = [16, 16, 32], strides = [1, 1, 1]} : vector<16x32x32xbf16> to vector<16x16x32xbf16>
    %14 = vector.extract_strided_slice %11 {offsets = [0, 9, 0], sizes = [16, 16, 32], strides = [1, 1, 1]} : vector<16x32x32xbf16> to vector<16x16x32xbf16>
    %15 = vector.extract_strided_slice %10 {offsets = [1, 0, 0], sizes = [16, 32, 32], strides = [1, 1, 1]} : vector<18x32x32xbf16> to vector<16x32x32xbf16>
    %16 = vector.extract_strided_slice %15 {offsets = [0, 7, 0], sizes = [16, 16, 32], strides = [1, 1, 1]} : vector<16x32x32xbf16> to vector<16x16x32xbf16>
    %17 = vector.extract_strided_slice %15 {offsets = [0, 8, 0], sizes = [16, 16, 32], strides = [1, 1, 1]} : vector<16x32x32xbf16> to vector<16x16x32xbf16>
    %18 = vector.extract_strided_slice %15 {offsets = [0, 9, 0], sizes = [16, 16, 32], strides = [1, 1, 1]} : vector<16x32x32xbf16> to vector<16x16x32xbf16>
    %19 = vector.extract_strided_slice %10 {offsets = [2, 0, 0], sizes = [16, 32, 32], strides = [1, 1, 1]} : vector<18x32x32xbf16> to vector<16x32x32xbf16>
    %20 = vector.extract_strided_slice %19 {offsets = [0, 7, 0], sizes = [16, 16, 32], strides = [1, 1, 1]} : vector<16x32x32xbf16> to vector<16x16x32xbf16>
    %21 = vector.extract_strided_slice %19 {offsets = [0, 8, 0], sizes = [16, 16, 32], strides = [1, 1, 1]} : vector<16x32x32xbf16> to vector<16x16x32xbf16>
    %22 = vector.extract_strided_slice %19 {offsets = [0, 9, 0], sizes = [16, 16, 32], strides = [1, 1, 1]} : vector<16x32x32xbf16> to vector<16x16x32xbf16>
    %23 = tpu.concatenate %12, %13, %14, %16, %17, %18, %20, %21, %22 in 2 : vector<16x16x32xbf16>, vector<16x16x32xbf16>, vector<16x16x32xbf16>, vector<16x16x32xbf16>, vector<16x16x32xbf16>, vector<16x16x32xbf16>, vector<16x16x32xbf16>, vector<16x16x32xbf16>, vector<16x16x32xbf16> -> vector<16x16x288xbf16>
    %24 = vector.shape_cast %23 : vector<16x16x288xbf16> to vector<256x288xbf16>
    %c0_17 = arith.constant 0 : index
    %c0_18 = arith.constant 0 : index
    %c0_19 = arith.constant 0 : index
    %25 = vector.load %arg2[%c0_17, %c0_18, %c0_19] : memref<3x288x32xbf16, #tpu.memory_space<vmem>>, vector<1x288x32xbf16>
    %26 = vector.shape_cast %25 : vector<1x288x32xbf16> to vector<288x32xbf16>
    %cst_20 = arith.constant dense<0.000000e+00> : vector<256x32xf32>
    %27 = tpu.matmul %24, %26, %cst_20 {dimension_numbers = #tpu.dot_dimension_numbers<[1], [0], [0], [1], [0, 0, 1, 1], [], []>} : vector<256x288xbf16>, vector<288x32xbf16>, vector<256x32xf32> -> vector<256x32xf32>
    %c0_21 = arith.constant 0 : index
    %c0_22 = arith.constant 0 : index
    %c0_23 = arith.constant 0 : index
    %28 = vector.load %arg3[%c0_21, %c0_22, %c0_23] : memref<3x1x32xf32, #tpu.memory_space<vmem>>, vector<1x1x32xf32>
    %29 = vector.shape_cast %28 : vector<1x1x32xf32> to vector<1x32xf32>
    %30 = vector.broadcast %29 : vector<1x32xf32> to vector<256x32xf32>
    %31 = arith.addf %27, %30 : vector<256x32xf32>
    %cst_24 = arith.constant 0.000000e+00 : f32
    %32 = vector.broadcast %cst_24 : f32 to vector<256x32xf32>
    %33 = arith.maximumf %31, %32 : vector<256x32xf32>
    %34 = vector.shape_cast %33 : vector<256x32xf32> to vector<16x16x32xf32>
    %35 = arith.truncf %34 : vector<16x16x32xf32> to vector<16x16x32xbf16>
    %c1_25 = arith.constant 1 : index
    %c8_26 = arith.constant 8 : index
    %c0_27 = arith.constant 0 : index
    %36 = vector.load %arg9[%c1_25, %c8_26, %c0_27] : memref<18x32x32xbf16, #tpu.memory_space<vmem>>, vector<16x16x32xbf16>
    tpu.vector_store %arg9[%c1_25, %c8_26, %c0_27], %35 {strides = array<i32>} : memref<18x32x32xbf16, #tpu.memory_space<vmem>>, vector<16x16x32xbf16>,
    %c0_28 = arith.constant 0 : index
    %c0_29 = arith.constant 0 : index
    %c0_30 = arith.constant 0 : index
    %37 = vector.load %arg9[%c0_28, %c0_29, %c0_30] : memref<18x32x32xbf16, #tpu.memory_space<vmem>>, vector<18x32x32xbf16>
    %38 = vector.extract_strided_slice %37 {offsets = [0, 0, 0], sizes = [16, 32, 32], strides = [1, 1, 1]} : vector<18x32x32xbf16> to vector<16x32x32xbf16>
    %39 = vector.extract_strided_slice %38 {offsets = [0, 7, 0], sizes = [16, 16, 32], strides = [1, 1, 1]} : vector<16x32x32xbf16> to vector<16x16x32xbf16>
    %40 = vector.extract_strided_slice %38 {offsets = [0, 8, 0], sizes = [16, 16, 32], strides = [1, 1, 1]} : vector<16x32x32xbf16> to vector<16x16x32xbf16>
    %41 = vector.extract_strided_slice %38 {offsets = [0, 9, 0], sizes = [16, 16, 32], strides = [1, 1, 1]} : vector<16x32x32xbf16> to vector<16x16x32xbf16>
    %42 = vector.extract_strided_slice %37 {offsets = [1, 0, 0], sizes = [16, 32, 32], strides = [1, 1, 1]} : vector<18x32x32xbf16> to vector<16x32x32xbf16>
    %43 = vector.extract_strided_slice %42 {offsets = [0, 7, 0], sizes = [16, 16, 32], strides = [1, 1, 1]} : vector<16x32x32xbf16> to vector<16x16x32xbf16>
    %44 = vector.extract_strided_slice %42 {offsets = [0, 8, 0], sizes = [16, 16, 32], strides = [1, 1, 1]} : vector<16x32x32xbf16> to vector<16x16x32xbf16>
    %45 = vector.extract_strided_slice %42 {offsets = [0, 9, 0], sizes = [16, 16, 32], strides = [1, 1, 1]} : vector<16x32x32xbf16> to vector<16x16x32xbf16>
    %46 = vector.extract_strided_slice %37 {offsets = [2, 0, 0], sizes = [16, 32, 32], strides = [1, 1, 1]} : vector<18x32x32xbf16> to vector<16x32x32xbf16>
    %47 = vector.extract_strided_slice %46 {offsets = [0, 7, 0], sizes = [16, 16, 32], strides = [1, 1, 1]} : vector<16x32x32xbf16> to vector<16x16x32xbf16>
    %48 = vector.extract_strided_slice %46 {offsets = [0, 8, 0], sizes = [16, 16, 32], strides = [1, 1, 1]} : vector<16x32x32xbf16> to vector<16x16x32xbf16>
    %49 = vector.extract_strided_slice %46 {offsets = [0, 9, 0], sizes = [16, 16, 32], strides = [1, 1, 1]} : vector<16x32x32xbf16> to vector<16x16x32xbf16>
    %50 = tpu.concatenate %39, %40, %41, %43, %44, %45, %47, %48, %49 in 2 : vector<16x16x32xbf16>, vector<16x16x32xbf16>, vector<16x16x32xbf16>, vector<16x16x32xbf16>, vector<16x16x32xbf16>, vector<16x16x32xbf16>, vector<16x16x32xbf16>, vector<16x16x32xbf16>, vector<16x16x32xbf16> -> vector<16x16x288xbf16>
    %51 = vector.shape_cast %50 : vector<16x16x288xbf16> to vector<256x288xbf16>
    %c1_31 = arith.constant 1 : index
    %c0_32 = arith.constant 0 : index
    %c0_33 = arith.constant 0 : index
    %52 = vector.load %arg2[%c1_31, %c0_32, %c0_33] : memref<3x288x32xbf16, #tpu.memory_space<vmem>>, vector<1x288x32xbf16>
    %53 = vector.shape_cast %52 : vector<1x288x32xbf16> to vector<288x32xbf16>
    %cst_34 = arith.constant dense<0.000000e+00> : vector<256x32xf32>
    %54 = tpu.matmul %51, %53, %cst_34 {dimension_numbers = #tpu.dot_dimension_numbers<[1], [0], [0], [1], [0, 0, 1, 1], [], []>} : vector<256x288xbf16>, vector<288x32xbf16>, vector<256x32xf32> -> vector<256x32xf32>
    %c1_35 = arith.constant 1 : index
    %c0_36 = arith.constant 0 : index
    %c0_37 = arith.constant 0 : index
    %55 = vector.load %arg3[%c1_35, %c0_36, %c0_37] : memref<3x1x32xf32, #tpu.memory_space<vmem>>, vector<1x1x32xf32>
    %56 = vector.shape_cast %55 : vector<1x1x32xf32> to vector<1x32xf32>
    %57 = vector.broadcast %56 : vector<1x32xf32> to vector<256x32xf32>
    %58 = arith.addf %54, %57 : vector<256x32xf32>
    %cst_38 = arith.constant 0.000000e+00 : f32
    %59 = vector.broadcast %cst_38 : f32 to vector<256x32xf32>
    %60 = arith.maximumf %58, %59 : vector<256x32xf32>
    %61 = vector.shape_cast %60 : vector<256x32xf32> to vector<16x16x32xf32>
    %62 = arith.truncf %61 : vector<16x16x32xf32> to vector<16x16x32xbf16>
    %c1_39 = arith.constant 1 : index
    %c8_40 = arith.constant 8 : index
    %c0_41 = arith.constant 0 : index
    %63 = vector.load %arg9[%c1_39, %c8_40, %c0_41] : memref<18x32x32xbf16, #tpu.memory_space<vmem>>, vector<16x16x32xbf16>
    tpu.vector_store %arg9[%c1_39, %c8_40, %c0_41], %62 {strides = array<i32>} : memref<18x32x32xbf16, #tpu.memory_space<vmem>>, vector<16x16x32xbf16>,
    %c0_42 = arith.constant 0 : index
    %c0_43 = arith.constant 0 : index
    %c0_44 = arith.constant 0 : index
    %64 = vector.load %arg9[%c0_42, %c0_43, %c0_44] : memref<18x32x32xbf16, #tpu.memory_space<vmem>>, vector<18x32x32xbf16>
    %65 = vector.extract_strided_slice %64 {offsets = [0, 0, 0], sizes = [16, 32, 32], strides = [1, 1, 1]} : vector<18x32x32xbf16> to vector<16x32x32xbf16>
    %66 = vector.extract_strided_slice %65 {offsets = [0, 7, 0], sizes = [16, 16, 32], strides = [1, 1, 1]} : vector<16x32x32xbf16> to vector<16x16x32xbf16>
    %67 = vector.extract_strided_slice %65 {offsets = [0, 8, 0], sizes = [16, 16, 32], strides = [1, 1, 1]} : vector<16x32x32xbf16> to vector<16x16x32xbf16>
    %68 = vector.extract_strided_slice %65 {offsets = [0, 9, 0], sizes = [16, 16, 32], strides = [1, 1, 1]} : vector<16x32x32xbf16> to vector<16x16x32xbf16>
    %69 = vector.extract_strided_slice %64 {offsets = [1, 0, 0], sizes = [16, 32, 32], strides = [1, 1, 1]} : vector<18x32x32xbf16> to vector<16x32x32xbf16>
    %70 = vector.extract_strided_slice %69 {offsets = [0, 7, 0], sizes = [16, 16, 32], strides = [1, 1, 1]} : vector<16x32x32xbf16> to vector<16x16x32xbf16>
    %71 = vector.extract_strided_slice %69 {offsets = [0, 8, 0], sizes = [16, 16, 32], strides = [1, 1, 1]} : vector<16x32x32xbf16> to vector<16x16x32xbf16>
    %72 = vector.extract_strided_slice %69 {offsets = [0, 9, 0], sizes = [16, 16, 32], strides = [1, 1, 1]} : vector<16x32x32xbf16> to vector<16x16x32xbf16>
    %73 = vector.extract_strided_slice %64 {offsets = [2, 0, 0], sizes = [16, 32, 32], strides = [1, 1, 1]} : vector<18x32x32xbf16> to vector<16x32x32xbf16>
    %74 = vector.extract_strided_slice %73 {offsets = [0, 7, 0], sizes = [16, 16, 32], strides = [1, 1, 1]} : vector<16x32x32xbf16> to vector<16x16x32xbf16>
    %75 = vector.extract_strided_slice %73 {offsets = [0, 8, 0], sizes = [16, 16, 32], strides = [1, 1, 1]} : vector<16x32x32xbf16> to vector<16x16x32xbf16>
    %76 = vector.extract_strided_slice %73 {offsets = [0, 9, 0], sizes = [16, 16, 32], strides = [1, 1, 1]} : vector<16x32x32xbf16> to vector<16x16x32xbf16>
    %77 = tpu.concatenate %66, %67, %68, %70, %71, %72, %74, %75, %76 in 2 : vector<16x16x32xbf16>, vector<16x16x32xbf16>, vector<16x16x32xbf16>, vector<16x16x32xbf16>, vector<16x16x32xbf16>, vector<16x16x32xbf16>, vector<16x16x32xbf16>, vector<16x16x32xbf16>, vector<16x16x32xbf16> -> vector<16x16x288xbf16>
    %78 = vector.shape_cast %77 : vector<16x16x288xbf16> to vector<256x288xbf16>
    %c2 = arith.constant 2 : index
    %c0_45 = arith.constant 0 : index
    %c0_46 = arith.constant 0 : index
    %79 = vector.load %arg2[%c2, %c0_45, %c0_46] : memref<3x288x32xbf16, #tpu.memory_space<vmem>>, vector<1x288x32xbf16>
    %80 = vector.shape_cast %79 : vector<1x288x32xbf16> to vector<288x32xbf16>
    %cst_47 = arith.constant dense<0.000000e+00> : vector<256x32xf32>
    %81 = tpu.matmul %78, %80, %cst_47 {dimension_numbers = #tpu.dot_dimension_numbers<[1], [0], [0], [1], [0, 0, 1, 1], [], []>} : vector<256x288xbf16>, vector<288x32xbf16>, vector<256x32xf32> -> vector<256x32xf32>
    %c2_48 = arith.constant 2 : index
    %c0_49 = arith.constant 0 : index
    %c0_50 = arith.constant 0 : index
    %82 = vector.load %arg3[%c2_48, %c0_49, %c0_50] : memref<3x1x32xf32, #tpu.memory_space<vmem>>, vector<1x1x32xf32>
    %83 = vector.shape_cast %82 : vector<1x1x32xf32> to vector<1x32xf32>
    %84 = vector.broadcast %83 : vector<1x32xf32> to vector<256x32xf32>
    %85 = arith.addf %81, %84 : vector<256x32xf32>
    %cst_51 = arith.constant 0.000000e+00 : f32
    %86 = vector.broadcast %cst_51 : f32 to vector<256x32xf32>
    %87 = arith.maximumf %85, %86 : vector<256x32xf32>
    %88 = vector.shape_cast %87 : vector<256x32xf32> to vector<16x16x32xf32>
    %89 = arith.truncf %88 : vector<16x16x32xf32> to vector<16x16x32xbf16>
    %90 = vector.shape_cast %89 : vector<16x16x32xbf16> to vector<256x32xbf16>
    %cst_52 = arith.constant 0.000000e+00 : f32
    %91 = vector.broadcast %cst_52 : f32 to vector<256x128xf32>
    %c0_53 = arith.constant 0 : index
    %c0_54 = arith.constant 0 : index
    %92 = vector.load %arg4[%c0_53, %c0_54] : memref<32x1024xbf16, #tpu.memory_space<vmem>>, vector<32x256xbf16>
    %cst_55 = arith.constant dense<0.000000e+00> : vector<256x256xf32>
    %93 = tpu.matmul %90, %92, %cst_55 {dimension_numbers = #tpu.dot_dimension_numbers<[1], [0], [0], [1], [0, 0, 1, 1], [], []>} : vector<256x32xbf16>, vector<32x256xbf16>, vector<256x256xf32> -> vector<256x256xf32>
    %c0_56 = arith.constant 0 : index
    %c0_57 = arith.constant 0 : index
    %94 = vector.load %arg5[%c0_56, %c0_57] : memref<1x1024xf32, #tpu.memory_space<vmem>>, vector<1x256xf32>
    %95 = vector.broadcast %94 : vector<1x256xf32> to vector<256x256xf32>
    %96 = arith.addf %93, %95 : vector<256x256xf32>
    %cst_58 = arith.constant 0.000000e+00 : f32
    %97 = vector.broadcast %cst_58 : f32 to vector<256x256xf32>
    %98 = arith.maximumf %96, %97 : vector<256x256xf32>
    %99 = arith.truncf %98 : vector<256x256xf32> to vector<256x256xbf16>
    %c0_59 = arith.constant 0 : index
    %c0_60 = arith.constant 0 : index
    %100 = vector.load %arg6[%c0_59, %c0_60] : memref<1024x128xbf16, #tpu.memory_space<vmem>>, vector<256x128xbf16>
    %cst_61 = arith.constant dense<0.000000e+00> : vector<256x128xf32>
    %101 = tpu.matmul %99, %100, %cst_61 {dimension_numbers = #tpu.dot_dimension_numbers<[1], [0], [0], [1], [0, 0, 1, 1], [], []>} : vector<256x256xbf16>, vector<256x128xbf16>, vector<256x128xf32> -> vector<256x128xf32>
    %102 = arith.addf %91, %101 : vector<256x128xf32>
    %c0_62 = arith.constant 0 : index
    %c256 = arith.constant 256 : index
    %103 = vector.load %arg4[%c0_62, %c256] : memref<32x1024xbf16, #tpu.memory_space<vmem>>, vector<32x256xbf16>
    %cst_63 = arith.constant dense<0.000000e+00> : vector<256x256xf32>
    %104 = tpu.matmul %90, %103, %cst_63 {dimension_numbers = #tpu.dot_dimension_numbers<[1], [0], [0], [1], [0, 0, 1, 1], [], []>} : vector<256x32xbf16>, vector<32x256xbf16>, vector<256x256xf32> -> vector<256x256xf32>
    %c0_64 = arith.constant 0 : index
    %c256_65 = arith.constant 256 : index
    %105 = vector.load %arg5[%c0_64, %c256_65] : memref<1x1024xf32, #tpu.memory_space<vmem>>, vector<1x256xf32>
    %106 = vector.broadcast %105 : vector<1x256xf32> to vector<256x256xf32>
    %107 = arith.addf %104, %106 : vector<256x256xf32>
    %cst_66 = arith.constant 0.000000e+00 : f32
    %108 = vector.broadcast %cst_66 : f32 to vector<256x256xf32>
    %109 = arith.maximumf %107, %108 : vector<256x256xf32>
    %110 = arith.truncf %109 : vector<256x256xf32> to vector<256x256xbf16>
    %c256_67 = arith.constant 256 : index
    %c0_68 = arith.constant 0 : index
    %111 = vector.load %arg6[%c256_67, %c0_68] : memref<1024x128xbf16, #tpu.memory_space<vmem>>, vector<256x128xbf16>
    %cst_69 = arith.constant dense<0.000000e+00> : vector<256x128xf32>
    %112 = tpu.matmul %110, %111, %cst_69 {dimension_numbers = #tpu.dot_dimension_numbers<[1], [0], [0], [1], [0, 0, 1, 1], [], []>} : vector<256x256xbf16>, vector<256x128xbf16>, vector<256x128xf32> -> vector<256x128xf32>
    %113 = arith.addf %102, %112 : vector<256x128xf32>
    %c0_70 = arith.constant 0 : index
    %c512 = arith.constant 512 : index
    %114 = vector.load %arg4[%c0_70, %c512] : memref<32x1024xbf16, #tpu.memory_space<vmem>>, vector<32x256xbf16>
    %cst_71 = arith.constant dense<0.000000e+00> : vector<256x256xf32>
    %115 = tpu.matmul %90, %114, %cst_71 {dimension_numbers = #tpu.dot_dimension_numbers<[1], [0], [0], [1], [0, 0, 1, 1], [], []>} : vector<256x32xbf16>, vector<32x256xbf16>, vector<256x256xf32> -> vector<256x256xf32>
    %c0_72 = arith.constant 0 : index
    %c512_73 = arith.constant 512 : index
    %116 = vector.load %arg5[%c0_72, %c512_73] : memref<1x1024xf32, #tpu.memory_space<vmem>>, vector<1x256xf32>
    %117 = vector.broadcast %116 : vector<1x256xf32> to vector<256x256xf32>
    %118 = arith.addf %115, %117 : vector<256x256xf32>
    %cst_74 = arith.constant 0.000000e+00 : f32
    %119 = vector.broadcast %cst_74 : f32 to vector<256x256xf32>
    %120 = arith.maximumf %118, %119 : vector<256x256xf32>
    %121 = arith.truncf %120 : vector<256x256xf32> to vector<256x256xbf16>
    %c512_75 = arith.constant 512 : index
    %c0_76 = arith.constant 0 : index
    %122 = vector.load %arg6[%c512_75, %c0_76] : memref<1024x128xbf16, #tpu.memory_space<vmem>>, vector<256x128xbf16>
    %cst_77 = arith.constant dense<0.000000e+00> : vector<256x128xf32>
    %123 = tpu.matmul %121, %122, %cst_77 {dimension_numbers = #tpu.dot_dimension_numbers<[1], [0], [0], [1], [0, 0, 1, 1], [], []>} : vector<256x256xbf16>, vector<256x128xbf16>, vector<256x128xf32> -> vector<256x128xf32>
    %124 = arith.addf %113, %123 : vector<256x128xf32>
    %c0_78 = arith.constant 0 : index
    %c768 = arith.constant 768 : index
    %125 = vector.load %arg4[%c0_78, %c768] : memref<32x1024xbf16, #tpu.memory_space<vmem>>, vector<32x256xbf16>
    %cst_79 = arith.constant dense<0.000000e+00> : vector<256x256xf32>
    %126 = tpu.matmul %90, %125, %cst_79 {dimension_numbers = #tpu.dot_dimension_numbers<[1], [0], [0], [1], [0, 0, 1, 1], [], []>} : vector<256x32xbf16>, vector<32x256xbf16>, vector<256x256xf32> -> vector<256x256xf32>
    %c0_80 = arith.constant 0 : index
    %c768_81 = arith.constant 768 : index
    %127 = vector.load %arg5[%c0_80, %c768_81] : memref<1x1024xf32, #tpu.memory_space<vmem>>, vector<1x256xf32>
    %128 = vector.broadcast %127 : vector<1x256xf32> to vector<256x256xf32>
    %129 = arith.addf %126, %128 : vector<256x256xf32>
    %cst_82 = arith.constant 0.000000e+00 : f32
    %130 = vector.broadcast %cst_82 : f32 to vector<256x256xf32>
    %131 = arith.maximumf %129, %130 : vector<256x256xf32>
    %132 = arith.truncf %131 : vector<256x256xf32> to vector<256x256xbf16>
    %c768_83 = arith.constant 768 : index
    %c0_84 = arith.constant 0 : index
    %133 = vector.load %arg6[%c768_83, %c0_84] : memref<1024x128xbf16, #tpu.memory_space<vmem>>, vector<256x128xbf16>
    %cst_85 = arith.constant dense<0.000000e+00> : vector<256x128xf32>
    %134 = tpu.matmul %132, %133, %cst_85 {dimension_numbers = #tpu.dot_dimension_numbers<[1], [0], [0], [1], [0, 0, 1, 1], [], []>} : vector<256x256xbf16>, vector<256x128xbf16>, vector<256x128xf32> -> vector<256x128xf32>
    %135 = arith.addf %124, %134 : vector<256x128xf32>
    %c0_86 = arith.constant 0 : index
    %c0_87 = arith.constant 0 : index
    %136 = vector.load %arg7[%c0_86, %c0_87] : memref<1x128xf32, #tpu.memory_space<vmem>>, vector<1x128xf32>
    %137 = vector.broadcast %136 : vector<1x128xf32> to vector<256x128xf32>
    %138 = arith.addf %135, %137 : vector<256x128xf32>
    %139 = vector.shape_cast %138 : vector<256x128xf32> to vector<16x16x128xf32>
    %c0_88 = arith.constant 0 : index
    %c0_89 = arith.constant 0 : index
    %c0_90 = arith.constant 0 : index
    %c0_91 = arith.constant 0 : index
    %140 = vector.load %arg8[%c0_88, %c0_89, %c0_90, %c0_91] : memref<1x16x16x128xf32, #tpu.memory_space<vmem>>, vector<1x16x16x128xf32>
    %141 = vector.shape_cast %140 : vector<1x16x16x128xf32> to vector<16x16x128xf32>
    %142 = vector.shape_cast %139 : vector<16x16x128xf32> to vector<1x16x16x128xf32>
    tpu.vector_store %arg8[%c0_88, %c0_89, %c0_90, %c0_91], %142 {strides = array<i32>} : memref<1x16x16x128xf32, #tpu.memory_space<vmem>>, vector<1x16x16x128xf32>,
    return
  }
  func.func @transform_0(%arg0: i32) -> (i32, i32, i32, i32) {
    %c0_i32 = arith.constant 0 : i32
    %c0_i32_0 = arith.constant 0 : i32
    %c0_i32_1 = arith.constant 0 : i32
    %c0_i32_2 = arith.constant 0 : i32
    return %arg0, %c0_i32, %c0_i32_0, %c0_i32_1 : i32, i32, i32, i32
  }
  func.func @transform_1(%arg0: i32) -> (i32, i32, i32) {
    %c0_i32 = arith.constant 0 : i32
    %c0_i32_0 = arith.constant 0 : i32
    %c0_i32_1 = arith.constant 0 : i32
    %c0_i32_2 = arith.constant 0 : i32
    return %c0_i32, %c0_i32_0, %c0_i32_1 : i32, i32, i32
  }
  func.func @transform_2(%arg0: i32) -> (i32, i32, i32) {
    %c0_i32 = arith.constant 0 : i32
    %c0_i32_0 = arith.constant 0 : i32
    %c0_i32_1 = arith.constant 0 : i32
    %c0_i32_2 = arith.constant 0 : i32
    return %c0_i32, %c0_i32_0, %c0_i32_1 : i32, i32, i32
  }
  func.func @transform_3(%arg0: i32) -> (i32, i32) {
    %c0_i32 = arith.constant 0 : i32
    %c0_i32_0 = arith.constant 0 : i32
    %c0_i32_1 = arith.constant 0 : i32
    return %c0_i32, %c0_i32_0 : i32, i32
  }
  func.func @transform_4(%arg0: i32) -> (i32, i32) {
    %c0_i32 = arith.constant 0 : i32
    %c0_i32_0 = arith.constant 0 : i32
    %c0_i32_1 = arith.constant 0 : i32
    return %c0_i32, %c0_i32_0 : i32, i32
  }
  func.func @transform_5(%arg0: i32) -> (i32, i32) {
    %c0_i32 = arith.constant 0 : i32
    %c0_i32_0 = arith.constant 0 : i32
    %c0_i32_1 = arith.constant 0 : i32
    return %c0_i32, %c0_i32_0 : i32, i32
  }
  func.func @transform_6(%arg0: i32) -> (i32, i32) {
    %c0_i32 = arith.constant 0 : i32
    %c0_i32_0 = arith.constant 0 : i32
    %c0_i32_1 = arith.constant 0 : i32
    return %c0_i32, %c0_i32_0 : i32, i32
  }
  func.func @transform_7(%arg0: i32) -> (i32, i32, i32, i32) {
    %c0_i32 = arith.constant 0 : i32
    %c0_i32_0 = arith.constant 0 : i32
    %c0_i32_1 = arith.constant 0 : i32
    %c0_i32_2 = arith.constant 0 : i32
    return %arg0, %c0_i32, %c0_i32_0, %c0_i32_1 : i32, i32, i32, i32
  }
}

</mosaic_0001>

<bundles_post_ra>
// kernel: initial_stage_forward.1
= control target key start
LH: loop header
LB: loop body
LE: loop exit
PB: predicated region body
PF: predicated region fallthrough
CT: control target
= control target key end

     0   :  { %s13326_s24 = smov 0   ;;  %s19007_s0 = inlined_call_operand.vmem [shape: f32[2,16,16,32], index: 0, kind: input, shape index: {}]   ;;  %s19008_s1 = inlined_call_operand.vmem [shape: bf16[3,288,32], index: 1, kind: input, shape index: {}]   ;;  %s19009_s2 = inlined_call_operand.vmem [shape: f32[3,1,32], index: 2, kind: input, shape index: {}]   ;;  %s19010_s3 = inlined_call_operand.vmem [shape: bf16[32,1024], index: 3, kind: input, shape index: {}]   ;;  %s19011_s4 = inlined_call_operand.vmem [shape: f32[1,1024], index: 4, kind: input, shape index: {}]   ;;  %s19012_s5 = inlined_call_operand.vmem [shape: bf16[1024,128], index: 5, kind: input, shape index: {}]   ;;  %s19013_s6 = inlined_call_operand.vmem [shape: f32[1,128], index: 6, kind: input, shape index: {}]   ;;  %s19014_s7 = inlined_call_operand.vmem [shape: f32[2,16,16,128], index: 7, kind: output, shape index: {}]  }
   0x1 LB: > { %s11265_s25 = sadd.s32 4294967295, %s13280_s24   ;;  %p11269_p0 = scmp.ge.s32.totalorder %s13280_s24, 1  ;;  %s13280_s24 = sphi %s13326_s24, %s17_s24  }
   0x2   : > { %p237_p1 = scmp.lt.s32.totalorder %s13280_s24, 3 }
   0x4   : > { %p238_p2 = pnand %p11269_p0, %p237_p1 }
   0x6   : > { %241 = sbr.rel (%p238_p2) target bundleno = 2602 (0xa2a), region = 48 }
   0xb   : > { %vm280_vm0 = vcmask 257024   ;;  %vm290_vm1 = vcmask 257027   ;;  %vm347_vm2 = vcmask 253952   ;;  %v19015_v0 = vmov 0   ;;  %p269_p3 = scmp.lt.s32.totalorder %s11265_s25, 1  ;;  %v12999_v16 = vld [vmem:[%s19008_s1 + $0x78] sm:$0xff]  }
   0xc   : > { %282 = vst.msk [vmem:[#allocation2 + $0x4] sm:$0xf] %vm280_vm0, %v19015_v0  ;;  %283 = vst.msk [vmem:[#allocation2 + $0x8] sm:$0xf] %vm280_vm0, %v19015_v0  ;;  %vm291_vm3 = vsmask.f32 7950  ;;  %12010 = vmatprep.subr.bf16.mxu0 %v12999_v16 }
   0xd   : > { %281 = vst.msk [vmem:[#allocation2] sm:$0xf] %vm280_vm0, %v19015_v0  ;;  %284 = vst.msk [vmem:[#allocation2 + $0xc] sm:$0xf] %vm280_vm0, %v19015_v0  ;;  %v299_v1 = vld [vmem:[#allocation2 + $0x20] sm:$0x8] }
   0xe   : > { %286 = vst.msk [vmem:[#allocation2 + $0x110] sm:$0xf] %vm280_vm0, %v19015_v0  ;;  %287 = vst.msk [vmem:[#allocation2 + $0x114] sm:$0xf] %vm280_vm0, %v19015_v0  ;;  %v296_v3 = vld [vmem:[#allocation2 + $0x10] sm:$0x8] }
   0xf   : > { %288 = vst.msk [vmem:[#allocation2 + $0x118] sm:$0xf] %vm280_vm0, %v19015_v0  ;;  %289 = vst.msk [vmem:[#allocation2 + $0x11c] sm:$0xf] %vm280_vm0, %v19015_v0  ;;  %v302_v4 = vld [vmem:[#allocation2 + $0x30] sm:$0x8] }
  0x10   : > { %vm13350_vm4 = vmand %vm290_vm1, %vm291_vm3  ;;  %vm348_vm5 = vsmask.f32 256  ;;  %s19461_s25 = smov (!%p269_p3, %s11265_s25), 1  ;;  %v356_v9 = vld [vmem:[#allocation2 + $0x2c] sm:$0x1]  ;;  %s13283_s9 = smov 64  }
  0x11   : > { %v300_v5 = vsel %vm13350_vm4, 0, %v299_v1  ;;  %v297_v6 = vsel %vm13350_vm4, 0, %v296_v3  ;;  %v303_v7 = vsel %vm13350_vm4, 0, %v302_v4  ;;  %vm13363_vm6 = vmand %vm347_vm2, %vm348_vm5  ;;  %v353_v11 = vld [vmem:[#allocation2 + $0x1c] sm:$0x1]  ;;  %s11912_s26 = sshll.u32 %s19461_s25, 8 }
  0x12   : > { %301 = vst [vmem:[#allocation2 + $0x20] sm:$0x8] %v300_v5  ;;  %298 = vst [vmem:[#allocation2 + $0x10] sm:$0x8] %v297_v6  ;;  %v357_v10 = vsel %vm13363_vm6, 0, %v356_v9  ;;  %v354_v13 = vsel %vm13363_vm6, 0, %v353_v11  ;;  %s13382_s8 = scalar_lea.vmem %s19007_s0, %s11912_s26  ;;  %s18907_s21 = scalar_lea.vmem %s19014_s7, %s11912_s26 }
  0x13   : > { %304 = vst [vmem:[#allocation2 + $0x30] sm:$0x8] %v303_v7  ;;  %v359_v12 = vld [vmem:[#allocation2 + $0x3c] sm:$0x1]  ;;  %358 = vst [vmem:[#allocation2 + $0x2c] sm:$0x1] %v357_v10 }
  0x14   : > { %v360_v14 = vsel %vm13363_vm6, 0, %v359_v12  ;;  %v305_v15 = vld [vmem:[#allocation2 + $0x40] sm:$0x8]  ;;  %355 = vst [vmem:[#allocation2 + $0x1c] sm:$0x1] %v354_v13  ;;  %v407_v20 = vld [vmem:[%s13382_s8 + $0x18] sm:$0xff] }
  0x15   : > { %361 = vst [vmem:[#allocation2 + $0x3c] sm:$0x1] %v360_v14  ;;  %v306_v17 = vsel %vm13350_vm4, 0, %v305_v15  ;;  %v362_v18 = vld [vmem:[#allocation2 + $0x4c] sm:$0x1]  ;;  %v406_v21 = vld [vmem:[%s13382_s8 + $0x10] sm:$0xff]  ;;  %v11917_v27 = vpack.c.bf16 %v407_v20, %v407_v20 }
  0x16   : > { %v308_v19 = vld [vmem:[#allocation2 + $0x50] sm:$0x8]  ;;  %v404_v22 = vld [vmem:[%s13382_s8] sm:$0xff]  ;;  %307 = vst [vmem:[#allocation2 + $0x40] sm:$0x8] %v306_v17  ;;  %v363_v23 = vsel %vm13363_vm6, 0, %v362_v18  ;;  %v11916_v28 = vpack.c.bf16 %v406_v21, %v406_v21 }
  0x17   : > { %v309_v24 = vsel %vm13350_vm4, 0, %v308_v19  ;;  %v598_v25 = vld [vmem:[#allocation2 + $0x4] sm:$0xf]  ;;  %v599_v26 = vld [vmem:[#allocation2 + $0x8] sm:$0xf]  ;;  %v11914_v29 = vpack.c.bf16 %v404_v22, %v404_v22  ;;  %v410_v39 = vld [vmem:[%s13382_s8 + $0x30] sm:$0xff] }
  0x18   : > { %v405_v30 = vld [vmem:[%s13382_s8 + $0x8] sm:$0xff]  ;;  %364 = vst [vmem:[#allocation2 + $0x4c] sm:$0x1] %v363_v23  ;;  %310 = vst [vmem:[#allocation2 + $0x50] sm:$0x8] %v309_v24  ;;  %v13394_v31 = vcombine.low %v598_v25, %v599_v26  ;;  %v408_v33 = vld [vmem:[%s13382_s8 + $0x20] sm:$0xff]  ;;  %v11920_v45 = vpack.c.bf16 %v410_v39, %v410_v39 }
  0x19   : > { %v11915_v32 = vpack.c.bf16 %v405_v30, %v405_v30  ;;  %v409_v34 = vld [vmem:[%s13382_s8 + $0x28] sm:$0xff]  ;;  %568 = vst.msk [vmem:[#allocation2 + $0x28] sm:$0xf] %vm280_vm0, %v11917_v27  ;;  %567 = vst.msk [vmem:[#allocation2 + $0x24] sm:$0xf] %vm280_vm0, %v11916_v28  ;;  %v11918_v36 = vpack.c.bf16 %v408_v33, %v408_v33  ;;  %v411_v40 = vld [vmem:[%s13382_s8 + $0x38] sm:$0xff] }
  0x1a   : > { %v350_v35 = vld [vmem:[#allocation2 + $0xc] sm:$0x1]  ;;  %565 = vst.msk [vmem:[#allocation2 + $0x14] sm:$0xf] %vm280_vm0, %v11914_v29  ;;  %v11919_v37 = vpack.c.bf16 %v409_v34, %v409_v34  ;;  %v412_v41 = vld [vmem:[%s13382_s8 + $0x40] sm:$0xff]  ;;  %v1022_v42 = vrot.slane %v13394_v31, 5  ;;  %v11921_v47 = vpack.c.bf16 %v411_v40, %v411_v40 }
  0x1b   : > { %v351_v38 = vsel %vm13363_vm6, 0, %v350_v35  ;;  %v814_v43 = vshrl.u32 %v13394_v31, 16  ;;  %v817_v44 = vshll.u32 %v13394_v31, 16  ;;  %566 = vst.msk [vmem:[#allocation2 + $0x18] sm:$0xf] %vm280_vm0, %v11915_v32  ;;  %v413_v46 = vld [vmem:[%s13382_s8 + $0x48] sm:$0xff]  ;;  %v11922_v48 = vpack.c.bf16 %v412_v41, %v412_v41 }
  0x1c   : > { %352 = vst [vmem:[#allocation2 + $0xc] sm:$0x1] %v351_v38  ;;  %569 = vst.msk [vmem:[#allocation2 + $0x34] sm:$0xf] %vm280_vm0, %v11918_v36  ;;  %v11923_v49 = vpack.c.bf16 %v413_v46, %v413_v46  ;;  %1070 = vrot.lane.b32.xlu1 %v1022_v42, %s13283_s9  ;;  %v605_v53 = vld [vmem:[#allocation2 + $0x20] sm:$0xf] }
  0x1d   : > { %570 = vst.msk [vmem:[#allocation2 + $0x38] sm:$0xf] %vm280_vm0, %v11919_v37  ;;  %v816_v50 = vrot.slane %v814_v43, 4  ;;  %v819_v51 = vrot.slane %v817_v44, 5  ;;  %571 = vst.msk [vmem:[#allocation2 + $0x44] sm:$0xf] %vm280_vm0, %v11920_v45 }
  0x1e   : > { %572 = vst.msk [vmem:[#allocation2 + $0x48] sm:$0xf] %vm280_vm0, %v11921_v47  ;;  %573 = vst.msk [vmem:[#allocation2 + $0x54] sm:$0xf] %vm280_vm0, %v11922_v48  ;;  %v414_v54 = vld [vmem:[%s13382_s8 + $0x50] sm:$0xff]  ;;  %s13284_s10 = smov 32  }
  0x1f   : > { %574 = vst.msk [vmem:[#allocation2 + $0x58] sm:$0xf] %vm280_vm0, %v11923_v49  ;;  %v820_v52 = vor.u32 %v819_v51, %v816_v50  ;;  %v601_v55 = vld [vmem:[#allocation2 + $0x10] sm:$0xf]  ;;  %v11924_v56 = vpack.c.bf16 %v414_v54, %v414_v54  ;;  %v12979_v9 = vld [vmem:[#allocation2 + $0x2c] ss:$0 sps:$4 sm:$0xff]  }
  0x20   : > { %v607_v57 = vld [vmem:[#allocation2 + $0x28] sm:$0xf]  ;;  %v606_v58 = vld [vmem:[#allocation2 + $0x24] sm:$0xf]  ;;  %v609_v4 = vld [vmem:[#allocation2 + $0x30] sm:$0xf] }
  0x21   : > { %941 = vrot.lane.b32.xlu1 %v820_v52, %s13284_s10  ;;  %v602_v59 = vld [vmem:[#allocation2 + $0x14] sm:$0xf]  ;;  %v13422_v60 = vcombine.low %v607_v57, %v607_v57  ;;  %v13424_v61 = vcombine.low %v605_v53, %v606_v58  ;;  %575 = vst.msk [vmem:[#allocation2 + $0x64] sm:$0xf] %vm280_vm0, %v11924_v56  ;;  %v11340_v5 = vcombine.low %v606_v58, %v607_v57  ;;  %v12980_v10 = vld [vmem:[#allocation2 + $0x1c] ss:$0 sps:$4 sm:$0xff]  }
  0x22   : > { %v603_v62 = vld [vmem:[#allocation2 + $0x18] sm:$0xf]  ;;  %v13429_v63 = vcombine.low %v601_v55, %v602_v59  ;;  %s13285_s11 = smov 96   ;;  %v365_v18 = vld [vmem:[#allocation2 + $0x5c] sm:$0x1]  ;;  %v13002_v19 = vld [vmem:[%s19008_s1 + $0x70] sm:$0xff]  }
  0x23   : > { %1295 = vrot.lane.b32.xlu0 %v13422_v60, %s13283_s9  ;;  %v11339_v1 = vcombine.low %v602_v59, %v603_v62  ;;  %v13433_v3 = vcombine.low %v603_v62, %v603_v62  ;;  %v610_v6 = vld [vmem:[#allocation2 + $0x34] sm:$0xf]  ;;  %v13441_v12 = vld [vmem:[#allocation2 + $0xc] ss:$0 sps:$4 sm:$0xff]   ;;  %v13000_v13 = vld [vmem:[%s19008_s1 + $0x38] sm:$0xff]   ;;  %v830_v16 = vshrl.u32 %v11340_v5, 16 }
  0x24   : > { %v13435_v7 = vld [vmem:[#allocation2 + $0x38] sm:$0xf]  ;;  %v13448_v14 = vcombine.low %v609_v4, %v610_v6  ;;  %v833_v17 = vshll.u32 %v11340_v5, 16  ;;  %v13456_v20 = vrot.slane %v11340_v5, 5  ;;  %v1029_v21 = vrot.slane %v12979_v9, 5  ;;  %12011 = vmatpush3.bf16.msra.mxu0 %v13000_v13  ;;  %v13003_v22 = vld [vmem:[%s19008_s1 + $0x30] sm:$0xff]  }
  0x25   : > { %1293 = vrot.lane.b32.xlu1 %v13424_v61, %s13283_s9  ;;  %v13439_v11 = vrot.slane %v11339_v1, 5  ;;  %v13451_v15 = vcombine.low %v610_v6, %v13435_v7  ;;  %vm1021_vm7 = vcmask 1042432   ;;  %v1026_v23 = vrot.slane %v12980_v10, 5  ;;  %12012 = vmatprep.subr.bf16.mxu0 %v13002_v19  ;;  %v415_v32 = vld [vmem:[%s13382_s8 + $0x58] sm:$0xff]  ;;  %v13006_v33 = vld [vmem:[%s19008_s1 + $0x68] sm:$0xff]   ;;  %v416_v38 = vld [vmem:[%s13382_s8 + $0x60] sm:$0xff] }
  0x26   : > { %19160 = vst [vmem:[#allocation3_spill] sm:$0xff] %v13456_v20  ;;  %v1023_v24 = vrot.slane %v13441_v12, 5  ;;  %v822_v25 = vshrl.u32 %v11339_v1, 16  ;;  %v825_v26 = vshll.u32 %v11339_v1, 16  ;;  %v366_v27 = vsel %vm13363_vm6, 0, %v365_v18  ;;  %v417_v40 = vld [vmem:[%s13382_s8 + $0x68] sm:$0xff] }
  0x27   : > { %1142 = vrot.lane.b32.xlu0 %v13429_v63, %s13285_s11  ;;  %v832_v28 = vrot.slane %v830_v16, 4  ;;  %v835_v29 = vrot.slane %v833_v17, 5  ;;  %v838_v30 = vshrl.u32 %v13451_v15, 16  ;;  %367 = vst [vmem:[#allocation2 + $0x5c] sm:$0x1] %v366_v27  ;;  %v13475_v34 = vsel %vm1021_vm7, %v13456_v20, %v1029_v21  ;;  %v418_v43 = vld [vmem:[%s13382_s8 + $0x70] sm:$0xff] }
  0x28   : > { %19161 = vst [vmem:[#allocation4_spill] sm:$0xff] %v13475_v34  ;;  %v311_v35 = vld [vmem:[#allocation2 + $0x60] sm:$0x8]  ;;  %v368_v36 = vld [vmem:[#allocation2 + $0x6c] sm:$0x1]  ;;  %12013 = vmatpush3.bf16.msra.mxu0 %v13003_v22  ;;  %v841_v39 = vshll.u32 %v13451_v15, 16  ;;  %v13491_v48 = vsel %vm1021_vm7, %v13439_v11, %v1026_v23  ;;  %v11925_v53 = vpack.c.bf16 %v415_v32, %v415_v32  ;;  %v11926_v62 = vpack.c.bf16 %v416_v38, %v416_v38 }
  0x29   : > { %1144 = vrot.lane.b32.xlu1 %v13433_v3, %s13285_s11  ;;  %v314_v37 = vld [vmem:[#allocation2 + $0x70] sm:$0x8]  ;;  %v293_v41 = vld [vmem:[#allocation2] sm:$0x8]  ;;  %12014 = vmatprep.subr.bf16.mxu0 %v13006_v33  ;;  %v824_v44 = vrot.slane %v822_v25, 4  ;;  %v827_v45 = vrot.slane %v825_v26, 5  ;;  %v13493_v49 = vor.u32 %v835_v29, %v832_v28  ;;  %v11927_v4 = vpack.c.bf16 %v417_v40, %v417_v40 }
  0x2a   : > { %v419_v46 = vld [vmem:[%s13382_s8 + $0x78] sm:$0xff]  ;;  %v13007_v47 = vld [vmem:[%s19008_s1 + $0x28] sm:$0xff]   ;;  %v312_v50 = vsel %vm13350_vm4, 0, %v311_v35  ;;  %v13008_v52 = vld [vmem:[%s19008_s1 + $0x60] sm:$0xff]   ;;  %v369_v54 = vsel %vm13363_vm6, 0, %v368_v36  ;;  %v840_v57 = vrot.slane %v838_v30, 4  ;;  %v11928_v9 = vpack.c.bf16 %v418_v43, %v418_v43 }
  0x2b   : > { %1221 = vrot.lane.b32.xlu0 %v13439_v11, %s13284_s10  ;;  %v371_v51 = vld [vmem:[#allocation2 + $0x7c] sm:$0x1]  ;;  %313 = vst [vmem:[#allocation2 + $0x60] sm:$0x8] %v312_v50  ;;  %v317_v55 = vld [vmem:[#allocation2 + $0x80] sm:$0x8]  ;;  %v1024_v10 = vsel %vm1021_vm7, %v1022_v42, %v1023_v24  ;;  %v11929_v13 = vpack.c.bf16 %v419_v46, %v419_v46  ;;  %v13535_v42 = vor.u32 %v827_v45, %v824_v44 }
  0x2c   : > { %12015 = vmatpush3.bf16.msra.mxu0 %v13007_v47  ;;  %v13009_v56 = vld [vmem:[%s19008_s1 + $0x20] sm:$0xff]   ;;  %v843_v58 = vrot.slane %v841_v39, 5  ;;  %370 = vst [vmem:[#allocation2 + $0x6c] sm:$0x1] %v369_v54  ;;  %v315_v59 = vsel %vm13350_vm4, 0, %v314_v37  ;;  %v13010_v1 = vld [vmem:[%s19008_s1 + $0x58] sm:$0xff]   ;;  %v13545_v19 = vcombine.low %v13435_v7, %v13435_v7 }
  0x2d   : > { %1297 = vrot.lane.b32.xlu1 %v13448_v14, %s13283_s9  ;;  %12016 = vmatprep.subr.bf16.mxu0 %v13008_v52  ;;  %576 = vst.msk [vmem:[#allocation2 + $0x68] sm:$0xf] %vm280_vm0, %v11925_v53  ;;  %316 = vst [vmem:[#allocation2 + $0x70] sm:$0x8] %v315_v59  ;;  %v294_v5 = vsel %vm13350_vm4, 0, %v293_v41  ;;  %v372_v6 = vsel %vm13363_vm6, 0, %v371_v51 }
  0x2e   : > { %577 = vst.msk [vmem:[#allocation2 + $0x74] sm:$0xf] %vm280_vm0, %v11926_v62  ;;  %295 = vst [vmem:[#allocation2] sm:$0x8] %v294_v5  ;;  %v318_v12 = vsel %vm13350_vm4, 0, %v317_v55  ;;  %v13012_v16 = vld [vmem:[%s19008_s1 + $0x18] sm:$0xff]   ;;  %v13539_v17 = vor.u32 %v843_v58, %v840_v57 }
  0x2f   : > { %1225 = vrot.lane.b32.xlu0 %v13456_v20, %s13284_s10  ;;  %373 = vst [vmem:[#allocation2 + $0x7c] sm:$0x1] %v372_v6  ;;  %578 = vst.msk [vmem:[#allocation2 + $0x78] sm:$0xf] %vm280_vm0, %v11927_v4  ;;  %v13013_v31 = vld [vmem:[%s19008_s1 + $0x50] sm:$0xff]   ;;  %v13555_v22 = vrot.slane %v13451_v15, 5 }
  0x30   : > { %319 = vst [vmem:[#allocation2 + $0x80] sm:$0x8] %v318_v12  ;;  %579 = vst.msk [vmem:[#allocation2 + $0x84] sm:$0xf] %vm280_vm0, %v11928_v9  ;;  %12017 = vmatpush3.bf16.msra.mxu0 %v13009_v56  ;;  %v12983_v18 = vld [vmem:[#allocation2 + $0x3c] ss:$0 sps:$4 sm:$0xff]  }
  0x31   : > { %1227 = vrot.lane.b32.xlu1 %v13475_v34, %s13284_s10  ;;  %580 = vst.msk [vmem:[#allocation2 + $0x88] sm:$0xf] %vm280_vm0, %v11929_v13  ;;  %12018 = vmatprep.subr.bf16.mxu0 %v13010_v1  ;;  %v13014_v21 = vld [vmem:[%s19008_s1 + $0x10] sm:$0xff]   ;;  %19162 = vst [vmem:[#allocation5_spill] sm:$0xff] %v13555_v22  ;;  %v1032_v23 = vrot.slane %v12983_v18, 5  ;;  %v13016_v7 = vld [vmem:[%s19008_s1 + $0x48] sm:$0xff]  }
  0x32   : > { %v614_v24 = vld [vmem:[#allocation2 + $0x44] sm:$0xf]  ;;  %v13017_v25 = vld [vmem:[%s19008_s1 + $0x8] sm:$0xff]   ;;  %v613_v15 = vld [vmem:[#allocation2 + $0x40] sm:$0xf]  ;;  %vm1404_vm9 = vcmask 261120  }
  0x33   : > { %1223 = vrot.lane.b32.xlu0 %v13491_v48, %s13284_s10  ;;  %v420_v27 = vld [vmem:[%s13382_s8 + $0x80] sm:$0xff]  ;;  %v13571_v28 = vsel %vm1021_vm7, %v13555_v22, %v1032_v23  ;;  %v374_v29 = vld [vmem:[#allocation2 + $0x8c] sm:$0x1]  ;;  %v13584_v38 = vcombine.low %v613_v15, %v614_v24  ;;  %v320_v39 = vld [vmem:[#allocation2 + $0x90] sm:$0x8]  ;;  %vm1485_vm10 = vcmask 523264  }
  0x34   : > { %12019 = vmatpush3.bf16.msra.mxu0 %v13012_v16  ;;  %19163 = vst [vmem:[#allocation6_spill] sm:$0xff] %v13571_v28  ;;  %v421_v30 = vld [vmem:[%s13382_s8 + $0x88] sm:$0xff]  ;;  %v11930_v32 = vpack.c.bf16 %v420_v27, %v420_v27  ;;  %v13020_v33 = vld [vmem:[%s19008_s1 + $0x40] sm:$0xff]   ;;  %v375_v37 = vsel %vm13363_vm6, 0, %v374_v29  ;;  %v321_v41 = vsel %vm13350_vm4, 0, %v320_v39  ;;  %v422_v51 = vld [vmem:[%s13382_s8 + $0x90] sm:$0xff] }
  0x35   : > { %1366 = vrot.lane.b32.xlu1 %v13493_v49, %s13285_s11  ;;  %12020 = vmatprep.subr.bf16.mxu0 %v13013_v31  ;;  %376 = vst [vmem:[#allocation2 + $0x8c] sm:$0x1] %v375_v37  ;;  %v11931_v40 = vpack.c.bf16 %v421_v30, %v421_v30  ;;  %v13021_v43 = vld [vmem:[%s19008_s1] sm:$0xff]   ;;  %322 = vst [vmem:[#allocation2 + $0x90] sm:$0x8] %v321_v41  ;;  %v423_v52 = vld [vmem:[%s13382_s8 + $0x98] sm:$0xff]  ;;  %v11932_v54 = vpack.c.bf16 %v422_v51, %v422_v51 }
  0x36   : > { %581 = vst.msk [vmem:[#allocation2 + $0x94] sm:$0xf] %vm280_vm0, %v11930_v32  ;;  %v377_v46 = vld [vmem:[#allocation2 + $0x9c] sm:$0x1]  ;;  %v323_v47 = vld [vmem:[#allocation2 + $0xa0] sm:$0x8]  ;;  %v11933_v55 = vpack.c.bf16 %v423_v52, %v423_v52 }
  0x37   : > { %1072 = vrot.lane.b32.xlu0 %v1024_v10, %s13283_s9  ;;  %582 = vst.msk [vmem:[#allocation2 + $0x98] sm:$0xf] %vm280_vm0, %v11931_v40  ;;  %v324_v50 = vsel %vm13350_vm4, 0, %v323_v47  ;;  %v380_v53 = vld [vmem:[#allocation2 + $0xac] sm:$0x1]  ;;  %v424_v58 = vld [vmem:[%s13382_s8 + $0xa0] sm:$0xff] }
  0x38   : > { %12021 = vmatpush3.bf16.msra.mxu0 %v13014_v21  ;;  %325 = vst [vmem:[#allocation2 + $0xa0] sm:$0x8] %v324_v50  ;;  %v381_v56 = vsel %vm13363_vm6, 0, %v380_v53  ;;  %v326_v57 = vld [vmem:[#allocation2 + $0xb0] sm:$0x8]  ;;  %v425_v62 = vld [vmem:[%s13382_s8 + $0xa8] sm:$0xff]  ;;  %v11934_v1 = vpack.c.bf16 %v424_v58, %v424_v58 }
  0x39   : > { %1074 = vrot.lane.b32.xlu1 %v13439_v11, %s13283_s9  ;;  %v13552_v11 = vld [vmem:[#allocation2 + $0x48] sm:$0xf]  ;;  %12022 = vmatprep.subr.bf16.mxu0 %v13016_v7  ;;  %382 = vst [vmem:[#allocation2 + $0xac] sm:$0x1] %v381_v56  ;;  %v327_v59 = vsel %vm13350_vm4, 0, %v326_v57  ;;  %v11935_v4 = vpack.c.bf16 %v425_v62, %v425_v62  ;;  %v426_v15 = vld [vmem:[%s13382_s8 + $0xb0] sm:$0xff] }
  0x3a   : > { %v11342_v26 = vcombine.low %v614_v24, %v13552_v11  ;;  %583 = vst.msk [vmem:[#allocation2 + $0xa4] sm:$0xf] %vm280_vm0, %v11932_v54  ;;  %584 = vst.msk [vmem:[#allocation2 + $0xa8] sm:$0xf] %vm280_vm0, %v11933_v55  ;;  %v12987_v6 = vld [vmem:[#allocation2 + $0x4c] ss:$0 sps:$4 sm:$0xff]   ;;  %v13622_v9 = vcombine.low %v13552_v11, %v13552_v11  ;;  %v11936_v32 = vpack.c.bf16 %v426_v15, %v426_v15 }
  0x3b   : > { %943 = vrot.lane.b32.xlu0 %v13535_v42, %s13284_s10  ;;  %328 = vst [vmem:[#allocation2 + $0xb0] sm:$0x8] %v327_v59  ;;  %585 = vst.msk [vmem:[#allocation2 + $0xb4] sm:$0xf] %vm280_vm0, %v11934_v1  ;;  %v1035_v12 = vrot.slane %v12987_v6, 5  ;;  %v428_v6 = vld [vmem:[%s13382_s8 + $0xc0] sm:$0xff] }
  0x3c   : > { %12023 = vmatpush3.bf16.msra.mxu0 %v13017_v25  ;;  %v846_v35 = vshrl.u32 %v11342_v26, 16  ;;  %v849_v36 = vshll.u32 %v11342_v26, 16  ;;  %586 = vst.msk [vmem:[#allocation2 + $0xb8] sm:$0xf] %vm280_vm0, %v11935_v4  ;;  %v13626_v10 = vrot.slane %v11342_v26, 5  ;;  %vm1550_vm11 = vcmask 785408  }
  0x3d   : > { %1368 = vrot.lane.b32.xlu1 %v13539_v17, %s13285_s11  ;;  %12024 = vmatprep.subr.bf16.mxu0 %v13020_v33  ;;  %v619_v13 = vld [vmem:[#allocation2 + $0x58] sm:$0xf]  ;;  %v618_v16 = vld [vmem:[#allocation2 + $0x54] sm:$0xf]  ;;  %v617_v21 = vld [vmem:[#allocation2 + $0x50] sm:$0xf] }
  0x3e   : > { %v848_v44 = vrot.slane %v846_v35, 4  ;;  %v851_v45 = vrot.slane %v849_v36, 5  ;;  %19164 = vst [vmem:[#allocation7_spill] sm:$0xff] %v13626_v10  ;;  %v11343_v31 = vcombine.low %v618_v16, %v619_v13  ;;  %v13634_v18 = vsel %vm1021_vm7, %v13626_v10, %v1035_v12  ;;  %v383_v11 = vld [vmem:[#allocation2 + $0xbc] sm:$0x1] }
  0x3f   : > { %1299 = vrot.lane.b32.xlu0 %v13545_v19, %s13283_s9  ;;  %19165 = vst [vmem:[#allocation8_spill] sm:$0xff] %v13634_v18  ;;  %v13640_v23 = vcombine.low %v617_v21, %v618_v16  ;;  %v384_v25 = vsel %vm13363_vm6, 0, %v383_v11  ;;  %v12991_v29 = vld [vmem:[#allocation2 + $0x5c] ss:$0 sps:$4 sm:$0xff]   ;;  %v329_v30 = vld [vmem:[#allocation2 + $0xc0] sm:$0x8]  ;;  %v13662_v41 = vcombine.low %v619_v13, %v619_v13  ;;  %v11938_v13 = vpack.c.bf16 %v428_v6, %v428_v6 }
  0x40   : > { %12025 = vmatpush3.bf16.msra.mxu0 %v13021_v43  ;;  %v13614_v5 = vor.u32 %v851_v45, %v848_v44  ;;  %v854_v7 = vshrl.u32 %v11343_v31, 16  ;;  %v857_v24 = vshll.u32 %v11343_v31, 16  ;;  %385 = vst [vmem:[#allocation2 + $0xbc] sm:$0x1] %v384_v25  ;;  %v330_v33 = vsel %vm13350_vm4, 0, %v329_v30  ;;  %v427_v35 = vld [vmem:[%s13382_s8 + $0xb8] sm:$0xff] }
  0x41   : > { %1148 = vrot.lane.b32.xlu1 %v13422_v60, %s13285_s11  ;;  %19166 = vst [vmem:[#allocation9_spill] sm:$0xff] %v13640_v23  ;;  %331 = vst [vmem:[#allocation2 + $0xc0] sm:$0x8] %v330_v33  ;;  %v11937_v36 = vpack.c.bf16 %v427_v35, %v427_v35  ;;  %v622_v39 = vld [vmem:[#allocation2 + $0x64] sm:$0xf]  ;;  %v13664_v43 = vrot.slane %v11343_v31, 5 }
  0x42   : > { %v856_v26 = vrot.slane %v854_v7, 4  ;;  %v859_v27 = vrot.slane %v857_v24, 5  ;;  %587 = vst.msk [vmem:[#allocation2 + $0xc4] sm:$0xf] %vm280_vm0, %v11936_v32  ;;  %v623_v40 = vld [vmem:[#allocation2 + $0x68] sm:$0xf] }
  0x43   : > { %1076 = vrot.lane.b32.xlu0 %v13491_v48, %s13283_s9  ;;  %v378_v48 = vsel %vm13363_vm6, 0, %v377_v46  ;;  %588 = vst.msk [vmem:[#allocation2 + $0xc8] sm:$0xf] %vm280_vm0, %v11937_v36  ;;  %19167 = vst [vmem:[#allocation10_spill] sm:$0xff] %v13662_v41  ;;  %v1038_v44 = vrot.slane %v12991_v29, 5  ;;  %v11344_v45 = vcombine.low %v622_v39, %v623_v40  ;;  %v429_v31 = vld [vmem:[%s13382_s8 + $0xc8] sm:$0xff]  ;;  %v13718_v15 = vcombine.low %v623_v40, %v623_v40 }
  0x44   : > { %379 = vst [vmem:[#allocation2 + $0x9c] sm:$0x1] %v378_v48  ;;  %v13657_v37 = vor.u32 %v859_v27, %v856_v26  ;;  %19168 = vst [vmem:[#allocation11_spill] sm:$0xff] %v13664_v43  ;;  %v621_v46 = vld [vmem:[#allocation2 + $0x60] sm:$0xf]  ;;  %v11939_v21 = vpack.c.bf16 %v429_v31, %v429_v31  ;;  %v13725_v29 = vld [vmem:[%s19008_s1 + $0x88] sm:$0xff]  }
  0x45   : > { %1231 = vrot.lane.b32.xlu1 %v13571_v28, %s13284_s10  ;;  %v13001_v47 = vld [vmem:[#allocation2 + $0x7c] ss:$0 sps:$4 sm:$0xff]   ;;  %v13674_v48 = vsel %vm1021_vm7, %v13664_v43, %v1038_v44  ;;  %v862_v50 = vshrl.u32 %v11344_v45, 16  ;;  %v865_v51 = vshll.u32 %v11344_v45, 16  ;;  %v626_v52 = vld [vmem:[#allocation2 + $0x74] sm:$0xf]  ;;  %v13682_v55 = vcombine.low %v621_v46, %v622_v39  ;;  %12956 = vmatprep.subr.bf16.mxu1 %v13725_v29 }
  0x46   : > { %19169 = vst [vmem:[#allocation12_spill] sm:$0xff] %v13674_v48  ;;  %v13678_v53 = vld [vmem:[#allocation2 + $0x78] sm:$0xf]  ;;  %v386_v54 = vld [vmem:[#allocation2 + $0xcc] sm:$0x1]  ;;  %v1044_v56 = vrot.slane %v13001_v47, 5  ;;  %12848 = vmatprep.subr.bf16.mxu0 %v13725_v29  ;;  %12958 = vmatpush3.bf16.msra.mxu1 %v13725_v29 }
  0x47   : > { %1146 = vrot.lane.b32.xlu0 %v13424_v61, %s13285_s11  ;;  %19170 = vst [vmem:[#allocation13_spill] sm:$0xff] %v13682_v55  ;;  %v387_v57 = vsel %vm13363_vm6, 0, %v386_v54  ;;  %v864_v58 = vrot.slane %v862_v50, 4  ;;  %v867_v59 = vrot.slane %v865_v51, 5  ;;  %v12995_v62 = vld [vmem:[#allocation2 + $0x6c] ss:$0 sps:$4 sm:$0xff]   ;;  %v13687_v1 = vcombine.low %v626_v52, %v13678_v53 }
  0x48   : > { %388 = vst [vmem:[#allocation2 + $0xcc] sm:$0x1] %v387_v57  ;;  %v332_v12 = vld [vmem:[#allocation2 + $0xd0] sm:$0x8]  ;;  %589 = vst.msk [vmem:[#allocation2 + $0xd4] sm:$0xf] %vm280_vm0, %v11938_v13 }
  0x49   : > { %1301 = vrot.lane.b32.xlu1 %v13584_v38, %s13283_s9  ;;  %v13694_v4 = vrot.slane %v13687_v1, 5  ;;  %v333_v16 = vsel %vm13350_vm4, 0, %v332_v12  ;;  %v13705_v11 = vor.u32 %v867_v59, %v864_v58  ;;  %v13707_v7 = vrot.slane %v11344_v45, 5  ;;  %590 = vst.msk [vmem:[#allocation2 + $0xd8] sm:$0xf] %vm280_vm0, %v11939_v21  ;;  %19171 = vst [vmem:[#allocation14_spill] sm:$0xff] %v13718_v15 }
  0x4a   : > { %334 = vst [vmem:[#allocation2 + $0xd0] sm:$0x8] %v333_v16  ;;  %v1041_v24 = vrot.slane %v12995_v62, 5  ;;  %v625_v32 = vld [vmem:[#allocation2 + $0x70] sm:$0xf]  ;;  %v13744_v44 = vld [vmem:[%s19008_s1 + $0x80] sm:$0xff]  }
  0x4b   : > { %1229 = vrot.lane.b32.xlu0 %v13555_v22, %s13284_s10  ;;  %v13711_v25 = vsel %vm1021_vm7, %v13694_v4, %v1044_v56  ;;  %v2027_v33 = vshrl.u32 %v13707_v7, 16  ;;  %v2030_v35 = vshll.u32 %v13707_v7, 16  ;;  %v2074_v50 = vshrl.u32 %v13694_v4, 16  ;;  %12957 = vmatprep.subr.bf16.mxu1 %v13744_v44  ;;  %v13755_v6 = vld [vmem:[#allocation2 + $0x88] sm:$0xf] }
  0x4c   : > { %v2082_v26 = vshrl.u32 %v13711_v25, 16  ;;  %v2085_v27 = vshll.u32 %v13711_v25, 16  ;;  %v13729_v30 = vsel %vm1021_vm7, %v13707_v7, %v1041_v24  ;;  %v870_v51 = vshrl.u32 %v13687_v1, 16  ;;  %12959 = vmatpush3.bf16.msra.mxu1 %v13744_v44  ;;  %v389_v16 = vld [vmem:[#allocation2 + $0xdc] sm:$0x1] }
  0x4d   : > { %1078 = vrot.lane.b32.xlu1 %v13456_v20, %s13283_s9  ;;  %v2035_v40 = vshrl.u32 %v13729_v30, 16  ;;  %v2029_v45 = vrot.slane %v2027_v33, 3  ;;  %v2032_v46 = vrot.slane %v2030_v35, 4  ;;  %v2038_v47 = vshll.u32 %v13729_v30, 16 }
  0x4e   : > { %v2084_v36 = vrot.slane %v2082_v26, 3  ;;  %v2087_v39 = vrot.slane %v2085_v27, 4  ;;  %v2077_v56 = vshll.u32 %v13694_v4, 16  ;;  %v2076_v59 = vrot.slane %v2074_v50, 3 }
  0x4f   : > { %945 = vrot.lane.b32.xlu0 %v13493_v49, %s13284_s10  ;;  %v2037_v54 = vrot.slane %v2035_v40, 3  ;;  %v2033_v57 = vor.u32 %v2032_v46, %v2029_v45  ;;  %v2040_v58 = vrot.slane %v2038_v47, 4  ;;  %v13753_v62 = vcombine.low %v625_v32, %v626_v52  ;;  %v630_v52 = vld [vmem:[#allocation2 + $0x84] sm:$0xf]  ;;  %v335_v40 = vld [vmem:[#allocation2 + $0xe0] sm:$0x8] }
  0x50   : > { %v2079_v12 = vrot.slane %v2077_v56, 4  ;;  %v2088_v13 = vor.u32 %v2087_v39, %v2084_v36  ;;  %v873_v31 = vshll.u32 %v13687_v1, 16  ;;  %vm1807_vm8 = vsmask.f32 4352  ;;  %v13015_v36 = vld [vmem:[#allocation2 + $0x8c] ss:$0 sps:$4 sm:$0xff]  }
  0x51   : > { %1370 = vrot.lane.b32.xlu1 %v13614_v5, %s13285_s11  ;;  %v2041_v21 = vor.u32 %v2040_v58, %v2037_v54  ;;  %v390_v24 = vsel %vm13363_vm6, 0, %v389_v16  ;;  %v872_v27 = vrot.slane %v870_v51, 4  ;;  %v11346_v35 = vcombine.low %v630_v52, %v13755_v6  ;;  %v430_v39 = vld [vmem:[%s13382_s8 + $0xd0] sm:$0xff]  ;;  %v431_v47 = vld [vmem:[%s13382_s8 + $0xd8] sm:$0xff] }
  0x52   : > { %v2080_v26 = vor.u32 %v2079_v12, %v2076_v59  ;;  %391 = vst [vmem:[#allocation2 + $0xdc] sm:$0x1] %v390_v24  ;;  %v875_v33 = vrot.slane %v873_v31, 5  ;;  %v11940_v45 = vpack.c.bf16 %v430_v39, %v430_v39  ;;  %v336_v46 = vsel %vm13350_vm4, 0, %v335_v40  ;;  %v13794_v16 = vld [vmem:[#allocation2 + $0x98] sm:$0xf] }
  0x53   : > { %1303 = vrot.lane.b32.xlu0 %v13622_v9, %s13283_s9  ;;  %v2042_v32 = vsel %vm1807_vm8, %v2033_v57, %v2041_v21  ;;  %337 = vst [vmem:[#allocation2 + $0xe0] sm:$0x8] %v336_v46  ;;  %v11941_v50 = vpack.c.bf16 %v431_v47, %v431_v47  ;;  %v878_v54 = vshrl.u32 %v11346_v35, 16  ;;  %v881_v56 = vshll.u32 %v11346_v35, 16  ;;  %v629_v31 = vld [vmem:[#allocation2 + $0x80] sm:$0xf] }
  0x54   : > { %12860 = vmatprep.mubr.msk.bf16.mxu1 %vm1404_vm9, %v2042_v32  ;;  %v2089_v1 = vsel %vm1807_vm8, %v2080_v26, %v2088_v13  ;;  %591 = vst.msk [vmem:[#allocation2 + $0xe4] sm:$0xf] %vm280_vm0, %v11940_v45  ;;  %v13781_v51 = vor.u32 %v875_v33, %v872_v27  ;;  %v13784_v57 = vrot.slane %v11346_v35, 5  ;;  %v1047_v58 = vrot.slane %v13015_v36, 5  ;;  %v597_v13 = vld [vmem:[#allocation2] sm:$0xf] }
  0x55   : > { %1152 = vrot.lane.b32.xlu1 %v13545_v19, %s13285_s11  ;;  %12861 = vmatmul.mubr.msk.bf16.vlgmr.msra.gmra.mxu1 %vm1404_vm9, %v2089_v1  ;;  %592 = vst.msk [vmem:[#allocation2 + $0xe8] sm:$0xf] %vm280_vm0, %v11941_v50  ;;  %v13790_v59 = vcombine.low %v13678_v53, %v13678_v53  ;;  %v880_v21 = vrot.slane %v878_v54, 4  ;;  %v634_v24 = vld [vmem:[#allocation2 + $0x94] sm:$0xf]  ;;  %v883_v26 = vrot.slane %v881_v56, 5  ;;  %v13810_v40 = vcombine.low %v629_v31, %v630_v52 }
  0x56   : > { %v13802_v53 = vsel %vm1021_vm7, %v13784_v57, %v1047_v58  ;;  %v11347_v32 = vcombine.low %v634_v24, %v13794_v16  ;;  %v13262_v33 = vld [vmem:[#allocation2 + $0x4] sm:$0xf]  ;;  %v13023_v36 = vld [vmem:[#allocation2 + $0x9c] ss:$0 sps:$4 sm:$0xff]   ;;  %v392_v39 = vld [vmem:[#allocation2 + $0xec] sm:$0x1] }
  0x57   : > { %1080 = vrot.lane.b32.xlu0 %v13475_v34, %s13283_s9  ;;  %19172 = vst [vmem:[#allocation15_spill] sm:$0xff] %v13790_v59  ;;  %v2129_v27 = vshrl.u32 %v13802_v53, 16  ;;  %v11306_v35 = vcombine.low %v597_v13, %v13262_v33  ;;  %v2132_v45 = vshll.u32 %v13802_v53, 16  ;;  %v393_v46 = vsel %vm13363_vm6, 0, %v392_v39  ;;  %v432_v13 = vld [vmem:[%s13382_s8 + $0xe0] sm:$0xff] }
  0x58   : > { %v886_v50 = vshrl.u32 %v11347_v32, 16  ;;  %v13817_v54 = vrot.slane %v11347_v32, 5  ;;  %394 = vst [vmem:[#allocation2 + $0xec] sm:$0x1] %v393_v46  ;;  %v1050_v52 = vrot.slane %v13023_v36, 5  ;;  %v11942_v39 = vpack.c.bf16 %v432_v13, %v432_v13 }
  0x59   : > { %1235 = vrot.lane.b32.xlu1 %v13634_v18, %s13284_s10  ;;  %v338_v33 = vld [vmem:[#allocation2 + $0xf0] sm:$0x8]  ;;  %v2134_v13 = vrot.slane %v2132_v45, 4 }
  0x5a   : > { %v339_v46 = vsel %vm13350_vm4, 0, %v338_v33  ;;  %593 = vst.msk [vmem:[#allocation2 + $0xf4] sm:$0xf] %vm280_vm0, %v11942_v39  ;;  %v13841_v33 = vsel %vm1021_vm7, %v13817_v54, %v1050_v52 }
  0x5b   : > { %1150 = vrot.lane.b32.xlu0 %v13448_v14, %s13285_s11  ;;  %340 = vst [vmem:[#allocation2 + $0xf0] sm:$0x8] %v339_v46  ;;  %v633_v46 = vld [vmem:[#allocation2 + $0x90] sm:$0xf] }
  0x5d   : > { %1305 = vrot.lane.b32.xlu1 %v13640_v23, %s13283_s9 }
  0x5f   : > { %1233 = vrot.lane.b32.xlu0 %v13626_v10, %s13284_s10 }
  0x61   : > { %1082 = vrot.lane.b32.xlu1 %v13555_v22, %s13283_s9  ;;  %v2121_v22 = vshrl.u32 %v13784_v57, 16 }
  0x63   : > { %947 = vrot.lane.b32.xlu0 %v13539_v17, %s13284_s10 }
  0x65   : > { %1372 = vrot.lane.b32.xlu1 %v13657_v37, %s13285_s11 }
  0x67   : > { %1307 = vrot.lane.b32.xlu0 %v13662_v41, %s13283_s9 }
  0x69   : > { %1156 = vrot.lane.b32.xlu1 %v13622_v9, %s13285_s11 }
  0x6b   : > { %1084 = vrot.lane.b32.xlu0 %v13571_v28, %s13283_s9 }
  0x6d   : > { %1239 = vrot.lane.b32.xlu1 %v13674_v48, %s13284_s10 }
  0x6f   : > { %1154 = vrot.lane.b32.xlu0 %v13584_v38, %s13285_s11 }
  0x71   : > { %1309 = vrot.lane.b32.xlu1 %v13682_v55, %s13283_s9 }
  0x73   : > { %1237 = vrot.lane.b32.xlu0 %v13664_v43, %s13284_s10 }
  0x75   : > { %1086 = vrot.lane.b32.xlu1 %v13626_v10, %s13283_s9  ;;  %v889_v10 = vshll.u32 %v11347_v32, 16  ;;  %v2176_v32 = vshrl.u32 %v13841_v33, 16 }
  0x77   : > { %949 = vrot.lane.b32.xlu0 %v13614_v5, %s13284_s10 }
  0x79   : > { %1374 = vrot.lane.b32.xlu1 %v13705_v11, %s13285_s11 }
  0x7b   : > { %1311 = vrot.lane.b32.xlu0 %v13718_v15, %s13283_s9 }
  0x7d   : > { %1160 = vrot.lane.b32.xlu1 %v13662_v41, %s13285_s11 }
  0x7f   : > { %1088 = vrot.lane.b32.xlu0 %v13634_v18, %s13283_s9  ;;  %v2124_v18 = vshll.u32 %v13784_v57, 16 }
  0x81   : > { %1243 = vrot.lane.b32.xlu1 %v13729_v30, %s13284_s10  ;;  %v2126_v28 = vrot.slane %v2124_v18, 4 }
  0x83   : > { %1158 = vrot.lane.b32.xlu0 %v13640_v23, %s13285_s11 }
  0x85   : > { %1313 = vrot.lane.b32.xlu1 %v13753_v62, %s13283_s9 }
  0x87   : > { %1241 = vrot.lane.b32.xlu0 %v13707_v7, %s13284_s10 }
  0x89   : > { %1090 = vrot.lane.b32.xlu1 %v13664_v43, %s13283_s9 }
  0x8b   : > { %951 = vrot.lane.b32.xlu0 %v13657_v37, %s13284_s10 }
  0x8d   : > { %1376 = vrot.lane.b32.xlu1 %v13781_v51, %s13285_s11 }
  0x8e   : > { %v1071_v12 = vpop.permute.xlu1 %1070 }
  0x8f   : > { %1315 = vrot.lane.b32.xlu0 %v13790_v59, %s13283_s9 }
  0x91   : > { %1164 = vrot.lane.b32.xlu1 %v13718_v15, %s13285_s11 }
  0x93   : > { %v942_v1 = vpop.permute.xlu1 %941  ;;  %1092 = vrot.lane.b32.xlu0 %v13674_v48, %s13283_s9  ;;  %v433_v48 = vld [vmem:[%s13382_s8 + $0xe8] sm:$0xff] }
  0x94   : > { %v1407_v58 = vsel %vm1404_vm9, %v11306_v35, %v942_v1  ;;  %v11943_v36 = vpack.c.bf16 %v433_v48, %v433_v48 }
  0x95   : > { %1247 = vrot.lane.b32.xlu1 %v13711_v25, %s13284_s10  ;;  %v13815_v47 = vpop.permute.xlu0 %1295  ;;  %v1487_v0 = vsel %vm1485_vm10, %v1407_v58, %v1071_v12  ;;  %v13837_v12 = vor.u32 %v883_v26, %v880_v21  ;;  %v2131_v58 = vrot.slane %v2129_v27, 3  ;;  %v13854_v21 = vcombine.low %v13755_v6, %v13755_v6  ;;  %v13263_v26 = vld [vmem:[#allocation2 + $0x8] sm:$0xf] }
  0x96   : > { %594 = vst.msk [vmem:[#allocation2 + $0xf8] sm:$0xf] %vm280_vm0, %v11943_v36  ;;  %v11307_v27 = vcombine.low %v13263_v26, %v13263_v26  ;;  %v13862_v36 = vrot.slane %v889_v10, 5  ;;  %v13868_v6 = vcombine.low %v633_v46, %v634_v24  ;;  %v2178_v26 = vrot.slane %v2176_v32, 3 }
  0x97   : > { %v1294_v56 = vpop.permute.xlu1 %1293  ;;  %1162 = vrot.lane.b32.xlu0 %v13682_v55, %s13285_s11  ;;  %v2168_v10 = vshrl.u32 %v13817_v54, 16  ;;  %v2171_v24 = vshll.u32 %v13817_v54, 16 }
  0x98   : > { %v1409_v34 = vsel %vm1404_vm9, %v11307_v27, %v942_v1 }
  0x99   : > { %1317 = vrot.lane.b32.xlu1 %v13810_v40, %s13283_s9  ;;  %v1143_v31 = vpop.permute.xlu0 %1142  ;;  %v2170_v27 = vrot.slane %v2168_v10, 3  ;;  %v395_v10 = vld [vmem:[#allocation2 + $0xfc] sm:$0x1] }
  0x9a   : > { %v1552_v35 = vsel %vm1550_vm11, %v1487_v0, %v1143_v31  ;;  %v13843_v31 = vrot.slane %v886_v50, 4 }
  0x9b   : > { %v13826_v43 = vpop.permute.xlu1 %1144  ;;  %1245 = vrot.lane.b32.xlu0 %v13694_v4, %s13284_s10  ;;  %v1808_v39 = vshrl.u32 %v1552_v35, 16  ;;  %v1811_v55 = vshll.u32 %v1552_v35, 16  ;;  %v2173_v35 = vrot.slane %v2171_v24, 4 }
  0x9d   : > { %1094 = vrot.lane.b32.xlu1 %v13707_v7, %s13283_s9  ;;  %v1222_v0 = vpop.permute.xlu0 %1221  ;;  %v2179_v7 = vshll.u32 %v13841_v33, 16  ;;  %v13874_v15 = vrot.slane %v1808_v39, 3 }
  0x9e   : > { %v1617_v50 = vsel %vm1404_vm9, %v13535_v42, %v1222_v0  ;;  %v2123_v0 = vrot.slane %v2121_v22, 3 }
  0x9f   : > { %v13847_v48 = vpop.permute.xlu1 %1297  ;;  %953 = vrot.lane.b32.xlu0 %v13705_v11, %s13284_s10  ;;  %v2181_v20 = vrot.slane %v2179_v7, 4  ;;  %v1696_v23 = vsel %vm1485_vm10, %v1617_v50, %v1294_v56  ;;  %v2135_v7 = vor.u32 %v2134_v13, %v2131_v58 }
  0xa0   : > { %v2127_v1 = vor.u32 %v2126_v28, %v2123_v0  ;;  %v1813_v28 = vrot.slane %v1811_v55, 4 }
  0xa1   : > { %1378 = vrot.lane.b32.xlu1 %v13837_v12, %s13285_s11  ;;  %v1226_v45 = vpop.permute.xlu0 %1225  ;;  %v2182_v56 = vor.u32 %v2181_v20, %v2178_v26 }
  0xa3   : > { %v13860_v52 = vpop.permute.xlu1 %1227  ;;  %1319 = vrot.lane.b32.xlu0 %v13854_v21, %s13283_s9 }
  0xa5   : > { %1168 = vrot.lane.b32.xlu1 %v13790_v59, %s13285_s11  ;;  %v1224_v41 = vpop.permute.xlu0 %1223 }
  0xa6   : > { %v1619_v32 = vsel %vm1404_vm9, %v13535_v42, %v1224_v41  ;;  %v2136_v42 = vsel %vm1807_vm8, %v2127_v1, %v2135_v7 }
  0xa7   : > { %v1367_v46 = vpop.permute.xlu1 %1366  ;;  %v1698_v22 = vsel %vm1485_vm10, %v1619_v32, %v13815_v47  ;;  %1096 = vrot.lane.b32.xlu0 %v13729_v30, %s13283_s9  ;;  %12864 = vmatprep.mubr.msk.bf16.mxu1 %vm1404_vm9, %v2136_v42  ;;  %v1622_v30 = vsel %vm1404_vm9, %v13493_v49, %v1226_v45  ;;  %v1814_v42 = vor.u32 %v1813_v28, %v13874_v15 }
  0xa8   : > { %v1760_v18 = vsel %vm1550_vm11, %v1696_v23, %v1367_v46  ;;  %v1761_v39 = vsel %vm1550_vm11, %v1698_v22, %v1367_v46  ;;  %v2174_v23 = vor.u32 %v2173_v35, %v2170_v27  ;;  %v341_v27 = vld [vmem:[#allocation2 + $0x100] sm:$0x8]  ;;  %v1700_v22 = vsel %vm1485_vm10, %v1622_v30, %v13847_v48 }
  0xa9   : > { %v1823_v50 = vshrl.u32 %v1760_v18, 16  ;;  %v1826_v59 = vshll.u32 %v1760_v18, 16  ;;  %1251 = vrot.lane.b32.xlu1 %v13802_v53, %s13284_s10  ;;  %v1830_v41 = vshrl.u32 %v1761_v39, 16  ;;  %v1833_v58 = vshll.u32 %v1761_v39, 16  ;;  %v1073_v47 = vpop.permute.xlu0 %1072  ;;  %v434_v39 = vld [vmem:[%s13382_s8 + $0xf0] sm:$0xff] }
  0xaa   : > { %v1489_v26 = vsel %vm1485_vm10, %v1409_v34, %v1073_v47  ;;  %v2183_v46 = vsel %vm1807_vm8, %v2174_v23, %v2182_v56  ;;  %v13916_v47 = vor.u32 %v13862_v36, %v13843_v31  ;;  %v342_v15 = vsel %vm13350_vm4, 0, %v341_v27 }
  0xab   : > { %v1825_v20 = vrot.slane %v1823_v50, 3  ;;  %v1828_v13 = vrot.slane %v1826_v59, 4  ;;  %v13893_v0 = vpop.permute.xlu1 %1074  ;;  %v1832_v24 = vrot.slane %v1830_v41, 3  ;;  %v1835_v32 = vrot.slane %v1833_v58, 4  ;;  %1166 = vrot.lane.b32.xlu0 %v13753_v62, %s13285_s11  ;;  %12865 = vmatmul.mubr.msk.bf16.gmra.mxu1 %vm1404_vm9, %v2183_v46  ;;  %v435_v50 = vld [vmem:[%s13382_s8 + $0xf8] sm:$0xff] }
  0xac   : > { %v1554_v55 = vsel %vm1550_vm11, %v1489_v26, %v13826_v43  ;;  %v396_v43 = vsel %vm13363_vm6, 0, %v395_v10  ;;  %v1624_v28 = vsel %vm1404_vm9, %v13493_v49, %v13860_v52  ;;  %343 = vst [vmem:[#allocation2 + $0x100] sm:$0x8] %v342_v15  ;;  %v11945_v26 = vpack.c.bf16 %v435_v50, %v435_v50 }
  0xad   : > { %v1815_v45 = vshrl.u32 %v1554_v55, 16  ;;  %v1818_v1 = vshll.u32 %v1554_v55, 16  ;;  %1321 = vrot.lane.b32.xlu1 %v13868_v6, %s13283_s9  ;;  %v1829_v34 = vor.u32 %v1828_v13, %v1825_v20  ;;  %v944_v59 = vpop.permute.xlu0 %943  ;;  %v1836_v7 = vor.u32 %v1835_v32, %v1832_v24  ;;  %397 = vst [vmem:[#allocation2 + $0xfc] sm:$0x1] %v396_v43  ;;  %v638_v24 = vld [vmem:[#allocation2 + $0xa4] sm:$0xf] }
  0xae   : > { %v11944_v13 = vpack.c.bf16 %v434_v39, %v434_v39  ;;  %v13927_v32 = vld [vmem:[#allocation2 + $0xa8] sm:$0xf]  ;;  %v13934_v49 = vcombine.low %v13794_v16, %v13794_v16  ;;  %596 = vst.msk [vmem:[#allocation2 + $0x108] sm:$0xf] %vm280_vm0, %v11945_v26  ;;  %v1412_v16 = vsel %vm1404_vm9, %v13429_v63, %v944_v59  ;;  %v13027_v63 = vld [vmem:[#allocation2 + $0xac] ss:$0 sps:$4 sm:$0xff]  }
  0xaf   : > { %v1817_v18 = vrot.slane %v1815_v45, 3  ;;  %v1820_v35 = vrot.slane %v1818_v1, 4  ;;  %v1369_v56 = vpop.permute.xlu1 %1368  ;;  %1249 = vrot.lane.b32.xlu0 %v13784_v57, %s13284_s10  ;;  %v1837_v58 = vsel %vm1807_vm8, %v1829_v34, %v1836_v7  ;;  %v1414_v1 = vsel %vm1404_vm9, %v13433_v3, %v944_v59  ;;  %v637_v3 = vld [vmem:[#allocation2 + $0xa0] sm:$0xf] }
  0xb0   : > { %v1763_v41 = vsel %vm1550_vm11, %v1700_v22, %v1369_v56  ;;  %2823 = vmatprep.mubr.bf16.mxu0 %v1837_v58  ;;  %595 = vst.msk [vmem:[#allocation2 + $0x104] sm:$0xf] %vm280_vm0, %v11944_v13  ;;  %v11348_v7 = vcombine.low %v638_v24, %v13927_v32  ;;  %v1491_v59 = vsel %vm1485_vm10, %v1412_v16, %v13893_v0  ;;  %v642_v16 = vld [vmem:[#allocation2 + $0xb4] sm:$0xf] }
  0xb1   : > { %v1870_v48 = vshrl.u32 %v1763_v41, 16  ;;  %v1873_v23 = vshll.u32 %v1763_v41, 16  ;;  %1098 = vrot.lane.b32.xlu1 %v13694_v4, %s13283_s9  ;;  %v1821_v30 = vor.u32 %v1820_v35, %v1817_v18  ;;  %v1300_v20 = vpop.permute.xlu0 %1299  ;;  %v13964_v0 = vcombine.low %v637_v3, %v638_v24 }
  0xb2   : > { %v1702_v31 = vsel %vm1485_vm10, %v1624_v28, %v1300_v20 }
  0xb3   : > { %v1149_v36 = vpop.permute.xlu1 %1148  ;;  %v1822_v10 = vsel %vm1807_vm8, %v1814_v42, %v1821_v30  ;;  %v1872_v4 = vrot.slane %v1870_v48, 3  ;;  %v1875_v55 = vrot.slane %v1873_v23, 4  ;;  %v1764_v46 = vsel %vm1550_vm11, %v1702_v31, %v1369_v56  ;;  %955 = vrot.lane.b32.xlu0 %v13781_v51, %s13284_s10 }
  0xb4   : > { %2824 = vmatmul.mubr.bf16.vlgmr.msra.gmra.mxu0 %v1822_v10  ;;  %v1877_v52 = vshrl.u32 %v1764_v46, 16  ;;  %v1880_v45 = vshll.u32 %v1764_v46, 16  ;;  %v894_v23 = vshrl.u32 %v11348_v7, 16  ;;  %v897_v30 = vshll.u32 %v11348_v7, 16  ;;  %v13970_v46 = vld [vmem:[#allocation2 + $0xb8] sm:$0xf] }
  0xb5   : > { %1380 = vrot.lane.b32.xlu1 %v13916_v47, %s13285_s11  ;;  %12849 = vmatpush3.bf16.msra.mxu0 %v13725_v29  ;;  %v1077_v34 = vpop.permute.xlu0 %1076  ;;  %v1876_v39 = vor.u32 %v1875_v55, %v1872_v4  ;;  %v13968_v4 = vrot.slane %v11348_v7, 5  ;;  %v1053_v55 = vrot.slane %v13027_v63, 5  ;;  %v13031_v7 = vld [vmem:[#allocation2 + $0xbc] ss:$0 sps:$4 sm:$0xff]  }
  0xb6   : > { %12850 = vmatprep.subr.bf16.mxu0 %v13744_v44  ;;  %v1879_v43 = vrot.slane %v1877_v52, 3  ;;  %v1882_v27 = vrot.slane %v1880_v45, 4  ;;  %v1493_v22 = vsel %vm1485_vm10, %v1414_v1, %v1077_v34  ;;  %v896_v52 = vrot.slane %v894_v23, 4 }
  0xb7   : > { %v13948_v18 = vpop.permute.xlu1 %1231  ;;  %v1558_v35 = vsel %vm1550_vm11, %v1493_v22, %v1149_v36  ;;  %1323 = vrot.lane.b32.xlu0 %v13934_v49, %s13283_s9  ;;  %v899_v45 = vrot.slane %v897_v30, 5  ;;  %v344_v22 = vld [vmem:[#allocation2 + $0x110] sm:$0x8] }
  0xb8   : > { %v1862_v29 = vshrl.u32 %v1558_v35, 16  ;;  %v1865_v56 = vshll.u32 %v1558_v35, 16  ;;  %v1883_v50 = vor.u32 %v1882_v27, %v1879_v43  ;;  %v1629_v2 = vsel %vm1404_vm9, %v13539_v17, %v13948_v18 }
  0xb9   : > { %1172 = vrot.lane.b32.xlu1 %v13854_v21, %s13285_s11  ;;  %12851 = vmatpush3.bf16.msra.mxu0 %v13744_v44  ;;  %v1147_v42 = vpop.permute.xlu0 %1146  ;;  %v398_v44 = vld [vmem:[#allocation2 + $0x10c] sm:$0x1] }
  0xba   : > { %v1556_v41 = vsel %vm1550_vm11, %v1491_v59, %v1147_v42  ;;  %v1884_v48 = vsel %vm1807_vm8, %v1876_v39, %v1883_v50  ;;  %v1864_v15 = vrot.slane %v1862_v29, 3  ;;  %v1867_v28 = vrot.slane %v1865_v56, 4 }
  0xbb   : > { %v1302_v58 = vpop.permute.xlu1 %1301  ;;  %v1855_v20 = vshrl.u32 %v1556_v41, 16  ;;  %v1858_v13 = vshll.u32 %v1556_v41, 16  ;;  %1100 = vrot.lane.b32.xlu0 %v13711_v25, %s13283_s9  ;;  %2831 = vmatprep.mubr.bf16.mxu0 %v1884_v48  ;;  %v399_v26 = vsel %vm13363_vm6, 0, %v398_v44  ;;  %v13983_v29 = vcombine.low %v642_v16, %v13970_v46 }
  0xbc   : > { %400 = vst [vmem:[#allocation2 + $0x10c] sm:$0x1] %v399_v26  ;;  %v1868_v34 = vor.u32 %v1867_v28, %v1864_v15  ;;  %v345_v56 = vsel %vm13350_vm4, 0, %v344_v22  ;;  %v13990_v50 = vor.u32 %v899_v45, %v896_v52  ;;  %v1056_v41 = vrot.slane %v13031_v7, 5  ;;  %v641_v28 = vld [vmem:[#allocation2 + $0xb0] sm:$0xf] }
  0xbd   : > { %1255 = vrot.lane.b32.xlu1 %v13841_v33, %s13284_s10  ;;  %v1857_v31 = vrot.slane %v1855_v20, 3  ;;  %v1860_v36 = vrot.slane %v1858_v13, 4  ;;  %v1230_v10 = vpop.permute.xlu0 %1229  ;;  %346 = vst [vmem:[#allocation2 + $0x110] sm:$0x8] %v345_v56  ;;  %v13995_v42 = vrot.slane %v13983_v29, 5  ;;  %v14002_v48 = vsel %vm1021_vm7, %v13968_v4, %v1053_v55 }
  0xbe   : > { %v1627_v24 = vsel %vm1404_vm9, %v13539_v17, %v1230_v10  ;;  %v2223_v15 = vshrl.u32 %v14002_v48, 16  ;;  %v14012_v17 = vcombine.low %v13927_v32, %v13927_v32  ;;  %v14018_v10 = vcombine.low %v641_v28, %v642_v16 }
  0xbf   : > { %v13972_v25 = vpop.permute.xlu1 %1078  ;;  %v1861_v1 = vor.u32 %v1860_v36, %v1857_v31  ;;  %1170 = vrot.lane.b32.xlu0 %v13810_v40, %s13285_s11  ;;  %v1704_v35 = vsel %vm1485_vm10, %v1627_v24, %v1302_v58  ;;  %v14022_v55 = vsel %vm1021_vm7, %v13995_v42, %v1056_v41 }
  0xc0   : > { %v2270_v16 = vshrl.u32 %v14022_v55, 16  ;;  %v2273_v7 = vshll.u32 %v14022_v55, 16  ;;  %v2225_v56 = vrot.slane %v2223_v15, 3  ;;  %v905_v15 = vshll.u32 %v13983_v29, 16 }
  0xc1   : > { %1325 = vrot.lane.b32.xlu1 %v13964_v0, %s13283_s9  ;;  %v946_v43 = vpop.permute.xlu0 %945  ;;  %v1869_v27 = vsel %vm1807_vm8, %v1861_v1, %v1868_v34 }
  0xc2   : > { %2832 = vmatmul.mubr.bf16.gmra.mxu0 %v1869_v27  ;;  %v1419_v31 = vsel %vm1404_vm9, %v13422_v60, %v946_v43  ;;  %v1417_v52 = vsel %vm1404_vm9, %v13424_v61, %v946_v43  ;;  %v902_v60 = vshrl.u32 %v13983_v29, 16 }
  0xc3   : > { %v1371_v3 = vpop.permute.xlu1 %1370  ;;  %1253 = vrot.lane.b32.xlu0 %v13817_v54, %s13284_s10 }
  0xc4   : > { %v1766_v39 = vsel %vm1550_vm11, %v1704_v35, %v1371_v3  ;;  %v1495_v35 = vsel %vm1485_vm10, %v1417_v52, %v13972_v25  ;;  %v2275_v25 = vrot.slane %v2273_v7, 4 }
  0xc5   : > { %v1917_v63 = vshrl.u32 %v1766_v39, 16  ;;  %v1920_v59 = vshll.u32 %v1766_v39, 16  ;;  %1102 = vrot.lane.b32.xlu1 %v13784_v57, %s13283_s9  ;;  %v1304_v58 = vpop.permute.xlu0 %1303  ;;  %v2226_v57 = vshll.u32 %v14002_v48, 16 }
  0xc6   : > { %v1706_v23 = vsel %vm1485_vm10, %v1629_v2, %v1304_v58 }
  0xc7   : > { %v1153_v30 = vpop.permute.xlu1 %1152  ;;  %v1919_v20 = vrot.slane %v1917_v63, 3  ;;  %v1922_v13 = vrot.slane %v1920_v59, 4  ;;  %v1767_v44 = vsel %vm1550_vm11, %v1706_v23, %v1371_v3  ;;  %957 = vrot.lane.b32.xlu0 %v13837_v12, %s13284_s10  ;;  %v2228_v39 = vrot.slane %v2226_v57, 4 }
  0xc8   : > { %v1924_v18 = vshrl.u32 %v1767_v44, 16  ;;  %v1927_v26 = vshll.u32 %v1767_v44, 16  ;;  %v2215_v63 = vshrl.u32 %v13968_v4, 16  ;;  %v2262_v44 = vshrl.u32 %v13995_v42, 16 }
  0xc9   : > { %1382 = vrot.lane.b32.xlu1 %v13990_v50, %s13285_s11  ;;  %v1081_v36 = vpop.permute.xlu0 %1080  ;;  %v1923_v61 = vor.u32 %v1922_v13, %v1919_v20  ;;  %v2272_v20 = vrot.slane %v2270_v16, 3  ;;  %v2218_v13 = vshll.u32 %v13968_v4, 16 }
  0xca   : > { %v1926_v32 = vrot.slane %v1924_v18, 3  ;;  %v1929_v45 = vrot.slane %v1927_v26, 4  ;;  %v1497_v1 = vsel %vm1485_vm10, %v1419_v31, %v1081_v36  ;;  %v2217_v57 = vrot.slane %v2215_v63, 3 }
  0xcb   : > { %v14027_v24 = vpop.permute.xlu1 %1235  ;;  %v1562_v34 = vsel %vm1550_vm11, %v1497_v1, %v1153_v30  ;;  %1327 = vrot.lane.b32.xlu0 %v14012_v17, %s13283_s9  ;;  %v2265_v36 = vshll.u32 %v13995_v42, 16  ;;  %v2264_v1 = vrot.slane %v2262_v44, 3  ;;  %v2276_v7 = vor.u32 %v2275_v25, %v2272_v20  ;;  %v14073_v25 = vld [vmem:[#allocation2 + $0xc8] sm:$0xf] }
  0xcc   : > { %v1909_v27 = vshrl.u32 %v1562_v34, 16  ;;  %v1912_v22 = vshll.u32 %v1562_v34, 16  ;;  %v1930_v43 = vor.u32 %v1929_v45, %v1926_v32  ;;  %v2220_v32 = vrot.slane %v2218_v13, 4 }
  0xcd   : > { %1176 = vrot.lane.b32.xlu1 %v13934_v49, %s13285_s11  ;;  %v1151_v3 = vpop.permute.xlu0 %1150  ;;  %v2229_v45 = vor.u32 %v2228_v39, %v2225_v56  ;;  %v2267_v29 = vrot.slane %v2265_v36, 4 }
  0xce   : > { %v1911_v59 = vrot.slane %v1909_v27, 3  ;;  %v1914_v41 = vrot.slane %v1912_v22, 4  ;;  %v1560_v2 = vsel %vm1550_vm11, %v1495_v35, %v1151_v3  ;;  %v1931_v23 = vsel %vm1807_vm8, %v1923_v61, %v1930_v43 }
  0xcf   : > { %v1306_v58 = vpop.permute.xlu1 %1305  ;;  %v1902_v30 = vshrl.u32 %v1560_v2, 16  ;;  %v1905_v28 = vshll.u32 %v1560_v2, 16  ;;  %1104 = vrot.lane.b32.xlu0 %v13802_v53, %s13283_s9  ;;  %2839 = vmatprep.mubr.bf16.mxu0 %v1931_v23  ;;  %v904_v27 = vrot.slane %v902_v60, 4  ;;  %v907_v22 = vrot.slane %v905_v15, 5 }
  0xd0   : > { %v1915_v53 = vor.u32 %v1914_v41, %v1911_v59  ;;  %v2221_v61 = vor.u32 %v2220_v32, %v2217_v57  ;;  %v2268_v3 = vor.u32 %v2267_v29, %v2264_v1 }
  0xd1   : > { %1259 = vrot.lane.b32.xlu1 %v14002_v48, %s13284_s10  ;;  %v1904_v18 = vrot.slane %v1902_v30, 3  ;;  %v1907_v26 = vrot.slane %v1905_v28, 4  ;;  %v1234_v31 = vpop.permute.xlu0 %1233  ;;  %v14066_v23 = vor.u32 %v907_v22, %v904_v27  ;;  %v645_v27 = vld [vmem:[#allocation2 + $0xc0] sm:$0xf] }
  0xd2   : > { %v1632_v16 = vsel %vm1404_vm9, %v13614_v5, %v1234_v31  ;;  %v2230_v63 = vsel %vm1807_vm8, %v2221_v61, %v2229_v45  ;;  %v2277_v60 = vsel %vm1807_vm8, %v2268_v3, %v2276_v7 }
  0xd3   : > { %v1083_v52 = vpop.permute.xlu1 %1082  ;;  %v1908_v34 = vor.u32 %v1907_v26, %v1904_v18  ;;  %1174 = vrot.lane.b32.xlu0 %v13868_v6, %s13285_s11  ;;  %v1708_v56 = vsel %vm1485_vm10, %v1632_v16, %v1306_v58  ;;  %12868 = vmatprep.mubr.msk.bf16.mxu1 %vm1404_vm9, %v2230_v63  ;;  %v1634_v58 = vsel %vm1404_vm9, %v13614_v5, %v14027_v24  ;;  %v646_v5 = vld [vmem:[#allocation2 + $0xc4] sm:$0xf] }
  0xd4   : > { %12869 = vmatmul.mubr.msk.bf16.gmra.mxu1 %vm1404_vm9, %v2277_v60  ;;  %v11350_v31 = vcombine.low %v646_v5, %v14073_v25 }
  0xd5   : > { %1329 = vrot.lane.b32.xlu1 %v14018_v10, %s13283_s9  ;;  %v948_v43 = vpop.permute.xlu0 %947  ;;  %v1916_v35 = vsel %vm1807_vm8, %v1908_v34, %v1915_v53 }
  0xd6   : > { %2840 = vmatmul.mubr.bf16.gmra.mxu0 %v1916_v35  ;;  %v1424_v24 = vsel %vm1404_vm9, %v13545_v19, %v948_v43  ;;  %v1422_v36 = vsel %vm1404_vm9, %v13448_v14, %v948_v43  ;;  %v910_v35 = vshrl.u32 %v11350_v31, 16  ;;  %v913_v3 = vshll.u32 %v11350_v31, 16 }
  0xd7   : > { %v1373_v39 = vpop.permute.xlu1 %1372  ;;  %1257 = vrot.lane.b32.xlu0 %v13968_v4, %s13284_s10  ;;  %v1499_v7 = vsel %vm1485_vm10, %v1422_v36, %v1083_v52  ;;  %v14104_v52 = vcombine.low %v645_v27, %v646_v5 }
  0xd8   : > { %v1769_v59 = vsel %vm1550_vm11, %v1708_v56, %v1373_v39  ;;  %v13034_v56 = vld [vmem:[#allocation2 + $0xcc] ss:$0 sps:$4 sm:$0xff]  }
  0xd9   : > { %v1964_v41 = vshrl.u32 %v1769_v59, 16  ;;  %v1967_v2 = vshll.u32 %v1769_v59, 16  ;;  %1106 = vrot.lane.b32.xlu1 %v13817_v54, %s13283_s9  ;;  %v1308_v30 = vpop.permute.xlu0 %1307  ;;  %v14080_v54 = vcombine.low %v13970_v46, %v13970_v46 }
  0xda   : > { %v1710_v28 = vsel %vm1485_vm10, %v1634_v58, %v1308_v30 }
  0xdb   : > { %v1157_v20 = vpop.permute.xlu1 %1156  ;;  %v1770_v15 = vsel %vm1550_vm11, %v1710_v28, %v1373_v39  ;;  %959 = vrot.lane.b32.xlu0 %v13916_v47, %s13284_s10  ;;  %v1966_v57 = vrot.slane %v1964_v41, 3  ;;  %v1969_v13 = vrot.slane %v1967_v2, 4  ;;  %v14100_v41 = vld [vmem:[#allocation2 + $0xd8] sm:$0xf]  ;;  %v13039_v2 = vld [vmem:[#allocation2 + $0xdc] ss:$0 sps:$4 sm:$0xff]  }
  0xdc   : > { %v1971_v44 = vshrl.u32 %v1770_v15, 16  ;;  %v1974_v18 = vshll.u32 %v1770_v15, 16 }
  0xdd   : > { %1384 = vrot.lane.b32.xlu1 %v14066_v23, %s13285_s11  ;;  %v1085_v26 = vpop.permute.xlu0 %1084  ;;  %v1970_v19 = vor.u32 %v1969_v13, %v1966_v57  ;;  %v912_v57 = vrot.slane %v910_v35, 4  ;;  %v14108_v13 = vrot.slane %v11350_v31, 5  ;;  %v1062_v31 = vrot.slane %v13039_v2, 5 }
  0xde   : > { %v1973_v53 = vrot.slane %v1971_v44, 3  ;;  %v1976_v46 = vrot.slane %v1974_v18, 4  ;;  %v1501_v32 = vsel %vm1485_vm10, %v1424_v24, %v1085_v26  ;;  %v1059_v44 = vrot.slane %v13034_v56, 5 }
  0xdf   : > { %v1240_v45 = vpop.permute.xlu1 %1239  ;;  %v1566_v1 = vsel %vm1550_vm11, %v1501_v32, %v1157_v20  ;;  %1331 = vrot.lane.b32.xlu0 %v14080_v54, %s13283_s9  ;;  %v650_v20 = vld [vmem:[#allocation2 + $0xd4] sm:$0xf]  ;;  %v915_v26 = vrot.slane %v913_v3, 5 }
  0xe0   : > { %v1956_v34 = vshrl.u32 %v1566_v1, 16  ;;  %v1959_v16 = vshll.u32 %v1566_v1, 16  ;;  %v1977_v29 = vor.u32 %v1976_v46, %v1973_v53 }
  0xe1   : > { %1180 = vrot.lane.b32.xlu1 %v14012_v17, %s13285_s11  ;;  %v1155_v14 = vpop.permute.xlu0 %1154 }
  0xe2   : > { %v1564_v22 = vsel %vm1550_vm11, %v1499_v7, %v1155_v14  ;;  %v1978_v43 = vsel %vm1807_vm8, %v1970_v19, %v1977_v29  ;;  %v1958_v39 = vrot.slane %v1956_v34, 3  ;;  %v1961_v63 = vrot.slane %v1959_v16, 4 }
  0xe3   : > { %v1310_v61 = vpop.permute.xlu1 %1309  ;;  %v1949_v59 = vshrl.u32 %v1564_v22, 16  ;;  %v1952_v60 = vshll.u32 %v1564_v22, 16  ;;  %1108 = vrot.lane.b32.xlu0 %v13841_v33, %s13283_s9  ;;  %2847 = vmatprep.mubr.bf16.mxu0 %v1978_v43  ;;  %v14111_v33 = vcombine.low %v650_v20, %v14100_v41  ;;  %v14126_v34 = vsel %vm1021_vm7, %v14108_v13, %v1059_v44  ;;  %v649_v22 = vld [vmem:[#allocation2 + $0xd0] sm:$0xf] }
  0xe4   : > { %v1962_v5 = vor.u32 %v1961_v63, %v1958_v39  ;;  %v14131_v19 = vor.u32 %v915_v26, %v912_v57  ;;  %v2317_v29 = vshrl.u32 %v14126_v34, 16  ;;  %v2320_v27 = vshll.u32 %v14126_v34, 16 }
  0xe5   : > { %1263 = vrot.lane.b32.xlu1 %v14022_v55, %s13284_s10  ;;  %v1951_v58 = vrot.slane %v1949_v59, 3  ;;  %v1954_v30 = vrot.slane %v1952_v60, 4  ;;  %v1238_v28 = vpop.permute.xlu0 %1237  ;;  %v14120_v36 = vrot.slane %v14111_v33, 5  ;;  %v1639_v43 = vsel %vm1404_vm9, %v13657_v37, %v1240_v45 }
  0xe6   : > { %v1637_v24 = vsel %vm1404_vm9, %v13657_v37, %v1238_v28  ;;  %v14153_v37 = vcombine.low %v649_v22, %v650_v20  ;;  %v2322_v28 = vrot.slane %v2320_v27, 4 }
  0xe7   : > { %v14106_v15 = vpop.permute.xlu1 %1086  ;;  %v1955_v18 = vor.u32 %v1954_v30, %v1951_v58  ;;  %1178 = vrot.lane.b32.xlu0 %v13964_v0, %s13285_s11  ;;  %v1712_v32 = vsel %vm1485_vm10, %v1637_v24, %v1310_v61  ;;  %v14139_v61 = vsel %vm1021_vm7, %v14120_v36, %v1062_v31  ;;  %v2319_v30 = vrot.slane %v2317_v29, 3 }
  0xe8   : > { %v2364_v3 = vshrl.u32 %v14139_v61, 16  ;;  %v2367_v56 = vshll.u32 %v14139_v61, 16 }
  0xe9   : > { %1333 = vrot.lane.b32.xlu1 %v14104_v52, %s13283_s9  ;;  %v950_v53 = vpop.permute.xlu0 %949  ;;  %v1963_v46 = vsel %vm1807_vm8, %v1955_v18, %v1962_v5 }
  0xea   : > { %2848 = vmatmul.mubr.bf16.gmra.mxu0 %v1963_v46  ;;  %v1429_v57 = vsel %vm1404_vm9, %v13622_v9, %v950_v53  ;;  %v2366_v18 = vrot.slane %v2364_v3, 3  ;;  %v2369_v24 = vrot.slane %v2367_v56, 4  ;;  %v2309_v46 = vshrl.u32 %v14108_v13, 16 }
  0xeb   : > { %v1375_v1 = vpop.permute.xlu1 %1374  ;;  %1261 = vrot.lane.b32.xlu0 %v13995_v42, %s13284_s10  ;;  %v2356_v9 = vshrl.u32 %v14120_v36, 16 }
  0xec   : > { %v1772_v16 = vsel %vm1550_vm11, %v1712_v32, %v1375_v1 }
  0xed   : > { %v2011_v7 = vshrl.u32 %v1772_v16, 16  ;;  %v2014_v14 = vshll.u32 %v1772_v16, 16  ;;  %1110 = vrot.lane.b32.xlu1 %v13968_v4, %s13283_s9  ;;  %v1312_v35 = vpop.permute.xlu0 %1311  ;;  %v14148_v4 = vcombine.low %v14073_v25, %v14073_v25  ;;  %v1427_v25 = vsel %vm1404_vm9, %v13584_v38, %v950_v53 }
  0xee   : > { %v1714_v39 = vsel %vm1485_vm10, %v1639_v43, %v1312_v35  ;;  %v2312_v38 = vshll.u32 %v14108_v13, 16  ;;  %v2358_v43 = vrot.slane %v2356_v9, 3  ;;  %v2359_v35 = vshll.u32 %v14120_v36, 16 }
  0xef   : > { %v1161_v63 = vpop.permute.xlu1 %1160  ;;  %v2013_v59 = vrot.slane %v2011_v7, 3  ;;  %v2016_v60 = vrot.slane %v2014_v14, 4  ;;  %v1773_v2 = vsel %vm1550_vm11, %v1714_v39, %v1375_v1  ;;  %961 = vrot.lane.b32.xlu0 %v13990_v50, %s13284_s10  ;;  %v2311_v7 = vrot.slane %v2309_v46, 3 }
  0xf0   : > { %v2018_v45 = vshrl.u32 %v1773_v2, 16  ;;  %v2021_v58 = vshll.u32 %v1773_v2, 16  ;;  %v1503_v14 = vsel %vm1485_vm10, %v1427_v25, %v14106_v15  ;;  %v2314_v22 = vrot.slane %v2312_v38, 4 }
  0xf1   : > { %1386 = vrot.lane.b32.xlu1 %v14131_v19, %s13285_s11  ;;  %v1089_v44 = vpop.permute.xlu0 %1088  ;;  %v2017_v1 = vor.u32 %v2016_v60, %v2013_v59  ;;  %v2323_v15 = vor.u32 %v2322_v28, %v2319_v30  ;;  %v921_v25 = vshll.u32 %v14111_v33, 16 }
  0xf2   : > { %v2020_v5 = vrot.slane %v2018_v45, 3  ;;  %v2023_v26 = vrot.slane %v2021_v58, 4  ;;  %v1505_v20 = vsel %vm1485_vm10, %v1429_v57, %v1089_v44  ;;  %v2315_v45 = vor.u32 %v2314_v22, %v2311_v7 }
  0xf3   : > { %v1244_v31 = vpop.permute.xlu1 %1243  ;;  %v1570_v32 = vsel %vm1550_vm11, %v1505_v20, %v1161_v63  ;;  %1335 = vrot.lane.b32.xlu0 %v14148_v4, %s13283_s9  ;;  %v918_v58 = vshrl.u32 %v14111_v33, 16  ;;  %v2361_v57 = vrot.slane %v2359_v35, 4  ;;  %v2370_v44 = vor.u32 %v2369_v24, %v2366_v18 }
  0xf4   : > { %v2003_v53 = vshrl.u32 %v1570_v32, 16  ;;  %v2006_v16 = vshll.u32 %v1570_v32, 16  ;;  %v2024_v29 = vor.u32 %v2023_v26, %v2020_v5  ;;  %v2324_v46 = vsel %vm1807_vm8, %v2315_v45, %v2323_v15 }
  0xf5   : > { %1184 = vrot.lane.b32.xlu1 %v14080_v54, %s13285_s11  ;;  %v1159_v27 = vpop.permute.xlu0 %1158  ;;  %12872 = vmatprep.mubr.msk.bf16.mxu1 %vm1404_vm9, %v2324_v46  ;;  %v920_v33 = vrot.slane %v918_v58, 4  ;;  %v923_v18 = vrot.slane %v921_v25, 5  ;;  %v1644_v22 = vsel %vm1404_vm9, %v13705_v11, %v1244_v31  ;;  %v19173_v31 = vld [vmem:[#allocation10_spill] sm:$0xff]  ;;  %v19174_v25 = vld [vmem:[#allocation9_spill] sm:$0xff] }
  0xf6   : > { %v2005_v3 = vrot.slane %v2003_v53, 3  ;;  %v2008_v56 = vrot.slane %v2006_v16, 4  ;;  %v1568_v39 = vsel %vm1550_vm11, %v1503_v14, %v1159_v27  ;;  %v2025_v59 = vsel %vm1807_vm8, %v2017_v1, %v2024_v29 }
  0xf7   : > { %v1314_v63 = vpop.permute.xlu1 %1313  ;;  %v1996_v60 = vshrl.u32 %v1568_v39, 16  ;;  %v1999_v2 = vshll.u32 %v1568_v39, 16  ;;  %1112 = vrot.lane.b32.xlu0 %v14002_v48, %s13283_s9  ;;  %2855 = vmatprep.mubr.bf16.mxu0 %v2025_v59  ;;  %v2362_v48 = vor.u32 %v2361_v57, %v2358_v43  ;;  %v14198_v27 = vor.u32 %v923_v18, %v920_v33  ;;  %v653_v18 = vld [vmem:[#allocation2 + $0xe0] sm:$0xf] }
  0xf8   : > { %v2009_v28 = vor.u32 %v2008_v56, %v2005_v3  ;;  %v14203_v56 = vld [vmem:[#allocation2 + $0xe8] sm:$0xf] }
  0xf9   : > { %1267 = vrot.lane.b32.xlu1 %v14126_v34, %s13284_s10  ;;  %v1998_v5 = vrot.slane %v1996_v60, 3  ;;  %v2001_v26 = vrot.slane %v1999_v2, 4  ;;  %v1242_v20 = vpop.permute.xlu0 %1241  ;;  %v2371_v24 = vsel %vm1807_vm8, %v2362_v48, %v2370_v44 }
  0xfa   : > { %v1642_v30 = vsel %vm1404_vm9, %v13705_v11, %v1242_v20  ;;  %12873 = vmatmul.mubr.msk.bf16.gmra.mxu1 %vm1404_vm9, %v2371_v24  ;;  %v654_v11 = vld [vmem:[#allocation2 + $0xe4] sm:$0xf] }
  0xfb   : > { %v1091_v32 = vpop.permute.xlu1 %1090  ;;  %v2002_v1 = vor.u32 %v2001_v26, %v1998_v5  ;;  %1182 = vrot.lane.b32.xlu0 %v14018_v10, %s13285_s11  ;;  %v1716_v53 = vsel %vm1485_vm10, %v1642_v30, %v1314_v63  ;;  %v14210_v63 = vcombine.low %v14100_v41, %v14100_v41  ;;  %v11352_v58 = vcombine.low %v654_v11, %v14203_v56 }
  0xfd   : > { %1337 = vrot.lane.b32.xlu1 %v14153_v37, %s13283_s9  ;;  %v952_v38 = vpop.permute.xlu0 %951  ;;  %v2010_v9 = vsel %vm1807_vm8, %v2002_v1, %v2009_v28 }
  0xfe   : > { %2856 = vmatmul.mubr.bf16.gmra.mxu0 %v2010_v9  ;;  %v1434_v45 = vsel %vm1404_vm9, %v19173_v31, %v952_v38  ;;  %v1432_v57 = vsel %vm1404_vm9, %v19174_v25, %v952_v38 }
  0xff   : > { %v1377_v16 = vpop.permute.xlu1 %1376  ;;  %1265 = vrot.lane.b32.xlu0 %v14108_v13, %s13284_s10  ;;  %v1507_v28 = vsel %vm1485_vm10, %v1432_v57, %v1091_v32  ;;  %v14234_v32 = vcombine.low %v653_v18, %v654_v11 }
 0x100   : > { %v1775_v29 = vsel %vm1550_vm11, %v1716_v53, %v1377_v16  ;;  %v926_v53 = vshrl.u32 %v11352_v58, 16 }
 0x101   : > { %v2058_v7 = vshrl.u32 %v1775_v29, 16  ;;  %v2061_v14 = vshll.u32 %v1775_v29, 16  ;;  %1114 = vrot.lane.b32.xlu1 %v13995_v42, %s13283_s9  ;;  %v1316_v43 = vpop.permute.xlu0 %1315  ;;  %v13042_v29 = vld [vmem:[#allocation2 + $0xec] ss:$0 sps:$4 sm:$0xff]  }
 0x102   : > { %v1718_v35 = vsel %vm1485_vm10, %v1644_v22, %v1316_v43  ;;  %v928_v31 = vrot.slane %v926_v53, 4 }
 0x103   : > { %v1165_v3 = vpop.permute.xlu1 %1164  ;;  %v1776_v39 = vsel %vm1550_vm11, %v1718_v35, %v1377_v16  ;;  %963 = vrot.lane.b32.xlu0 %v14066_v23, %s13284_s10  ;;  %v2060_v42 = vrot.slane %v2058_v7, 3  ;;  %v2063_v59 = vrot.slane %v2061_v14, 4  ;;  %v929_v16 = vshll.u32 %v11352_v58, 16  ;;  %v14230_v35 = vld [vmem:[#allocation2 + $0xf8] sm:$0xf] }
 0x104   : > { %v2065_v60 = vshrl.u32 %v1776_v39, 16  ;;  %v2068_v2 = vshll.u32 %v1776_v39, 16 }
 0x105   : > { %1388 = vrot.lane.b32.xlu1 %v14198_v27, %s13285_s11  ;;  %v1093_v15 = vpop.permute.xlu0 %1092  ;;  %v2064_v1 = vor.u32 %v2063_v59, %v2060_v42 }
 0x106   : > { %v2067_v44 = vrot.slane %v2065_v60, 3  ;;  %v2070_v41 = vrot.slane %v2068_v2, 4  ;;  %v1509_v5 = vsel %vm1485_vm10, %v1434_v45, %v1093_v15  ;;  %v658_v60 = vld [vmem:[#allocation2 + $0xf4] sm:$0xf]  ;;  %v14238_v45 = vrot.slane %v11352_v58, 5 }
 0x107   : > { %v1248_v26 = vpop.permute.xlu1 %1247  ;;  %v1574_v20 = vsel %vm1550_vm11, %v1509_v5, %v1165_v3  ;;  %1339 = vrot.lane.b32.xlu0 %v14210_v63, %s13283_s9  ;;  %v13045_v3 = vld [vmem:[#allocation2 + $0xfc] ss:$0 sps:$4 sm:$0xff]   ;;  %v1065_v15 = vrot.slane %v13042_v29, 5 }
 0x108   : > { %v2050_v46 = vshrl.u32 %v1574_v20, 16  ;;  %v2053_v48 = vshll.u32 %v1574_v20, 16  ;;  %v2071_v30 = vor.u32 %v2070_v41, %v2067_v44  ;;  %v931_v44 = vrot.slane %v929_v16, 5 }
 0x109   : > { %1188 = vrot.lane.b32.xlu1 %v14148_v4, %s13285_s11  ;;  %v1163_v33 = vpop.permute.xlu0 %1162  ;;  %v1068_v58 = vrot.slane %v13045_v3, 5  ;;  %v1649_v16 = vsel %vm1404_vm9, %v13781_v51, %v1248_v26 }
 0x10a   : > { %v1572_v24 = vsel %vm1550_vm11, %v1507_v28, %v1163_v33  ;;  %v2072_v9 = vsel %vm1807_vm8, %v2064_v1, %v2071_v30  ;;  %v2052_v7 = vrot.slane %v2050_v46, 3  ;;  %v2055_v14 = vrot.slane %v2053_v48, 4 }
 0x10b   : > { %v1318_v38 = vpop.permute.xlu1 %1317  ;;  %v2043_v22 = vshrl.u32 %v1572_v24, 16  ;;  %v2046_v43 = vshll.u32 %v1572_v24, 16  ;;  %1116 = vrot.lane.b32.xlu0 %v14022_v55, %s13283_s9  ;;  %2863 = vmatprep.mubr.bf16.mxu0 %v2072_v9  ;;  %v14241_v55 = vcombine.low %v658_v60, %v14230_v35  ;;  %v14256_v1 = vsel %vm1021_vm7, %v14238_v45, %v1065_v15  ;;  %v657_v9 = vld [vmem:[#allocation2 + $0xf0] sm:$0xf] }
 0x10c   : > { %v2056_v11 = vor.u32 %v2055_v14, %v2052_v7  ;;  %v14261_v28 = vor.u32 %v931_v44, %v928_v31  ;;  %v2411_v33 = vshrl.u32 %v14256_v1, 16 }
 0x10d   : > { %1271 = vrot.lane.b32.xlu1 %v14139_v61, %s13284_s10  ;;  %v2045_v39 = vrot.slane %v2043_v22, 3  ;;  %v2048_v42 = vrot.slane %v2046_v43, 4  ;;  %v1246_v59 = vpop.permute.xlu0 %1245  ;;  %v14250_v41 = vrot.slane %v14241_v55, 5 }
 0x10e   : > { %v1647_v57 = vsel %vm1404_vm9, %v13781_v51, %v1246_v59  ;;  %v14283_v51 = vcombine.low %v657_v9, %v658_v60  ;;  %v2413_v31 = vrot.slane %v2411_v33, 3 }
 0x10f   : > { %v14236_v2 = vpop.permute.xlu1 %1094  ;;  %v2049_v25 = vor.u32 %v2048_v42, %v2045_v39  ;;  %1186 = vrot.lane.b32.xlu0 %v14104_v52, %s13285_s11  ;;  %v1720_v46 = vsel %vm1485_vm10, %v1647_v57, %v1318_v38  ;;  %v2414_v38 = vshll.u32 %v14256_v1, 16  ;;  %v14269_v53 = vsel %vm1021_vm7, %v14250_v41, %v1068_v58  ;;  %v19176_v57 = vld [vmem:[#allocation14_spill] sm:$0xff] }
 0x110   : > { %v2458_v7 = vshrl.u32 %v14269_v53, 16  ;;  %v2461_v14 = vshll.u32 %v14269_v53, 16 }
 0x111   : > { %1341 = vrot.lane.b32.xlu1 %v14234_v32, %s13283_s9  ;;  %v954_v5 = vpop.permute.xlu0 %953  ;;  %v2057_v20 = vsel %vm1807_vm8, %v2049_v25, %v2056_v11  ;;  %v2416_v15 = vrot.slane %v2414_v38, 4  ;;  %v19175_v25 = vld [vmem:[#allocation13_spill] sm:$0xff]  ;;  %v2406_v38 = vshll.u32 %v14238_v45, 16 }
 0x112   : > { %2864 = vmatmul.mubr.bf16.gmra.mxu0 %v2057_v20  ;;  %v1439_v11 = vsel %vm1404_vm9, %v19176_v57, %v954_v5  ;;  %v2460_v58 = vrot.slane %v2458_v7, 3  ;;  %v2463_v20 = vrot.slane %v2461_v14, 4 }
 0x113   : > { %v1379_v48 = vpop.permute.xlu1 %1378  ;;  %1269 = vrot.lane.b32.xlu0 %v14120_v36, %s13284_s10 }
 0x114   : > { %v1778_v30 = vsel %vm1550_vm11, %v1720_v46, %v1379_v48 }
 0x115   : > { %v2105_v18 = vshrl.u32 %v1778_v30, 16  ;;  %v2108_v24 = vshll.u32 %v1778_v30, 16  ;;  %1118 = vrot.lane.b32.xlu1 %v14108_v13, %s13283_s9  ;;  %v1320_v29 = vpop.permute.xlu0 %1319  ;;  %v14278_v13 = vcombine.low %v14203_v56, %v14203_v56  ;;  %v1437_v56 = vsel %vm1404_vm9, %v19175_v25, %v954_v5 }
 0x116   : > { %v1722_v22 = vsel %vm1485_vm10, %v1649_v16, %v1320_v29  ;;  %v2450_v5 = vshrl.u32 %v14250_v41, 16  ;;  %v1511_v14 = vsel %vm1485_vm10, %v1437_v56, %v14236_v2  ;;  %v2417_v2 = vor.u32 %v2416_v15, %v2413_v31 }
 0x117   : > { %v1169_v43 = vpop.permute.xlu1 %1168  ;;  %v2107_v3 = vrot.slane %v2105_v18, 3  ;;  %v2110_v39 = vrot.slane %v2108_v24, 4  ;;  %v1779_v42 = vsel %vm1550_vm11, %v1722_v22, %v1379_v48  ;;  %965 = vrot.lane.b32.xlu0 %v14131_v19, %s13284_s10  ;;  %v2403_v18 = vshrl.u32 %v14238_v45, 16 }
 0x118   : > { %v2112_v26 = vshrl.u32 %v1779_v42, 16  ;;  %v2115_v59 = vshll.u32 %v1779_v42, 16  ;;  %v2452_v42 = vrot.slane %v2450_v5, 3  ;;  %v934_v56 = vshrl.u32 %v14241_v55, 16 }
 0x119   : > { %1390 = vrot.lane.b32.xlu1 %v14261_v28, %s13285_s11  ;;  %v1097_v44 = vpop.permute.xlu0 %1096  ;;  %v2111_v33 = vor.u32 %v2110_v39, %v2107_v3  ;;  %v2405_v7 = vrot.slane %v2403_v18, 3  ;;  %v2464_v18 = vor.u32 %v2463_v20, %v2460_v58 }
 0x11a   : > { %v2114_v46 = vrot.slane %v2112_v26, 3  ;;  %v2117_v48 = vrot.slane %v2115_v59, 4  ;;  %v1513_v60 = vsel %vm1485_vm10, %v1439_v11, %v1097_v44  ;;  %v2453_v26 = vshll.u32 %v14250_v41, 16 }
 0x11b   : > { %v1252_v30 = vpop.permute.xlu1 %1251  ;;  %v1578_v24 = vsel %vm1550_vm11, %v1513_v60, %v1169_v43  ;;  %1343 = vrot.lane.b32.xlu0 %v14278_v13, %s13283_s9  ;;  %v2408_v43 = vrot.slane %v2406_v38, 4 }
 0x11c   : > { %v2097_v9 = vshrl.u32 %v1578_v24, 16  ;;  %v2100_v16 = vshll.u32 %v1578_v24, 16  ;;  %v2118_v29 = vor.u32 %v2117_v48, %v2114_v46  ;;  %v937_v48 = vshll.u32 %v14241_v55, 16 }
 0x11d   : > { %1192 = vrot.lane.b32.xlu1 %v14210_v63, %s13285_s11  ;;  %v1167_v22 = vpop.permute.xlu0 %1166  ;;  %v2409_v46 = vor.u32 %v2408_v43, %v2405_v7  ;;  %v2455_v60 = vrot.slane %v2453_v26, 4  ;;  %v936_v55 = vrot.slane %v934_v56, 4 }
 0x11e   : > { %v2099_v3 = vrot.slane %v2097_v9, 3  ;;  %v2102_v39 = vrot.slane %v2100_v16, 4  ;;  %v1576_v59 = vsel %vm1550_vm11, %v1511_v14, %v1167_v22  ;;  %v2119_v57 = vsel %vm1807_vm8, %v2111_v33, %v2118_v29 }
 0x11f   : > { %v1322_v25 = vpop.permute.xlu1 %1321  ;;  %v2090_v11 = vshrl.u32 %v1576_v59, 16  ;;  %v2093_v44 = vshll.u32 %v1576_v59, 16  ;;  %1120 = vrot.lane.b32.xlu0 %v14126_v34, %s13283_s9  ;;  %2871 = vmatprep.mubr.bf16.mxu0 %v2119_v57  ;;  %v2418_v5 = vsel %vm1807_vm8, %v2409_v46, %v2417_v2  ;;  %v2456_v34 = vor.u32 %v2455_v60, %v2452_v42 }
 0x120   : > { %12876 = vmatprep.mubr.msk.bf16.mxu1 %vm1404_vm9, %v2418_v5  ;;  %v2103_v15 = vor.u32 %v2102_v39, %v2099_v3  ;;  %v939_v58 = vrot.slane %v937_v48, 5  ;;  %v1654_v39 = vsel %vm1404_vm9, %v13837_v12, %v1252_v30  ;;  %v14340_v46 = vcombine.low %v14230_v35, %v14230_v35  ;;  %v19177_v30 = vld [vmem:[#allocation15_spill] sm:$0xff] }
 0x121   : > { %1275 = vrot.lane.b32.xlu1 %v14256_v1, %s13284_s10  ;;  %v2092_v24 = vrot.slane %v2090_v11, 3  ;;  %v2095_v38 = vrot.slane %v2093_v44, 4  ;;  %v1250_v33 = vpop.permute.xlu0 %1249  ;;  %v2465_v20 = vsel %vm1807_vm8, %v2456_v34, %v2464_v18  ;;  %v14333_v11 = vld [vmem:[#allocation2 + $0x108] sm:$0xf] }
 0x122   : > { %v1652_v31 = vsel %vm1404_vm9, %v13837_v12, %v1250_v33  ;;  %12877 = vmatmul.mubr.msk.bf16.gmra.mxu1 %vm1404_vm9, %v2465_v20  ;;  %v14328_v3 = vor.u32 %v939_v58, %v936_v55  ;;  %v662_v12 = vld [vmem:[#allocation2 + $0x104] sm:$0xf] }
 0x123   : > { %v1099_v9 = vpop.permute.xlu1 %1098  ;;  %v2096_v16 = vor.u32 %v2095_v38, %v2092_v24  ;;  %1190 = vrot.lane.b32.xlu0 %v14153_v37, %s13285_s11  ;;  %v1724_v14 = vsel %vm1485_vm10, %v1652_v31, %v1322_v25  ;;  %v11372_v24 = vcombine.low %v662_v12, %v14333_v11 }
 0x125   : > { %1345 = vrot.lane.b32.xlu1 %v14283_v51, %s13283_s9  ;;  %v956_v29 = vpop.permute.xlu0 %955  ;;  %v2104_v7 = vsel %vm1807_vm8, %v2096_v16, %v2103_v15 }
 0x126   : > { %2872 = vmatmul.mubr.bf16.gmra.mxu0 %v2104_v7  ;;  %v1444_v60 = vsel %vm1404_vm9, %v19177_v30, %v956_v29  ;;  %v1442_v38 = vsel %vm1404_vm9, %v13753_v62, %v956_v29  ;;  %v661_v29 = vld [vmem:[#allocation2 + $0x100] sm:$0xf] }
 0x127   : > { %v1381_v22 = vpop.permute.xlu1 %1380  ;;  %1273 = vrot.lane.b32.xlu0 %v14238_v45, %s13284_s10  ;;  %v1515_v20 = vsel %vm1485_vm10, %v1442_v38, %v1099_v9  ;;  %v14362_v9 = vcombine.low %v661_v29, %v662_v12 }
 0x128   : > { %v1781_v43 = vsel %vm1550_vm11, %v1724_v14, %v1381_v22 }
 0x129   : > { %v2152_v42 = vshrl.u32 %v1781_v43, 16  ;;  %v2155_v26 = vshll.u32 %v1781_v43, 16  ;;  %1122 = vrot.lane.b32.xlu1 %v14120_v36, %s13283_s9  ;;  %v1324_v59 = vpop.permute.xlu0 %1323  ;;  %v1208_v43 = vshrl.u32 %v11372_v24, 16 }
 0x12a   : > { %v1726_v25 = vsel %vm1485_vm10, %v1654_v39, %v1324_v59 }
 0x12b   : > { %v1173_v57 = vpop.permute.xlu1 %1172  ;;  %v1782_v44 = vsel %vm1550_vm11, %v1726_v25, %v1381_v22  ;;  %967 = vrot.lane.b32.xlu0 %v14198_v27, %s13284_s10  ;;  %v2154_v36 = vrot.slane %v2152_v42, 3  ;;  %v2157_v2 = vrot.slane %v2155_v26, 4  ;;  %v1211_v42 = vshll.u32 %v11372_v24, 16 }
 0x12c   : > { %v2159_v56 = vshrl.u32 %v1782_v44, 16  ;;  %v2162_v48 = vshll.u32 %v1782_v44, 16  ;;  %v1210_v30 = vrot.slane %v1208_v43, 4 }
 0x12d   : > { %1392 = vrot.lane.b32.xlu1 %v14328_v3, %s13285_s11  ;;  %v1101_v18 = vpop.permute.xlu0 %1100  ;;  %v2158_v55 = vor.u32 %v2157_v2, %v2154_v36 }
 0x12e   : > { %v2161_v33 = vrot.slane %v2159_v56, 3  ;;  %v2164_v35 = vrot.slane %v2162_v48, 4  ;;  %v1517_v5 = vsel %vm1485_vm10, %v1444_v60, %v1101_v18  ;;  %v401_v56 = vld [vmem:[#allocation2 + $0x11c] sm:$0x1]  ;;  %v1213_v60 = vrot.slane %v1211_v42, 5 }
 0x12f   : > { %v1256_v34 = vpop.permute.xlu1 %1255  ;;  %v1582_v16 = vsel %vm1550_vm11, %v1517_v5, %v1173_v57  ;;  %1347 = vrot.lane.b32.xlu0 %v14340_v46, %s13283_s9  ;;  %v13048_v57 = vld [vmem:[#allocation2 + $0x10c] ss:$0 sps:$4 sm:$0xff]   ;;  %v14364_v18 = vrot.slane %v11372_v24, 5  ;;  %v402_v38 = vsel %vm13363_vm6, 0, %v401_v56 }
 0x130   : > { %v2144_v31 = vshrl.u32 %v1582_v16, 16  ;;  %v2147_v15 = vshll.u32 %v1582_v16, 16  ;;  %v2165_v58 = vor.u32 %v2164_v35, %v2161_v33  ;;  %v1219_v35 = vrot.slane %v13048_v57, 5  ;;  %403 = vst [vmem:[#allocation2 + $0x11c] sm:$0x1] %v402_v38 }
 0x131   : > { %1196 = vrot.lane.b32.xlu1 %v14278_v13, %s13285_s11  ;;  %v1171_v62 = vpop.permute.xlu0 %1170  ;;  %v14375_v16 = vld [vmem:[#allocation2 + $0x118] sm:$0xf]  ;;  %v1659_v43 = vsel %vm1404_vm9, %v13916_v47, %v1256_v34 }
 0x132   : > { %v1580_v7 = vsel %vm1550_vm11, %v1515_v20, %v1171_v62  ;;  %v2166_v22 = vsel %vm1807_vm8, %v2158_v55, %v2165_v58  ;;  %v2146_v26 = vrot.slane %v2144_v31, 3  ;;  %v2149_v39 = vrot.slane %v2147_v15, 4  ;;  %v14387_v20 = vld [vmem:[#allocation2 + $0x114] sm:$0xf] }
 0x133   : > { %v1326_v14 = vpop.permute.xlu1 %1325  ;;  %v2137_v59 = vshrl.u32 %v1580_v7, 16  ;;  %v2140_v25 = vshll.u32 %v1580_v7, 16  ;;  %1124 = vrot.lane.b32.xlu0 %v14139_v61, %s13283_s9  ;;  %2879 = vmatprep.mubr.bf16.mxu0 %v2166_v22  ;;  %v14381_v55 = vor.u32 %v1213_v60, %v1210_v30  ;;  %v14385_v58 = vsel %vm1021_vm7, %v14364_v18, %v1219_v35 }
 0x134   : > { %v2150_v12 = vor.u32 %v2149_v39, %v2146_v26  ;;  %v2505_v7 = vshrl.u32 %v14385_v58, 16  ;;  %v14396_v22 = vcombine.low %v14387_v20, %v14375_v16  ;;  %v2508_v26 = vshll.u32 %v14385_v58, 16 }
 0x135   : > { %1279 = vrot.lane.b32.xlu1 %v14269_v53, %s13284_s10  ;;  %v2139_v44 = vrot.slane %v2137_v59, 3  ;;  %v2142_v36 = vrot.slane %v2140_v25, 4  ;;  %v1254_v2 = vpop.permute.xlu0 %1253  ;;  %v14406_v25 = vcombine.low %v14333_v11, %v14333_v11 }
 0x136   : > { %v1657_v33 = vsel %vm1404_vm9, %v13916_v47, %v1254_v2  ;;  %v1401_v57 = vrot.slane %v14396_v22, 5  ;;  %v2507_v11 = vrot.slane %v2505_v7, 3 }
 0x137   : > { %v1103_v48 = vpop.permute.xlu1 %1102  ;;  %v2143_v61 = vor.u32 %v2142_v36, %v2139_v44  ;;  %1194 = vrot.lane.b32.xlu0 %v14234_v32, %s13285_s11  ;;  %v1728_v8 = vsel %vm1485_vm10, %v1657_v33, %v1326_v14  ;;  %v14392_v14 = vld [vmem:[#allocation2 + $0x110] sm:$0xf]  ;;  %v13052_v44 = vld [vmem:[#allocation2 + $0x11c] ss:$0 sps:$4 sm:$0xff]   ;;  %v2510_v33 = vrot.slane %v2508_v26, 4 }
 0x138   : > { %v1402_v30 = vrot.slane %v13052_v44, 5  ;;  %v2544_v26 = vshrl.u32 %v1401_v57, 16 }
 0x139   : > { %1349 = vrot.lane.b32.xlu1 %v14362_v9, %s13283_s9  ;;  %v958_v5 = vpop.permute.xlu0 %957  ;;  %v2151_v24 = vsel %vm1807_vm8, %v2143_v61, %v2150_v12  ;;  %v1359_v12 = vshrl.u32 %v14396_v22, 16 }
 0x13a   : > { %2880 = vmatmul.mubr.bf16.gmra.mxu0 %v2151_v24  ;;  %v1447_v39 = vsel %vm1404_vm9, %v13810_v40, %v958_v5  ;;  %v11374_v40 = vcombine.low %v14392_v14, %v14387_v20  ;;  %v1449_v60 = vsel %vm1404_vm9, %v13854_v21, %v958_v5  ;;  %v2500_v5 = vshll.u32 %v14364_v18, 16 }
 0x13b   : > { %v1383_v31 = vpop.permute.xlu1 %1382  ;;  %1277 = vrot.lane.b32.xlu0 %v14250_v41, %s13284_s10  ;;  %v1519_v61 = vsel %vm1485_vm10, %v1447_v39, %v1103_v48  ;;  %v1403_v48 = vsel %vm1021_vm7, %v1401_v57, %v1402_v30  ;;  %v2547_v39 = vshll.u32 %v1401_v57, 16  ;;  %v1362_v57 = vshll.u32 %v14396_v22, 16 }
 0x13c   : > { %v1784_v15 = vsel %vm1550_vm11, %v1728_v8, %v1383_v31 }
 0x13d   : > { %v2199_v62 = vshrl.u32 %v1784_v15, 16  ;;  %v2202_v29 = vshll.u32 %v1784_v15, 16  ;;  %1126 = vrot.lane.b32.xlu1 %v14238_v45, %s13283_s9  ;;  %v1328_v42 = vpop.permute.xlu0 %1327  ;;  %v2497_v15 = vshrl.u32 %v14364_v18, 16 }
 0x13e   : > { %v1730_v59 = vsel %vm1485_vm10, %v1659_v43, %v1328_v42  ;;  %v2502_v42 = vrot.slane %v2500_v5, 4 }
 0x13f   : > { %v1177_v45 = vpop.permute.xlu1 %1176  ;;  %v2201_v36 = vrot.slane %v2199_v62, 3  ;;  %v2204_v2 = vrot.slane %v2202_v29, 4  ;;  %v1785_v47 = vsel %vm1550_vm11, %v1730_v59, %v1383_v31  ;;  %969 = vrot.lane.b32.xlu0 %v14261_v28, %s13284_s10  ;;  %v2499_v14 = vrot.slane %v2497_v15, 3 }
 0x140   : > { %v2206_v34 = vshrl.u32 %v1785_v47, 16  ;;  %v2209_v56 = vshll.u32 %v1785_v47, 16  ;;  %v2552_v59 = vshrl.u32 %v1403_v48, 16 }
 0x141   : > { %1394 = vrot.lane.b32.xlu1 %v14381_v55, %s13285_s11  ;;  %v1105_v38 = vpop.permute.xlu0 %1104  ;;  %v2205_v21 = vor.u32 %v2204_v2, %v2201_v36  ;;  %v2503_v30 = vor.u32 %v2502_v42, %v2499_v14 }
 0x142   : > { %v2208_v35 = vrot.slane %v2206_v34, 3  ;;  %v2211_v24 = vrot.slane %v2209_v56, 4  ;;  %v1521_v8 = vsel %vm1485_vm10, %v1449_v60, %v1105_v38  ;;  %v2511_v60 = vor.u32 %v2510_v33, %v2507_v11 }
 0x143   : > { %v14421_v31 = vpop.permute.xlu1 %1259  ;;  %v1586_v20 = vsel %vm1550_vm11, %v1521_v8, %v1177_v45  ;;  %1351 = vrot.lane.b32.xlu0 %v14406_v25, %s13283_s9  ;;  %v2546_v38 = vrot.slane %v2544_v26, 3  ;;  %v1361_v33 = vrot.slane %v1359_v12, 4  ;;  %v3306_v26 = vld [vmem:[#allocation2 + $0x4] sm:$0xf] }
 0x144   : > { %v2191_v62 = vshrl.u32 %v1586_v20, 16  ;;  %v2194_v29 = vshll.u32 %v1586_v20, 16  ;;  %v2212_v7 = vor.u32 %v2211_v24, %v2208_v35  ;;  %v2549_v35 = vrot.slane %v2547_v39, 4  ;;  %v3307_v39 = vld [vmem:[#allocation2 + $0x8] sm:$0xf] }
 0x145   : > { %1200 = vrot.lane.b32.xlu1 %v14340_v46, %s13285_s11  ;;  %v1175_v43 = vpop.permute.xlu0 %1174  ;;  %v2554_v24 = vrot.slane %v2552_v59, 3  ;;  %v2512_v20 = vsel %vm1807_vm8, %v2503_v30, %v2511_v60 }
 0x146   : > { %v2193_v45 = vrot.slane %v2191_v62, 3  ;;  %v2196_v44 = vrot.slane %v2194_v29, 4  ;;  %v1584_v36 = vsel %vm1550_vm11, %v1519_v61, %v1175_v43  ;;  %v2213_v47 = vsel %vm1807_vm8, %v2205_v21, %v2212_v7  ;;  %12880 = vmatprep.mubr.msk.bf16.mxu1 %vm1404_vm9, %v2512_v20 }
 0x147   : > { %v1330_v2 = vpop.permute.xlu1 %1329  ;;  %v2184_v34 = vshrl.u32 %v1584_v36, 16  ;;  %v2187_v56 = vshll.u32 %v1584_v36, 16  ;;  %1128 = vrot.lane.b32.xlu0 %v14256_v1, %s13283_s9  ;;  %2887 = vmatprep.mubr.bf16.mxu0 %v2213_v47  ;;  %v2555_v21 = vshll.u32 %v1403_v48, 16  ;;  %v1364_v29 = vrot.slane %v1362_v57, 5 }
 0x148   : > { %v2197_v62 = vor.u32 %v2196_v44, %v2193_v45  ;;  %v1664_v36 = vsel %vm1404_vm9, %v13990_v50, %v14421_v31  ;;  %v14457_v47 = vcombine.low %v3306_v26, %v3307_v39 }
 0x149   : > { %1283 = vrot.lane.b32.xlu1 %v14385_v58, %s13284_s10  ;;  %v2186_v61 = vrot.slane %v2184_v34, 3  ;;  %v2189_v8 = vrot.slane %v2187_v56, 4  ;;  %v1258_v15 = vpop.permute.xlu0 %1257  ;;  %v2550_v58 = vor.u32 %v2549_v35, %v2546_v38  ;;  %v2557_v22 = vrot.slane %v2555_v21, 4 }
 0x14a   : > { %v1662_v11 = vsel %vm1404_vm9, %v13990_v50, %v1258_v15  ;;  %v1365_v44 = vor.u32 %v1364_v29, %v1361_v33  ;;  %v3522_v35 = vshrl.u32 %v14457_v47, 16 }
 0x14b   : > { %v1107_v5 = vpop.permute.xlu1 %1106  ;;  %v2190_v1 = vor.u32 %v2189_v8, %v2186_v61  ;;  %1198 = vrot.lane.b32.xlu0 %v14283_v51, %s13285_s11  ;;  %v2558_v14 = vor.u32 %v2557_v22, %v2554_v24  ;;  %v1732_v43 = vsel %vm1485_vm10, %v1662_v11, %v1330_v2  ;;  %v3525_v24 = vshll.u32 %v14457_v47, 16 }
 0x14d   : > { %1353 = vrot.lane.b32.xlu1 %v11374_v40, %s13283_s9  ;;  %v960_v7 = vpop.permute.xlu0 %959  ;;  %v2198_v48 = vsel %vm1807_vm8, %v2190_v1, %v2197_v62  ;;  %v2559_v45 = vsel %vm1807_vm8, %v2550_v58, %v2558_v14  ;;  %v3729_v62 = vrot.slane %v14457_v47, 5  ;;  %v3527_v14 = vrot.slane %v3525_v24, 5 }
 0x14e   : > { %2888 = vmatmul.mubr.bf16.gmra.mxu0 %v2198_v48  ;;  %12881 = vmatmul.mubr.msk.bf16.gmra.mxu1 %vm1404_vm9, %v2559_v45  ;;  %v1454_v50 = vsel %vm1404_vm9, %v13934_v49, %v960_v7  ;;  %v1452_v61 = vsel %vm1404_vm9, %v13868_v6, %v960_v7  ;;  %v3524_v48 = vrot.slane %v3522_v35, 4 }
 0x14f   : > { %v1385_v42 = vpop.permute.xlu1 %1384  ;;  %1281 = vrot.lane.b32.xlu0 %v14364_v18, %s13284_s10  ;;  %v1523_v6 = vsel %vm1485_vm10, %v1452_v61, %v1107_v5 }
 0x150   : > { %v1787_v59 = vsel %vm1550_vm11, %v1732_v43, %v1385_v42 }
 0x151   : > { %v2246_v40 = vshrl.u32 %v1787_v59, 16  ;;  %v2249_v12 = vshll.u32 %v1787_v59, 16  ;;  %1130 = vrot.lane.b32.xlu1 %v14250_v41, %s13283_s9  ;;  %v1332_v2 = vpop.permute.xlu0 %1331  ;;  %v11375_v41 = vcombine.low %v14375_v16, %v14375_v16 }
 0x152   : > { %v1734_v34 = vsel %vm1485_vm10, %v1664_v36, %v1332_v2  ;;  %v3528_v2 = vor.u32 %v3527_v14, %v3524_v48 }
 0x153   : > { %v1181_v18 = vpop.permute.xlu1 %1180  ;;  %v1788_v56 = vsel %vm1550_vm11, %v1734_v34, %v1385_v42  ;;  %971 = vrot.lane.b32.xlu0 %v14328_v3, %s13284_s10  ;;  %v2248_v30 = vrot.slane %v2246_v40, 3  ;;  %v2251_v60 = vrot.slane %v2249_v12, 4 }
 0x154   : > { %v2253_v57 = vshrl.u32 %v1788_v56, 16  ;;  %v2256_v38 = vshll.u32 %v1788_v56, 16 }
 0x155   : > { %1396 = vrot.lane.b32.xlu1 %v1365_v44, %s13285_s11  ;;  %v1109_v31 = vpop.permute.xlu0 %1108  ;;  %v2252_v11 = vor.u32 %v2251_v60, %v2248_v30 }
 0x156   : > { %v2255_v8 = vrot.slane %v2253_v57, 3  ;;  %v2258_v15 = vrot.slane %v2256_v38, 4  ;;  %v1525_v16 = vsel %vm1485_vm10, %v1454_v50, %v1109_v31 }
 0x157   : > { %v1264_v20 = vpop.permute.xlu1 %1263  ;;  %v1590_v21 = vsel %vm1550_vm11, %v1525_v16, %v1181_v18  ;;  %1355 = vrot.lane.b32.xlu0 %v11375_v41, %s13283_s9 }
 0x158   : > { %v2238_v49 = vshrl.u32 %v1590_v21, 16  ;;  %v2241_v1 = vshll.u32 %v1590_v21, 16  ;;  %v2259_v58 = vor.u32 %v2258_v15, %v2255_v8 }
 0x159   : > { %1204 = vrot.lane.b32.xlu1 %v14406_v25, %s13285_s11  ;;  %v1179_v22 = vpop.permute.xlu0 %1178  ;;  %v13054_v25 = vld [vmem:[#allocation2 + $0xc] ss:$0 sps:$4 sm:$0xff]  }
 0x15a   : > { %v1588_v33 = vsel %vm1550_vm11, %v1523_v6, %v1179_v22  ;;  %v2260_v7 = vsel %vm1807_vm8, %v2252_v11, %v2259_v58  ;;  %v2240_v43 = vrot.slane %v2238_v49, 3  ;;  %v2243_v42 = vrot.slane %v2241_v1, 4 }
 0x15b   : > { %v1334_v29 = vpop.permute.xlu1 %1333  ;;  %v2231_v26 = vshrl.u32 %v1588_v33, 16  ;;  %v2234_v39 = vshll.u32 %v1588_v33, 16  ;;  %1132 = vrot.lane.b32.xlu0 %v14269_v53, %s13283_s9  ;;  %2895 = vmatprep.mubr.bf16.mxu0 %v2260_v7  ;;  %v3730_v47 = vrot.slane %v13054_v25, 5 }
 0x15c   : > { %v2244_v36 = vor.u32 %v2243_v42, %v2240_v43 }
 0x15d   : > { %3777 = vrot.lane.b32.xlu1 %v3729_v62, %s13283_s9  ;;  %v2233_v5 = vrot.slane %v2231_v26, 3  ;;  %v2236_v59 = vrot.slane %v2234_v39, 4  ;;  %v1262_v45 = vpop.permute.xlu0 %1261  ;;  %v3731_v57 = vsel %vm1021_vm7, %v3729_v62, %v3730_v47 }
 0x15e   : > { %v1667_v44 = vsel %vm1404_vm9, %v14066_v23, %v1262_v45 }
 0x15f   : > { %v1111_v40 = vpop.permute.xlu1 %1110  ;;  %v2237_v12 = vor.u32 %v2236_v59, %v2233_v5  ;;  %1202 = vrot.lane.b32.xlu0 %v14362_v9, %s13285_s11  ;;  %v1736_v18 = vsel %vm1485_vm10, %v1667_v44, %v1334_v29  ;;  %v1669_v9 = vsel %vm1404_vm9, %v14066_v23, %v1264_v20 }
 0x161   : > { %v962_v34 = vpop.permute.xlu0 %961  ;;  %v2245_v53 = vsel %vm1807_vm8, %v2237_v12, %v2244_v36 }
 0x162   : > { %2896 = vmatmul.mubr.bf16.gmra.mxu0 %v2245_v53  ;;  %v1459_v16 = vsel %vm1404_vm9, %v14012_v17, %v962_v34  ;;  %v1457_v62 = vsel %vm1404_vm9, %v13964_v0, %v962_v34 }
 0x163   : > { %v1387_v56 = vpop.permute.xlu1 %1386  ;;  %3649 = vrot.lane.b32.xlu0 %v3528_v2, %s13284_s10  ;;  %v1527_v29 = vsel %vm1485_vm10, %v1457_v62, %v1111_v40 }
 0x164   : > { %v1790_v41 = vsel %vm1550_vm11, %v1736_v18, %v1387_v56 }
 0x165   : > { %v2293_v30 = vshrl.u32 %v1790_v41, 16  ;;  %v2296_v60 = vshll.u32 %v1790_v41, 16  ;;  %v1336_v38 = vpop.permute.xlu0 %1335 }
 0x166   : > { %v1738_v50 = vsel %vm1485_vm10, %v1669_v9, %v1336_v38 }
 0x167   : > { %v1185_v31 = vpop.permute.xlu1 %1184  ;;  %v1791_v35 = vsel %vm1550_vm11, %v1738_v50, %v1387_v56  ;;  %3779 = vrot.lane.b32.xlu0 %v3731_v57, %s13283_s9  ;;  %v2295_v24 = vrot.slane %v2293_v30, 3  ;;  %v2298_v61 = vrot.slane %v2296_v60, 4 }
 0x168   : > { %v2300_v8 = vshrl.u32 %v1791_v35, 16  ;;  %v2303_v15 = vshll.u32 %v1791_v35, 16 }
 0x169   : > { %v1113_v21 = vpop.permute.xlu0 %1112  ;;  %v2299_v22 = vor.u32 %v2298_v61, %v2295_v24 }
 0x16a   : > { %v2302_v23 = vrot.slane %v2300_v8, 3  ;;  %v2305_v20 = vrot.slane %v2303_v15, 4  ;;  %v1529_v49 = vsel %vm1485_vm10, %v1459_v16, %v1113_v21 }
 0x16b   : > { %v1268_v1 = vpop.permute.xlu1 %1267  ;;  %v1594_v11 = vsel %vm1550_vm11, %v1529_v49, %v1185_v31 }
 0x16c   : > { %v2285_v58 = vshrl.u32 %v1594_v11, 16  ;;  %v2288_v6 = vshll.u32 %v1594_v11, 16  ;;  %v2306_v33 = vor.u32 %v2305_v20, %v2302_v23  ;;  %v1674_v60 = vsel %vm1404_vm9, %v14131_v19, %v1268_v1 }
 0x16d   : > { %v1183_v7 = vpop.permute.xlu0 %1182 }
 0x16e   : > { %v1592_v17 = vsel %vm1550_vm11, %v1527_v29, %v1183_v7  ;;  %v2307_v14 = vsel %vm1807_vm8, %v2299_v22, %v2306_v33  ;;  %v2287_v0 = vrot.slane %v2285_v58, 3  ;;  %v2290_v43 = vrot.slane %v2288_v6, 4 }
 0x16f   : > { %v1338_v48 = vpop.permute.xlu1 %1337  ;;  %v2278_v42 = vshrl.u32 %v1592_v17, 16  ;;  %v2281_v26 = vshll.u32 %v1592_v17, 16  ;;  %2903 = vmatprep.mubr.bf16.mxu0 %v2307_v14 }
 0x170   : > { %v2291_v44 = vor.u32 %v2290_v43, %v2287_v0 }
 0x171   : > { %v2280_v39 = vrot.slane %v2278_v42, 3  ;;  %v2283_v25 = vrot.slane %v2281_v26, 4  ;;  %v1266_v5 = vpop.permute.xlu0 %1265 }
 0x172   : > { %v1672_v12 = vsel %vm1404_vm9, %v14131_v19, %v1266_v5 }
 0x173   : > { %v1115_v59 = vpop.permute.xlu1 %1114  ;;  %v2284_v45 = vor.u32 %v2283_v25, %v2280_v39  ;;  %v1740_v34 = vsel %vm1485_vm10, %v1672_v12, %v1338_v48 }
 0x174   : > { %v12026_v40 = vpop.f32.mrf.mxu0 }
 0x175   : > { %v964_v2 = vpop.permute.xlu0 %963  ;;  %v2292_v47 = vsel %vm1807_vm8, %v2284_v45, %v2291_v44 }
 0x176   : > { %v12027_v36 = vpop.f32.mrf.mxu0  ;;  %2904 = vmatmul.mubr.bf16.gmra.mxu0 %v2292_v47  ;;  %v1464_v15 = vsel %vm1404_vm9, %v14080_v54, %v964_v2  ;;  %v1462_v21 = vsel %vm1404_vm9, %v14018_v10, %v964_v2 }
 0x177   : > { %v14511_v53 = vadd.f32 %v12027_v36, %v12026_v40  ;;  %v1389_v18 = vpop.permute.xlu1 %1388  ;;  %v1531_v33 = vsel %vm1485_vm10, %v1462_v21, %v1115_v59 }
 0x178   : > { %v1793_v56 = vsel %vm1550_vm11, %v1740_v34, %v1389_v18  ;;  %v14518_v24 = vpop.f32.mrf.mxu0 }
 0x179   : > { %v2340_v41 = vshrl.u32 %v1793_v56, 16  ;;  %v2343_v30 = vshll.u32 %v1793_v56, 16  ;;  %v1340_v57 = vpop.permute.xlu0 %1339 }
 0x17a   : > { %v1742_v9 = vsel %vm1485_vm10, %v1674_v60, %v1340_v57  ;;  %v14526_v1 = vpop.f32.mrf.mxu0 }
 0x17b   : > { %v1189_v38 = vpop.permute.xlu1 %1188  ;;  %v1794_v50 = vsel %vm1550_vm11, %v1742_v9, %v1389_v18  ;;  %v2342_v31 = vrot.slane %v2340_v41, 3  ;;  %v2345_v35 = vrot.slane %v2343_v30, 4 }
 0x17c   : > { %v2347_v61 = vshrl.u32 %v1794_v50, 16  ;;  %v2350_v8 = vshll.u32 %v1794_v50, 16 }
 0x17d   : > { %v1117_v16 = vpop.permute.xlu0 %1116  ;;  %v2346_v6 = vor.u32 %v2345_v35, %v2342_v31 }
 0x17e   : > { %v2349_v19 = vrot.slane %v2347_v61, 3  ;;  %v2352_v62 = vrot.slane %v2350_v8, 4  ;;  %v1533_v23 = vsel %vm1485_vm10, %v1464_v15, %v1117_v16 }
 0x17f   : > { %v1272_v20 = vpop.permute.xlu1 %1271  ;;  %v1598_v49 = vsel %vm1550_vm11, %v1533_v23, %v1189_v38 }
 0x180   : > { %v2332_v11 = vshrl.u32 %v1598_v49, 16  ;;  %v2335_v58 = vshll.u32 %v1598_v49, 16  ;;  %v2353_v22 = vor.u32 %v2352_v62, %v2349_v19  ;;  %v1679_v41 = vsel %vm1404_vm9, %v14198_v27, %v1272_v20 }
 0x181   : > { %v1187_v54 = vpop.permute.xlu0 %1186 }
 0x182   : > { %v1596_v29 = vsel %vm1550_vm11, %v1531_v33, %v1187_v54  ;;  %v12032_v7 = vpop.f32.mrf.mxu0  ;;  %v2354_v17 = vsel %vm1807_vm8, %v2346_v6, %v2353_v22  ;;  %v2334_v48 = vrot.slane %v2332_v11, 3  ;;  %v2337_v14 = vrot.slane %v2335_v58, 4 }
 0x183   : > { %v1342_v10 = vpop.permute.xlu1 %1341  ;;  %v2325_v0 = vshrl.u32 %v1596_v29, 16  ;;  %v2328_v43 = vshll.u32 %v1596_v29, 16  ;;  %2911 = vmatprep.mubr.bf16.mxu0 %v2354_v17 }
 0x184   : > { %v12033_v42 = vpop.f32.mrf.mxu0  ;;  %v2338_v40 = vor.u32 %v2337_v14, %v2334_v48 }
 0x185   : > { %v2327_v26 = vrot.slane %v2325_v0, 3  ;;  %v2330_v39 = vrot.slane %v2328_v43, 4  ;;  %v14531_v25 = vadd.f32 %v12033_v42, %v12032_v7  ;;  %v1270_v5 = vpop.permute.xlu0 %1269 }
 0x186   : > { %v1677_v12 = vsel %vm1404_vm9, %v14198_v27, %v1270_v5  ;;  %v14542_v38 = vpop.f32.mrf.mxu0 }
 0x187   : > { %v1119_v45 = vpop.permute.xlu1 %1118  ;;  %v2331_v59 = vor.u32 %v2330_v39, %v2327_v26  ;;  %v1744_v2 = vsel %vm1485_vm10, %v1677_v12, %v1342_v10 }
 0x188   : > { %v14550_v20 = vpop.f32.mrf.mxu0 }
 0x189   : > { %v966_v44 = vpop.permute.xlu0 %965  ;;  %v2339_v36 = vsel %vm1807_vm8, %v2331_v59, %v2338_v40 }
 0x18a   : > { %2912 = vmatmul.mubr.bf16.gmra.mxu0 %v2339_v36  ;;  %v1469_v8 = vsel %vm1404_vm9, %v14148_v4, %v966_v44  ;;  %v1467_v16 = vsel %vm1404_vm9, %v14104_v52, %v966_v44 }
 0x18b   : > { %v1391_v47 = vpop.permute.xlu1 %1390  ;;  %v1535_v22 = vsel %vm1485_vm10, %v1467_v16, %v1119_v45 }
 0x18c   : > { %v1796_v34 = vsel %vm1550_vm11, %v1744_v2, %v1391_v47 }
 0x18d   : > { %v2387_v18 = vshrl.u32 %v1796_v34, 16  ;;  %v2390_v56 = vshll.u32 %v1796_v34, 16  ;;  %v1344_v30 = vpop.permute.xlu0 %1343 }
 0x18e   : > { %v1746_v60 = vsel %vm1485_vm10, %v1679_v41, %v1344_v30 }
 0x18f   : > { %v1193_v57 = vpop.permute.xlu1 %1192  ;;  %v1797_v9 = vsel %vm1550_vm11, %v1746_v60, %v1391_v47  ;;  %v2389_v50 = vrot.slane %v2387_v18, 3  ;;  %v2392_v31 = vrot.slane %v2390_v56, 4 }
 0x190   : > { %v2394_v35 = vshrl.u32 %v1797_v9, 16  ;;  %v2397_v61 = vshll.u32 %v1797_v9, 16 }
 0x191   : > { %v1121_v15 = vpop.permute.xlu0 %1120  ;;  %v2393_v58 = vor.u32 %v2392_v31, %v2389_v50 }
 0x192   : > { %v2396_v27 = vrot.slane %v2394_v35, 3  ;;  %v2399_v21 = vrot.slane %v2397_v61, 4  ;;  %v1537_v19 = vsel %vm1485_vm10, %v1469_v8, %v1121_v15 }
 0x193   : > { %v1276_v62 = vpop.permute.xlu1 %1275  ;;  %v1602_v23 = vsel %vm1550_vm11, %v1537_v19, %v1193_v57 }
 0x194   : > { %v2379_v49 = vshrl.u32 %v1602_v23, 16  ;;  %v2382_v11 = vshll.u32 %v1602_v23, 16  ;;  %v2400_v6 = vor.u32 %v2399_v21, %v2396_v27  ;;  %v1684_v18 = vsel %vm1404_vm9, %v14261_v28, %v1276_v62 }
 0x195   : > { %v1191_v4 = vpop.permute.xlu0 %1190 }
 0x196   : > { %v1600_v33 = vsel %vm1550_vm11, %v1535_v22, %v1191_v4  ;;  %v12038_v54 = vpop.f32.mrf.mxu0  ;;  %v2401_v29 = vsel %vm1807_vm8, %v2393_v58, %v2400_v6  ;;  %v2381_v7 = vrot.slane %v2379_v49, 3  ;;  %v2384_v10 = vrot.slane %v2382_v11, 4 }
 0x197   : > { %v1346_v52 = vpop.permute.xlu1 %1345  ;;  %v2372_v17 = vshrl.u32 %v1600_v33, 16  ;;  %v2375_v48 = vshll.u32 %v1600_v33, 16  ;;  %2919 = vmatprep.mubr.bf16.mxu0 %v2401_v29 }
 0x198   : > { %v12039_v14 = vpop.f32.mrf.mxu0  ;;  %v2385_v59 = vor.u32 %v2384_v10, %v2381_v7 }
 0x199   : > { %v2374_v0 = vrot.slane %v2372_v17, 3  ;;  %v2377_v43 = vrot.slane %v2375_v48, 4  ;;  %v14555_v42 = vadd.f32 %v12039_v14, %v12038_v54  ;;  %v1274_v26 = vpop.permute.xlu0 %1273 }
 0x19a   : > { %v1682_v45 = vsel %vm1404_vm9, %v14261_v28, %v1274_v26  ;;  %v14566_v57 = vpop.f32.mrf.mxu0 }
 0x19b   : > { %v1123_v39 = vpop.permute.xlu1 %1122  ;;  %v2378_v5 = vor.u32 %v2377_v43, %v2374_v0  ;;  %v1748_v44 = vsel %vm1485_vm10, %v1682_v45, %v1346_v52 }
 0x19c   : > { %v14574_v62 = vpop.f32.mrf.mxu0 }
 0x19d   : > { %v968_v12 = vpop.permute.xlu0 %967  ;;  %v2386_v40 = vsel %vm1807_vm8, %v2378_v5, %v2385_v59 }
 0x19e   : > { %2920 = vmatmul.mubr.bf16.gmra.mxu0 %v2386_v40  ;;  %v1474_v61 = vsel %vm1404_vm9, %v14210_v63, %v968_v12  ;;  %v1472_v15 = vsel %vm1404_vm9, %v14153_v37, %v968_v12 }
 0x19f   : > { %v1393_v36 = vpop.permute.xlu1 %1392  ;;  %v1539_v6 = vsel %vm1485_vm10, %v1472_v15, %v1123_v39 }
 0x1a0   : > { %v1799_v2 = vsel %vm1550_vm11, %v1748_v44, %v1393_v36 }
 0x1a1   : > { %v2434_v47 = vshrl.u32 %v1799_v2, 16  ;;  %v2437_v34 = vshll.u32 %v1799_v2, 16  ;;  %v1348_v56 = vpop.permute.xlu0 %1347 }
 0x1a2   : > { %v1750_v41 = vsel %vm1485_vm10, %v1684_v18, %v1348_v56 }
 0x1a3   : > { %v1197_v30 = vpop.permute.xlu1 %1196  ;;  %v1800_v60 = vsel %vm1550_vm11, %v1750_v41, %v1393_v36  ;;  %v2436_v9 = vrot.slane %v2434_v47, 3  ;;  %v2439_v50 = vrot.slane %v2437_v34, 4 }
 0x1a4   : > { %v2441_v31 = vshrl.u32 %v1800_v60, 16  ;;  %v2444_v35 = vshll.u32 %v1800_v60, 16 }
 0x1a5   : > { %v1125_v8 = vpop.permute.xlu0 %1124  ;;  %v2440_v11 = vor.u32 %v2439_v50, %v2436_v9 }
 0x1a6   : > { %v2443_v28 = vrot.slane %v2441_v31, 3  ;;  %v2446_v16 = vrot.slane %v2444_v35, 4  ;;  %v1541_v27 = vsel %vm1485_vm10, %v1474_v61, %v1125_v8  ;;  %v14594_v8 = vpop.f32.mrf.mxu1 }
 0x1a7   : > { %v1280_v21 = vpop.permute.xlu1 %1279  ;;  %v1606_v19 = vsel %vm1550_vm11, %v1541_v27, %v1197_v30 }
 0x1a8   : > { %v2426_v23 = vshrl.u32 %v1606_v19, 16  ;;  %v2429_v49 = vshll.u32 %v1606_v19, 16  ;;  %v2447_v58 = vor.u32 %v2446_v16, %v2443_v28  ;;  %v1689_v47 = vsel %vm1404_vm9, %v14328_v3, %v1280_v21 }
 0x1a9   : > { %v1195_v63 = vpop.permute.xlu0 %1194 }
 0x1aa   : > { %v1604_v22 = vsel %vm1550_vm11, %v1539_v6, %v1195_v63  ;;  %v12044_v4 = vpop.f32.mrf.mxu0  ;;  %v2448_v33 = vsel %vm1807_vm8, %v2440_v11, %v2447_v58  ;;  %v2428_v54 = vrot.slane %v2426_v23, 3  ;;  %v2431_v52 = vrot.slane %v2429_v49, 4  ;;  %v3018_v63 = vpop.f32.mrf.mxu1 }
 0x1ab   : > { %v1350_v37 = vpop.permute.xlu1 %1349  ;;  %v2419_v29 = vshrl.u32 %v1604_v22, 16  ;;  %v2422_v7 = vshll.u32 %v1604_v22, 16  ;;  %2927 = vmatprep.mubr.bf16.mxu0 %v2448_v33 }
 0x1ac   : > { %v12045_v10 = vpop.f32.mrf.mxu0  ;;  %v2432_v5 = vor.u32 %v2431_v52, %v2428_v54 }
 0x1ad   : > { %v2421_v17 = vrot.slane %v2419_v29, 3  ;;  %v2424_v48 = vrot.slane %v2422_v7, 4  ;;  %v14579_v14 = vadd.f32 %v12045_v10, %v12044_v4  ;;  %v1278_v0 = vpop.permute.xlu0 %1277 }
 0x1ae   : > { %v1687_v39 = vsel %vm1404_vm9, %v14328_v3, %v1278_v0  ;;  %v14590_v30 = vpop.f32.mrf.mxu0 }
 0x1af   : > { %v1127_v43 = vpop.permute.xlu1 %1126  ;;  %v2425_v26 = vor.u32 %v2424_v48, %v2421_v17  ;;  %v1752_v12 = vsel %vm1485_vm10, %v1687_v39, %v1350_v37 }
 0x1b0   : > { %v14600_v19 = vpop.f32.mrf.mxu0 }
 0x1b1   : > { %v970_v45 = vpop.permute.xlu0 %969  ;;  %v2433_v59 = vsel %vm1807_vm8, %v2425_v26, %v2432_v5  ;;  %v14605_v26 = vpop.f32.mrf.mxu1  ;;  %v14612_v5 = vld [vmem:[%s19009_s2] ss:$0 sm:$0xff] }
 0x1b2   : > { %2928 = vmatmul.mubr.bf16.gmra.mxu0 %v2433_v59  ;;  %v1479_v35 = vsel %vm1404_vm9, %v14278_v13, %v970_v45  ;;  %v1477_v3 = vsel %vm1404_vm9, %v14234_v32, %v970_v45 }
 0x1b3   : > { %v1395_v40 = vpop.permute.xlu1 %1394  ;;  %v1543_v13 = vsel %vm1485_vm10, %v1477_v3, %v1127_v43 }
 0x1b4   : > { %v1802_v44 = vsel %vm1550_vm11, %v1752_v12, %v1395_v40 }
 0x1b5   : > { %v2481_v36 = vshrl.u32 %v1802_v44, 16  ;;  %v2484_v2 = vshll.u32 %v1802_v44, 16  ;;  %v1352_v34 = vpop.permute.xlu0 %1351  ;;  %v19178_v44 = vld [vmem:[#allocation6_spill] sm:$0xff] }
 0x1b6   : > { %v1754_v18 = vsel %vm1485_vm10, %v1689_v47, %v1352_v34  ;;  %v1897_v47 = vshll.u32 %v19178_v44, 16 }
 0x1b7   : > { %v1201_v56 = vpop.permute.xlu1 %1200  ;;  %v1803_v41 = vsel %vm1550_vm11, %v1754_v18, %v1395_v40  ;;  %v2483_v60 = vrot.slane %v2481_v36, 3  ;;  %v2486_v9 = vrot.slane %v2484_v2, 4  ;;  %v1894_v36 = vshrl.u32 %v19178_v44, 16 }
 0x1b8   : > { %v2488_v50 = vshrl.u32 %v1803_v41, 16  ;;  %v2491_v31 = vshll.u32 %v1803_v41, 16 }
 0x1b9   : > { %v1129_v61 = vpop.permute.xlu0 %1128  ;;  %v2487_v11 = vor.u32 %v2486_v9, %v2483_v60  ;;  %v19179_v60 = vld [vmem:[#allocation4_spill] sm:$0xff] }
 0x1ba   : > { %v2490_v15 = vrot.slane %v2488_v50, 3  ;;  %v2493_v28 = vrot.slane %v2491_v31, 4  ;;  %v1545_v16 = vsel %vm1485_vm10, %v1479_v35, %v1129_v61  ;;  %v1847_v9 = vshrl.u32 %v19179_v60, 16  ;;  %v3021_v61 = vpop.f32.mrf.mxu1 }
 0x1bb   : > { %v1284_v27 = vpop.permute.xlu1 %1283  ;;  %v1610_v21 = vsel %vm1550_vm11, %v1545_v16, %v1201_v56  ;;  %v1850_v50 = vshll.u32 %v19179_v60, 16  ;;  %v14625_v16 = vrot.slane %v1894_v36, 3 }
 0x1bc   : > { %v2473_v23 = vshrl.u32 %v1610_v21, 16  ;;  %v2476_v49 = vshll.u32 %v1610_v21, 16  ;;  %v2494_v58 = vor.u32 %v2493_v28, %v2490_v15 }
 0x1bd   : > { %v1199_v6 = vpop.permute.xlu0 %1198 }
 0x1be   : > { %v1608_v22 = vsel %vm1550_vm11, %v1543_v13, %v1199_v6  ;;  %v12050_v32 = vpop.f32.mrf.mxu0  ;;  %v2495_v37 = vsel %vm1807_vm8, %v2487_v11, %v2494_v58  ;;  %v2475_v33 = vrot.slane %v2473_v23, 3  ;;  %v2478_v54 = vrot.slane %v2476_v49, 4 }
 0x1bf   : > { %v1354_v4 = vpop.permute.xlu1 %1353  ;;  %v2466_v52 = vshrl.u32 %v1608_v22, 16  ;;  %v2469_v29 = vshll.u32 %v1608_v22, 16  ;;  %2935 = vmatprep.mubr.bf16.mxu0 %v2495_v37  ;;  %v14627_v49 = vrot.slane %v1897_v47, 4  ;;  %v1694_v11 = vsel %vm1404_vm9, %v14381_v55, %v1284_v27 }
 0x1c0   : > { %v12051_v7 = vpop.f32.mrf.mxu0  ;;  %v2479_v40 = vor.u32 %v2478_v54, %v2475_v33  ;;  %v14633_v22 = vrot.slane %v1850_v50, 4  ;;  %v19180_v33 = vld [vmem:[#allocation3_spill] sm:$0xff]  ;;  %v3325_v50 = vld [vmem:[#allocation2 + $0x50] sm:$0xf] }
 0x1c1   : > { %v2468_v10 = vrot.slane %v2466_v52, 3  ;;  %v2471_v17 = vrot.slane %v2469_v29, 4  ;;  %v12052_v48 = vadd.f32 %v12051_v7, %v12050_v32  ;;  %v1282_v0 = vpop.permute.xlu0 %1281  ;;  %v1839_v54 = vshrl.u32 %v19180_v33, 16 }
 0x1c2   : > { %v12053_v43 = vpop.f32.mrf.mxu0  ;;  %v1692_v59 = vsel %vm1404_vm9, %v14381_v55, %v1282_v0  ;;  %v1842_v52 = vshll.u32 %v19180_v33, 16 }
 0x1c3   : > { %v14607_v39 = vpop.permute.xlu1 %1130  ;;  %v2472_v45 = vor.u32 %v2471_v17, %v2468_v10  ;;  %v2858_v12 = vadd.f32 %v12052_v48, %v14612_v5  ;;  %v1756_v31 = vsel %vm1485_vm10, %v1692_v59, %v1354_v4  ;;  %v1900_v17 = vor.u32 %v14627_v49, %v14625_v16  ;;  %v19181_v48 = vld [vmem:[#allocation8_spill] sm:$0xff]  ;;  %v14705_v49 = vpop.f32.mrf.mxu1 }
 0x1c4   : > { %v12054_v2 = vpop.f32.mrf.mxu0  ;;  %v1941_v0 = vshrl.u32 %v19181_v48, 16 }
 0x1c5   : > { %v12055_v34 = vadd.f32 %v12054_v2, %v12053_v43  ;;  %v3019_v18 = vadd.f32 %v3018_v63, %v2858_v12  ;;  %v972_v56 = vpop.permute.xlu0 %971  ;;  %v2480_v41 = vsel %vm1807_vm8, %v2472_v45, %v2479_v40  ;;  %v14631_v63 = vrot.slane %v1847_v9, 3 }
 0x1c6   : > { %2936 = vmatmul.mubr.bf16.gmra.mxu0 %v2480_v41  ;;  %v1484_v43 = vsel %vm1404_vm9, %v14340_v46, %v972_v56  ;;  %v1482_v12 = vsel %vm1404_vm9, %v14283_v51, %v972_v56  ;;  %v1944_v2 = vshll.u32 %v19181_v48, 16 }
 0x1c7   : > { %v1397_v35 = vpop.permute.xlu1 %1396  ;;  %v3121_v3 = vmax.f32 %v3019_v18, 0.0  ;;  %v2861_v28 = vadd.f32 %v12055_v34, %v14612_v5  ;;  %v1841_v34 = vrot.slane %v1839_v54, 3  ;;  %v1844_v18 = vrot.slane %v1842_v52, 4  ;;  %v19184_v52 = vld [vmem:[#allocation7_spill] sm:$0xff] }
 0x1c8   : > { %v1805_v15 = vsel %vm1550_vm11, %v1756_v31, %v1397_v35  ;;  %v14651_v31 = vrot.slane %v1941_v0, 3  ;;  %v1547_v51 = vsel %vm1485_vm10, %v1482_v12, %v14607_v39  ;;  %v1853_v54 = vor.u32 %v14633_v22, %v14631_v63 }
 0x1c9   : > { %v2528_v21 = vshrl.u32 %v1805_v15, 16  ;;  %v2531_v23 = vshll.u32 %v1805_v15, 16  ;;  %v11954_v58 = vpack.c.bf16 %v3121_v3, %v3121_v3  ;;  %v3022_v13 = vadd.f32 %v3021_v61, %v2861_v28  ;;  %v1356_v6 = vpop.permute.xlu0 %1355 }
 0x1ca   : > { %v1758_v32 = vsel %vm1485_vm10, %v1694_v11, %v1356_v6  ;;  %v14659_v6 = vrot.slane %v1944_v2, 4  ;;  %v1845_v33 = vor.u32 %v1844_v18, %v1841_v34 }
 0x1cb   : > { %3281 = vst.msk [vmem:[#allocation2 + $0x54] sm:$0xf] %vm280_vm0, %v11954_v58  ;;  %v3122_v4 = vmax.f32 %v3022_v13, 0.0  ;;  %v1806_v37 = vsel %vm1550_vm11, %v1758_v32, %v1397_v35  ;;  %v2530_v29 = vrot.slane %v2528_v21, 3  ;;  %v2533_v55 = vrot.slane %v2531_v23, 4  ;;  %v1205_v10 = vpop.permute.xlu1 %1204  ;;  %v19182_v35 = vld [vmem:[#allocation5_spill] sm:$0xff] }
 0x1cc   : > { %v2535_v27 = vshrl.u32 %v1806_v37, 16  ;;  %v2538_v7 = vshll.u32 %v1806_v37, 16  ;;  %v1886_v61 = vshrl.u32 %v19182_v35, 16  ;;  %v1889_v3 = vshll.u32 %v19182_v35, 16  ;;  %v13057_v13 = vld [vmem:[#allocation2 + $0x5c] ss:$0 sps:$4 sm:$0xff]  }
 0x1cd   : > { %v11955_v45 = vpack.c.bf16 %v3122_v4, %v3122_v4  ;;  %v1133_v59 = vpop.permute.xlu0 %1132  ;;  %v2534_v46 = vor.u32 %v2533_v55, %v2530_v29  ;;  %v1933_v29 = vshrl.u32 %v19184_v52, 16  ;;  %v1936_v55 = vshll.u32 %v19184_v52, 16 }
 0x1ce   : > { %v2537_v40 = vrot.slane %v2535_v27, 3  ;;  %v2540_v44 = vrot.slane %v2538_v7, 4  ;;  %v1549_v36 = vsel %vm1485_vm10, %v1484_v43, %v1133_v59  ;;  %v19185_v27 = vld [vmem:[#allocation12_spill] sm:$0xff]  ;;  %v3745_v12 = vrot.slane %v13057_v13, 5 }
 0x1cf   : > { %3282 = vst.msk [vmem:[#allocation2 + $0x58] sm:$0xf] %vm280_vm0, %v11955_v45  ;;  %v1614_v47 = vsel %vm1550_vm11, %v1549_v36, %v1205_v10  ;;  %v1988_v7 = vshrl.u32 %v19185_v27, 16  ;;  %v1888_v63 = vrot.slane %v1886_v61, 3  ;;  %v1891_v22 = vrot.slane %v1889_v3, 4  ;;  %v19187_v61 = vld [vmem:[#allocation11_spill] sm:$0xff] }
 0x1d0   : > { %v2520_v41 = vshrl.u32 %v1614_v47, 16  ;;  %v2523_v60 = vshll.u32 %v1614_v47, 16  ;;  %v2541_v9 = vor.u32 %v2540_v44, %v2537_v40  ;;  %v1991_v47 = vshll.u32 %v19185_v27, 16 }
 0x1d1   : > { %v1203_v56 = vpop.permute.xlu0 %1202  ;;  %v1854_v18 = vsel %vm1807_vm8, %v1845_v33, %v1853_v54  ;;  %v1892_v35 = vor.u32 %v1891_v22, %v1888_v63  ;;  %v1980_v3 = vshrl.u32 %v19187_v61, 16  ;;  %v3329_v63 = vld [vmem:[#allocation2 + $0x60] sm:$0xf] }
 0x1d2   : > { %v2522_v15 = vrot.slane %v2520_v41, 3  ;;  %v2525_v28 = vrot.slane %v2523_v60, 4  ;;  %v1612_v21 = vsel %vm1550_vm11, %v1547_v51, %v1203_v56  ;;  %v12056_v23 = vpop.f32.mrf.mxu0  ;;  %v2542_v11 = vsel %vm1807_vm8, %v2534_v46, %v2541_v9  ;;  %v3326_v58 = vld [vmem:[#allocation2 + $0x54] sm:$0xf] }
 0x1d3   : > { %v2513_v32 = vshrl.u32 %v1612_v21, 16  ;;  %v2516_v4 = vshll.u32 %v1612_v21, 16  ;;  %2943 = vmatprep.mubr.bf16.mxu0 %v2542_v11  ;;  %v14661_v39 = vcombine.low %v3325_v50, %v3326_v58  ;;  %v1935_v41 = vrot.slane %v1933_v29, 3 }
 0x1d4   : > { %v12057_v37 = vpop.f32.mrf.mxu0  ;;  %v2526_v43 = vor.u32 %v2525_v28, %v2522_v15  ;;  %v1938_v60 = vrot.slane %v1936_v55, 4  ;;  %v1990_v56 = vrot.slane %v1988_v7, 3  ;;  %v1983_v15 = vshll.u32 %v19187_v61, 16 }
 0x1d5   : > { %19183 = vst [vmem:[#allocation10_spill] sm:$0xff] %v14661_v39  ;;  %v2515_v10 = vrot.slane %v2513_v32, 3  ;;  %v2518_v48 = vrot.slane %v2516_v4, 4  ;;  %v12058_v0 = vadd.f32 %v12057_v37, %v12056_v23  ;;  %4012 = vrot.lane.b32.xlu1 %v14661_v39, %s13283_s9  ;;  %3865 = vrot.lane.b32.xlu0 %v14661_v39, %s13285_s11  ;;  %v1947_v32 = vor.u32 %v14659_v6, %v14651_v31  ;;  %v13103_v39 = vld [vmem:[#allocation2 + $0x10c] ss:$0 sps:$4 sm:$0xff]  }
 0x1d6   : > { %v12059_v45 = vpop.f32.mrf.mxu0  ;;  %v3327_v59 = vld [vmem:[#allocation2 + $0x58] sm:$0xf]  ;;  %v1939_v13 = vor.u32 %v1938_v60, %v1935_v41  ;;  %v1993_v52 = vrot.slane %v1991_v47, 4  ;;  %v1901_v27 = vsel %vm1807_vm8, %v1892_v35, %v1900_v17  ;;  %v1982_v6 = vrot.slane %v1980_v3, 3  ;;  %v13060_v60 = vld [vmem:[#allocation2 + $0x6c] ss:$0 sps:$4 sm:$0xff]  }
 0x1d7   : > { %v2519_v40 = vor.u32 %v2518_v48, %v2515_v10  ;;  %v2866_v44 = vadd.f32 %v12058_v0, %v14612_v5  ;;  %v14673_v36 = vcombine.low %v3327_v59, %v3327_v59  ;;  %v14675_v2 = vcombine.low %v3326_v58, %v3327_v59 }
 0x1d8   : > { %v12060_v34 = vpop.f32.mrf.mxu0  ;;  %v1985_v7 = vrot.slane %v1983_v15, 4  ;;  %v1948_v10 = vsel %vm1807_vm8, %v1939_v13, %v1947_v32  ;;  %v1994_v16 = vor.u32 %v1993_v52, %v1990_v56  ;;  %v3748_v3 = vrot.slane %v13060_v60, 5 }
 0x1d9   : > { %19186 = vst [vmem:[#allocation9_spill] sm:$0xff] %v14673_v36  ;;  %v3027_v46 = vadd.f32 %v14594_v8, %v2866_v44  ;;  %v12061_v9 = vadd.f32 %v12060_v34, %v12059_v45  ;;  %3867 = vrot.lane.b32.xlu1 %v14673_v36, %s13285_s11  ;;  %4014 = vrot.lane.b32.xlu0 %v14673_v36, %s13283_s9  ;;  %v3744_v51 = vrot.slane %v14675_v2, 5  ;;  %v3562_v45 = vshrl.u32 %v14675_v2, 16  ;;  %v3034_v44 = vpop.f32.mrf.mxu1 }
 0x1da   : > { %v2527_v50 = vsel %vm1807_vm8, %v2519_v40, %v2526_v43  ;;  %v1986_v17 = vor.u32 %v1985_v7, %v1982_v6  ;;  %v3565_v59 = vshll.u32 %v14675_v2, 16 }
 0x1db   : > { %2944 = vmatmul.mubr.bf16.gmra.mxu0 %v2527_v50  ;;  %v3123_v28 = vmax.f32 %v3027_v46, 0.0  ;;  %v2869_v8 = vadd.f32 %v12061_v9, %v14612_v5  ;;  %v3746_v21 = vsel %vm1021_vm7, %v3744_v51, %v3745_v12  ;;  %v4683_v23 = vshrl.u32 %v3744_v51, 16  ;;  %v14722_v50 = vpop.f32.mrf.mxu1 }
 0x1dc   : > { %12852 = vmatprep.mubr.msk.bf16.mxu0 %vm1404_vm9, %v1854_v18  ;;  %v4691_v11 = vshrl.u32 %v3746_v21, 16  ;;  %v4694_v58 = vshll.u32 %v3746_v21, 16  ;;  %v4686_v54 = vshll.u32 %v3744_v51, 16  ;;  %v1995_v34 = vsel %vm1807_vm8, %v1986_v17, %v1994_v16  ;;  %v3333_v17 = vld [vmem:[#allocation2 + $0x70] sm:$0xf] }
 0x1dd   : > { %v11956_v4 = vpack.c.bf16 %v3123_v28, %v3123_v28  ;;  %v3030_v37 = vadd.f32 %v14605_v26, %v2869_v8  ;;  %3797 = vrot.lane.b32.xlu1 %v3744_v51, %s13283_s9  ;;  %3944 = vrot.lane.b32.xlu0 %v3744_v51, %s13284_s10  ;;  %v4685_v33 = vrot.slane %v4683_v23, 3  ;;  %v3564_v18 = vrot.slane %v3562_v45, 4  ;;  %v3037_v23 = vpop.f32.mrf.mxu1 }
 0x1de   : > { %v4693_v29 = vrot.slane %v4691_v11, 3  ;;  %v4696_v55 = vrot.slane %v4694_v58, 4  ;;  %v4688_v26 = vrot.slane %v4686_v54, 4  ;;  %v3567_v41 = vrot.slane %v3565_v59, 5 }
 0x1df   : > { %3283 = vst.msk [vmem:[#allocation2 + $0x64] sm:$0xf] %vm280_vm0, %v11956_v4  ;;  %v3124_v31 = vmax.f32 %v3030_v37, 0.0 }
 0x1e0   : > { %v4697_v48 = vor.u32 %v4696_v55, %v4693_v29  ;;  %v4689_v43 = vor.u32 %v4688_v26, %v4685_v33  ;;  %v14725_v35 = vor.u32 %v3567_v41, %v3564_v18 }
 0x1e1   : > { %v11957_v0 = vpack.c.bf16 %v3124_v31, %v3124_v31  ;;  %3946 = vrot.lane.b32.xlu1 %v3746_v21, %s13284_s10  ;;  %3799 = vrot.lane.b32.xlu0 %v3746_v21, %s13283_s9 }
 0x1e2   : > { %v14712_v12 = vsel %vm1807_vm8, %v4689_v43, %v4697_v48  ;;  %19189 = vst [vmem:[#allocation14_spill] sm:$0xff] %v14725_v35 }
 0x1e3   : > { %12853 = vmatmul.mubr.msk.bf16.vlgmr.msra.gmra.mxu0 %vm1404_vm9, %v1901_v27  ;;  %3284 = vst.msk [vmem:[#allocation2 + $0x68] sm:$0xf] %vm280_vm0, %v11957_v0 }
 0x1e4   : > { %12856 = vmatprep.mubr.msk.bf16.mxu0 %vm1404_vm9, %v1948_v10 }
 0x1e6   : > { %v12062_v22 = vpop.f32.mrf.mxu0  ;;  %v3330_v40 = vld [vmem:[#allocation2 + $0x64] sm:$0xf] }
 0x1e7   : > { %v14714_v47 = vcombine.low %v3329_v63, %v3330_v40 }
 0x1e8   : > { %v12063_v46 = vpop.f32.mrf.mxu0 }
 0x1e9   : > { %19188 = vst [vmem:[#allocation13_spill] sm:$0xff] %v14714_v47  ;;  %v12064_v9 = vadd.f32 %v12063_v46, %v12062_v22  ;;  %4016 = vrot.lane.b32.xlu1 %v14714_v47, %s13283_s9  ;;  %3869 = vrot.lane.b32.xlu0 %v14714_v47, %s13285_s11 }
 0x1ea   : > { %v12065_v2 = vpop.f32.mrf.mxu0  ;;  %v3331_v51 = vld [vmem:[#allocation2 + $0x68] sm:$0xf] }
 0x1eb   : > { %12857 = vmatmul.mubr.msk.bf16.gmra.mxu0 %vm1404_vm9, %v1995_v34  ;;  %v2874_v56 = vadd.f32 %v12064_v9, %v14612_v5  ;;  %v11483_v61 = vcombine.low %v3330_v40, %v3331_v51  ;;  %v14732_v13 = vcombine.low %v3331_v51, %v3331_v51 }
 0x1ec   : > { %v12066_v15 = vpop.f32.mrf.mxu0 }
 0x1ed   : > { %v12067_v28 = vadd.f32 %v12066_v15, %v12065_v2  ;;  %v3035_v8 = vadd.f32 %v3034_v44, %v2874_v56  ;;  %4079 = vrot.lane.b32.xlu1 %v14725_v35, %s13285_s11  ;;  %3659 = vrot.lane.b32.xlu0 %v14725_v35, %s13284_s10  ;;  %v3747_v21 = vrot.slane %v11483_v61, 5  ;;  %19190 = vst [vmem:[#allocation15_spill] sm:$0xff] %v14732_v13  ;;  %v3570_v0 = vshrl.u32 %v11483_v61, 16  ;;  %v13063_v44 = vld [vmem:[#allocation2 + $0x7c] ss:$0 sps:$4 sm:$0xff]  }
 0x1ee   : > { %v3573_v43 = vshll.u32 %v11483_v61, 16  ;;  %v3751_v51 = vrot.slane %v13063_v44, 5 }
 0x1ef   : > { %v3125_v11 = vmax.f32 %v3035_v8, 0.0  ;;  %v2877_v58 = vadd.f32 %v12067_v28, %v14612_v5  ;;  %v3749_v32 = vsel %vm1021_vm7, %v3747_v21, %v3748_v3  ;;  %v4730_v33 = vshrl.u32 %v3747_v21, 16 }
 0x1f0   : > { %v4738_v4 = vshrl.u32 %v3749_v32, 16  ;;  %v4741_v37 = vshll.u32 %v3749_v32, 16  ;;  %v4733_v29 = vshll.u32 %v3747_v21, 16  ;;  %v3572_v22 = vrot.slane %v3570_v0, 4 }
 0x1f1   : > { %v11958_v54 = vpack.c.bf16 %v3125_v11, %v3125_v11  ;;  %v3038_v52 = vadd.f32 %v3037_v23, %v2877_v58  ;;  %3871 = vrot.lane.b32.xlu1 %v14732_v13, %s13285_s11  ;;  %4018 = vrot.lane.b32.xlu0 %v14732_v13, %s13283_s9  ;;  %v4732_v31 = vrot.slane %v4730_v33, 3  ;;  %v3575_v40 = vrot.slane %v3573_v43, 5 }
 0x1f2   : > { %v4740_v55 = vrot.slane %v4738_v4, 3  ;;  %v4743_v27 = vrot.slane %v4741_v37, 4  ;;  %v4735_v7 = vrot.slane %v4733_v29, 4 }
 0x1f3   : > { %3285 = vst.msk [vmem:[#allocation2 + $0x74] sm:$0xf] %vm280_vm0, %v11958_v54  ;;  %v3126_v6 = vmax.f32 %v3038_v52, 0.0  ;;  %v14755_v9 = vor.u32 %v3575_v40, %v3572_v22  ;;  %v13066_v40 = vld [vmem:[#allocation2 + $0x8c] ss:$0 sps:$4 sm:$0xff]  }
 0x1f4   : > { %v4744_v26 = vor.u32 %v4743_v27, %v4740_v55  ;;  %v4736_v48 = vor.u32 %v4735_v7, %v4732_v31 }
 0x1f5   : > { %v11959_v10 = vpack.c.bf16 %v3126_v6, %v3126_v6  ;;  %3801 = vrot.lane.b32.xlu1 %v3747_v21, %s13283_s9  ;;  %3948 = vrot.lane.b32.xlu0 %v3747_v21, %s13284_s10  ;;  %19192 = vst [vmem:[#allocation4_spill] sm:$0xff] %v14755_v9  ;;  %v14774_v6 = vpop.f32.mrf.mxu1 }
 0x1f6   : > { %v14744_v16 = vsel %vm1807_vm8, %v4736_v48, %v4744_v26  ;;  %v3337_v48 = vld [vmem:[#allocation2 + $0x80] sm:$0xf] }
 0x1f7   : > { %3286 = vst.msk [vmem:[#allocation2 + $0x78] sm:$0xf] %vm280_vm0, %v11959_v10 }
 0x1f9   : > { %3950 = vrot.lane.b32.xlu1 %v3749_v32, %s13284_s10  ;;  %3803 = vrot.lane.b32.xlu0 %v3749_v32, %s13283_s9 }
 0x1fa   : > { %v12068_v45 = vpop.f32.mrf.mxu0  ;;  %v3334_v59 = vld [vmem:[#allocation2 + $0x74] sm:$0xf] }
 0x1fb   : > { %v14748_v63 = vcombine.low %v3333_v17, %v3334_v59  ;;  %v3050_v17 = vpop.f32.mrf.mxu1 }
 0x1fc   : > { %v12069_v34 = vpop.f32.mrf.mxu0 }
 0x1fd   : > { %19191 = vst [vmem:[#allocation6_spill] sm:$0xff] %v14748_v63  ;;  %v12070_v18 = vadd.f32 %v12069_v34, %v12068_v45  ;;  %4020 = vrot.lane.b32.xlu1 %v14748_v63, %s13283_s9  ;;  %3873 = vrot.lane.b32.xlu0 %v14748_v63, %s13285_s11 }
 0x1fe   : > { %v12071_v41 = vpop.f32.mrf.mxu0  ;;  %v3335_v60 = vld [vmem:[#allocation2 + $0x78] sm:$0xf] }
 0x1ff   : > { %v2882_v46 = vadd.f32 %v12070_v18, %v14612_v5  ;;  %v11484_v2 = vcombine.low %v3334_v59, %v3335_v60  ;;  %v14763_v21 = vcombine.low %v3335_v60, %v3335_v60 }
 0x200   : > { %v12072_v56 = vpop.f32.mrf.mxu0 }
 0x201   : > { %v3043_v61 = vadd.f32 %v14705_v49, %v2882_v46  ;;  %v12073_v3 = vadd.f32 %v12072_v56, %v12071_v41  ;;  %4081 = vrot.lane.b32.xlu1 %v14755_v9, %s13285_s11  ;;  %3661 = vrot.lane.b32.xlu0 %v14755_v9, %s13284_s10  ;;  %v3750_v15 = vrot.slane %v11484_v2, 5  ;;  %19193 = vst [vmem:[#allocation3_spill] sm:$0xff] %v14763_v21  ;;  %v3578_v7 = vshrl.u32 %v11484_v2, 16  ;;  %v14788_v41 = vpop.f32.mrf.mxu1 }
 0x202   : > { %v3581_v26 = vshll.u32 %v11484_v2, 16  ;;  %v3754_v56 = vrot.slane %v13066_v40, 5 }
 0x203   : > { %v3127_v28 = vmax.f32 %v3043_v61, 0.0  ;;  %v2885_v8 = vadd.f32 %v12073_v3, %v14612_v5  ;;  %v3752_v23 = vsel %vm1021_vm7, %v3750_v15, %v3751_v51  ;;  %v4777_v32 = vshrl.u32 %v3750_v15, 16 }
 0x204   : > { %v4785_v11 = vshrl.u32 %v3752_v23, 16  ;;  %v4788_v58 = vshll.u32 %v3752_v23, 16  ;;  %v4780_v37 = vshll.u32 %v3750_v15, 16  ;;  %v3580_v59 = vrot.slane %v3578_v7, 4 }
 0x205   : > { %v11960_v4 = vpack.c.bf16 %v3127_v28, %v3127_v28  ;;  %v3046_v49 = vadd.f32 %v14722_v50, %v2885_v8  ;;  %3875 = vrot.lane.b32.xlu1 %v14763_v21, %s13285_s11  ;;  %4022 = vrot.lane.b32.xlu0 %v14763_v21, %s13283_s9  ;;  %v4779_v52 = vrot.slane %v4777_v32, 3  ;;  %v3583_v22 = vrot.slane %v3581_v26, 5  ;;  %v3053_v8 = vpop.f32.mrf.mxu1 }
 0x206   : > { %v4787_v33 = vrot.slane %v4785_v11, 3  ;;  %v4790_v54 = vrot.slane %v4788_v58, 4  ;;  %v4782_v55 = vrot.slane %v4780_v37, 4 }
 0x207   : > { %3287 = vst.msk [vmem:[#allocation2 + $0x84] sm:$0xf] %vm280_vm0, %v11960_v4  ;;  %v3128_v29 = vmax.f32 %v3046_v49, 0.0  ;;  %v14791_v2 = vor.u32 %v3583_v22, %v3580_v59  ;;  %v3341_v59 = vld [vmem:[#allocation2 + $0x90] sm:$0xf] }
 0x208   : > { %v4791_v27 = vor.u32 %v4790_v54, %v4787_v33  ;;  %v4783_v50 = vor.u32 %v4782_v55, %v4779_v52 }
 0x209   : > { %v11961_v31 = vpack.c.bf16 %v3128_v29, %v3128_v29  ;;  %3805 = vrot.lane.b32.xlu1 %v3750_v15, %s13283_s9  ;;  %3952 = vrot.lane.b32.xlu0 %v3750_v15, %s13284_s10  ;;  %19195 = vst [vmem:[#allocation5_spill] sm:$0xff] %v14791_v2 }
 0x20a   : > { %v14778_v10 = vsel %vm1807_vm8, %v4783_v50, %v4791_v27 }
 0x20b   : > { %3288 = vst.msk [vmem:[#allocation2 + $0x88] sm:$0xf] %vm280_vm0, %v11961_v31 }
 0x20d   : > { %3954 = vrot.lane.b32.xlu1 %v3752_v23, %s13284_s10  ;;  %3807 = vrot.lane.b32.xlu0 %v3752_v23, %s13283_s9 }
 0x20e   : > { %v12074_v0 = vpop.f32.mrf.mxu0  ;;  %v3338_v43 = vld [vmem:[#allocation2 + $0x84] sm:$0xf] }
 0x20f   : > { %v14782_v45 = vcombine.low %v3337_v48, %v3338_v43 }
 0x210   : > { %v12075_v44 = vpop.f32.mrf.mxu0 }
 0x211   : > { %19194 = vst [vmem:[#allocation8_spill] sm:$0xff] %v14782_v45  ;;  %v12076_v34 = vadd.f32 %v12075_v44, %v12074_v0  ;;  %4024 = vrot.lane.b32.xlu1 %v14782_v45, %s13283_s9  ;;  %3877 = vrot.lane.b32.xlu0 %v14782_v45, %s13285_s11 }
 0x212   : > { %v12077_v18 = vpop.f32.mrf.mxu0  ;;  %v3339_v60 = vld [vmem:[#allocation2 + $0x88] sm:$0xf] }
 0x213   : > { %v2890_v46 = vadd.f32 %v12076_v34, %v14612_v5  ;;  %v11485_v51 = vcombine.low %v3338_v43, %v3339_v60  ;;  %v14798_v58 = vcombine.low %v3339_v60, %v3339_v60 }
 0x214   : > { %v12078_v61 = vpop.f32.mrf.mxu0 }
 0x215   : > { %v12079_v3 = vadd.f32 %v12078_v61, %v12077_v18  ;;  %v3051_v15 = vadd.f32 %v3050_v17, %v2890_v46  ;;  %4083 = vrot.lane.b32.xlu1 %v14791_v2, %s13285_s11  ;;  %3663 = vrot.lane.b32.xlu0 %v14791_v2, %s13284_s10  ;;  %v3753_v28 = vrot.slane %v11485_v51, 5  ;;  %19196 = vst [vmem:[#allocation7_spill] sm:$0xff] %v14798_v58  ;;  %v3586_v0 = vshrl.u32 %v11485_v51, 16 }
 0x216   : > { %v3589_v43 = vshll.u32 %v11485_v51, 16 }
 0x217   : > { %v3129_v23 = vmax.f32 %v3051_v15, 0.0  ;;  %v2893_v11 = vadd.f32 %v12079_v3, %v14612_v5  ;;  %v3755_v32 = vsel %vm1021_vm7, %v3753_v28, %v3754_v56  ;;  %v4824_v37 = vshrl.u32 %v3753_v28, 16 }
 0x218   : > { %v4832_v4 = vshrl.u32 %v3755_v32, 16  ;;  %v4835_v49 = vshll.u32 %v3755_v32, 16  ;;  %v4827_v52 = vshll.u32 %v3753_v28, 16  ;;  %v3588_v34 = vrot.slane %v3586_v0, 4 }
 0x219   : > { %v11962_v33 = vpack.c.bf16 %v3129_v23, %v3129_v23  ;;  %v3054_v54 = vadd.f32 %v3053_v8, %v2893_v11  ;;  %3879 = vrot.lane.b32.xlu1 %v14798_v58, %s13285_s11  ;;  %4026 = vrot.lane.b32.xlu0 %v14798_v58, %s13283_s9  ;;  %v4826_v27 = vrot.slane %v4824_v37, 3  ;;  %v3591_v18 = vrot.slane %v3589_v43, 5  ;;  %v13069_v8 = vld [vmem:[#allocation2 + $0x9c] ss:$0 sps:$4 sm:$0xff]  }
 0x21a   : > { %v4834_v29 = vrot.slane %v4832_v4, 3  ;;  %v4837_v55 = vrot.slane %v4835_v49, 4  ;;  %v4829_v50 = vrot.slane %v4827_v52, 4  ;;  %v3757_v52 = vrot.slane %v13069_v8, 5 }
 0x21b   : > { %3289 = vst.msk [vmem:[#allocation2 + $0x94] sm:$0xf] %vm280_vm0, %v11962_v33  ;;  %v3130_v31 = vmax.f32 %v3054_v54, 0.0  ;;  %v14821_v3 = vor.u32 %v3591_v18, %v3588_v34 }
 0x21c   : > { %v4838_v7 = vor.u32 %v4837_v55, %v4834_v29  ;;  %v4830_v48 = vor.u32 %v4829_v50, %v4826_v27 }
 0x21d   : > { %v11963_v26 = vpack.c.bf16 %v3130_v31, %v3130_v31  ;;  %3809 = vrot.lane.b32.xlu1 %v3753_v28, %s13283_s9  ;;  %3956 = vrot.lane.b32.xlu0 %v3753_v28, %s13284_s10  ;;  %19198 = vst [vmem:[#allocation11_spill] sm:$0xff] %v14821_v3 }
 0x21e   : > { %v14810_v17 = vsel %vm1807_vm8, %v4830_v48, %v4838_v7  ;;  %v3345_v48 = vld [vmem:[#allocation2 + $0xa0] sm:$0xf] }
 0x21f   : > { %3290 = vst.msk [vmem:[#allocation2 + $0x98] sm:$0xf] %vm280_vm0, %v11963_v26 }
 0x221   : > { %3958 = vrot.lane.b32.xlu1 %v3755_v32, %s13284_s10  ;;  %3811 = vrot.lane.b32.xlu0 %v3755_v32, %s13283_s9 }
 0x222   : > { %v12080_v22 = vpop.f32.mrf.mxu0  ;;  %v3342_v40 = vld [vmem:[#allocation2 + $0x94] sm:$0xf] }
 0x223   : > { %v14814_v44 = vcombine.low %v3341_v59, %v3342_v40 }
 0x224   : > { %v12081_v60 = vpop.f32.mrf.mxu0 }
 0x225   : > { %19197 = vst [vmem:[#allocation12_spill] sm:$0xff] %v14814_v44  ;;  %v12082_v46 = vadd.f32 %v12081_v60, %v12080_v22  ;;  %4028 = vrot.lane.b32.xlu1 %v14814_v44, %s13283_s9  ;;  %3881 = vrot.lane.b32.xlu0 %v14814_v44, %s13285_s11 }
 0x226   : > { %v12083_v51 = vpop.f32.mrf.mxu0  ;;  %v3343_v56 = vld [vmem:[#allocation2 + $0x98] sm:$0xf] }
 0x227   : > { %v2898_v61 = vadd.f32 %v12082_v46, %v14612_v5  ;;  %v11486_v15 = vcombine.low %v3342_v40, %v3343_v56  ;;  %v14828_v32 = vcombine.low %v3343_v56, %v3343_v56  ;;  %v13072_v40 = vld [vmem:[#allocation2 + $0xac] ss:$0 sps:$4 sm:$0xff]  }
 0x228   : > { %v12084_v28 = vpop.f32.mrf.mxu0 }
 0x229   : > { %v3059_v23 = vadd.f32 %v14774_v6, %v2898_v61  ;;  %v12085_v11 = vadd.f32 %v12084_v28, %v12083_v51  ;;  %4085 = vrot.lane.b32.xlu1 %v14821_v3, %s13285_s11  ;;  %3665 = vrot.lane.b32.xlu0 %v14821_v3, %s13284_s10  ;;  %19199 = vst [vmem:[#allocation16_spill] sm:$0xff] %v14828_v32  ;;  %v3594_v37 = vshrl.u32 %v11486_v15, 16  ;;  %v3597_v33 = vshll.u32 %v11486_v15, 16 }
 0x22a   : > { %v14831_v54 = vrot.slane %v11486_v15, 5  ;;  %v3760_v28 = vrot.slane %v13072_v40, 5 }
 0x22b   : > { %v3131_v4 = vmax.f32 %v3059_v23, 0.0  ;;  %v2901_v49 = vadd.f32 %v12085_v11, %v14612_v5  ;;  %v3596_v27 = vrot.slane %v3594_v37, 4  ;;  %v3599_v31 = vrot.slane %v3597_v33, 5 }
 0x22c   : > { %v14841_v50 = vsel %vm1021_vm7, %v14831_v54, %v3757_v52 }
 0x22d   : > { %v11964_v29 = vpack.c.bf16 %v3131_v4, %v3131_v4  ;;  %v3062_v6 = vadd.f32 %v14788_v41, %v2901_v49  ;;  %3883 = vrot.lane.b32.xlu1 %v14828_v32, %s13285_s11  ;;  %4030 = vrot.lane.b32.xlu0 %v14828_v32, %s13283_s9  ;;  %v12874_v41 = vpop.f32.mrf.mxu1  ;;  %v14848_v26 = vor.u32 %v3599_v31, %v3596_v27 }
 0x22f   : > { %3291 = vst.msk [vmem:[#allocation2 + $0xa4] sm:$0xf] %vm280_vm0, %v11964_v29  ;;  %v3132_v55 = vmax.f32 %v3062_v6, 0.0  ;;  %19200 = vst [vmem:[#allocation17_spill] sm:$0xff] %v14848_v26  ;;  %v3066_v59 = vpop.f32.mrf.mxu1 }
 0x231   : > { %v11965_v7 = vpack.c.bf16 %v3132_v55, %v3132_v55  ;;  %3962 = vrot.lane.b32.xlu1 %v14841_v50, %s13284_s10  ;;  %3960 = vrot.lane.b32.xlu0 %v14831_v54, %s13284_s10  ;;  %v12875_v51 = vpop.f32.mrf.mxu1  ;;  %v13081_v55 = vld [vmem:[%s19008_s1 + $0x118] sm:$0xff]  }
 0x232   : > { %12884 = vmatprep.subr.bf16.mxu0 %v13081_v55 }
 0x233   : > { %3292 = vst.msk [vmem:[#allocation2 + $0xa8] sm:$0xf] %vm280_vm0, %v11965_v7  ;;  %v3069_v49 = vpop.f32.mrf.mxu1  ;;  %12885 = vmatpush3.bf16.msra.mxu0 %v13081_v55 }
 0x235   : > { %3667 = vrot.lane.b32.xlu0 %v14848_v26, %s13284_s10 }
 0x236   : > { %v12086_v0 = vpop.f32.mrf.mxu0  ;;  %v3346_v43 = vld [vmem:[#allocation2 + $0xa4] sm:$0xf] }
 0x237   : > { %v14852_v22 = vcombine.low %v3345_v48, %v3346_v43 }
 0x238   : > { %v12087_v34 = vpop.f32.mrf.mxu0 }
 0x239   : > { %19201 = vst [vmem:[#allocation18_spill] sm:$0xff] %v14852_v22  ;;  %v12088_v18 = vadd.f32 %v12087_v34, %v12086_v0  ;;  %4032 = vrot.lane.b32.xlu1 %v14852_v22, %s13283_s9  ;;  %v13082_v0 = vld [vmem:[%s19008_s1 + $0x110] sm:$0xff]  }
 0x23a   : > { %v12089_v60 = vpop.f32.mrf.mxu0  ;;  %v3347_v46 = vld [vmem:[#allocation2 + $0xa8] sm:$0xf]  ;;  %12886 = vmatprep.subr.bf16.mxu0 %v13082_v0 }
 0x23b   : > { %v2906_v56 = vadd.f32 %v12088_v18, %v14612_v5  ;;  %v14857_v61 = vcombine.low %v3347_v46, %v3347_v46  ;;  %v11487_v15 = vcombine.low %v3346_v43, %v3347_v46  ;;  %v3349_v43 = vld [vmem:[#allocation2 + $0xb0] sm:$0xf]  ;;  %12887 = vmatpush3.bf16.msra.mxu0 %v13082_v0 }
 0x23c   : > { %v12090_v8 = vpop.f32.mrf.mxu0 }
 0x23d   : > { %19202 = vst [vmem:[#allocation19_spill] sm:$0xff] %v14857_v61  ;;  %v12091_v23 = vadd.f32 %v12090_v8, %v12089_v60  ;;  %v3067_v11 = vadd.f32 %v3066_v59, %v2906_v56  ;;  %4087 = vrot.lane.b32.xlu1 %v14848_v26, %s13285_s11  ;;  %4034 = vrot.lane.b32.xlu0 %v14857_v61, %s13283_s9  ;;  %v14863_v4 = vrot.slane %v11487_v15, 5  ;;  %v3602_v7 = vshrl.u32 %v11487_v15, 16 }
 0x23e   : > { %v3605_v48 = vshll.u32 %v11487_v15, 16 }
 0x23f   : > { %v3133_v37 = vmax.f32 %v3067_v11, 0.0  ;;  %v2909_v33 = vadd.f32 %v12091_v23, %v14612_v5  ;;  %v14868_v52 = vsel %vm1021_vm7, %v14863_v4, %v3760_v28  ;;  %v3604_v18 = vrot.slane %v3602_v7, 4 }
 0x240   : > { %v3607_v60 = vrot.slane %v3605_v48, 5 }
 0x241   : > { %v11966_v29 = vpack.c.bf16 %v3133_v37, %v3133_v37  ;;  %v3070_v6 = vadd.f32 %v3069_v49, %v2909_v33  ;;  %3966 = vrot.lane.b32.xlu1 %v14868_v52, %s13284_s10  ;;  %3964 = vrot.lane.b32.xlu0 %v14863_v4, %s13284_s10 }
 0x242   : > { %v14890_v8 = vor.u32 %v3607_v60, %v3604_v18 }
 0x243   : > { %3293 = vst.msk [vmem:[#allocation2 + $0xb4] sm:$0xf] %vm280_vm0, %v11966_v29  ;;  %v3134_v27 = vmax.f32 %v3070_v6, 0.0 }
 0x244   : > { %19204 = vst [vmem:[#allocation21_spill] sm:$0xff] %v14890_v8 }
 0x245   : > { %v11967_v31 = vpack.c.bf16 %v3134_v27, %v3134_v27 }
 0x247   : > { %3294 = vst.msk [vmem:[#allocation2 + $0xb8] sm:$0xf] %vm280_vm0, %v11967_v31  ;;  %v12878_v31 = vpop.f32.mrf.mxu1 }
 0x249   : > { %v3082_v48 = vpop.f32.mrf.mxu1 }
 0x24a   : > { %v12092_v59 = vpop.f32.mrf.mxu0  ;;  %v14882_v40 = vld [vmem:[#allocation2 + $0xb4] sm:$0xf] }
 0x24b   : > { %v14885_v34 = vcombine.low %v3349_v43, %v14882_v40 }
 0x24c   : > { %v12093_v46 = vpop.f32.mrf.mxu0 }
 0x24d   : > { %19203 = vst [vmem:[#allocation20_spill] sm:$0xff] %v14885_v34  ;;  %v12094_v56 = vadd.f32 %v12093_v46, %v12092_v59  ;;  %4036 = vrot.lane.b32.xlu1 %v14885_v34, %s13283_s9  ;;  %v12879_v59 = vpop.f32.mrf.mxu1 }
 0x24e   : > { %v12095_v15 = vpop.f32.mrf.mxu0 }
 0x24f   : > { %v2914_v28 = vadd.f32 %v12094_v56, %v14612_v5 }
 0x250   : > { %v12096_v23 = vpop.f32.mrf.mxu0 }
 0x251   : > { %v3075_v11 = vadd.f32 %v12874_v41, %v2914_v28  ;;  %v12097_v49 = vadd.f32 %v12096_v23, %v12095_v15  ;;  %4089 = vrot.lane.b32.xlu1 %v14890_v8, %s13285_s11  ;;  %v3085_v15 = vpop.f32.mrf.mxu1 }
 0x253   : > { %v3135_v37 = vmax.f32 %v3075_v11, 0.0  ;;  %v2917_v33 = vadd.f32 %v12097_v49, %v14612_v5 }
 0x255   : > { %v11968_v29 = vpack.c.bf16 %v3135_v37, %v3135_v37  ;;  %v3078_v6 = vadd.f32 %v12875_v51, %v2917_v33 }
 0x257   : > { %3295 = vst.msk [vmem:[#allocation2 + $0xc4] sm:$0xf] %vm280_vm0, %v11968_v29  ;;  %v3136_v55 = vmax.f32 %v3078_v6, 0.0 }
 0x259   : > { %v11969_v27 = vpack.c.bf16 %v3136_v55, %v3136_v55 }
 0x25b   : > { %3296 = vst.msk [vmem:[#allocation2 + $0xc8] sm:$0xf] %vm280_vm0, %v11969_v27 }
 0x25e   : > { %v12098_v7 = vpop.f32.mrf.mxu0 }
 0x260   : > { %v12099_v0 = vpop.f32.mrf.mxu0 }
 0x261   : > { %v12100_v41 = vadd.f32 %v12099_v0, %v12098_v7 }
 0x262   : > { %v12101_v43 = vpop.f32.mrf.mxu0 }
 0x263   : > { %v2922_v18 = vadd.f32 %v12100_v41, %v14612_v5 }
 0x264   : > { %v12102_v60 = vpop.f32.mrf.mxu0 }
 0x265   : > { %v12103_v46 = vadd.f32 %v12102_v60, %v12101_v43  ;;  %v3083_v56 = vadd.f32 %v3082_v48, %v2922_v18 }
 0x267   : > { %v3137_v51 = vmax.f32 %v3083_v56, 0.0  ;;  %v2925_v28 = vadd.f32 %v12103_v46, %v14612_v5  ;;  %v14903_v56 = vpop.permute.xlu1 %3777 }
 0x268   : > { %19205 = vst [vmem:[#allocation22_spill] sm:$0xff] %v14903_v56 }
 0x269   : > { %v11970_v23 = vpack.c.bf16 %v3137_v51, %v3137_v51  ;;  %v3086_v11 = vadd.f32 %v3085_v15, %v2925_v28  ;;  %v12882_v51 = vpop.f32.mrf.mxu1  ;;  %v14906_v28 = vpop.permute.xlu0 %3649 }
 0x26b   : > { %3297 = vst.msk [vmem:[#allocation2 + $0xd4] sm:$0xf] %vm280_vm0, %v11970_v23  ;;  %v3138_v49 = vmax.f32 %v3086_v11, 0.0  ;;  %v3098_v23 = vpop.f32.mrf.mxu1  ;;  %v14909_v11 = vpop.permute.xlu1 %4012 }
 0x26c   : > { %19206 = vst [vmem:[#allocation23_spill] sm:$0xff] %v14909_v11 }
 0x26d   : > { %v11971_v37 = vpack.c.bf16 %v3138_v49, %v3138_v49 }
 0x26f   : > { %3298 = vst.msk [vmem:[#allocation2 + $0xd8] sm:$0xf] %vm280_vm0, %v11971_v37  ;;  %v14911_v37 = vpop.permute.xlu0 %3779 }
 0x272   : > { %v12104_v33 = vpop.f32.mrf.mxu0 }
 0x274   : > { %v12105_v29 = vpop.f32.mrf.mxu0 }
 0x275   : > { %v12106_v6 = vadd.f32 %v12105_v29, %v12104_v33  ;;  %v12883_v29 = vpop.f32.mrf.mxu1 }
 0x276   : > { %v12107_v55 = vpop.f32.mrf.mxu0 }
 0x277   : > { %v2930_v27 = vadd.f32 %v12106_v6, %v14612_v5  ;;  %v14913_v6 = vpop.permute.xlu1 %3867 }
 0x278   : > { %v12108_v7 = vpop.f32.mrf.mxu0  ;;  %19207 = vst [vmem:[#allocation24_spill] sm:$0xff] %v14913_v6 }
 0x279   : > { %v12109_v48 = vadd.f32 %v12108_v7, %v12107_v55  ;;  %v3091_v0 = vadd.f32 %v12878_v31, %v2930_v27 }
 0x27b   : > { %v2933_v41 = vadd.f32 %v12109_v48, %v14612_v5  ;;  %v3139_v43 = vmax.f32 %v3091_v0, 0.0  ;;  %v3101_v0 = vpop.f32.mrf.mxu1 }
 0x27d   : > { %v3094_v18 = vadd.f32 %v12879_v59, %v2933_v41  ;;  %v11972_v60 = vpack.c.bf16 %v3139_v43, %v3139_v43  ;;  %v14916_v41 = vpop.permute.xlu0 %3865 }
 0x27e   : > { %19208 = vst [vmem:[#allocation25_spill] sm:$0xff] %v14916_v41 }
 0x27f   : > { %v3140_v46 = vmax.f32 %v3094_v18, 0.0  ;;  %3299 = vst.msk [vmem:[#allocation2 + $0xe4] sm:$0xf] %vm280_vm0, %v11972_v60 }
 0x281   : > { %v11973_v15 = vpack.c.bf16 %v3140_v46, %v3140_v46  ;;  %v14919_v46 = vpop.permute.xlu1 %3797 }
 0x282   : > { %19209 = vst [vmem:[#allocation26_spill] sm:$0xff] %v14919_v46 }
 0x283   : > { %3300 = vst.msk [vmem:[#allocation2 + $0xe8] sm:$0xf] %vm280_vm0, %v11973_v15 }
 0x286   : > { %v12110_v31 = vpop.f32.mrf.mxu0 }
 0x288   : > { %v12111_v49 = vpop.f32.mrf.mxu0 }
 0x289   : > { %v12112_v59 = vadd.f32 %v12111_v49, %v12110_v31  ;;  %v14922_v49 = vpop.permute.xlu0 %4014 }
 0x28a   : > { %v12113_v33 = vpop.f32.mrf.mxu0  ;;  %19210 = vst [vmem:[#allocation27_spill] sm:$0xff] %v14922_v49 }
 0x28b   : > { %v2938_v27 = vadd.f32 %v12112_v59, %v14612_v5  ;;  %v14925_v59 = vpop.permute.xlu1 %3946 }
 0x28c   : > { %v12114_v55 = vpop.f32.mrf.mxu0  ;;  %19211 = vst [vmem:[#allocation28_spill] sm:$0xff] %v14925_v59 }
 0x28d   : > { %v12115_v7 = vadd.f32 %v12114_v55, %v12113_v33  ;;  %v3099_v48 = vadd.f32 %v3098_v23, %v2938_v27  ;;  %v14927_v33 = vpop.permute.xlu0 %3944 }
 0x28e   : > { %19212 = vst [vmem:[#allocation29_spill] sm:$0xff] %v14927_v33 }
 0x28f   : > { %v2941_v43 = vadd.f32 %v12115_v7, %v14612_v5  ;;  %v3141_v18 = vmax.f32 %v3099_v48, 0.0  ;;  %v14929_v55 = vpop.permute.xlu1 %4016 }
 0x290   : > { %19213 = vst [vmem:[#allocation30_spill] sm:$0xff] %v14929_v55 }
 0x291   : > { %v3102_v60 = vadd.f32 %v3101_v0, %v2941_v43  ;;  %v11974_v15 = vpack.c.bf16 %v3141_v18, %v3141_v18  ;;  %v12037_v18 = vadd.f32 %v14550_v20, %v14542_v38  ;;  %v13264_v38 = vld [vmem:[%s19009_s2] ss:$0 sm:$0xff] }
 0x292   : > { %v2826_v20 = vadd.f32 %v13264_v38, %v14511_v53 }
 0x293   : > { %v3142_v31 = vmax.f32 %v3102_v60, 0.0  ;;  %3301 = vst.msk [vmem:[#allocation2 + $0xf4] sm:$0xf] %vm280_vm0, %v11974_v15  ;;  %v14934_v60 = vpop.permute.xlu0 %3799  ;;  %v14940_v44 = vpop.permute.xlu1 %4079  ;;  %v2837_v3 = vadd.f32 %v13264_v38, %v12037_v18 }
 0x294   : > { %19214 = vst [vmem:[#allocation31_spill] sm:$0xff] %v14934_v60  ;;  %19215 = vst [vmem:[#allocation32_spill] sm:$0xff] %v14940_v44 }
 0x295   : > { %v11975_v32 = vpack.c.bf16 %v3142_v31, %v3142_v31  ;;  %v12031_v31 = vadd.f32 %v14526_v1, %v14518_v24 }
 0x297   : > { %3302 = vst.msk [vmem:[#allocation2 + $0xf8] sm:$0xf] %vm280_vm0, %v11975_v32  ;;  %v2834_v32 = vadd.f32 %v14531_v25, %v14612_v5  ;;  %v14947_v24 = vpop.permute.xlu0 %3869  ;;  %v14951_v41 = vpop.permute.xlu1 %3871 }
 0x298   : > { %19216 = vst [vmem:[#allocation33_spill] sm:$0xff] %v14947_v24  ;;  %19217 = vst [vmem:[#allocation34_spill] sm:$0xff] %v14951_v41 }
 0x29b   : > { %v12116_v23 = vpop.f32.mrf.mxu0 }
 0x29d   : > { %v12117_v27 = vpop.f32.mrf.mxu0 }
 0x29e   : > { %v12118_v7 = vadd.f32 %v12117_v27, %v12116_v23  ;;  %v15256_v60 = vld [vmem:[#allocation2 + $0xf8] sm:$0xf] }
 0x29f   : > { %v12119_v48 = vpop.f32.mrf.mxu0  ;;  %19248 = vst [vmem:[#allocation65_spill] sm:$0xff] %v15256_v60 }
 0x2a0   : > { %v2946_v0 = vadd.f32 %v12118_v7, %v14612_v5 }
 0x2a1   : > { %v12120_v43 = vpop.f32.mrf.mxu0 }
 0x2a2   : > { %v12121_v15 = vadd.f32 %v12120_v43, %v12119_v48  ;;  %v3107_v26 = vadd.f32 %v12882_v51, %v2946_v0  ;;  %v2829_v0 = vadd.f32 %v13264_v38, %v12031_v31 }
 0x2a3   : > { %v12854_v23 = vpop.f32.mrf.mxu0 }
 0x2a4   : > { %v2949_v27 = vadd.f32 %v12121_v15, %v14612_v5  ;;  %v2995_v7 = vadd.f32 %v12854_v23, %v2834_v32  ;;  %v3143_v48 = vmax.f32 %v3107_v26, 0.0  ;;  %v12049_v23 = vadd.f32 %v14600_v19, %v14590_v30 }
 0x2a5   : > { %v2986_v43 = vpop.f32.mrf.mxu0  ;;  %v2850_v26 = vadd.f32 %v13264_v38, %v14579_v14  ;;  %v14961_v14 = vpop.permute.xlu0 %3659 }
 0x2a6   : > { %v3110_v58 = vadd.f32 %v12883_v29, %v2949_v27  ;;  %v3115_v25 = vmax.f32 %v2995_v7, 0.0  ;;  %v2987_v45 = vadd.f32 %v2986_v43, %v2826_v20  ;;  %v11976_v1 = vpack.c.bf16 %v3143_v48, %v3143_v48  ;;  %19218 = vst [vmem:[#allocation35_spill] sm:$0xff] %v14961_v14 }
 0x2a7   : > { %v12855_v51 = vpop.f32.mrf.mxu0  ;;  %v12043_v7 = vadd.f32 %v14574_v62, %v14566_v57 }
 0x2a8   : > { %v3144_v6 = vmax.f32 %v3110_v58, 0.0  ;;  %v11948_v5 = vpack.c.bf16 %v3115_v25, %v3115_v25  ;;  %v3113_v15 = vmax.f32 %v2987_v45, 0.0  ;;  %v2998_v32 = vadd.f32 %v12855_v51, %v2837_v3  ;;  %3303 = vst.msk [vmem:[#allocation2 + $0x104] sm:$0xf] %vm280_vm0, %v11976_v1  ;;  %v14964_v1 = vpop.permute.xlu1 %3801 }
 0x2a9   : > { %v2989_v53 = vpop.f32.mrf.mxu0  ;;  %v2842_v3 = vadd.f32 %v13264_v38, %v14555_v42  ;;  %v2853_v25 = vadd.f32 %v13264_v38, %v12049_v23  ;;  %19219 = vst [vmem:[#allocation36_spill] sm:$0xff] %v14964_v1 }
 0x2aa   : > { %v11977_v29 = vpack.c.bf16 %v3144_v6, %v3144_v6  ;;  %3275 = vst.msk [vmem:[#allocation2 + $0x24] sm:$0xf] %vm280_vm0, %v11948_v5  ;;  %v11946_v18 = vpack.c.bf16 %v3113_v15, %v3113_v15  ;;  %v3116_v27 = vmax.f32 %v2998_v32, 0.0  ;;  %v2990_v31 = vadd.f32 %v2989_v53, %v2829_v0  ;;  %v3313_v15 = vld [vmem:[#allocation2 + $0x20] sm:$0xf] }
 0x2ab   : > { %v12858_v58 = vpop.f32.mrf.mxu0  ;;  %v2845_v32 = vadd.f32 %v13264_v38, %v12043_v7 }
 0x2ac   : > { %3304 = vst.msk [vmem:[#allocation2 + $0x108] sm:$0xf] %vm280_vm0, %v11977_v29  ;;  %3273 = vst.msk [vmem:[#allocation2 + $0x14] sm:$0xf] %vm280_vm0, %v11946_v18  ;;  %v11949_v45 = vpack.c.bf16 %v3116_v27, %v3116_v27  ;;  %v3114_v30 = vmax.f32 %v2990_v31, 0.0  ;;  %v3011_v19 = vadd.f32 %v12858_v58, %v2850_v26  ;;  %v14968_v18 = vpop.permute.xlu0 %4018 }
 0x2ad   : > { %v3002_v6 = vpop.f32.mrf.mxu0  ;;  %v13080_v29 = vld [vmem:[#allocation2 + $0x2c] ss:$0 sps:$4 sm:$0xff]   ;;  %19220 = vst [vmem:[#allocation37_spill] sm:$0xff] %v14968_v18  ;;  %v3309_v58 = vld [vmem:[#allocation2 + $0x10] sm:$0xf] }
 0x2ae   : > { %3276 = vst.msk [vmem:[#allocation2 + $0x28] sm:$0xf] %vm280_vm0, %v11949_v45  ;;  %v11947_v20 = vpack.c.bf16 %v3114_v30, %v3114_v30  ;;  %v3119_v48 = vmax.f32 %v3011_v19, 0.0  ;;  %v3003_v43 = vadd.f32 %v3002_v6, %v2842_v3  ;;  %v14973_v30 = vpop.permute.xlu1 %3950  ;;  %v13108_v3 = vld [vmem:[%s19008_s1 + $0x108] sm:$0xff]  }
 0x2af   : > { %v12859_v51 = vpop.f32.mrf.mxu0  ;;  %19222 = vst [vmem:[#allocation39_spill] sm:$0xff] %v14973_v30  ;;  %12140 = vmatprep.subr.bf16.mxu1 %v13108_v3  ;;  %v13085_v3 = vld [vmem:[#allocation2 + $0x3c] ss:$0 sps:$4 sm:$0xff]  }
 0x2b0   : > { %3274 = vst.msk [vmem:[#allocation2 + $0x18] sm:$0xf] %vm280_vm0, %v11947_v20  ;;  %v11952_v0 = vpack.c.bf16 %v3119_v48, %v3119_v48  ;;  %v3117_v5 = vmax.f32 %v3003_v43, 0.0  ;;  %v3014_v42 = vadd.f32 %v12859_v51, %v2853_v25  ;;  %v3736_v20 = vrot.slane %v13080_v29, 5  ;;  %v13109_v48 = vld [vmem:[%s19008_s1 + $0xc8] sm:$0xff]   ;;  %v13110_v43 = vld [vmem:[%s19008_s1 + $0x100] sm:$0xff]  }
 0x2b1   : > { %v3005_v57 = vpop.f32.mrf.mxu0  ;;  %v3314_v62 = vld [vmem:[#allocation2 + $0x24] sm:$0xf]  ;;  %12141 = vmatpush3.bf16.msra.mxu1 %v13109_v48 }
 0x2b2   : > { %3279 = vst.msk [vmem:[#allocation2 + $0x44] sm:$0xf] %vm280_vm0, %v11952_v0  ;;  %v11950_v53 = vpack.c.bf16 %v3117_v5, %v3117_v5  ;;  %v3120_v26 = vmax.f32 %v3014_v42, 0.0  ;;  %v3006_v23 = vadd.f32 %v3005_v57, %v2845_v32  ;;  %v14970_v27 = vcombine.low %v3313_v15, %v3314_v62  ;;  %v13112_v42 = vld [vmem:[%s19008_s1 + $0xc0] sm:$0xff]   ;;  %v14999_v15 = vpop.permute.xlu0 %3948  ;;  %12142 = vmatprep.subr.bf16.mxu1 %v13110_v43 }
 0x2b3   : > { %v3310_v45 = vld [vmem:[#allocation2 + $0x14] sm:$0xf]  ;;  %19225 = vst [vmem:[#allocation42_spill] sm:$0xff] %v14999_v15  ;;  %v15258_v46 = vld [vmem:[#allocation2 + $0x108] sm:$0xf] }
 0x2b4   : > { %19221 = vst [vmem:[#allocation38_spill] sm:$0xff] %v14970_v27  ;;  %3277 = vst.msk [vmem:[#allocation2 + $0x34] sm:$0xf] %vm280_vm0, %v11950_v53  ;;  %v11953_v31 = vpack.c.bf16 %v3120_v26, %v3120_v26  ;;  %v3118_v38 = vmax.f32 %v3006_v23, 0.0  ;;  %3853 = vrot.lane.b32.xlu0 %v14970_v27, %s13285_s11  ;;  %4000 = vrot.lane.b32.xlu1 %v14970_v27, %s13283_s9  ;;  %v14993_v51 = vcombine.low %v3309_v58, %v3310_v45  ;;  %v13113_v53 = vld [vmem:[%s19008_s1 + $0xf8] sm:$0xff]   ;;  %v15010_v26 = vpop.permute.xlu1 %4020 }
 0x2b5   : > { %v3315_v19 = vld [vmem:[#allocation2 + $0x28] sm:$0xf]  ;;  %19226 = vst [vmem:[#allocation43_spill] sm:$0xff] %v15010_v26  ;;  %v13088_v58 = vld [vmem:[#allocation2 + $0x4c] ss:$0 sps:$4 sm:$0xff]   ;;  %12143 = vmatpush3.bf16.msra.mxu1 %v13112_v42  ;;  %19249 = vst [vmem:[#allocation66_spill] sm:$0xff] %v15258_v46 }
 0x2b6   : > { %3280 = vst.msk [vmem:[#allocation2 + $0x48] sm:$0xf] %vm280_vm0, %v11953_v31  ;;  %v14983_v7 = vcombine.low %v3315_v19, %v3315_v19  ;;  %v14985_v6 = vcombine.low %v3314_v62, %v3315_v19  ;;  %v11951_v25 = vpack.c.bf16 %v3118_v38, %v3118_v38  ;;  %19224 = vst [vmem:[#allocation41_spill] sm:$0xff] %v14993_v51  ;;  %12144 = vmatprep.subr.bf16.mxu1 %v13113_v53  ;;  %v15032_v63 = vpop.permute.xlu0 %3803  ;;  %v13117_v53 = vld [vmem:[%s19008_s1 + $0xb0] sm:$0xff]  }
 0x2b7   : > { %v3311_v0 = vld [vmem:[#allocation2 + $0x18] sm:$0xf]  ;;  %19228 = vst [vmem:[#allocation45_spill] sm:$0xff] %v15032_v63  ;;  %v3742_v11 = vrot.slane %v13088_v58, 5 }
 0x2b8   : > { %19223 = vst [vmem:[#allocation40_spill] sm:$0xff] %v14983_v7  ;;  %v3735_v5 = vrot.slane %v14985_v6, 5  ;;  %3278 = vst.msk [vmem:[#allocation2 + $0x38] sm:$0xf] %vm280_vm0, %v11951_v25  ;;  %3855 = vrot.lane.b32.xlu1 %v14983_v7, %s13285_s11  ;;  %3849 = vrot.lane.b32.xlu0 %v14993_v51, %s13285_s11  ;;  %v15012_v29 = vcombine.low %v3311_v0, %v3311_v0  ;;  %v3541_v18 = vshll.u32 %v14985_v6, 16 }
 0x2b9   : > { %v15021_v25 = vld [vmem:[#allocation2 + $0x44] sm:$0xf] }
 0x2ba   : > { %v3737_v32 = vsel %vm1021_vm7, %v3735_v5, %v3736_v20  ;;  %v4542_v57 = vshrl.u32 %v3735_v5, 16  ;;  %v4545_v62 = vshll.u32 %v3735_v5, 16  ;;  %19227 = vst [vmem:[#allocation44_spill] sm:$0xff] %v15012_v29  ;;  %v13114_v20 = vld [vmem:[%s19008_s1 + $0xb8] sm:$0xff]  }
 0x2bb   : > { %v4550_v23 = vshrl.u32 %v3737_v32, 16  ;;  %v4553_v31 = vshll.u32 %v3737_v32, 16  ;;  %12145 = vmatpush3.bf16.msra.mxu1 %v13114_v20 }
 0x2bc   : > { %v4544_v38 = vrot.slane %v4542_v57, 3  ;;  %v4547_v19 = vrot.slane %v4545_v62, 4  ;;  %3851 = vrot.lane.b32.xlu1 %v15012_v29, %s13285_s11  ;;  %4002 = vrot.lane.b32.xlu0 %v14983_v7, %s13283_s9  ;;  %v13115_v62 = vld [vmem:[%s19008_s1 + $0xf0] sm:$0xff]  }
 0x2bd   : > { %v4552_v48 = vrot.slane %v4550_v23, 3  ;;  %v4555_v43 = vrot.slane %v4553_v31, 4  ;;  %v15023_v21 = vld [vmem:[#allocation2 + $0x48] sm:$0xf]  ;;  %v15034_v23 = vld [vmem:[#allocation2 + $0x34] sm:$0xf]  ;;  %12146 = vmatprep.subr.bf16.mxu1 %v13115_v62 }
 0x2be   : > { %v4548_v57 = vor.u32 %v4547_v19, %v4544_v38  ;;  %v15027_v42 = vcombine.low %v15021_v25, %v15023_v21  ;;  %v15044_v38 = vpop.permute.xlu1 %4081  ;;  %v15049_v19 = vcombine.low %v3310_v45, %v3311_v0  ;;  %v13119_v0 = vld [vmem:[%s19008_s1 + $0xa8] sm:$0xff]  }
 0x2bf   : > { %v4556_v44 = vor.u32 %v4555_v43, %v4552_v48  ;;  %v15036_v31 = vld [vmem:[#allocation2 + $0x38] sm:$0xf]  ;;  %19229 = vst [vmem:[#allocation46_spill] sm:$0xff] %v15044_v38  ;;  %v3739_v43 = vrot.slane %v13085_v3, 5  ;;  %12147 = vmatpush3.bf16.msra.mxu1 %v13117_v53  ;;  %v15071_v3 = vpop.permute.xlu0 %3873 }
 0x2c0   : > { %v15039_v49 = vrot.slane %v15027_v42, 5  ;;  %3785 = vrot.lane.b32.xlu1 %v3735_v5, %s13283_s9  ;;  %3932 = vrot.lane.b32.xlu0 %v3735_v5, %s13284_s10  ;;  %v15053_v48 = vcombine.low %v15034_v23, %v15036_v31  ;;  %v13118_v5 = vld [vmem:[%s19008_s1 + $0xe8] sm:$0xff]   ;;  %19230 = vst [vmem:[#allocation47_spill] sm:$0xff] %v15071_v3  ;;  %v13120_v3 = vld [vmem:[%s19008_s1 + $0xe0] sm:$0xff]   ;;  %v3554_v56 = vshrl.u32 %v15027_v42, 16 }
 0x2c1   : > { %v4557_v58 = vsel %vm1807_vm8, %v4548_v57, %v4556_v44  ;;  %v3732_v57 = vrot.slane %v15049_v19, 5  ;;  %12148 = vmatprep.subr.bf16.mxu1 %v13118_v5  ;;  %v13121_v5 = vld [vmem:[%s19008_s1 + $0xa0] sm:$0xff]  }
 0x2c2   : > { %12888 = vmatprep.mubr.msk.bf16.mxu0 %vm1404_vm9, %v4557_v58  ;;  %v4636_v20 = vshrl.u32 %v15039_v49, 16  ;;  %v4639_v7 = vshll.u32 %v15039_v49, 16  ;;  %v15062_v44 = vrot.slane %v15053_v48, 5  ;;  %v15066_v45 = vsel %vm1021_vm7, %v15039_v49, %v3742_v11 }
 0x2c3   : > { %v4644_v27 = vshrl.u32 %v15066_v45, 16  ;;  %v4647_v2 = vshll.u32 %v15066_v45, 16  ;;  %12149 = vmatpush3.bf16.msra.mxu1 %v13119_v0  ;;  %v15097_v63 = vpop.permute.xlu0 %3661 }
 0x2c4   : > { %3934 = vrot.lane.b32.xlu1 %v3737_v32, %s13284_s10  ;;  %3787 = vrot.lane.b32.xlu0 %v3737_v32, %s13283_s9  ;;  %v15078_v62 = vsel %vm1021_vm7, %v15062_v44, %v3739_v43  ;;  %v4589_v11 = vshrl.u32 %v15062_v44, 16  ;;  %v4638_v58 = vrot.slane %v4636_v20, 3  ;;  %v4641_v53 = vrot.slane %v4639_v7, 4  ;;  %v15086_v32 = vpop.permute.xlu1 %3875  ;;  %v3321_v20 = vld [vmem:[#allocation2 + $0x40] sm:$0xf]  ;;  %19232 = vst [vmem:[#allocation49_spill] sm:$0xff] %v15097_v63 }
 0x2c5   : > { %19231 = vst [vmem:[#allocation48_spill] sm:$0xff] %v15086_v32  ;;  %v4592_v30 = vshll.u32 %v15062_v44, 16  ;;  %v4597_v43 = vshrl.u32 %v15078_v62, 16  ;;  %v4600_v29 = vshll.u32 %v15078_v62, 16  ;;  %v13089_v7 = vld [vmem:[#allocation2 + $0x1c] ss:$0 sps:$4 sm:$0xff]   ;;  %12150 = vmatprep.subr.bf16.mxu1 %v13120_v3  ;;  %v15100_v38 = vcombine.low %v3321_v20, %v15021_v25 }
 0x2c6   : > { %v4591_v26 = vrot.slane %v4589_v11, 3  ;;  %v4642_v9 = vor.u32 %v4641_v53, %v4638_v58  ;;  %v4646_v15 = vrot.slane %v4644_v27, 3  ;;  %v4649_v47 = vrot.slane %v4647_v2, 4  ;;  %v13124_v2 = vld [vmem:[%s19008_s1 + $0x98] sm:$0xff]   ;;  %v13126_v25 = vld [vmem:[%s19008_s1 + $0x90] sm:$0xff]  }
 0x2c7   : > { %v4594_v1 = vrot.slane %v4592_v30, 4  ;;  %v4599_v51 = vrot.slane %v4597_v43, 3  ;;  %v4602_v11 = vrot.slane %v4600_v29, 4  ;;  %v3538_v32 = vshrl.u32 %v14985_v6, 16  ;;  %19233 = vst [vmem:[#allocation50_spill] sm:$0xff] %v15100_v38  ;;  %v13122_v30 = vld [vmem:[%s19008_s1 + $0xd8] sm:$0xff]   ;;  %12151 = vmatpush3.bf16.msra.mxu1 %v13121_v5 }
 0x2c8   : > { %3781 = vrot.lane.b32.xlu1 %v3732_v57, %s13283_s9  ;;  %3928 = vrot.lane.b32.xlu0 %v3732_v57, %s13284_s10  ;;  %v4650_v29 = vor.u32 %v4649_v47, %v4646_v15  ;;  %v3733_v58 = vrot.slane %v13089_v7, 5  ;;  %v15109_v27 = vpop.permute.xlu1 %3805  ;;  %v3533_v53 = vshll.u32 %v15049_v19, 16  ;;  %v3317_v20 = vld [vmem:[#allocation2 + $0x30] sm:$0xf]  ;;  %v13093_v7 = vld [vmem:[#allocation2 + $0xbc] ss:$0 sps:$4 sm:$0xff]  }
 0x2c9   : > { %v4595_v0 = vor.u32 %v4594_v1, %v4591_v26  ;;  %v4603_v13 = vor.u32 %v4602_v11, %v4599_v51  ;;  %19234 = vst [vmem:[#allocation51_spill] sm:$0xff] %v15109_v27  ;;  %12152 = vmatprep.subr.bf16.mxu1 %v13122_v30  ;;  %v3540_v6 = vrot.slane %v3538_v32, 4  ;;  %v3543_v51 = vrot.slane %v3541_v18, 5  ;;  %v15120_v26 = vld [vmem:[#allocation2 + $0xb8] sm:$0xf] }
 0x2ca   : > { %v4651_v47 = vsel %vm1807_vm8, %v4642_v9, %v4650_v29  ;;  %v3734_v15 = vsel %vm1021_vm7, %v3732_v57, %v3733_v58  ;;  %v13125_v9 = vld [vmem:[%s19008_s1 + $0xd0] sm:$0xff]   ;;  %v3530_v57 = vshrl.u32 %v15049_v19, 16  ;;  %v15138_v32 = vld [vmem:[#allocation2 + $0xc8] sm:$0xf]  ;;  %v15142_v43 = vcombine.low %v14882_v40, %v15120_v26  ;;  %v15150_v19 = vld [vmem:[#allocation2 + $0xc4] sm:$0xf] }
 0x2cb   : > { %v4604_v1 = vsel %vm1807_vm8, %v4595_v0, %v4603_v13  ;;  %12153 = vmatpush3.bf16.msra.mxu1 %v13124_v2  ;;  %v15122_v13 = vpop.permute.xlu0 %4022  ;;  %v15134_v3 = vor.u32 %v3543_v51, %v3540_v6  ;;  %v4879_v5 = vshrl.u32 %v14841_v50, 16  ;;  %v4882_v11 = vshll.u32 %v14841_v50, 16  ;;  %v13095_v0 = vld [vmem:[#allocation2 + $0xcc] ss:$0 sps:$4 sm:$0xff]   ;;  %v15197_v63 = vld [vmem:[#allocation2 + $0xd4] sm:$0xf] }
 0x2cc   : > { %4008 = vrot.lane.b32.xlu1 %v15100_v38, %s13283_s9  ;;  %3861 = vrot.lane.b32.xlu0 %v15100_v38, %s13285_s11  ;;  %19235 = vst [vmem:[#allocation52_spill] sm:$0xff] %v15122_v13  ;;  %v15132_v18 = vpop.permute.xlu1 %3954  ;;  %v4926_v30 = vshrl.u32 %v14868_v52, 16  ;;  %v4871_v40 = vshrl.u32 %v14831_v54, 16  ;;  %v4874_v29 = vshll.u32 %v14831_v54, 16  ;;  %v15159_v58 = vcombine.low %v15150_v19, %v15138_v32 }
 0x2cd   : > { %12889 = vmatmul.mubr.msk.bf16.vlgmr.msra.gmra.mxu0 %vm1404_vm9, %v4604_v1  ;;  %19236 = vst [vmem:[#allocation53_spill] sm:$0xff] %v15132_v18  ;;  %19237 = vst [vmem:[#allocation54_spill] sm:$0xff] %v15134_v3  ;;  %12154 = vmatprep.subr.bf16.mxu1 %v13125_v9  ;;  %v4929_v2 = vshll.u32 %v14868_v52, 16  ;;  %v3532_v6 = vrot.slane %v3530_v57, 4  ;;  %v15170_v51 = vrot.slane %v15142_v43, 5  ;;  %v4881_v27 = vrot.slane %v4879_v5, 3 }
 0x2ce   : > { %12892 = vmatprep.mubr.msk.bf16.mxu0 %vm1404_vm9, %v4651_v47  ;;  %v15167_v47 = vcombine.low %v3317_v20, %v15034_v23  ;;  %v15172_v9 = vld [vmem:[#allocation2 + $0xdc] ss:$0 sps:$4 sm:$0xff]   ;;  %v4921_v23 = vshll.u32 %v14863_v4, 16  ;;  %v3766_v57 = vrot.slane %v13095_v0, 5  ;;  %v4884_v20 = vrot.slane %v4882_v11, 4 }
 0x2cf   : > { %12155 = vmatpush3.bf16.msra.mxu1 %v13126_v25  ;;  %v15162_v1 = vpop.permute.xlu0 %3952  ;;  %v15174_v25 = vld [vmem:[#allocation2 + $0xec] ss:$0 sps:$4 sm:$0xff]   ;;  %v15187_v5 = vrot.slane %v15159_v58, 5  ;;  %v4928_v18 = vrot.slane %v4926_v30, 3  ;;  %v15208_v30 = vld [vmem:[#allocation2 + $0xe4] sm:$0xf] }
 0x2d0   : > { %3930 = vrot.lane.b32.xlu1 %v3734_v15, %s13284_s10  ;;  %3783 = vrot.lane.b32.xlu0 %v3734_v15, %s13283_s9  ;;  %19238 = vst [vmem:[#allocation55_spill] sm:$0xff] %v15162_v1  ;;  %19239 = vst [vmem:[#allocation56_spill] sm:$0xff] %v15167_v47  ;;  %v3763_v15 = vrot.slane %v13093_v7, 5  ;;  %v15176_v38 = vpop.permute.xlu1 %4024  ;;  %v4873_v7 = vrot.slane %v4871_v40, 3  ;;  %v4931_v1 = vrot.slane %v4929_v2, 4  ;;  %v3769_v40 = vrot.slane %v15172_v9, 5 }
 0x2d1   : > { %19240 = vst [vmem:[#allocation57_spill] sm:$0xff] %v15176_v38  ;;  %v15189_v38 = vld [vmem:[#allocation2 + $0xe8] sm:$0xf]  ;;  %v4923_v2 = vrot.slane %v4921_v23, 4  ;;  %v4885_v9 = vor.u32 %v4884_v20, %v4881_v27  ;;  %v15226_v24 = vsel %vm1021_vm7, %v15187_v5, %v3766_v57  ;;  %v5012_v23 = vshrl.u32 %v15187_v5, 16 }
 0x2d2   : > { %v15201_v11 = vsel %vm1021_vm7, %v15170_v51, %v3763_v15  ;;  %v5015_v57 = vshll.u32 %v15187_v5, 16 }
 0x2d3   : > { %v4973_v27 = vshrl.u32 %v15201_v11, 16 }
 0x2d4   : > { %4073 = vrot.lane.b32.xlu1 %v15134_v3, %s13285_s11  ;;  %3653 = vrot.lane.b32.xlu0 %v15134_v3, %s13284_s10  ;;  %v4876_v3 = vrot.slane %v4874_v29, 4  ;;  %v15210_v29 = vpop.permute.xlu0 %3807  ;;  %v15228_v55 = vpop.permute.xlu1 %4083 }
 0x2d5   : > { %12893 = vmatmul.mubr.msk.bf16.gmra.mxu0 %vm1404_vm9, %v14712_v12  ;;  %v3535_v12 = vrot.slane %v3533_v53, 5  ;;  %v15184_v53 = vld [vmem:[#allocation2 + $0xd8] sm:$0xf]  ;;  %19243 = vst [vmem:[#allocation60_spill] sm:$0xff] %v15210_v29  ;;  %v4965_v29 = vshrl.u32 %v15170_v51, 16  ;;  %19244 = vst [vmem:[#allocation61_spill] sm:$0xff] %v15228_v55 }
 0x2d6   : > { %12896 = vmatprep.mubr.msk.bf16.mxu0 %vm1404_vm9, %v14744_v16  ;;  %v4918_v16 = vshrl.u32 %v14863_v4, 16  ;;  %v15205_v0 = vcombine.low %v15197_v63, %v15184_v53  ;;  %v4877_v15 = vor.u32 %v4876_v3, %v4873_v7  ;;  %v4976_v3 = vshll.u32 %v15201_v11, 16  ;;  %v13101_v55 = vld [vmem:[#allocation2 + $0xfc] ss:$0 sps:$4 sm:$0xff]  }
 0x2d7   : > { %v15195_v13 = vor.u32 %v3535_v12, %v3532_v6  ;;  %v15218_v6 = vcombine.low %v15208_v30, %v15189_v38  ;;  %v3772_v12 = vrot.slane %v15174_v25, 5  ;;  %v4932_v25 = vor.u32 %v4931_v1, %v4928_v18 }
 0x2d8   : > { %4004 = vrot.lane.b32.xlu1 %v15167_v47, %s13283_s9  ;;  %3857 = vrot.lane.b32.xlu0 %v15167_v47, %s13285_s11  ;;  %v15193_v47 = vcombine.low %v15023_v21, %v15023_v21  ;;  %v4920_v21 = vrot.slane %v4918_v16, 3  ;;  %v15234_v16 = vcombine.low %v15036_v31, %v15036_v31  ;;  %v15242_v20 = vrot.slane %v15205_v0, 5  ;;  %v15253_v41 = vpop.permute.xlu0 %3877 }
 0x2d9   : > { %19242 = vst [vmem:[#allocation59_spill] sm:$0xff] %v15195_v13  ;;  %v5020_v31 = vshrl.u32 %v15226_v24, 16  ;;  %v5023_v18 = vshll.u32 %v15226_v24, 16  ;;  %v15251_v1 = vrot.slane %v15218_v6, 5  ;;  %v4967_v7 = vrot.slane %v4965_v29, 3  ;;  %19247 = vst [vmem:[#allocation64_spill] sm:$0xff] %v15253_v41  ;;  %v15264_v29 = vpop.permute.xlu1 %3879 }
 0x2da   : > { %19241 = vst [vmem:[#allocation58_spill] sm:$0xff] %v15193_v47  ;;  %19245 = vst [vmem:[#allocation62_spill] sm:$0xff] %v15234_v16  ;;  %v4886_v59 = vsel %vm1807_vm8, %v4877_v15, %v4885_v9  ;;  %v4975_v33 = vrot.slane %v4973_v27, 3  ;;  %v15262_v36 = vsel %vm1021_vm7, %v15242_v20, %v3769_v40  ;;  %v15277_v40 = vld [vmem:[#allocation2 + $0x104] sm:$0xf] }
 0x2db   : > { %19246 = vst [vmem:[#allocation63_spill] sm:$0xff] %v15251_v1  ;;  %19250 = vst [vmem:[#allocation67_spill] sm:$0xff] %v15264_v29  ;;  %v5022_v9 = vrot.slane %v5020_v31, 3  ;;  %v15273_v27 = vsel %vm1021_vm7, %v15251_v1, %v3772_v12  ;;  %v5070_v31 = vshll.u32 %v15262_v36, 16  ;;  %v5109_v29 = vshll.u32 %v15251_v1, 16 }
 0x2dc   : > { %3863 = vrot.lane.b32.xlu1 %v15193_v47, %s13285_s11  ;;  %3651 = vrot.lane.b32.xlu0 %v15195_v13, %s13284_s10  ;;  %19251 = vst [vmem:[#allocation68_spill] sm:$0xff] %v15273_v27  ;;  %19253 = vst [vmem:[#allocation70_spill] sm:$0xff] %v15277_v40 }
 0x2dd   : > { %12897 = vmatmul.mubr.msk.bf16.gmra.mxu0 %vm1404_vm9, %v14778_v10  ;;  %v4968_v10 = vshll.u32 %v15170_v51, 16  ;;  %v5072_v13 = vrot.slane %v5070_v31, 4 }
 0x2de   : > { %12900 = vmatprep.mubr.msk.bf16.mxu0 %vm1404_vm9, %v14810_v17  ;;  %v4924_v17 = vor.u32 %v4923_v2, %v4920_v21  ;;  %v4978_v21 = vrot.slane %v4976_v3, 4  ;;  %v5014_v2 = vrot.slane %v5012_v23, 3  ;;  %v15275_v3 = vld [vmem:[#allocation2 + $0xf4] sm:$0xf]  ;;  %v5059_v23 = vshrl.u32 %v15242_v20, 16 }
 0x2df   : > { %v4970_v35 = vrot.slane %v4968_v10, 4  ;;  %v5025_v10 = vrot.slane %v5023_v18, 4  ;;  %19252 = vst [vmem:[#allocation69_spill] sm:$0xff] %v15275_v3  ;;  %v15284_v41 = vcombine.low %v15275_v3, %v15256_v60  ;;  %v5106_v18 = vshrl.u32 %v15251_v1, 16  ;;  %v15297_v3 = vpop.permute.xlu0 %3663 }
 0x2e0   : > { %3859 = vrot.lane.b32.xlu1 %v15234_v16, %s13285_s11  ;;  %4010 = vrot.lane.b32.xlu0 %v15193_v47, %s13283_s9  ;;  %v5017_v47 = vrot.slane %v5015_v57, 4  ;;  %v4933_v15 = vsel %vm1807_vm8, %v4924_v17, %v4932_v25  ;;  %v5062_v57 = vshll.u32 %v15242_v20, 16  ;;  %v15288_v25 = vcombine.low %v15277_v40, %v15258_v46  ;;  %19254 = vst [vmem:[#allocation71_spill] sm:$0xff] %v15297_v3 }
 0x2e1   : > { %v4971_v12 = vor.u32 %v4970_v35, %v4967_v7  ;;  %v5067_v17 = vshrl.u32 %v15262_v36, 16  ;;  %v5117_v60 = vshll.u32 %v15273_v27, 16  ;;  %v4979_v35 = vor.u32 %v4978_v21, %v4975_v33 }
 0x2e2   : > { %v5018_v7 = vor.u32 %v5017_v47, %v5014_v2  ;;  %v5061_v46 = vrot.slane %v5059_v23, 3  ;;  %v5064_v40 = vrot.slane %v5062_v57, 4  ;;  %v15304_v1 = vrot.slane %v15284_v41, 5 }
 0x2e3   : > { %v15307_v14 = vrot.slane %v15288_v25, 5  ;;  %v5069_v3 = vrot.slane %v5067_v17, 3  ;;  %v5108_v33 = vrot.slane %v5106_v18, 3  ;;  %v5111_v47 = vrot.slane %v5109_v29, 4 }
 0x2e4   : > { %3793 = vrot.lane.b32.xlu1 %v15039_v49, %s13283_s9  ;;  %4006 = vrot.lane.b32.xlu0 %v15234_v16, %s13283_s9  ;;  %v5114_v16 = vshrl.u32 %v15273_v27, 16  ;;  %v15309_v27 = vpop.permute.xlu1 %3809  ;;  %v4980_v2 = vsel %vm1807_vm8, %v4971_v12, %v4979_v35  ;;  %v3549_v23 = vshll.u32 %v15053_v48, 16  ;;  %v5065_v57 = vor.u32 %v5064_v40, %v5061_v46 }
 0x2e5   : > { %12901 = vmatmul.mubr.msk.bf16.gmra.mxu0 %vm1404_vm9, %v4886_v59  ;;  %v3775_v59 = vrot.slane %v13101_v55, 5  ;;  %v3926_v55 = vrot.slane %v13103_v39, 5  ;;  %19255 = vst [vmem:[#allocation72_spill] sm:$0xff] %v15309_v27  ;;  %v5119_v39 = vrot.slane %v5117_v60, 4  ;;  %v15328_v60 = vpop.permute.xlu0 %4026  ;;  %v5073_v12 = vor.u32 %v5072_v13, %v5069_v3 }
 0x2e6   : > { %12904 = vmatprep.mubr.msk.bf16.mxu0 %vm1404_vm9, %v4933_v15  ;;  %v5026_v15 = vor.u32 %v5025_v10, %v5022_v9  ;;  %v5116_v21 = vrot.slane %v5114_v16, 3  ;;  %v3556_v16 = vrot.slane %v3554_v56, 4  ;;  %v5112_v17 = vor.u32 %v5111_v47, %v5108_v33 }
 0x2e7   : > { %v15322_v10 = vsel %vm1021_vm7, %v15304_v1, %v3775_v59  ;;  %v5153_v18 = vshrl.u32 %v15304_v1, 16  ;;  %v5156_v56 = vshll.u32 %v15304_v1, 16  ;;  %v5200_v46 = vshrl.u32 %v15307_v14, 16 }
 0x2e8   : > { %3942 = vrot.lane.b32.xlu1 %v15066_v45, %s13284_s10  ;;  %3940 = vrot.lane.b32.xlu0 %v15039_v49, %s13284_s10  ;;  %v3557_v49 = vshll.u32 %v15027_v42, 16  ;;  %v5027_v9 = vsel %vm1807_vm8, %v5018_v7, %v5026_v15  ;;  %v15326_v42 = vsel %vm1021_vm7, %v15307_v14, %v3926_v55  ;;  %v5120_v31 = vor.u32 %v5119_v39, %v5116_v21  ;;  %v15333_v59 = vpop.permute.xlu1 %3958 }
 0x2e9   : > { %19256 = vst [vmem:[#allocation73_spill] sm:$0xff] %v15333_v59  ;;  %v5161_v35 = vshrl.u32 %v15322_v10, 16  ;;  %v5203_v13 = vshll.u32 %v15307_v14, 16  ;;  %v5208_v3 = vshrl.u32 %v15326_v42, 16  ;;  %v5211_v40 = vshll.u32 %v15326_v42, 16  ;;  %v15351_v33 = vpop.permute.xlu0 %3956 }
 0x2ea   : > { %v3559_v29 = vrot.slane %v3557_v49, 5  ;;  %v5074_v55 = vsel %vm1807_vm8, %v5065_v57, %v5073_v12  ;;  %v5121_v49 = vsel %vm1807_vm8, %v5112_v17, %v5120_v31  ;;  %19257 = vst [vmem:[#allocation74_spill] sm:$0xff] %v15351_v33  ;;  %v5155_v47 = vrot.slane %v5153_v18, 3 }
 0x2eb   : > { %v5158_v21 = vrot.slane %v5156_v56, 4  ;;  %v5163_v39 = vrot.slane %v5161_v35, 3  ;;  %v3610_v12 = vshrl.u32 %v15142_v43, 16 }
 0x2ec   : > { %3789 = vrot.lane.b32.xlu1 %v15062_v44, %s13283_s9  ;;  %3795 = vrot.lane.b32.xlu0 %v15066_v45, %s13283_s9  ;;  %v3546_v45 = vshrl.u32 %v15053_v48, 16  ;;  %v5164_v48 = vshll.u32 %v15322_v10, 16  ;;  %v15347_v7 = vor.u32 %v3559_v29, %v3556_v16  ;;  %v5205_v16 = vrot.slane %v5203_v13, 4 }
 0x2ed   : > { %12905 = vmatmul.mubr.msk.bf16.gmra.mxu0 %vm1404_vm9, %v4980_v2  ;;  %v5210_v29 = vrot.slane %v5208_v3, 3  ;;  %v5159_v17 = vor.u32 %v5158_v21, %v5155_v47  ;;  %v15369_v35 = vpop.permute.xlu0 %3811  ;;  %v3618_v21 = vshrl.u32 %v15159_v58, 16 }
 0x2ee   : > { %12908 = vmatprep.mubr.msk.bf16.mxu0 %vm1404_vm9, %v5027_v9  ;;  %v3548_v15 = vrot.slane %v3546_v45, 4  ;;  %v5166_v2 = vrot.slane %v5164_v48, 4  ;;  %v5202_v9 = vrot.slane %v5200_v46, 3  ;;  %v5213_v45 = vrot.slane %v5211_v40, 4  ;;  %19259 = vst [vmem:[#allocation76_spill] sm:$0xff] %v15369_v35 }
 0x2ef   : > { %v3612_v48 = vrot.slane %v3610_v12, 4 }
 0x2f0   : > { %3938 = vrot.lane.b32.xlu1 %v15078_v62, %s13284_s10  ;;  %3936 = vrot.lane.b32.xlu0 %v15062_v44, %s13284_s10  ;;  %v3551_v44 = vrot.slane %v3549_v23, 5  ;;  %v15358_v23 = vpop.permute.xlu1 %4028  ;;  %v5167_v31 = vor.u32 %v5166_v2, %v5163_v39  ;;  %v5206_v18 = vor.u32 %v5205_v16, %v5202_v9  ;;  %v5214_v56 = vor.u32 %v5213_v45, %v5210_v29 }
 0x2f1   : > { %19258 = vst [vmem:[#allocation75_spill] sm:$0xff] %v15358_v23  ;;  %v3621_v39 = vshll.u32 %v15159_v58, 16  ;;  %v3620_v9 = vrot.slane %v3618_v21, 4  ;;  %v15432_v45 = vcombine.low %v15138_v32, %v15138_v32 }
 0x2f2   : > { %v15361_v57 = vor.u32 %v3551_v44, %v3548_v15  ;;  %v5168_v3 = vsel %vm1807_vm8, %v5159_v17, %v5167_v31  ;;  %v15385_v15 = vcombine.low %v15120_v26, %v15120_v26  ;;  %v15387_v44 = vpop.permute.xlu0 %3881  ;;  %v3353_v26 = vld [vmem:[#allocation2 + $0xc0] sm:$0xf] }
 0x2f3   : > { %19262 = vst [vmem:[#allocation79_spill] sm:$0xff] %v15387_v44  ;;  %v15408_v47 = vcombine.low %v3353_v26, %v15150_v19  ;;  %v3623_v16 = vrot.slane %v3621_v39, 5  ;;  %19272 = vst [vmem:[#allocation89_spill] sm:$0xff] %v15432_v45  ;;  %v15479_v26 = vcombine.low %v15184_v53, %v15184_v53 }
 0x2f4   : > { %4077 = vrot.lane.b32.xlu1 %v15347_v7, %s13285_s11  ;;  %3791 = vrot.lane.b32.xlu0 %v15078_v62, %s13283_s9  ;;  %v3613_v62 = vshll.u32 %v15142_v43, 16  ;;  %v15371_v13 = vpop.permute.xlu1 %4085  ;;  %v5215_v43 = vsel %vm1807_vm8, %v5206_v18, %v5214_v56  ;;  %19261 = vst [vmem:[#allocation78_spill] sm:$0xff] %v15385_v15  ;;  %v3626_v18 = vshrl.u32 %v15205_v0, 16  ;;  %v3629_v56 = vshll.u32 %v15205_v0, 16 }
 0x2f5   : > { %12909 = vmatmul.mubr.msk.bf16.gmra.mxu0 %vm1404_vm9, %v5074_v55  ;;  %19266 = vst [vmem:[#allocation83_spill] sm:$0xff] %v15408_v47  ;;  %v15428_v29 = vor.u32 %v3623_v16, %v3620_v9  ;;  %19281 = vst [vmem:[#allocation98_spill] sm:$0xff] %v15479_v26  ;;  %v3361_v16 = vld [vmem:[#allocation2 + $0xe0] sm:$0xf] }
 0x2f6   : > { %12912 = vmatprep.mubr.msk.bf16.mxu0 %vm1404_vm9, %v5121_v49  ;;  %v3615_v46 = vrot.slane %v3613_v62, 5  ;;  %v15399_v55 = vpop.permute.xlu0 %3665  ;;  %v3357_v62 = vld [vmem:[#allocation2 + $0xd0] sm:$0xf] }
 0x2f7   : > { %19264 = vst [vmem:[#allocation81_spill] sm:$0xff] %v15399_v55  ;;  %19271 = vst [vmem:[#allocation88_spill] sm:$0xff] %v15428_v29  ;;  %v15455_v31 = vcombine.low %v3357_v62, %v15197_v63 }
 0x2f8   : > { %4075 = vrot.lane.b32.xlu1 %v15361_v57, %s13285_s11  ;;  %3657 = vrot.lane.b32.xlu0 %v15347_v7, %s13284_s10  ;;  %v15381_v40 = vor.u32 %v3615_v46, %v3612_v48  ;;  %v3628_v46 = vrot.slane %v3626_v18, 4  ;;  %v15500_v18 = vcombine.low %v3361_v16, %v15208_v30 }
 0x2f9   : > { %19277 = vst [vmem:[#allocation94_spill] sm:$0xff] %v15455_v31 }
 0x2fa   : > { %19260 = vst [vmem:[#allocation77_spill] sm:$0xff] %v15381_v40  ;;  %v15412_v2 = vpop.permute.xlu0 %4030  ;;  %19282 = vst [vmem:[#allocation99_spill] sm:$0xff] %v15500_v18 }
 0x2fb   : > { %19267 = vst [vmem:[#allocation84_spill] sm:$0xff] %v15412_v2 }
 0x2fc   : > { %3813 = vrot.lane.b32.xlu1 %v14831_v54, %s13283_s9  ;;  %3655 = vrot.lane.b32.xlu0 %v15361_v57, %s13284_s10  ;;  %v15393_v54 = vpop.permute.xlu1 %3883 }
 0x2fd   : > { %12913 = vmatmul.mubr.msk.bf16.gmra.mxu0 %vm1404_vm9, %v5168_v3  ;;  %19263 = vst [vmem:[#allocation80_spill] sm:$0xff] %v15393_v54  ;;  %v3631_v3 = vrot.slane %v3629_v56, 5  ;;  %v3634_v56 = vshrl.u32 %v15218_v6, 16 }
 0x2fe   : > { %12916 = vmatprep.mubr.msk.bf16.mxu0 %vm1404_vm9, %v5215_v43  ;;  %v15424_v19 = vpop.permute.xlu0 %3960 }
 0x2ff   : > { %19269 = vst [vmem:[#allocation86_spill] sm:$0xff] %v15424_v19  ;;  %v15475_v43 = vor.u32 %v3631_v3, %v3628_v46  ;;  %v15644_v19 = vld [vmem:[#allocation2 + $0x118] sm:$0xf] }
 0x300   : > { %4091 = vrot.lane.b32.xlu1 %v15381_v40, %s13285_s11  ;;  %4038 = vrot.lane.b32.xlu0 %v15385_v15, %s13283_s9  ;;  %v15401_v49 = vpop.permute.xlu1 %3962 }
 0x301   : > { %19265 = vst [vmem:[#allocation82_spill] sm:$0xff] %v15401_v49  ;;  %19280 = vst [vmem:[#allocation97_spill] sm:$0xff] %v15475_v43 }
 0x304   : > { %3887 = vrot.lane.b32.xlu1 %v14857_v61, %s13285_s11  ;;  %3815 = vrot.lane.b32.xlu0 %v14841_v50, %s13283_s9  ;;  %v15414_v50 = vpop.permute.xlu1 %4032 }
 0x305   : > { %19268 = vst [vmem:[#allocation85_spill] sm:$0xff] %v15414_v50 }
 0x308   : > { %3970 = vrot.lane.b32.xlu1 %v15201_v11, %s13284_s10  ;;  %3885 = vrot.lane.b32.xlu0 %v14852_v22, %s13285_s11  ;;  %v15426_v58 = vpop.permute.xlu1 %4087 }
 0x309   : > { %19270 = vst [vmem:[#allocation87_spill] sm:$0xff] %v15426_v58 }
 0x30c   : > { %4040 = vrot.lane.b32.xlu1 %v15408_v47, %s13283_s9  ;;  %3968 = vrot.lane.b32.xlu0 %v15170_v51, %s13284_s10  ;;  %v15440_v12 = vpop.permute.xlu1 %3966 }
 0x30d   : > { %19274 = vst [vmem:[#allocation91_spill] sm:$0xff] %v15440_v12  ;;  %v19291_v12 = vld [vmem:[#allocation69_spill] sm:$0xff] }
 0x310   : > { %3817 = vrot.lane.b32.xlu1 %v14863_v4, %s13283_s9  ;;  %3669 = vrot.lane.b32.xlu0 %v14890_v8, %s13284_s10  ;;  %v15438_v4 = vpop.permute.xlu0 %3667  ;;  %v15448_v32 = vpop.permute.xlu1 %4036 }
 0x311   : > { %19273 = vst [vmem:[#allocation90_spill] sm:$0xff] %v15438_v4  ;;  %19276 = vst [vmem:[#allocation93_spill] sm:$0xff] %v15448_v32  ;;  %v19286_v32 = vld [vmem:[#allocation59_spill] sm:$0xff] }
 0x314   : > { %4093 = vrot.lane.b32.xlu1 %v15428_v29, %s13285_s11  ;;  %4042 = vrot.lane.b32.xlu0 %v15432_v45, %s13283_s9  ;;  %v15446_v17 = vpop.permute.xlu0 %4034  ;;  %v15465_v48 = vpop.permute.xlu1 %4089 }
 0x315   : > { %19275 = vst [vmem:[#allocation92_spill] sm:$0xff] %v15446_v17  ;;  %19279 = vst [vmem:[#allocation96_spill] sm:$0xff] %v15465_v48 }
 0x318   : > { %3891 = vrot.lane.b32.xlu1 %v15385_v15, %s13285_s11  ;;  %3819 = vrot.lane.b32.xlu0 %v14868_v52, %s13283_s9  ;;  %v15463_v52 = vpop.permute.xlu0 %3964  ;;  %v3305_v15 = vld [vmem:[#allocation2] sm:$0xf] }
 0x319   : > { %19278 = vst [vmem:[#allocation95_spill] sm:$0xff] %v15463_v52 }
 0x31c   : > { %3974 = vrot.lane.b32.xlu1 %v15226_v24, %s13284_s10  ;;  %3889 = vrot.lane.b32.xlu0 %v14885_v34, %s13285_s11  ;;  %v13265_v34 = vld [vmem:[#allocation2 + $0x8] sm:$0xf] }
 0x31d   : > { %v11446_v30 = vcombine.low %v13265_v34, %v13265_v34 }
 0x31f   : > { %v4115_v34 = vsel %vm1404_vm9, %v11446_v30, %v14906_v28 }
 0x320   : > { %4044 = vrot.lane.b32.xlu1 %v15455_v31, %s13283_s9  ;;  %3972 = vrot.lane.b32.xlu0 %v15187_v5, %s13284_s10 }
 0x324   : > { %3821 = vrot.lane.b32.xlu1 %v15170_v51, %s13283_s9  ;;  %3671 = vrot.lane.b32.xlu0 %v15381_v40, %s13284_s10 }
 0x326   : > { %v15471_v63 = vpop.permute.xlu1 %4000  ;;  %v15473_v0 = vpop.permute.xlu0 %3853 }
 0x328   : > { %4095 = vrot.lane.b32.xlu1 %v15475_v43, %s13285_s11  ;;  %4046 = vrot.lane.b32.xlu0 %v15479_v26, %s13283_s9 }
 0x32a   : > { %v15485_v51 = vpop.permute.xlu1 %3855  ;;  %v3850_v21 = vpop.permute.xlu0 %3849 }
 0x32c   : > { %3895 = vrot.lane.b32.xlu1 %v15432_v45, %s13285_s11  ;;  %3823 = vrot.lane.b32.xlu0 %v15201_v11, %s13283_s9  ;;  %v3637_v11 = vshll.u32 %v15218_v6, 16  ;;  %v3636_v45 = vrot.slane %v3634_v56, 4  ;;  %v13266_v6 = vld [vmem:[#allocation2 + $0x4] sm:$0xf]  ;;  %v15522_v56 = vcombine.low %v15189_v38, %v15189_v38  ;;  %v4194_v38 = vsel %vm1485_vm10, %v4115_v34, %v14911_v37  ;;  %v3365_v34 = vld [vmem:[#allocation2 + $0xf0] sm:$0xf] }
 0x32d   : > { %v11445_v16 = vcombine.low %v3305_v15, %v13266_v6 }
 0x32e   : > { %v3852_v39 = vpop.permute.xlu1 %3851  ;;  %v4003_v9 = vpop.permute.xlu0 %4002  ;;  %19284 = vst [vmem:[#allocation101_spill] sm:$0xff] %v15522_v56 }
 0x330   : > { %3978 = vrot.lane.b32.xlu1 %v15262_v36, %s13284_s10  ;;  %3893 = vrot.lane.b32.xlu0 %v15408_v47, %s13285_s11  ;;  %v3639_v47 = vrot.slane %v3637_v11, 5  ;;  %v19285_v11 = vld [vmem:[#allocation22_spill] sm:$0xff] }
 0x332   : > { %v15495_v53 = vpop.permute.xlu1 %3785  ;;  %v15497_v62 = vpop.permute.xlu0 %3932  ;;  %v15518_v40 = vor.u32 %v3639_v47, %v3636_v45  ;;  %v4258_v45 = vsel %vm1550_vm11, %v4194_v38, %v3852_v39  ;;  %v19287_v38 = vld [vmem:[#allocation35_spill] sm:$0xff] }
 0x333   : > { %v4521_v4 = vshll.u32 %v4258_v45, 16 }
 0x334   : > { %4048 = vrot.lane.b32.xlu1 %v15500_v18, %s13283_s9  ;;  %3976 = vrot.lane.b32.xlu0 %v15242_v20, %s13284_s10  ;;  %19283 = vst [vmem:[#allocation100_spill] sm:$0xff] %v15518_v40 }
 0x335   : > { %v4523_v44 = vrot.slane %v4521_v4, 4 }
 0x336   : > { %v15508_v46 = vpop.permute.xlu1 %3934  ;;  %v15510_v3 = vpop.permute.xlu0 %3787 }
 0x338   : > { %3825 = vrot.lane.b32.xlu1 %v15187_v5, %s13283_s9  ;;  %3673 = vrot.lane.b32.xlu0 %v15428_v29, %s13284_s10  ;;  %v4113_v5 = vsel %vm1404_vm9, %v11445_v16, %v14906_v28  ;;  %v4518_v29 = vshrl.u32 %v4258_v45, 16  ;;  %v3642_v45 = vshrl.u32 %v15284_v41, 16 }
 0x339   : > { %v4192_v30 = vsel %vm1485_vm10, %v4113_v5, %v19285_v11  ;;  %v19289_v5 = vld [vmem:[#allocation68_spill] sm:$0xff] }
 0x33a   : > { %v15516_v61 = vpop.permute.xlu1 %3781  ;;  %v3929_v22 = vpop.permute.xlu0 %3928  ;;  %v4256_v28 = vsel %vm1550_vm11, %v4192_v30, %v3850_v21  ;;  %v19290_v30 = vld [vmem:[#allocation9_spill] sm:$0xff] }
 0x33b   : > { %v4321_v37 = vsel %vm1404_vm9, %v19286_v32, %v3929_v22  ;;  %v4511_v21 = vshrl.u32 %v4256_v28, 16  ;;  %v4514_v11 = vshll.u32 %v4256_v28, 16  ;;  %v3645_v22 = vshll.u32 %v15284_v41, 16 }
 0x33c   : > { %4097 = vrot.lane.b32.xlu1 %v15518_v40, %s13285_s11  ;;  %4050 = vrot.lane.b32.xlu0 %v15522_v56, %s13283_s9  ;;  %v4520_v28 = vrot.slane %v4518_v29, 3 }
 0x33e   : > { %v15532_v15 = vpop.permute.xlu1 %4008  ;;  %v15534_v47 = vpop.permute.xlu0 %3861  ;;  %v4524_v50 = vor.u32 %v4523_v44, %v4520_v28 }
 0x340   : > { %3899 = vrot.lane.b32.xlu1 %v15479_v26, %s13285_s11  ;;  %3827 = vrot.lane.b32.xlu0 %v15226_v24, %s13283_s9  ;;  %v19288_v26 = vld [vmem:[#allocation10_spill] sm:$0xff] }
 0x341   : > { %v4138_v24 = vsel %vm1404_vm9, %v19288_v26, %v19287_v38 }
 0x342   : > { %v3931_v6 = vpop.permute.xlu1 %3930  ;;  %v15546_v16 = vpop.permute.xlu0 %3783 }
 0x343   : > { %v4323_v39 = vsel %vm1404_vm9, %v19286_v32, %v3931_v6  ;;  %v4140_v32 = vsel %vm1404_vm9, %v19290_v30, %v19287_v38  ;;  %v4400_v6 = vsel %vm1485_vm10, %v4321_v37, %v15471_v63  ;;  %v19293_v63 = vld [vmem:[#allocation63_spill] sm:$0xff]  ;;  %v4516_v37 = vrot.slane %v4514_v11, 4  ;;  %v19297_v11 = vld [vmem:[#allocation14_spill] sm:$0xff] }
 0x344   : > { %3982 = vrot.lane.b32.xlu1 %v19289_v5, %s13284_s10  ;;  %3897 = vrot.lane.b32.xlu0 %v15455_v31, %s13285_s11  ;;  %v4402_v26 = vsel %vm1485_vm10, %v4323_v39, %v4003_v9  ;;  %v15570_v31 = vcombine.low %v3365_v34, %v19291_v12  ;;  %v4513_v9 = vrot.slane %v4511_v21, 3  ;;  %v3644_v12 = vrot.slane %v3642_v45, 4  ;;  %v19296_v21 = vld [vmem:[#allocation29_spill] sm:$0xff] }
 0x345   : > { %v3647_v39 = vrot.slane %v3645_v22, 5  ;;  %v4341_v45 = vsel %vm1404_vm9, %v19297_v11, %v19296_v21  ;;  %v19298_v22 = vld [vmem:[#allocation28_spill] sm:$0xff] }
 0x346   : > { %v4074_v52 = vpop.permute.xlu1 %4073  ;;  %v15567_v8 = vpop.permute.xlu0 %3653  ;;  %19292 = vst [vmem:[#allocation22_spill] sm:$0xff] %v15570_v31  ;;  %v4517_v44 = vor.u32 %v4516_v37, %v4513_v9  ;;  %v19305_v9 = vld [vmem:[#allocation46_spill] sm:$0xff] }
 0x347   : > { %v4464_v54 = vsel %vm1550_vm11, %v4400_v6, %v4074_v52  ;;  %v4465_v41 = vsel %vm1550_vm11, %v4402_v26, %v4074_v52 }
 0x348   : > { %v4526_v27 = vshrl.u32 %v4464_v54, 16  ;;  %v4529_v35 = vshll.u32 %v4464_v54, 16  ;;  %v4533_v38 = vshrl.u32 %v4465_v41, 16  ;;  %v4536_v30 = vshll.u32 %v4465_v41, 16  ;;  %4052 = vrot.lane.b32.xlu1 %v15570_v31, %s13283_s9  ;;  %3980 = vrot.lane.b32.xlu0 %v19293_v63, %s13284_s10  ;;  %v19294_v54 = vld [vmem:[#allocation26_spill] sm:$0xff]  ;;  %v19295_v41 = vld [vmem:[#allocation31_spill] sm:$0xff] }
 0x349   : > { %v4212_v26 = vsel %vm1485_vm10, %v4138_v24, %v19294_v54  ;;  %v4214_v17 = vsel %vm1485_vm10, %v4140_v32, %v19295_v41  ;;  %v4343_v24 = vsel %vm1404_vm9, %v19297_v11, %v19298_v22  ;;  %v15601_v54 = vor.u32 %v3647_v39, %v3644_v12  ;;  %v19303_v41 = vld [vmem:[#allocation33_spill] sm:$0xff]  ;;  %v19307_v12 = vld [vmem:[#allocation15_spill] sm:$0xff] }
 0x34a   : > { %v4528_v29 = vrot.slane %v4526_v27, 3  ;;  %v4531_v4 = vrot.slane %v4529_v35, 4  ;;  %v4535_v34 = vrot.slane %v4533_v38, 3  ;;  %v4538_v6 = vrot.slane %v4536_v30, 4  ;;  %v15578_v48 = vpop.permute.xlu1 %4004  ;;  %v15580_v52 = vpop.permute.xlu0 %3857  ;;  %v19299_v38 = vld [vmem:[#allocation34_spill] sm:$0xff]  ;;  %v19304_v11 = vld [vmem:[#allocation37_spill] sm:$0xff] }
 0x34b   : > { %v4278_v32 = vsel %vm1550_vm11, %v4214_v17, %v19299_v38  ;;  %v4276_v21 = vsel %vm1550_vm11, %v4212_v26, %v19303_v41  ;;  %v4418_v17 = vsel %vm1485_vm10, %v4343_v24, %v19304_v11  ;;  %v19308_v41 = vld [vmem:[#allocation45_spill] sm:$0xff] }
 0x34c   : > { %3829 = vrot.lane.b32.xlu1 %v15242_v20, %s13283_s9  ;;  %3675 = vrot.lane.b32.xlu0 %v15475_v43, %s13284_s10  ;;  %v4532_v27 = vor.u32 %v4531_v4, %v4528_v29  ;;  %v4539_v35 = vor.u32 %v4538_v6, %v4535_v34  ;;  %v19300_v29 = vld [vmem:[#allocation65_spill] sm:$0xff]  ;;  %v19302_v34 = vld [vmem:[#allocation30_spill] sm:$0xff]  ;;  %v4753_v26 = vshrl.u32 %v4278_v32, 16  ;;  %v4477_v22 = vsel %vm1550_vm11, %v4418_v17, %v19305_v9 }
 0x34d   : > { %v15605_v4 = vcombine.low %v19300_v29, %v19300_v29  ;;  %v4416_v6 = vsel %vm1485_vm10, %v4341_v45, %v19302_v34  ;;  %v4756_v45 = vshll.u32 %v4278_v32, 16  ;;  %v4749_v29 = vshll.u32 %v4276_v21, 16 }
 0x34e   : > { %v15598_v28 = vpop.permute.xlu1 %3863  ;;  %v3652_v20 = vpop.permute.xlu0 %3651  ;;  %v4540_v30 = vsel %vm1807_vm8, %v4532_v27, %v4539_v35  ;;  %v4476_v37 = vsel %vm1550_vm11, %v4416_v6, %v19305_v9  ;;  %v19306_v27 = vld [vmem:[#allocation49_spill] sm:$0xff]  ;;  %v4525_v35 = vsel %vm1807_vm8, %v4517_v44, %v4524_v50  ;;  %v4724_v43 = vshll.u32 %v4477_v22, 16  ;;  %v19309_v50 = vld [vmem:[#allocation48_spill] sm:$0xff] }
 0x34f   : > { %19301 = vst [vmem:[#allocation59_spill] sm:$0xff] %v15605_v4  ;;  %5528 = vmatprep.mubr.bf16.mxu1 %v4540_v30  ;;  %v4145_v39 = vsel %vm1404_vm9, %v19307_v12, %v19306_v27  ;;  %v4746_v30 = vshrl.u32 %v4276_v21, 16  ;;  %v4714_v34 = vshrl.u32 %v4476_v37, 16  ;;  %v4717_v6 = vshll.u32 %v4476_v37, 16  ;;  %v19310_v21 = vld [vmem:[#allocation13_spill] sm:$0xff] }
 0x350   : > { %4099 = vrot.lane.b32.xlu1 %v15601_v54, %s13285_s11  ;;  %4054 = vrot.lane.b32.xlu0 %v15605_v4, %s13283_s9  ;;  %v4218_v11 = vsel %vm1485_vm10, %v4145_v39, %v19308_v41  ;;  %v4721_v12 = vshrl.u32 %v4477_v22, 16  ;;  %v4755_v44 = vrot.slane %v4753_v26, 3  ;;  %v4758_v17 = vrot.slane %v4756_v45, 4 }
 0x351   : > { %5529 = vmatmul.mubr.bf16.vlgmr.msra.gmra.mxu1 %v4525_v35  ;;  %v4282_v32 = vsel %vm1550_vm11, %v4218_v11, %v19309_v50  ;;  %v4143_v9 = vsel %vm1404_vm9, %v19310_v21, %v19306_v27  ;;  %v3369_v35 = vld [vmem:[#allocation2 + $0x100] sm:$0xf]  ;;  %v4748_v22 = vrot.slane %v4746_v30, 3  ;;  %v4751_v41 = vrot.slane %v4749_v29, 4  ;;  %v19311_v29 = vld [vmem:[#allocation42_spill] sm:$0xff] }
 0x352   : > { %v15625_v24 = vpop.permute.xlu1 %3859  ;;  %v15627_v38 = vpop.permute.xlu0 %4010  ;;  %v4716_v11 = vrot.slane %v4714_v34, 3  ;;  %v4719_v50 = vrot.slane %v4717_v6, 4  ;;  %v4800_v49 = vshrl.u32 %v4282_v32, 16  ;;  %v4726_v26 = vrot.slane %v4724_v43, 4  ;;  %v19312_v34 = vld [vmem:[#allocation4_spill] sm:$0xff] }
 0x353   : > { %v3915_v27 = vshrl.u32 %v15288_v25, 16  ;;  %v3918_v45 = vshll.u32 %v15288_v25, 16  ;;  %v4759_v30 = vor.u32 %v4758_v17, %v4755_v44  ;;  %v4346_v6 = vsel %vm1404_vm9, %v19312_v34, %v19311_v29  ;;  %v19314_v43 = vld [vmem:[#allocation36_spill] sm:$0xff] }
 0x354   : > { %3903 = vrot.lane.b32.xlu1 %v15522_v56, %s13285_s11  ;;  %3831 = vrot.lane.b32.xlu0 %v15262_v36, %s13283_s9  ;;  %v4803_v56 = vshll.u32 %v4282_v32, 16  ;;  %v4723_v36 = vrot.slane %v4721_v12, 3  ;;  %v19313_v32 = vld [vmem:[#allocation41_spill] sm:$0xff]  ;;  %v4216_v55 = vsel %vm1485_vm10, %v4143_v9, %v19314_v43  ;;  %v4752_v44 = vor.u32 %v4751_v41, %v4748_v22  ;;  %v19318_v41 = vld [vmem:[#allocation43_spill] sm:$0xff] }
 0x355   : > { %v4118_v21 = vsel %vm1404_vm9, %v19313_v32, %v3652_v20  ;;  %v15657_v12 = vld [vmem:[#allocation2 + $0x114] sm:$0xf]  ;;  %v15668_v17 = vrot.slane %v4800_v49, 3  ;;  %v19316_v32 = vld [vmem:[#allocation44_spill] sm:$0xff]  ;;  %v4720_v33 = vor.u32 %v4719_v50, %v4716_v11  ;;  %v19317_v49 = vld [vmem:[#allocation39_spill] sm:$0xff] }
 0x356   : > { %v15640_v37 = vpop.permute.xlu1 %3793  ;;  %v15642_v39 = vpop.permute.xlu0 %4006  ;;  %v15666_v25 = vcombine.low %v15657_v12, %v15644_v19  ;;  %v15670_v29 = vrot.slane %v4803_v56, 4  ;;  %v4120_v59 = vsel %vm1404_vm9, %v19316_v32, %v3652_v20  ;;  %v4196_v9 = vsel %vm1485_vm10, %v4118_v21, %v15516_v61  ;;  %v19319_v11 = vld [vmem:[#allocation47_spill] sm:$0xff]  ;;  %v19320_v21 = vld [vmem:[#allocation52_spill] sm:$0xff]  ;;  %v19323_v32 = vld [vmem:[#allocation53_spill] sm:$0xff] }
 0x357   : > { %v4727_v22 = vor.u32 %v4726_v26, %v4723_v36  ;;  %v4348_v56 = vsel %vm1404_vm9, %v19312_v34, %v19317_v49  ;;  %v15685_v20 = vsel %vm1485_vm10, %v4346_v6, %v19318_v41  ;;  %v15689_v61 = vsel %vm1550_vm11, %v4216_v55, %v19319_v11  ;;  %v19321_v36 = vld [vmem:[#allocation55_spill] sm:$0xff]  ;;  %v19322_v26 = vld [vmem:[#allocation5_spill] sm:$0xff]  ;;  %v19325_v41 = vld [vmem:[#allocation66_spill] sm:$0xff] }
 0x358   : > { %3986 = vrot.lane.b32.xlu1 %v15322_v10, %s13284_s10  ;;  %3901 = vrot.lane.b32.xlu0 %v15500_v18, %s13285_s11  ;;  %v19315_v18 = vld [vmem:[#allocation70_spill] sm:$0xff]  ;;  %v15692_v50 = vsel %vm1807_vm8, %v4752_v44, %v4759_v30  ;;  %v4198_v34 = vsel %vm1485_vm10, %v4120_v59, %v15546_v16  ;;  %v15709_v55 = vld [vmem:[#allocation2 + $0x110] sm:$0xf]  ;;  %v4066_v30 = vshrl.u32 %v15666_v25, 16  ;;  %v15717_v49 = vsel %vm1404_vm9, %v19322_v26, %v19323_v32 }
 0x359   : > { %v15662_v23 = vcombine.low %v3369_v35, %v19315_v18  ;;  %v3917_v18 = vrot.slane %v3915_v27, 4  ;;  %v3920_v35 = vrot.slane %v3918_v45, 5  ;;  %v15696_v27 = vsel %vm1485_vm10, %v4348_v56, %v19320_v21 }
 0x35a   : > { %v3943_v58 = vpop.permute.xlu1 %3942  ;;  %v3941_v2 = vpop.permute.xlu0 %3940  ;;  %v15701_v45 = vsel %vm1404_vm9, %v19322_v26, %v19321_v36  ;;  %v4260_v56 = vsel %vm1550_vm11, %v4196_v9, %v15473_v0  ;;  %v4069_v59 = vshll.u32 %v15666_v25, 16  ;;  %v15730_v11 = vcombine.low %v19325_v41, %v19325_v41  ;;  %v19326_v36 = vld [vmem:[#allocation38_spill] sm:$0xff]  ;;  %v19327_v9 = vld [vmem:[#allocation40_spill] sm:$0xff] }
 0x35b   : > { %v15726_v16 = vor.u32 %v3920_v35, %v3917_v18  ;;  %v15733_v21 = vsel %vm1807_vm8, %v4720_v33, %v4727_v22  ;;  %v4123_v0 = vsel %vm1404_vm9, %v19326_v36, %v15567_v8  ;;  %v4262_v26 = vsel %vm1550_vm11, %v4198_v34, %v15485_v51  ;;  %v19328_v36 = vld [vmem:[#allocation54_spill] sm:$0xff] }
 0x35c   : > { %4056 = vrot.lane.b32.xlu1 %v15662_v23, %s13283_s9  ;;  %3984 = vrot.lane.b32.xlu0 %v15304_v1, %s13284_s10  ;;  %v4558_v41 = vshrl.u32 %v4260_v56, 16  ;;  %v4561_v44 = vshll.u32 %v4260_v56, 16  ;;  %v15745_v33 = vrot.slane %v4066_v30, 4  ;;  %v15756_v34 = vrot.slane %v4069_v59, 5 }
 0x35d   : > { %19324 = vst [vmem:[#allocation35_spill] sm:$0xff] %v15726_v16  ;;  %v4328_v30 = vsel %vm1404_vm9, %v19328_v36, %v15508_v46  ;;  %v4200_v56 = vsel %vm1485_vm10, %v4123_v0, %v15495_v53  ;;  %v4338_v46 = vsel %vm1404_vm9, %v15347_v7, %v3943_v58  ;;  %v4336_v53 = vsel %vm1404_vm9, %v15347_v7, %v3941_v2 }
 0x35e   : > { %v15705_v6 = vpop.permute.xlu1 %3789  ;;  %v15707_v43 = vpop.permute.xlu0 %3795  ;;  %v4568_v59 = vshll.u32 %v4262_v26, 16  ;;  %v15789_v58 = vsel %vm1550_vm11, %v4200_v56, %v15580_v52  ;;  %v4406_v56 = vsel %vm1485_vm10, %v4328_v30, %v15642_v39 }
 0x360   : > { %3833 = vrot.lane.b32.xlu1 %v19293_v63, %s13283_s9  ;;  %3677 = vrot.lane.b32.xlu0 %v15518_v40, %s13284_s10  ;;  %v4125_v63 = vsel %vm1404_vm9, %v19327_v9, %v15567_v8  ;;  %v4326_v40 = vsel %vm1404_vm9, %v19328_v36, %v15497_v62  ;;  %v4565_v62 = vshrl.u32 %v4262_v26, 16  ;;  %v15783_v36 = vrot.slane %v4561_v44, 4  ;;  %v19329_v26 = vld [vmem:[#allocation27_spill] sm:$0xff] }
 0x361   : > { %v4202_v9 = vsel %vm1485_vm10, %v4125_v63, %v15510_v3  ;;  %v19330_v44 = vld [vmem:[#allocation23_spill] sm:$0xff] }
 0x362   : > { %v3939_v35 = vpop.permute.xlu1 %3938  ;;  %v3937_v32 = vpop.permute.xlu0 %3936 }
 0x363   : > { %v4333_v8 = vsel %vm1404_vm9, %v15361_v57, %v3939_v35  ;;  %v4331_v51 = vsel %vm1404_vm9, %v15361_v57, %v3937_v32  ;;  %v15771_v57 = vsel %vm1550_vm11, %v4202_v9, %v15625_v24  ;;  %v15781_v32 = vrot.slane %v4558_v41, 3 }
 0x364   : > { %4101 = vrot.lane.b32.xlu1 %v15726_v16, %s13285_s11  ;;  %4058 = vrot.lane.b32.xlu0 %v15730_v11, %s13283_s9  ;;  %v4410_v3 = vsel %vm1485_vm10, %v4333_v8, %v15627_v38  ;;  %v4408_v0 = vsel %vm1485_vm10, %v4331_v51, %v15532_v15  ;;  %v4404_v24 = vsel %vm1485_vm10, %v4326_v40, %v15578_v48  ;;  %v4612_v38 = vshrl.u32 %v15771_v57, 16 }
 0x365   : > { %v4615_v15 = vshll.u32 %v15771_v57, 16  ;;  %v4414_v41 = vsel %vm1485_vm10, %v4338_v46, %v19329_v26  ;;  %v4412_v8 = vsel %vm1485_vm10, %v4336_v53, %v19330_v44  ;;  %v4564_v46 = vor.u32 %v15783_v36, %v15781_v32 }
 0x366   : > { %v4078_v63 = vpop.permute.xlu1 %4077  ;;  %v3792_v35 = vpop.permute.xlu0 %3791  ;;  %v4567_v53 = vrot.slane %v4565_v62, 3 }
 0x367   : > { %v4470_v7 = vsel %vm1550_vm11, %v4408_v0, %v4078_v63  ;;  %v4471_v2 = vsel %vm1550_vm11, %v4410_v3, %v4078_v63  ;;  %v4570_v3 = vrot.slane %v4568_v59, 4  ;;  %v19331_v0 = vld [vmem:[#allocation32_spill] sm:$0xff] }
 0x368   : > { %3907 = vrot.lane.b32.xlu1 %v15605_v4, %s13285_s11  ;;  %3835 = vrot.lane.b32.xlu0 %v19289_v5, %s13283_s9  ;;  %v4620_v40 = vshrl.u32 %v4470_v7, 16  ;;  %v4623_v48 = vshll.u32 %v4470_v7, 16  ;;  %v4627_v52 = vshrl.u32 %v4471_v2, 16  ;;  %v4630_v51 = vshll.u32 %v4471_v2, 16 }
 0x369   : > { %v4474_v63 = vsel %vm1550_vm11, %v4414_v41, %v19331_v0  ;;  %v4473_v5 = vsel %vm1550_vm11, %v4412_v8, %v19331_v0 }
 0x36a   : > { %v4076_v9 = vpop.permute.xlu1 %4075  ;;  %v15805_v57 = vpop.permute.xlu0 %3657  ;;  %v4622_v62 = vrot.slane %v4620_v40, 3  ;;  %v4625_v59 = vrot.slane %v4623_v48, 4  ;;  %v4629_v32 = vrot.slane %v4627_v52, 3  ;;  %v4632_v36 = vrot.slane %v4630_v51, 4 }
 0x36b   : > { %v4467_v7 = vsel %vm1550_vm11, %v4404_v24, %v4076_v9  ;;  %v4468_v2 = vsel %vm1550_vm11, %v4406_v56, %v4076_v9  ;;  %v4674_v9 = vshrl.u32 %v4474_v63, 16  ;;  %v4667_v4 = vshrl.u32 %v4473_v5, 16 }
 0x36c   : > { %v4573_v26 = vshrl.u32 %v4467_v7, 16  ;;  %v4576_v39 = vshll.u32 %v4467_v7, 16  ;;  %v4580_v30 = vshrl.u32 %v4468_v2, 16  ;;  %v4583_v44 = vshll.u32 %v4468_v2, 16  ;;  %3990 = vrot.lane.b32.xlu1 %v15326_v42, %s13284_s10  ;;  %3905 = vrot.lane.b32.xlu0 %v15570_v31, %s13285_s11  ;;  %v19332_v2 = vld [vmem:[#allocation56_spill] sm:$0xff]  ;;  %v19333_v31 = vld [vmem:[#allocation62_spill] sm:$0xff] }
 0x36d   : > { %v4677_v7 = vshll.u32 %v4474_v63, 16  ;;  %v4571_v42 = vor.u32 %v4570_v3, %v4567_v53  ;;  %v4670_v16 = vshll.u32 %v4473_v5, 16  ;;  %v19334_v48 = vcombine.low %v15709_v55, %v15657_v12 }
 0x36e   : > { %v4575_v41 = vrot.slane %v4573_v26, 3  ;;  %v4578_v8 = vrot.slane %v4576_v39, 4  ;;  %v4582_v0 = vrot.slane %v4580_v30, 3  ;;  %v4585_v24 = vrot.slane %v4583_v44, 4  ;;  %v15819_v22 = vpop.permute.xlu1 %3813  ;;  %v3656_v56 = vpop.permute.xlu0 %3655 }
 0x36f   : > { %v4128_v18 = vsel %vm1404_vm9, %v19332_v2, %v3656_v56  ;;  %v4130_v40 = vsel %vm1404_vm9, %v19333_v31, %v3656_v56  ;;  %v4626_v26 = vor.u32 %v4625_v59, %v4622_v62  ;;  %v4633_v53 = vor.u32 %v4632_v36, %v4629_v32  ;;  %v19335_v32 = vld [vmem:[#allocation50_spill] sm:$0xff]  ;;  %v19336_v36 = vld [vmem:[#allocation61_spill] sm:$0xff] }
 0x370   : > { %4060 = vrot.lane.b32.xlu1 %v19334_v48, %s13283_s9  ;;  %3988 = vrot.lane.b32.xlu0 %v15307_v14, %s13284_s10  ;;  %v4579_v52 = vor.u32 %v4578_v8, %v4575_v41  ;;  %v4204_v51 = vsel %vm1485_vm10, %v4128_v18, %v15705_v6  ;;  %v4586_v63 = vor.u32 %v4585_v24, %v4582_v0  ;;  %v4605_v3 = vshrl.u32 %v15789_v58, 16  ;;  %v19337_v41 = vld [vmem:[#allocation58_spill] sm:$0xff] }
 0x371   : > { %v4608_v5 = vshll.u32 %v15789_v58, 16  ;;  %v4206_v31 = vsel %vm1485_vm10, %v4130_v40, %v3792_v35  ;;  %v4072_v14 = vor.u32 %v15756_v34, %v15745_v33  ;;  %v4614_v55 = vrot.slane %v4612_v38, 3 }
 0x372   : > { %v15836_v39 = vpop.permute.xlu1 %4091  ;;  %v15838_v12 = vpop.permute.xlu0 %4038  ;;  %v4617_v30 = vrot.slane %v4615_v15, 4  ;;  %v4587_v6 = vsel %vm1807_vm8, %v4579_v52, %v4586_v63  ;;  %v4572_v18 = vsel %vm1807_vm8, %v4564_v46, %v4571_v42  ;;  %v4676_v44 = vrot.slane %v4674_v9, 3  ;;  %v13133_v52 = vld [vmem:[#allocation2 + $0x11c] ss:$0 sps:$4 sm:$0xff]  }
 0x373   : > { %v4679_v62 = vrot.slane %v4677_v7, 4  ;;  %v4669_v59 = vrot.slane %v4667_v4, 3  ;;  %v4268_v58 = vsel %vm1550_vm11, %v4204_v51, %v15534_v47  ;;  %5536 = vmatprep.mubr.bf16.mxu1 %v4587_v6  ;;  %v4672_v35 = vrot.slane %v4670_v16, 4  ;;  %v19339_v51 = vld [vmem:[#allocation71_spill] sm:$0xff] }
 0x374   : > { %3837 = vrot.lane.b32.xlu1 %v15304_v1, %s13283_s9  ;;  %v4133_v33 = vsel %vm1404_vm9, %v19335_v32, %v15805_v57  ;;  %v4270_v34 = vsel %vm1550_vm11, %v4206_v31, %v15598_v28  ;;  %3679 = vrot.lane.b32.xlu0 %v15601_v54, %s13284_s10  ;;  %v4634_v4 = vsel %vm1807_vm8, %v4626_v26, %v4633_v53  ;;  %v4607_v38 = vrot.slane %v4605_v3, 3  ;;  %v19341_v26 = vld [vmem:[#allocation3_spill] sm:$0xff]  ;;  %v19342_v31 = vld [vmem:[#allocation25_spill] sm:$0xff] }
 0x375   : > { %5537 = vmatmul.mubr.bf16.gmra.mxu1 %v4572_v18  ;;  %v4610_v47 = vrot.slane %v4608_v5, 4  ;;  %v4793_v16 = vshrl.u32 %v15689_v61, 16  ;;  %v4796_v46 = vshll.u32 %v15689_v61, 16  ;;  %v4479_v28 = vsel %vm1550_vm11, %v15685_v20, %v19336_v36 }
 0x376   : > { %5544 = vmatprep.mubr.bf16.mxu1 %v4634_v4  ;;  %v15856_v15 = vpop.permute.xlu1 %3887  ;;  %v15858_v1 = vpop.permute.xlu0 %3815  ;;  %v4135_v8 = vsel %vm1404_vm9, %v19337_v41, %v15805_v57  ;;  %v4652_v0 = vshrl.u32 %v4268_v58, 16  ;;  %v4655_v24 = vshll.u32 %v4268_v58, 16  ;;  %v4618_v56 = vor.u32 %v4617_v30, %v4614_v55 }
 0x377   : > { %v4208_v9 = vsel %vm1485_vm10, %v4133_v33, %v15640_v37  ;;  %v4659_v7 = vshrl.u32 %v4270_v34, 16  ;;  %v4662_v2 = vshll.u32 %v4270_v34, 16  ;;  %v4480_v42 = vsel %vm1550_vm11, %v15696_v27, %v19336_v36  ;;  %v19340_v37 = vld [vmem:[#allocation6_spill] sm:$0xff] }
 0x378   : > { %4103 = vrot.lane.b32.xlu1 %v4072_v14, %s13285_s11  ;;  %v4108_v20 = vrot.slane %v15666_v25, 5  ;;  %v19338_v57 = vcombine.low %v15644_v19, %v15644_v19  ;;  %v4673_v40 = vor.u32 %v4672_v35, %v4669_v59  ;;  %v4680_v48 = vor.u32 %v4679_v62, %v4676_v44  ;;  %v19343_v59 = vld [vmem:[#allocation24_spill] sm:$0xff] }
 0x379   : > { %v4148_v63 = vsel %vm1404_vm9, %v19340_v37, %v19339_v51  ;;  %v4150_v53 = vsel %vm1404_vm9, %v19341_v26, %v19339_v51  ;;  %v4611_v3 = vor.u32 %v4610_v47, %v4607_v38  ;;  %v4210_v25 = vsel %vm1485_vm10, %v4135_v8, %v15707_v43  ;;  %v19345_v51 = vld [vmem:[#allocation67_spill] sm:$0xff] }
 0x37a   : > { %4062 = vrot.lane.b32.xlu0 %v19338_v57, %s13283_s9  ;;  %v15887_v27 = vpop.permute.xlu1 %3970  ;;  %v15889_v5 = vpop.permute.xlu0 %3885  ;;  %v4761_v19 = vshrl.u32 %v4479_v28, 16  ;;  %v4272_v14 = vsel %vm1550_vm11, %v4208_v9, %v19342_v31  ;;  %v4654_v55 = vrot.slane %v4652_v0, 3  ;;  %v4657_v30 = vrot.slane %v4655_v24, 4 }
 0x37b   : > { %v4764_v6 = vshll.u32 %v4479_v28, 16  ;;  %v4619_v18 = vsel %vm1807_vm8, %v4611_v3, %v4618_v56  ;;  %v4661_v44 = vrot.slane %v4659_v7, 3  ;;  %v4664_v62 = vrot.slane %v4662_v2, 4  ;;  %v19344_v7 = vld [vmem:[#allocation60_spill] sm:$0xff] }
 0x37c   : > { %3911 = vrot.lane.b32.xlu1 %v15730_v11, %s13285_s11  ;;  %v4274_v43 = vsel %vm1550_vm11, %v4210_v25, %v19343_v59  ;;  %v4681_v58 = vsel %vm1807_vm8, %v4673_v40, %v4680_v48  ;;  %v4109_v35 = vrot.slane %v13133_v52, 5  ;;  %v5247_v32 = vshrl.u32 %v4108_v20, 16  ;;  %v19347_v59 = vld [vmem:[#allocation51_spill] sm:$0xff] }
 0x37d   : > { %5545 = vmatmul.mubr.bf16.gmra.mxu1 %v4619_v18  ;;  %v4768_v33 = vshrl.u32 %v4480_v42, 16  ;;  %v4771_v34 = vshll.u32 %v4480_v42, 16  ;;  %v4699_v38 = vshrl.u32 %v4272_v14, 16  ;;  %v5250_v47 = vshll.u32 %v4108_v20, 16 }
 0x37e   : > { %3839 = vrot.lane.b32.xlu0 %v15322_v10, %s13283_s9  ;;  %5552 = vmatprep.mubr.bf16.mxu1 %v4681_v58  ;;  %v15901_v4 = vpop.permute.xlu1 %4040  ;;  %v15903_v11 = vpop.permute.xlu0 %3968  ;;  %v4658_v36 = vor.u32 %v4657_v30, %v4654_v55  ;;  %v4702_v28 = vshll.u32 %v4272_v14, 16  ;;  %v4110_v41 = vsel %vm1021_vm7, %v4108_v20, %v4109_v35  ;;  %v5249_v8 = vrot.slane %v5247_v32, 3  ;;  %v19346_v30 = vld [vmem:[#allocation57_spill] sm:$0xff] }
 0x37f   : > { %v4665_v10 = vor.u32 %v4664_v62, %v4661_v44  ;;  %v4706_v0 = vshrl.u32 %v4274_v43, 16  ;;  %v4709_v24 = vshll.u32 %v4274_v43, 16  ;;  %v5252_v56 = vrot.slane %v5250_v47, 4 }
 0x380   : > { %v4763_v9 = vrot.slane %v4761_v19, 3  ;;  %v4222_v2 = vsel %vm1485_vm10, %v4150_v53, %v19344_v7  ;;  %v5255_v42 = vshrl.u32 %v4110_v41, 16  ;;  %v5258_v57 = vshll.u32 %v4110_v41, 16 }
 0x381   : > { %v4766_v40 = vrot.slane %v4764_v6, 4  ;;  %v4770_v48 = vrot.slane %v4768_v33, 3  ;;  %v4773_v52 = vrot.slane %v4771_v34, 4  ;;  %v4286_v20 = vsel %vm1550_vm11, %v4222_v2, %v19345_v51  ;;  %v19348_v34 = vld [vmem:[#allocation74_spill] sm:$0xff]  ;;  %v19354_v51 = vld [vmem:[#allocation87_spill] sm:$0xff] }
 0x382   : > { %3909 = vrot.lane.b32.xlu0 %v15662_v23, %s13285_s11  ;;  %v15912_v37 = vpop.permute.xlu1 %3817  ;;  %v15914_v26 = vpop.permute.xlu0 %3669  ;;  %v4701_v3 = vrot.slane %v4699_v38, 3  ;;  %v5253_v25 = vor.u32 %v5252_v56, %v5249_v8  ;;  %v5257_v19 = vrot.slane %v5255_v42, 3  ;;  %v5260_v31 = vrot.slane %v5258_v57, 4  ;;  %v19349_v38 = vld [vmem:[#allocation11_spill] sm:$0xff] }
 0x383   : > { %v4666_v53 = vsel %vm1807_vm8, %v4658_v36, %v4665_v10  ;;  %v4704_v14 = vrot.slane %v4702_v28, 4  ;;  %v4708_v23 = vrot.slane %v4706_v0, 3  ;;  %v4711_v55 = vrot.slane %v4709_v24, 4  ;;  %v19351_v0 = vld [vmem:[#allocation73_spill] sm:$0xff]  ;;  %v19352_v56 = vld [vmem:[#allocation75_spill] sm:$0xff] }
 0x384   : > { %v4424_v6 = vsel %vm1485_vm10, %v15701_v45, %v19346_v30  ;;  %v4426_v18 = vsel %vm1485_vm10, %v15717_v49, %v15328_v60  ;;  %v15925_v44 = vrot.slane %v4793_v16, 3  ;;  %v5261_v62 = vor.u32 %v5260_v31, %v5257_v19 }
 0x385   : > { %5553 = vmatmul.mubr.bf16.gmra.mxu1 %v4666_v53  ;;  %v4220_v43 = vsel %vm1485_vm10, %v4148_v63, %v19347_v59  ;;  %v4482_v58 = vsel %vm1550_vm11, %v4424_v6, %v15371_v13  ;;  %v4483_v35 = vsel %vm1550_vm11, %v4426_v18, %v15371_v13  ;;  %v15940_v49 = vrot.slane %v4796_v46, 4  ;;  %v19350_v46 = vld [vmem:[#allocation64_spill] sm:$0xff]  ;;  %v19357_v18 = vld [vmem:[#allocation7_spill] sm:$0xff]  ;;  %v19359_v59 = vld [vmem:[#allocation17_spill] sm:$0xff] }
 0x386   : > { %5560 = vmatprep.mubr.bf16.mxu1 %v15733_v21  ;;  %v15934_v45 = vpop.permute.xlu1 %4093  ;;  %v15936_v60 = vpop.permute.xlu0 %4042  ;;  %v4847_v16 = vshrl.u32 %v4286_v20, 16  ;;  %v4850_v32 = vshll.u32 %v4286_v20, 16  ;;  %v4767_v33 = vor.u32 %v4766_v40, %v4763_v9  ;;  %v5262_v63 = vsel %vm1807_vm8, %v5253_v25, %v5261_v62  ;;  %v19356_v25 = vld [vmem:[#allocation8_spill] sm:$0xff]  ;;  %v19358_v62 = vld [vmem:[#allocation86_spill] sm:$0xff] }
 0x387   : > { %v4356_v47 = vsel %vm1404_vm9, %v19349_v38, %v19348_v34  ;;  %v4705_v13 = vor.u32 %v4704_v14, %v4701_v3  ;;  %v4712_v36 = vor.u32 %v4711_v55, %v4708_v23  ;;  %v4774_v21 = vor.u32 %v4773_v52, %v4770_v48  ;;  %12917 = vmatmul.mubr.msk.bf16.gmra.mxu0 %vm1404_vm9, %v5262_v63  ;;  %v19353_v48 = vld [vmem:[#allocation84_spill] sm:$0xff]  ;;  %v19355_v3 = vld [vmem:[#allocation81_spill] sm:$0xff] }
 0x388   : > { %v4808_v28 = vshrl.u32 %v4482_v58, 16  ;;  %v4811_v41 = vshll.u32 %v4482_v58, 16  ;;  %v4815_v8 = vshrl.u32 %v4483_v35, 16  ;;  %v4818_v61 = vshll.u32 %v4483_v35, 16  ;;  %v19361_v63 = vld [vmem:[#allocation85_spill] sm:$0xff] }
 0x389   : > { %v15949_v10 = vsel %vm1550_vm11, %v4220_v43, %v19350_v46  ;;  %v4358_v24 = vsel %vm1404_vm9, %v19349_v38, %v19351_v0  ;;  %v4428_v9 = vsel %vm1485_vm10, %v4356_v47, %v19352_v56  ;;  %v4799_v42 = vor.u32 %v15940_v49, %v15925_v44 }
 0x38a   : > { %v15956_v7 = vpop.permute.xlu1 %3891  ;;  %v15958_v2 = vpop.permute.xlu0 %3819  ;;  %v15962_v57 = vrot.slane %v4847_v16, 3  ;;  %v15964_v40 = vrot.slane %v4850_v32, 4  ;;  %v4430_v52 = vsel %vm1485_vm10, %v4358_v24, %v19353_v48  ;;  %v4485_v20 = vsel %vm1550_vm11, %v4428_v9, %v19354_v51  ;;  %v19360_v32 = vld [vmem:[#allocation82_spill] sm:$0xff]  ;;  %v19365_v9 = vld [vmem:[#allocation72_spill] sm:$0xff] }
 0x38b   : > { %v4153_v19 = vsel %vm1404_vm9, %v19356_v25, %v19355_v3  ;;  %v4486_v31 = vsel %vm1550_vm11, %v4430_v52, %v19354_v51  ;;  %v4713_v53 = vsel %vm1807_vm8, %v4705_v13, %v4712_v36  ;;  %v4775_v14 = vsel %vm1807_vm8, %v4767_v33, %v4774_v21  ;;  %v19362_v36 = vld [vmem:[#allocation92_spill] sm:$0xff] }
 0x38c   : > { %v4810_v23 = vrot.slane %v4808_v28, 3  ;;  %v4813_v55 = vrot.slane %v4811_v41, 4  ;;  %v4817_v30 = vrot.slane %v4815_v8, 3  ;;  %v4820_v6 = vrot.slane %v4818_v61, 4  ;;  %v19363_v28 = vld [vmem:[#allocation96_spill] sm:$0xff] }
 0x38d   : > { %5561 = vmatmul.mubr.bf16.gmra.mxu1 %v4713_v53  ;;  %v4155_v44 = vsel %vm1404_vm9, %v19357_v18, %v19355_v3  ;;  %v4361_v43 = vsel %vm1404_vm9, %v19359_v59, %v19358_v62  ;;  %v4855_v58 = vshrl.u32 %v4485_v20, 16  ;;  %v4858_v35 = vshll.u32 %v4485_v20, 16  ;;  %v19364_v61 = vld [vmem:[#allocation76_spill] sm:$0xff]  ;;  %v19368_v62 = vld [vmem:[#allocation79_spill] sm:$0xff] }
 0x38e   : > { %5568 = vmatprep.mubr.bf16.mxu1 %v4775_v14  ;;  %v15983_v49 = vpop.permute.xlu1 %3974  ;;  %v15985_v16 = vpop.permute.xlu0 %3889  ;;  %v4363_v33 = vsel %vm1404_vm9, %v19359_v59, %v19360_v32  ;;  %v4432_v34 = vsel %vm1485_vm10, %v4361_v43, %v19361_v63  ;;  %v4862_v38 = vshrl.u32 %v4486_v31, 16  ;;  %v4865_v47 = vshll.u32 %v4486_v31, 16  ;;  %v19366_v52 = vld [vmem:[#allocation80_spill] sm:$0xff] }
 0x38f   : > { %v4853_v13 = vor.u32 %v15964_v40, %v15962_v57  ;;  %v4434_v21 = vsel %vm1485_vm10, %v4363_v33, %v19362_v36  ;;  %v4488_v41 = vsel %vm1550_vm11, %v4432_v34, %v19363_v28  ;;  %v4840_v8 = vshrl.u32 %v15949_v10, 16  ;;  %v19369_v33 = vld [vmem:[#allocation91_spill] sm:$0xff] }
 0x390   : > { %v4226_v46 = vsel %vm1485_vm10, %v4155_v44, %v19364_v61  ;;  %v4489_v0 = vsel %vm1550_vm11, %v4434_v21, %v19363_v28  ;;  %v4814_v24 = vor.u32 %v4813_v55, %v4810_v23  ;;  %v4821_v56 = vor.u32 %v4820_v6, %v4817_v30 }
 0x391   : > { %v4224_v48 = vsel %vm1485_vm10, %v4153_v19, %v19365_v9  ;;  %v4290_v51 = vsel %vm1550_vm11, %v4226_v46, %v19366_v52  ;;  %v4857_v20 = vrot.slane %v4855_v58, 3  ;;  %v4860_v3 = vrot.slane %v4858_v35, 4 }
 0x392   : > { %v16007_v25 = vpop.permute.xlu1 %4044  ;;  %v16009_v31 = vpop.permute.xlu0 %3972  ;;  %v4864_v53 = vrot.slane %v4862_v38, 3  ;;  %v4867_v14 = vrot.slane %v4865_v47, 4  ;;  %v4902_v18 = vshrl.u32 %v4488_v41, 16  ;;  %v19367_v44 = vor.u32 %v15670_v29, %v15668_v17  ;;  %v19370_v17 = vld [vmem:[#allocation21_spill] sm:$0xff] }
 0x393   : > { %v4905_v55 = vshll.u32 %v4488_v41, 16  ;;  %v4909_v30 = vshrl.u32 %v4489_v0, 16  ;;  %v4912_v19 = vshll.u32 %v4489_v0, 16  ;;  %v4843_v6 = vshll.u32 %v15949_v10, 16 }
 0x394   : > { %v4807_v23 = vsel %vm1807_vm8, %v4799_v42, %v19367_v44  ;;  %v4288_v59 = vsel %vm1550_vm11, %v4224_v48, %v19368_v62  ;;  %v4894_v43 = vshrl.u32 %v4290_v51, 16  ;;  %v4822_v58 = vsel %vm1807_vm8, %v4814_v24, %v4821_v56  ;;  %v19371_v42 = vld [vmem:[#allocation95_spill] sm:$0xff]  ;;  %v19373_v24 = vld [vmem:[#allocation90_spill] sm:$0xff]  ;;  %v19374_v56 = vld [vmem:[#allocation12_spill] sm:$0xff] }
 0x395   : > { %5569 = vmatmul.mubr.bf16.gmra.mxu1 %v15692_v50  ;;  %v16020_v35 = vrot.slane %v4840_v8, 3  ;;  %v4897_v32 = vshll.u32 %v4290_v51, 16  ;;  %v4368_v29 = vsel %vm1404_vm9, %v19370_v17, %v19369_v33  ;;  %v4366_v63 = vsel %vm1404_vm9, %v19370_v17, %v19371_v42  ;;  %v19372_v50 = vld [vmem:[#allocation93_spill] sm:$0xff]  ;;  %v19375_v48 = vld [vmem:[#allocation16_spill] sm:$0xff] }
 0x396   : > { %5576 = vmatprep.mubr.bf16.mxu1 %v4822_v58  ;;  %v16028_v10 = vpop.permute.xlu1 %3821  ;;  %v16030_v34 = vpop.permute.xlu0 %3671  ;;  %v4861_v38 = vor.u32 %v4860_v3, %v4857_v20  ;;  %v4436_v47 = vsel %vm1485_vm10, %v4366_v63, %v19372_v50  ;;  %v4904_v36 = vrot.slane %v4902_v18, 3  ;;  %v4438_v21 = vsel %vm1485_vm10, %v4368_v29, %v15838_v12  ;;  %v19376_v33 = vld [vmem:[#allocation77_spill] sm:$0xff] }
 0x397   : > { %v4868_v28 = vor.u32 %v4867_v14, %v4864_v53  ;;  %v4907_v41 = vrot.slane %v4905_v55, 4  ;;  %v4911_v8 = vrot.slane %v4909_v30, 3  ;;  %v4914_v61 = vrot.slane %v4912_v19, 4 }
 0x398   : > { %v4491_v46 = vsel %vm1550_vm11, %v4436_v47, %v15836_v39  ;;  %v16038_v0 = vrot.slane %v4894_v43, 3  ;;  %v4158_v9 = vsel %vm1404_vm9, %v19374_v56, %v19373_v24  ;;  %v4160_v52 = vsel %vm1404_vm9, %v19375_v48, %v19373_v24  ;;  %v6011_v56 = vld [vmem:[#allocation2 + $0x4] sm:$0xf] }
 0x399   : > { %v4845_v51 = vrot.slane %v4843_v6, 4  ;;  %v4228_v12 = vsel %vm1485_vm10, %v4158_v9, %v15819_v22  ;;  %v4492_v20 = vsel %vm1550_vm11, %v4438_v21, %v15836_v39  ;;  %v4230_v3 = vsel %vm1485_vm10, %v4160_v52, %v15858_v1  ;;  %v6012_v9 = vld [vmem:[#allocation2 + $0x8] sm:$0xf] }
 0x39a   : > { %v16052_v53 = vpop.permute.xlu1 %4095  ;;  %v16054_v14 = vpop.permute.xlu0 %4046  ;;  %v4887_v18 = vshrl.u32 %v4288_v59, 16  ;;  %v4949_v44 = vshrl.u32 %v4491_v46, 16  ;;  %v4952_v55 = vshll.u32 %v4491_v46, 16  ;;  %v4292_v30 = vsel %vm1550_vm11, %v4228_v12, %v15889_v5 }
 0x39b   : > { %v4890_v19 = vshll.u32 %v4288_v59, 16  ;;  %v16058_v6 = vrot.slane %v4897_v32, 4  ;;  %v4869_v22 = vsel %vm1807_vm8, %v4861_v38, %v4868_v28  ;;  %v4908_v62 = vor.u32 %v4907_v41, %v4904_v36 }
 0x39c   : > { %v4915_v39 = vor.u32 %v4914_v61, %v4911_v8  ;;  %v4956_v43 = vshrl.u32 %v4492_v20, 16  ;;  %v4959_v58 = vshll.u32 %v4492_v20, 16  ;;  %v4294_v1 = vsel %vm1550_vm11, %v4230_v3, %v15856_v15  ;;  %v19377_v3 = vld [vmem:[#allocation18_spill] sm:$0xff] }
 0x39d   : > { %v4371_v17 = vsel %vm1404_vm9, %v19376_v33, %v15903_v11  ;;  %5577 = vmatmul.mubr.bf16.gmra.mxu1 %v4807_v23  ;;  %v4373_v5 = vsel %vm1404_vm9, %v19376_v33, %v15887_v27  ;;  %v4934_v59 = vshrl.u32 %v4292_v30, 16  ;;  %v4937_v32 = vshll.u32 %v4292_v30, 16 }
 0x39e   : > { %5584 = vmatprep.mubr.bf16.mxu1 %v4869_v22  ;;  %v16069_v29 = vpop.permute.xlu1 %3895  ;;  %v16071_v42 = vpop.permute.xlu0 %3823  ;;  %v16073_v63 = vrot.slane %v4887_v18, 3  ;;  %v16075_v38 = vrot.slane %v4949_v44, 3  ;;  %v16077_v15 = vrot.slane %v4952_v55, 4  ;;  %v4442_v11 = vsel %vm1485_vm10, %v4373_v5, %v15936_v60  ;;  %v16115_v55 = vld [vmem:[#allocation2 + $0x118] sm:$0xf] }
 0x39f   : > { %v16081_v23 = vrot.slane %v4890_v19, 4  ;;  %v4941_v50 = vshrl.u32 %v4294_v1, 16  ;;  %v4944_v27 = vshll.u32 %v4294_v1, 16  ;;  %v4440_v47 = vsel %vm1485_vm10, %v4371_v17, %v15901_v4  ;;  %v19378_v19 = vld [vmem:[#allocation19_spill] sm:$0xff]  ;;  %v6079_v1 = vld [vmem:[#allocation2 + $0x114] sm:$0xf] }
 0x3a0   : > { %v16085_v36 = vrot.slane %v4956_v43, 3  ;;  %v4961_v21 = vrot.slane %v4959_v58, 4  ;;  %v4494_v28 = vsel %vm1550_vm11, %v4440_v47, %v15934_v45  ;;  %v4846_v41 = vor.u32 %v4845_v51, %v16020_v35  ;;  %v6078_v58 = vld [vmem:[#allocation2 + $0x110] sm:$0xf] }
 0x3a1   : > { %v4900_v8 = vor.u32 %v16058_v6, %v16038_v0  ;;  %v16092_v61 = vrot.slane %v4934_v59, 3  ;;  %v16094_v60 = vrot.slane %v4937_v32, 4  ;;  %v4495_v46 = vsel %vm1550_vm11, %v4442_v11, %v15934_v45 }
 0x3a2   : > { %v16098_v24 = vpop.permute.xlu1 %3978  ;;  %v16100_v4 = vpop.permute.xlu0 %3893  ;;  %v4854_v35 = vsel %vm1807_vm8, %v4846_v41, %v4853_v13  ;;  %v4916_v0 = vsel %vm1807_vm8, %v4908_v62, %v4915_v39  ;;  %v4893_v48 = vor.u32 %v16081_v23, %v16073_v63  ;;  %v4955_v52 = vor.u32 %v16077_v15, %v16075_v38  ;;  %v13135_v13 = vld [vmem:[#allocation2 + $0xc] ss:$0 sps:$4 sm:$0xff]  }
 0x3a3   : > { %v4943_v45 = vrot.slane %v4941_v50, 3  ;;  %v4946_v51 = vrot.slane %v4944_v27, 4  ;;  %v4996_v12 = vshrl.u32 %v4494_v28, 16  ;;  %v11653_v20 = vcombine.low %v6011_v56, %v6012_v9 }
 0x3a4   : > { %v4163_v18 = vsel %vm1404_vm9, %v19377_v3, %v15914_v26  ;;  %v4999_v44 = vshll.u32 %v4494_v28, 16  ;;  %v5003_v57 = vshrl.u32 %v4495_v46, 16  ;;  %v4962_v40 = vor.u32 %v4961_v21, %v16085_v36  ;;  %v19381_v3 = vld [vmem:[#allocation20_spill] sm:$0xff] }
 0x3a5   : > { %5585 = vmatmul.mubr.bf16.gmra.mxu1 %v4854_v35  ;;  %v4940_v30 = vor.u32 %v16094_v60, %v16092_v61  ;;  %v4165_v6 = vsel %vm1404_vm9, %v19378_v19, %v15914_v26  ;;  %v6227_v39 = vshrl.u32 %v11653_v20, 16  ;;  %v6230_v43 = vshll.u32 %v11653_v20, 16  ;;  %v19380_v26 = vld [vmem:[#allocation88_spill] sm:$0xff] }
 0x3a6   : > { %5592 = vmatprep.mubr.bf16.mxu1 %v4916_v0  ;;  %v16122_v22 = vpop.permute.xlu1 %4048  ;;  %v3977_v62 = vpop.permute.xlu0 %3976  ;;  %v5006_v33 = vshll.u32 %v4495_v46, 16  ;;  %v4234_v17 = vsel %vm1485_vm10, %v4165_v6, %v15958_v2  ;;  %v6434_v5 = vrot.slane %v11653_v20, 5  ;;  %v16127_v59 = vcombine.low %v6079_v1, %v16115_v55  ;;  %v19383_v6 = vld [vmem:[#allocation97_spill] sm:$0xff] }
 0x3a7   : > { %v4232_v32 = vsel %vm1485_vm10, %v4163_v18, %v15912_v37  ;;  %v4376_v63 = vsel %vm1404_vm9, %v19380_v26, %v16009_v31  ;;  %v6229_v38 = vrot.slane %v6227_v39, 4  ;;  %v6232_v15 = vrot.slane %v6230_v43, 5 }
 0x3a8   : > { %19379 = vst [vmem:[#allocation10_spill] sm:$0xff] %v16127_v59  ;;  %v16134_v11 = vrot.slane %v4996_v12, 3  ;;  %v4378_v23 = vsel %vm1404_vm9, %v19380_v26, %v15983_v49  ;;  %v6435_v2 = vrot.slane %v13135_v13, 5  ;;  %6482 = vrot.lane.b32.xlu1 %v6434_v5, %s13283_s9  ;;  %v11689_v50 = vcombine.low %v6078_v58, %v6079_v1 }
 0x3a9   : > { %v5001_v27 = vrot.slane %v4999_v44, 4  ;;  %v4298_v37 = vsel %vm1550_vm11, %v4234_v17, %v15956_v7  ;;  %v4446_v47 = vsel %vm1485_vm10, %v4378_v23, %v16054_v14  ;;  %v6233_v21 = vor.u32 %v6232_v15, %v6229_v38 }
 0x3aa   : > { %v16144_v31 = vpop.permute.xlu1 %3825  ;;  %v16146_v36 = vpop.permute.xlu0 %3673  ;;  %v5005_v28 = vrot.slane %v5003_v57, 3  ;;  %v5008_v41 = vrot.slane %v5006_v33, 4  ;;  %v4296_v49 = vsel %vm1550_vm11, %v4232_v32, %v15985_v16  ;;  %v4444_v61 = vsel %vm1485_vm10, %v4376_v63, %v16007_v25 }
 0x3ab   : > { %v4497_v60 = vsel %vm1550_vm11, %v4444_v61, %v16052_v53  ;;  %v4901_v7 = vsel %vm1807_vm8, %v4893_v48, %v4900_v8  ;;  %v4963_v14 = vsel %vm1807_vm8, %v4955_v52, %v4962_v40  ;;  %v4947_v46 = vor.u32 %v4946_v51, %v4943_v45  ;;  %6354 = vrot.lane.b32.xlu0 %v6233_v21, %s13284_s10  ;;  %v19385_v61 = vld [vmem:[#allocation89_spill] sm:$0xff] }
 0x3ac   : > { %v4988_v56 = vshrl.u32 %v4298_v37, 16  ;;  %v4991_v9 = vshll.u32 %v4298_v37, 16  ;;  %v4498_v35 = vsel %vm1550_vm11, %v4446_v47, %v16052_v53  ;;  %v6436_v16 = vsel %vm1021_vm7, %v6434_v5, %v6435_v2  ;;  %6765 = vrot.lane.b32.xlu1 %v11689_v50, %s13283_s9 }
 0x3ad   : > { %5593 = vmatmul.mubr.bf16.gmra.mxu1 %v4901_v7  ;;  %v4981_v25 = vshrl.u32 %v4296_v49, 16  ;;  %v4984_v0 = vshll.u32 %v4296_v49, 16  ;;  %v4948_v48 = vsel %vm1807_vm8, %v4940_v30, %v4947_v46  ;;  %v5043_v52 = vshrl.u32 %v4497_v60, 16  ;;  %v19382_v30 = vld [vmem:[#allocation78_spill] sm:$0xff] }
 0x3ae   : > { %5600 = vmatprep.mubr.bf16.mxu1 %v4963_v14  ;;  %v4098_v12 = vpop.permute.xlu1 %4097  ;;  %v4051_v8 = vpop.permute.xlu0 %4050  ;;  %v5046_v45 = vshll.u32 %v4497_v60, 16  ;;  %v5002_v51 = vor.u32 %v5001_v27, %v16134_v11  ;;  %v5009_v20 = vor.u32 %v5008_v41, %v5005_v28  ;;  %v4168_v53 = vsel %vm1404_vm9, %v19381_v3, %v16030_v34 }
 0x3af   : > { %v5050_v18 = vshrl.u32 %v4498_v35, 16  ;;  %v5053_v44 = vshll.u32 %v4498_v35, 16  ;;  %6484 = vrot.lane.b32.xlu0 %v6436_v16, %s13283_s9  ;;  %v11690_v57 = vcombine.low %v16115_v55, %v16115_v55  ;;  %v4990_v40 = vrot.slane %v4988_v56, 3 }
 0x3b0   : > { %v4993_v13 = vrot.slane %v4991_v9, 4  ;;  %v4170_v19 = vsel %vm1404_vm9, %v19382_v30, %v16030_v34  ;;  %v4381_v39 = vsel %vm1404_vm9, %v19383_v6, %v3977_v62  ;;  %v4983_v43 = vrot.slane %v4981_v25, 3 }
 0x3b1   : > { %v4986_v58 = vrot.slane %v4984_v0, 4  ;;  %v4238_v1 = vsel %vm1485_vm10, %v4170_v19, %v16071_v42  ;;  %v4383_v33 = vsel %vm1404_vm9, %v19383_v6, %v16098_v24  ;;  %v5045_v5 = vrot.slane %v5043_v52, 3 }
 0x3b2   : > { %v3900_v17 = vpop.permute.xlu1 %3899  ;;  %v3828_v55 = vpop.permute.xlu0 %3827  ;;  %v5048_v32 = vrot.slane %v5046_v45, 4  ;;  %v4236_v26 = vsel %vm1485_vm10, %v4168_v53, %v16028_v10  ;;  %v4450_v34 = vsel %vm1485_vm10, %v4383_v33, %v4051_v8  ;;  %v5052_v63 = vrot.slane %v5050_v18, 3 }
 0x3b3   : > { %v5055_v62 = vrot.slane %v5053_v44, 4  ;;  %v4300_v38 = vsel %vm1550_vm11, %v4236_v26, %v16100_v4  ;;  %v4448_v42 = vsel %vm1485_vm10, %v4381_v39, %v16122_v22  ;;  %6767 = vrot.lane.b32.xlu0 %v11690_v57, %s13283_s9  ;;  %v4302_v24 = vsel %vm1550_vm11, %v4238_v1, %v16069_v29  ;;  %v19384_v22 = vld [vmem:[#allocation83_spill] sm:$0xff] }
 0x3b4   : > { %v4500_v15 = vsel %vm1550_vm11, %v4448_v42, %v4098_v12  ;;  %v5010_v10 = vsel %vm1807_vm8, %v5002_v51, %v5009_v20  ;;  %v4987_v11 = vor.u32 %v4986_v58, %v4983_v43  ;;  %v4501_v23 = vsel %vm1550_vm11, %v4450_v34, %v4098_v12 }
 0x3b5   : > { %5601 = vmatmul.mubr.bf16.gmra.mxu1 %v4948_v48  ;;  %v4994_v4 = vor.u32 %v4993_v13, %v4990_v40  ;;  %v5028_v27 = vshrl.u32 %v4300_v38, 16  ;;  %v5031_v37 = vshll.u32 %v4300_v38, 16  ;;  %v4173_v47 = vsel %vm1404_vm9, %v19384_v22, %v16146_v36  ;;  %v19386_v13 = vld [vmem:[#allocation100_spill] sm:$0xff] }
 0x3b6   : > { %5608 = vmatprep.mubr.bf16.mxu1 %v5010_v10  ;;  %v3983_v2 = vpop.permute.xlu1 %3982  ;;  %v3898_v50 = vpop.permute.xlu0 %3897  ;;  %v5049_v21 = vor.u32 %v5048_v32, %v5045_v5  ;;  %v5035_v29 = vshrl.u32 %v4302_v24, 16  ;;  %v5038_v28 = vshll.u32 %v4302_v24, 16  ;;  %v5090_v41 = vshrl.u32 %v4500_v15, 16 }
 0x3b7   : > { %v5056_v49 = vor.u32 %v5055_v62, %v5052_v63  ;;  %v4175_v60 = vsel %vm1404_vm9, %v19385_v61, %v16146_v36  ;;  %v5093_v7 = vshll.u32 %v4500_v15, 16  ;;  %v5097_v14 = vshrl.u32 %v4501_v23, 16 }
 0x3b8   : > { %v5100_v46 = vshll.u32 %v4501_v23, 16  ;;  %v4242_v56 = vsel %vm1485_vm10, %v4175_v60, %v3828_v55  ;;  %v4240_v9 = vsel %vm1485_vm10, %v4173_v47, %v16144_v31  ;;  %v5030_v25 = vrot.slane %v5028_v27, 3 }
 0x3b9   : > { %v5033_v0 = vrot.slane %v5031_v37, 4  ;;  %v4304_v12 = vsel %vm1550_vm11, %v4240_v9, %v3898_v50  ;;  %v4995_v8 = vsel %vm1807_vm8, %v4987_v11, %v4994_v4  ;;  %v5037_v48 = vrot.slane %v5035_v29, 3  ;;  %v19387_v50 = vld [vmem:[#allocation98_spill] sm:$0xff] }
 0x3ba   : > { %v4053_v35 = vpop.permute.xlu1 %4052  ;;  %v3981_v16 = vpop.permute.xlu0 %3980  ;;  %v5040_v52 = vrot.slane %v5038_v28, 4  ;;  %v5092_v45 = vrot.slane %v5090_v41, 3  ;;  %v5057_v36 = vsel %vm1807_vm8, %v5049_v21, %v5056_v49  ;;  %v5095_v51 = vrot.slane %v5093_v7, 4  ;;  %v19388_v21 = vld [vmem:[#allocation94_spill] sm:$0xff] }
 0x3bb   : > { %v5099_v20 = vrot.slane %v5097_v14, 3  ;;  %v5102_v3 = vrot.slane %v5100_v46, 4  ;;  %v4306_v53 = vsel %vm1550_vm11, %v4242_v56, %v3900_v17  ;;  %v5075_v31 = vshrl.u32 %v4304_v12, 16 }
 0x3bc   : > { %v5078_v18 = vshll.u32 %v4304_v12, 16  ;;  %v5034_v40 = vor.u32 %v5033_v0, %v5030_v25  ;;  %v4386_v30 = vsel %vm1404_vm9, %v19386_v13, %v3981_v16  ;;  %v5082_v19 = vshrl.u32 %v4306_v53, 16 }
 0x3bd   : > { %5609 = vmatmul.mubr.bf16.gmra.mxu1 %v4995_v8  ;;  %v5085_v6 = vshll.u32 %v4306_v53, 16  ;;  %v5041_v39 = vor.u32 %v5040_v52, %v5037_v48  ;;  %v5096_v43 = vor.u32 %v5095_v51, %v5092_v45  ;;  %v5103_v58 = vor.u32 %v5102_v3, %v5099_v20 }
 0x3be   : > { %5616 = vmatprep.mubr.bf16.mxu1 %v5057_v36  ;;  %v3830_v44 = vpop.permute.xlu1 %3829  ;;  %v3676_v57 = vpop.permute.xlu0 %3675  ;;  %v4388_v1 = vsel %vm1404_vm9, %v19386_v13, %v3983_v2  ;;  %v5077_v33 = vrot.slane %v5075_v31, 3  ;;  %v5080_v17 = vrot.slane %v5078_v18, 4  ;;  %v4452_v55 = vsel %vm1485_vm10, %v4386_v30, %v4053_v35 }
 0x3bf   : > { %v5042_v63 = vsel %vm1807_vm8, %v5034_v40, %v5041_v39  ;;  %v5084_v62 = vrot.slane %v5082_v19, 3  ;;  %v5087_v15 = vrot.slane %v5085_v6, 4  ;;  %v5104_v23 = vsel %vm1807_vm8, %v5096_v43, %v5103_v58 }
 0x3c0   : > { %v5081_v2 = vor.u32 %v5080_v17, %v5077_v33  ;;  %v4180_v4 = vsel %vm1404_vm9, %v19387_v50, %v3676_v57  ;;  %v4178_v29 = vsel %vm1404_vm9, %v19388_v21, %v3676_v57 }
 0x3c1   : > { %v5088_v46 = vor.u32 %v5087_v15, %v5084_v62  ;;  %v4244_v35 = vsel %vm1485_vm10, %v4178_v29, %v3830_v44  ;;  %v19390_v62 = vld [vmem:[#allocation99_spill] sm:$0xff] }
 0x3c2   : > { %v4100_v5 = vpop.permute.xlu1 %4099  ;;  %v4055_v32 = vpop.permute.xlu0 %4054 }
 0x3c3   : > { %v4503_v26 = vsel %vm1550_vm11, %v4452_v55, %v4100_v5  ;;  %v4454_v34 = vsel %vm1485_vm10, %v4388_v1, %v4055_v32  ;;  %v5089_v12 = vsel %vm1807_vm8, %v5081_v2, %v5088_v46 }
 0x3c4   : > { %v5137_v38 = vshrl.u32 %v4503_v26, 16  ;;  %v5140_v42 = vshll.u32 %v4503_v26, 16  ;;  %v4504_v24 = vsel %vm1550_vm11, %v4454_v34, %v4100_v5  ;;  %v19389_v5 = vld [vmem:[#allocation101_spill] sm:$0xff] }
 0x3c5   : > { %v5144_v10 = vshrl.u32 %v4504_v24, 16  ;;  %v5147_v11 = vshll.u32 %v4504_v24, 16  ;;  %5617 = vmatmul.mubr.bf16.gmra.mxu1 %v5042_v63 }
 0x3c6   : > { %v5139_v27 = vrot.slane %v5137_v38, 3  ;;  %v5142_v37 = vrot.slane %v5140_v42, 4  ;;  %5624 = vmatprep.mubr.bf16.mxu1 %v5104_v23  ;;  %v3904_v22 = vpop.permute.xlu1 %3903  ;;  %v3832_v47 = vpop.permute.xlu0 %3831 }
 0x3c7   : > { %v5146_v28 = vrot.slane %v5144_v10, 3  ;;  %v5149_v41 = vrot.slane %v5147_v11, 4  ;;  %v4246_v49 = vsel %vm1485_vm10, %v4180_v4, %v3832_v47 }
 0x3c8   : > { %v4310_v61 = vsel %vm1550_vm11, %v4246_v49, %v3904_v22  ;;  %v5143_v60 = vor.u32 %v5142_v37, %v5139_v27 }
 0x3c9   : > { %v5129_v7 = vshrl.u32 %v4310_v61, 16  ;;  %v5132_v14 = vshll.u32 %v4310_v61, 16  ;;  %v5150_v56 = vor.u32 %v5149_v41, %v5146_v28 }
 0x3ca   : > { %v3987_v9 = vpop.permute.xlu1 %3986  ;;  %v3902_v16 = vpop.permute.xlu0 %3901 }
 0x3cb   : > { %v5131_v25 = vrot.slane %v5129_v7, 3  ;;  %v4308_v0 = vsel %vm1550_vm11, %v4244_v35, %v3902_v16  ;;  %v5134_v8 = vrot.slane %v5132_v14, 4  ;;  %v5151_v45 = vsel %vm1807_vm8, %v5143_v60, %v5150_v56  ;;  %v13146_v14 = vld [vmem:[%s19008_s1 + $0x1a8] sm:$0xff]   ;;  %v13149_v16 = vld [vmem:[%s19008_s1 + $0x1a0] sm:$0xff]  }
 0x3cc   : > { %v5122_v48 = vshrl.u32 %v4308_v0, 16  ;;  %v5125_v52 = vshll.u32 %v4308_v0, 16  ;;  %v4393_v13 = vsel %vm1404_vm9, %v15601_v54, %v3987_v9  ;;  %12920 = vmatprep.subr.bf16.mxu0 %v13146_v14 }
 0x3cd   : > { %5625 = vmatmul.mubr.bf16.gmra.mxu1 %v5089_v12  ;;  %v5135_v31 = vor.u32 %v5134_v8, %v5131_v25  ;;  %12921 = vmatpush3.bf16.msra.mxu0 %v13146_v14  ;;  %v19391_v25 = vld [vmem:[#allocation35_spill] sm:$0xff] }
 0x3ce   : > { %v5124_v36 = vrot.slane %v5122_v48, 3  ;;  %v5127_v51 = vrot.slane %v5125_v52, 4  ;;  %5632 = vmatprep.mubr.bf16.mxu1 %v5151_v45  ;;  %v4057_v20 = vpop.permute.xlu1 %4056  ;;  %v3985_v3 = vpop.permute.xlu0 %3984  ;;  %12922 = vmatprep.subr.bf16.mxu0 %v13149_v16 }
 0x3cf   : > { %v4391_v40 = vsel %vm1404_vm9, %v15601_v54, %v3985_v3 }
 0x3d0   : > { %v5128_v53 = vor.u32 %v5127_v51, %v5124_v36  ;;  %v4456_v30 = vsel %vm1485_vm10, %v4391_v40, %v4057_v20 }
 0x3d1   : > { %12923 = vmatpush3.bf16.msra.mxu0 %v13149_v16  ;;  %v6014_v16 = vld [vmem:[#allocation2 + $0x10] sm:$0xf] }
 0x3d2   : > { %v3834_v18 = vpop.permute.xlu1 %3833  ;;  %v3678_v44 = vpop.permute.xlu0 %3677  ;;  %v5136_v57 = vsel %vm1807_vm8, %v5128_v53, %v5135_v31 }
 0x3d3   : > { %v4185_v32 = vsel %vm1404_vm9, %v19389_v5, %v3678_v44  ;;  %v4183_v38 = vsel %vm1404_vm9, %v19390_v62, %v3678_v44 }
 0x3d4   : > { %v4248_v27 = vsel %vm1485_vm10, %v4183_v38, %v3834_v18 }
 0x3d5   : > { %5633 = vmatmul.mubr.bf16.gmra.mxu1 %v5136_v57 }
 0x3d6   : > { %v4102_v19 = vpop.permute.xlu1 %4101  ;;  %v4059_v6 = vpop.permute.xlu0 %4058 }
 0x3d7   : > { %v4506_v39 = vsel %vm1550_vm11, %v4456_v30, %v4102_v19  ;;  %v4458_v43 = vsel %vm1485_vm10, %v4393_v13, %v4059_v6  ;;  %v19392_v13 = vld [vmem:[#allocation22_spill] sm:$0xff] }
 0x3d8   : > { %v5184_v58 = vshrl.u32 %v4506_v39, 16  ;;  %v5187_v1 = vshll.u32 %v4506_v39, 16  ;;  %v4507_v33 = vsel %vm1550_vm11, %v4458_v43, %v4102_v19  ;;  %v19393_v19 = vld [vmem:[#allocation59_spill] sm:$0xff] }
 0x3d9   : > { %v5191_v17 = vshrl.u32 %v4507_v33, 16  ;;  %v5194_v55 = vshll.u32 %v4507_v33, 16 }
 0x3da   : > { %v5186_v26 = vrot.slane %v5184_v58, 3  ;;  %v5189_v34 = vrot.slane %v5187_v1, 4  ;;  %v3908_v54 = vpop.permute.xlu1 %3907  ;;  %v3836_v63 = vpop.permute.xlu0 %3835 }
 0x3db   : > { %v5193_v42 = vrot.slane %v5191_v17, 3  ;;  %v5196_v24 = vrot.slane %v5194_v55, 4  ;;  %v4250_v15 = vsel %vm1485_vm10, %v4185_v32, %v3836_v63 }
 0x3dc   : > { %v4314_v10 = vsel %vm1550_vm11, %v4250_v15, %v3908_v54  ;;  %v5190_v11 = vor.u32 %v5189_v34, %v5186_v26 }
 0x3dd   : > { %v5176_v23 = vshrl.u32 %v4314_v10, 16  ;;  %v5179_v2 = vshll.u32 %v4314_v10, 16  ;;  %v5197_v50 = vor.u32 %v5196_v24, %v5193_v42 }
 0x3de   : > { %v3991_v4 = vpop.permute.xlu1 %3990  ;;  %v3906_v37 = vpop.permute.xlu0 %3905 }
 0x3df   : > { %v5178_v22 = vrot.slane %v5176_v23, 3  ;;  %v4312_v47 = vsel %vm1550_vm11, %v4248_v27, %v3906_v37  ;;  %v5181_v21 = vrot.slane %v5179_v2, 4  ;;  %v5198_v41 = vsel %vm1807_vm8, %v5190_v11, %v5197_v50  ;;  %v12890_v50 = vpop.f32.mrf.mxu0  ;;  %v16271_v37 = vld [vmem:[%s19009_s2 + $0x1] ss:$0 sm:$0xff] }
 0x3e0   : > { %v5169_v29 = vshrl.u32 %v4312_v47, 16  ;;  %v5172_v28 = vshll.u32 %v4312_v47, 16  ;;  %5640 = vmatprep.mubr.bf16.mxu1 %v5198_v41  ;;  %v4398_v52 = vsel %vm1404_vm9, %v19391_v25, %v3991_v4 }
 0x3e1   : > { %v5182_v56 = vor.u32 %v5181_v21, %v5178_v22  ;;  %v5691_v27 = vpop.f32.mrf.mxu0 }
 0x3e2   : > { %v5171_v49 = vrot.slane %v5169_v29, 3  ;;  %v5174_v61 = vrot.slane %v5172_v28, 4  ;;  %v4061_v60 = vpop.permute.xlu1 %4060  ;;  %v3989_v7 = vpop.permute.xlu0 %3988 }
 0x3e3   : > { %v4396_v0 = vsel %vm1404_vm9, %v19391_v25, %v3989_v7  ;;  %v12891_v28 = vpop.f32.mrf.mxu0 }
 0x3e4   : > { %v5175_v46 = vor.u32 %v5174_v61, %v5171_v49  ;;  %v4460_v8 = vsel %vm1485_vm10, %v4396_v0, %v4061_v60 }
 0x3e5   : > { %v5694_v14 = vpop.f32.mrf.mxu0 }
 0x3e6   : > { %v3838_v9 = vpop.permute.xlu1 %3837  ;;  %v5183_v35 = vsel %vm1807_vm8, %v5175_v46, %v5182_v56  ;;  %v3680_v12 = vpop.permute.xlu0 %3679 }
 0x3e7   : > { %5641 = vmatmul.mubr.bf16.gmra.mxu1 %v5183_v35  ;;  %v4188_v30 = vsel %vm1404_vm9, %v19392_v13, %v3680_v12  ;;  %v4190_v6 = vsel %vm1404_vm9, %v19393_v19, %v3680_v12 }
 0x3e8   : > { %v4252_v26 = vsel %vm1485_vm10, %v4188_v30, %v3838_v9 }
 0x3ea   : > { %v4104_v48 = vpop.permute.xlu1 %4103 }
 0x3eb   : > { %v4509_v45 = vsel %vm1550_vm11, %v4460_v8, %v4104_v48  ;;  %v13142_v8 = vld [vmem:[#allocation2 + $0x1c] ss:$0 sps:$4 sm:$0xff]  }
 0x3ec   : > { %v4063_v36 = vpop.permute.xlu0 %4062  ;;  %v5231_v51 = vshrl.u32 %v4509_v45, 16  ;;  %v5234_v20 = vshll.u32 %v4509_v45, 16 }
 0x3ed   : > { %v4462_v3 = vsel %vm1485_vm10, %v4398_v52, %v4063_v36  ;;  %v6438_v36 = vrot.slane %v13142_v8, 5 }
 0x3ee   : > { %v4510_v53 = vsel %vm1550_vm11, %v4462_v3, %v4104_v48  ;;  %v5233_v31 = vrot.slane %v5231_v51, 3  ;;  %v5236_v18 = vrot.slane %v5234_v20, 4  ;;  %v3912_v40 = vpop.permute.xlu1 %3911 }
 0x3ef   : > { %v5238_v44 = vshrl.u32 %v4510_v53, 16  ;;  %v5241_v57 = vshll.u32 %v4510_v53, 16 }
 0x3f0   : > { %v3840_v39 = vpop.permute.xlu0 %3839  ;;  %v5237_v33 = vor.u32 %v5236_v18, %v5233_v31 }
 0x3f1   : > { %v5240_v43 = vrot.slane %v5238_v44, 3  ;;  %v5243_v58 = vrot.slane %v5241_v57, 4  ;;  %v4254_v1 = vsel %vm1485_vm10, %v4190_v6, %v3840_v39  ;;  %v12894_v44 = vpop.f32.mrf.mxu0  ;;  %v13174_v6 = vld [vmem:[%s19008_s1 + $0x158] sm:$0xff]  }
 0x3f2   : > { %v4318_v17 = vsel %vm1550_vm11, %v4254_v1, %v3912_v40  ;;  %v13173_v40 = vld [vmem:[%s19008_s1 + $0x198] sm:$0xff]  }
 0x3f3   : > { %v5223_v55 = vshrl.u32 %v4318_v17, 16  ;;  %v5226_v5 = vshll.u32 %v4318_v17, 16  ;;  %v5244_v32 = vor.u32 %v5243_v58, %v5240_v43  ;;  %12270 = vmatprep.subr.bf16.mxu1 %v13173_v40  ;;  %v5707_v58 = vpop.f32.mrf.mxu0 }
 0x3f4   : > { %v3910_v34 = vpop.permute.xlu0 %3909  ;;  %12271 = vmatpush3.bf16.msra.mxu1 %v13174_v6  ;;  %v13180_v6 = vld [vmem:[%s19008_s1 + $0x140] sm:$0xff]  }
 0x3f5   : > { %v4316_v54 = vsel %vm1550_vm11, %v4252_v26, %v3910_v34  ;;  %v5245_v63 = vsel %vm1807_vm8, %v5237_v33, %v5244_v32  ;;  %v5225_v62 = vrot.slane %v5223_v55, 3  ;;  %v5228_v38 = vrot.slane %v5226_v5, 4  ;;  %v12895_v34 = vpop.f32.mrf.mxu0 }
 0x3f6   : > { %v5216_v42 = vshrl.u32 %v4316_v54, 16  ;;  %v5219_v24 = vshll.u32 %v4316_v54, 16  ;;  %5648 = vmatprep.mubr.bf16.mxu1 %v5245_v63 }
 0x3f7   : > { %v5229_v23 = vor.u32 %v5228_v38, %v5225_v62 }
 0x3f8   : > { %v5218_v15 = vrot.slane %v5216_v42, 3  ;;  %v5221_v10 = vrot.slane %v5219_v24, 4 }
 0x3fa   : > { %v5222_v11 = vor.u32 %v5221_v10, %v5218_v15 }
 0x3fc   : > { %v5230_v2 = vsel %vm1807_vm8, %v5222_v11, %v5229_v23  ;;  %v5710_v23 = vpop.f32.mrf.mxu0 }
 0x3fd   : > { %5649 = vmatmul.mubr.bf16.gmra.mxu1 %v5230_v2 }
 0x411   : > { %v12156_v4 = vpop.f32.mrf.mxu1 }
 0x413   : > { %v12157_v22 = vpop.f32.mrf.mxu1 }
 0x414   : > { %v12158_v47 = vadd.f32 %v12157_v22, %v12156_v4 }
 0x415   : > { %v12159_v21 = vpop.f32.mrf.mxu1 }
 0x416   : > { %v5531_v29 = vadd.f32 %v12158_v47, %v16271_v37  ;;  %v13145_v47 = vld [vmem:[#allocation2 + $0x2c] ss:$0 sps:$4 sm:$0xff]  }
 0x417   : > { %v12160_v41 = vpop.f32.mrf.mxu1 }
 0x418   : > { %v5692_v49 = vadd.f32 %v5691_v27, %v5531_v29  ;;  %v12161_v61 = vadd.f32 %v12160_v41, %v12159_v21 }
 0x41a   : > { %v5818_v60 = vmax.f32 %v5692_v49, 0.0  ;;  %v5534_v7 = vadd.f32 %v12161_v61, %v16271_v37  ;;  %v13175_v49 = vld [vmem:[%s19008_s1 + $0x190] sm:$0xff]  }
 0x41b   : > { %v13176_v61 = vld [vmem:[%s19008_s1 + $0x150] sm:$0xff]   ;;  %12272 = vmatprep.subr.bf16.mxu1 %v13175_v49 }
 0x41c   : > { %v11978_v46 = vpack.c.bf16 %v5818_v60, %v5818_v60  ;;  %v5695_v56 = vadd.f32 %v5694_v14, %v5534_v7  ;;  %12273 = vmatpush3.bf16.msra.mxu1 %v13176_v61 }
 0x41e   : > { %5978 = vst.msk [vmem:[#allocation2 + $0x14] sm:$0xf] %vm280_vm0, %v11978_v46  ;;  %v5819_v9 = vmax.f32 %v5695_v56, 0.0  ;;  %v16312_v46 = vpop.f32.mrf.mxu0 }
 0x420   : > { %v11979_v35 = vpack.c.bf16 %v5819_v9, %v5819_v9 }
 0x422   : > { %5979 = vst.msk [vmem:[#allocation2 + $0x18] sm:$0xf] %vm280_vm0, %v11979_v35 }
 0x425   : > { %v6015_v25 = vld [vmem:[#allocation2 + $0x14] sm:$0xf] }
 0x426   : > { %v16277_v0 = vcombine.low %v6014_v16, %v6015_v25 }
 0x428   : > { %6554 = vrot.lane.b32.xlu0 %v16277_v0, %s13285_s11 }
 0x429   : > { %v6016_v12 = vld [vmem:[#allocation2 + $0x18] sm:$0xf] }
 0x42a   : > { %v16281_v48 = vcombine.low %v6016_v12, %v6016_v12  ;;  %v11654_v52 = vcombine.low %v6015_v25, %v6016_v12 }
 0x42c   : > { %6556 = vrot.lane.b32.xlu1 %v16281_v48, %s13285_s11  ;;  %v6437_v45 = vrot.slane %v11654_v52, 5  ;;  %v6235_v24 = vshrl.u32 %v11654_v52, 16  ;;  %v6238_v15 = vshll.u32 %v11654_v52, 16  ;;  %v6441_v52 = vrot.slane %v13145_v47, 5  ;;  %v6022_v47 = vld [vmem:[#allocation2 + $0x30] sm:$0xf] }
 0x42e   : > { %6633 = vrot.lane.b32.xlu0 %v6437_v45, %s13284_s10  ;;  %v6439_v51 = vsel %vm1021_vm7, %v6437_v45, %v6438_v36  ;;  %v6240_v41 = vrot.slane %v6238_v15, 5  ;;  %v13178_v36 = vld [vmem:[%s19008_s1 + $0x148] sm:$0xff]   ;;  %v13182_v15 = vld [vmem:[%s19008_s1 + $0x138] sm:$0xff]  }
 0x430   : > { %6486 = vrot.lane.b32.xlu1 %v6437_v45, %s13283_s9  ;;  %v13177_v45 = vld [vmem:[%s19008_s1 + $0x188] sm:$0xff]  }
 0x431   : > { %12274 = vmatprep.subr.bf16.mxu1 %v13177_v45 }
 0x432   : > { %6488 = vrot.lane.b32.xlu0 %v6439_v51, %s13283_s9  ;;  %12275 = vmatpush3.bf16.msra.mxu1 %v13178_v36 }
 0x434   : > { %6635 = vrot.lane.b32.xlu1 %v6439_v51, %s13284_s10 }
 0x435   : > { %v12162_v20 = vpop.f32.mrf.mxu1 }
 0x437   : > { %v12163_v3 = vpop.f32.mrf.mxu1 }
 0x438   : > { %v12164_v53 = vadd.f32 %v12163_v3, %v12162_v20 }
 0x439   : > { %v12165_v31 = vpop.f32.mrf.mxu1 }
 0x43a   : > { %v5539_v18 = vadd.f32 %v12164_v53, %v16271_v37 }
 0x43b   : > { %v12166_v57 = vpop.f32.mrf.mxu1 }
 0x43c   : > { %v5700_v13 = vadd.f32 %v12890_v50, %v5539_v18  ;;  %v12167_v30 = vadd.f32 %v12166_v57, %v12165_v31  ;;  %v6018_v50 = vld [vmem:[#allocation2 + $0x20] sm:$0xf]  ;;  %v5723_v18 = vpop.f32.mrf.mxu0 }
 0x43d   : > { %v12168_v19 = vpop.f32.mrf.mxu1  ;;  %v13179_v31 = vld [vmem:[%s19008_s1 + $0x180] sm:$0xff]  }
 0x43e   : > { %v5820_v39 = vmax.f32 %v5700_v13, 0.0  ;;  %v5542_v43 = vadd.f32 %v12167_v30, %v16271_v37  ;;  %12276 = vmatprep.subr.bf16.mxu1 %v13179_v31 }
 0x43f   : > { %v12169_v1 = vpop.f32.mrf.mxu1  ;;  %12277 = vmatpush3.bf16.msra.mxu1 %v13180_v6 }
 0x440   : > { %v11980_v33 = vpack.c.bf16 %v5820_v39, %v5820_v39  ;;  %v5703_v17 = vadd.f32 %v12891_v28, %v5542_v43  ;;  %v12170_v55 = vadd.f32 %v12169_v1, %v12168_v19  ;;  %v6237_v28 = vrot.slane %v6235_v24, 4 }
 0x441   : > { %v12171_v5 = vpop.f32.mrf.mxu1 }
 0x442   : > { %5980 = vst.msk [vmem:[#allocation2 + $0x24] sm:$0xf] %vm280_vm0, %v11980_v33  ;;  %v5821_v32 = vmax.f32 %v5703_v17, 0.0  ;;  %v5547_v26 = vadd.f32 %v12170_v55, %v16271_v37  ;;  %v16318_v12 = vor.u32 %v6240_v41, %v6237_v28  ;;  %v13150_v33 = vld [vmem:[#allocation2 + $0x3c] ss:$0 sps:$4 sm:$0xff]   ;;  %v16351_v55 = vpop.f32.mrf.mxu0  ;;  %v13185_v28 = vld [vmem:[%s19008_s1 + $0x170] sm:$0xff]  }
 0x443   : > { %v12172_v54 = vpop.f32.mrf.mxu1  ;;  %v13181_v17 = vld [vmem:[%s19008_s1 + $0x178] sm:$0xff]  }
 0x444   : > { %v11981_v63 = vpack.c.bf16 %v5821_v32, %v5821_v32  ;;  %v5708_v62 = vadd.f32 %v5707_v58, %v5547_v26  ;;  %v12173_v38 = vadd.f32 %v12172_v54, %v12171_v5  ;;  %12278 = vmatprep.subr.bf16.mxu1 %v13181_v17  ;;  %v5726_v41 = vpop.f32.mrf.mxu0 }
 0x445   : > { %v12174_v42 = vpop.f32.mrf.mxu1  ;;  %12279 = vmatpush3.bf16.msra.mxu1 %v13182_v15 }
 0x446   : > { %5981 = vst.msk [vmem:[#allocation2 + $0x28] sm:$0xf] %vm280_vm0, %v11981_v63  ;;  %v5822_v10 = vmax.f32 %v5708_v62, 0.0  ;;  %v5550_v11 = vadd.f32 %v12173_v38, %v16271_v37  ;;  %12280 = vmatprep.subr.bf16.mxu1 %v13185_v28 }
 0x447   : > { %v12175_v2 = vpop.f32.mrf.mxu1 }
 0x448   : > { %v11982_v4 = vpack.c.bf16 %v5822_v10, %v5822_v10  ;;  %v5711_v27 = vadd.f32 %v5710_v23, %v5550_v11  ;;  %v12176_v22 = vadd.f32 %v12175_v2, %v12174_v42 }
 0x449   : > { %v12177_v21 = vpop.f32.mrf.mxu1  ;;  %v6019_v29 = vld [vmem:[#allocation2 + $0x24] sm:$0xf] }
 0x44a   : > { %5982 = vst.msk [vmem:[#allocation2 + $0x34] sm:$0xf] %vm280_vm0, %v11982_v4  ;;  %v5823_v60 = vmax.f32 %v5711_v27, 0.0  ;;  %v5555_v7 = vadd.f32 %v12176_v22, %v16271_v37  ;;  %v16310_v14 = vcombine.low %v6018_v50, %v6019_v29 }
 0x44b   : > { %v12178_v56 = vpop.f32.mrf.mxu1 }
 0x44c   : > { %v11983_v9 = vpack.c.bf16 %v5823_v60, %v5823_v60  ;;  %v5716_v35 = vadd.f32 %v12894_v44, %v5555_v7  ;;  %v12179_v16 = vadd.f32 %v12178_v56, %v12177_v21  ;;  %6558 = vrot.lane.b32.xlu0 %v16310_v14, %s13285_s11  ;;  %6705 = vrot.lane.b32.xlu1 %v16310_v14, %s13283_s9  ;;  %v16373_v7 = vld [vmem:[#allocation2 + $0x4c] ss:$0 sps:$4 sm:$0xff]  }
 0x44d   : > { %v12180_v25 = vpop.f32.mrf.mxu1  ;;  %v6020_v8 = vld [vmem:[#allocation2 + $0x28] sm:$0xf]  ;;  %v6447_v6 = vrot.slane %v16373_v7, 5 }
 0x44e   : > { %5983 = vst.msk [vmem:[#allocation2 + $0x38] sm:$0xf] %vm280_vm0, %v11983_v9  ;;  %v5824_v51 = vmax.f32 %v5716_v35, 0.0  ;;  %v5558_v20 = vadd.f32 %v12179_v16, %v16271_v37  ;;  %v16328_v3 = vcombine.low %v6020_v8, %v6020_v8  ;;  %v16330_v53 = vcombine.low %v6019_v29, %v6020_v8 }
 0x44f   : > { %v12181_v44 = vpop.f32.mrf.mxu1  ;;  %v6444_v29 = vrot.slane %v13150_v33, 5 }
 0x450   : > { %v11984_v57 = vpack.c.bf16 %v5824_v51, %v5824_v51  ;;  %v5719_v40 = vadd.f32 %v12895_v34, %v5558_v20  ;;  %v12182_v13 = vadd.f32 %v12181_v44, %v12180_v25  ;;  %6356 = vrot.lane.b32.xlu0 %v16318_v12, %s13284_s10  ;;  %6560 = vrot.lane.b32.xlu1 %v16328_v3, %s13285_s11  ;;  %v6440_v30 = vrot.slane %v16330_v53, 5  ;;  %v13186_v51 = vld [vmem:[%s19008_s1 + $0x130] sm:$0xff]   ;;  %v13187_v44 = vld [vmem:[%s19008_s1 + $0x168] sm:$0xff]  }
 0x451   : > { %v12183_v19 = vpop.f32.mrf.mxu1  ;;  %v6243_v54 = vshrl.u32 %v16330_v53, 16  ;;  %v6023_v24 = vld [vmem:[#allocation2 + $0x34] sm:$0xf]  ;;  %v6246_v4 = vshll.u32 %v16330_v53, 16  ;;  %12281 = vmatpush3.bf16.msra.mxu1 %v13186_v51 }
 0x452   : > { %5984 = vst.msk [vmem:[#allocation2 + $0x44] sm:$0xf] %vm280_vm0, %v11984_v57  ;;  %v5825_v39 = vmax.f32 %v5719_v40, 0.0  ;;  %v5563_v43 = vadd.f32 %v12182_v13, %v16271_v37  ;;  %v16346_v58 = vsel %vm1021_vm7, %v6440_v30, %v6441_v52  ;;  %v7247_v1 = vshrl.u32 %v6440_v30, 16  ;;  %v16398_v57 = vpop.f32.mrf.mxu0  ;;  %12282 = vmatprep.subr.bf16.mxu1 %v13187_v44 }
 0x453   : > { %v12184_v5 = vpop.f32.mrf.mxu1  ;;  %v7255_v32 = vshrl.u32 %v16346_v58, 16  ;;  %v7258_v26 = vshll.u32 %v16346_v58, 16  ;;  %v7250_v34 = vshll.u32 %v6440_v30, 16  ;;  %v16382_v52 = vcombine.low %v6022_v47, %v6023_v24 }
 0x454   : > { %v11985_v63 = vpack.c.bf16 %v5825_v39, %v5825_v39  ;;  %v5724_v62 = vadd.f32 %v5723_v18, %v5563_v43  ;;  %v12185_v38 = vadd.f32 %v12184_v5, %v12183_v19  ;;  %6707 = vrot.lane.b32.xlu0 %v16328_v3, %s13283_s9  ;;  %6490 = vrot.lane.b32.xlu1 %v6440_v30, %s13283_s9  ;;  %v7249_v42 = vrot.slane %v7247_v1, 3 }
 0x455   : > { %v12186_v10 = vpop.f32.mrf.mxu1  ;;  %v7257_v11 = vrot.slane %v7255_v32, 3  ;;  %v7260_v23 = vrot.slane %v7258_v26, 4  ;;  %v7252_v2 = vrot.slane %v7250_v34, 4  ;;  %v16362_v50 = vld [vmem:[#allocation2 + $0x38] sm:$0xf]  ;;  %v6245_v45 = vrot.slane %v6243_v54, 4 }
 0x456   : > { %5985 = vst.msk [vmem:[#allocation2 + $0x48] sm:$0xf] %vm280_vm0, %v11985_v63  ;;  %v5826_v27 = vmax.f32 %v5724_v62, 0.0  ;;  %v5566_v22 = vadd.f32 %v12185_v38, %v16271_v37  ;;  %v16368_v21 = vcombine.low %v6023_v24, %v16362_v50  ;;  %v6248_v36 = vrot.slane %v6246_v4, 5  ;;  %v5739_v24 = vpop.f32.mrf.mxu0 }
 0x457   : > { %v12187_v49 = vpop.f32.mrf.mxu1  ;;  %v7253_v61 = vor.u32 %v7252_v2, %v7249_v42  ;;  %v7261_v60 = vor.u32 %v7260_v23, %v7257_v11  ;;  %v13189_v42 = vld [vmem:[%s19008_s1 + $0x160] sm:$0xff]  }
 0x458   : > { %v11986_v56 = vpack.c.bf16 %v5826_v27, %v5826_v27  ;;  %v5727_v9 = vadd.f32 %v5726_v41, %v5566_v22  ;;  %v12188_v35 = vadd.f32 %v12187_v49, %v12186_v10  ;;  %6637 = vrot.lane.b32.xlu0 %v6440_v30, %s13284_s10  ;;  %6639 = vrot.lane.b32.xlu1 %v16346_v58, %s13284_s10  ;;  %v16379_v16 = vrot.slane %v16368_v21, 5 }
 0x459   : > { %v12189_v25 = vpop.f32.mrf.mxu1  ;;  %v7262_v8 = vsel %vm1807_vm8, %v7253_v61, %v7261_v60  ;;  %v16409_v17 = vld [vmem:[#allocation2 + $0x44] sm:$0xf]  ;;  %v16418_v62 = vor.u32 %v6248_v36, %v6245_v45  ;;  %v16451_v60 = vpop.f32.mrf.mxu0 }
 0x45a   : > { %5986 = vst.msk [vmem:[#allocation2 + $0x54] sm:$0xf] %vm280_vm0, %v11986_v56  ;;  %v5827_v20 = vmax.f32 %v5727_v9, 0.0  ;;  %v5571_v53 = vadd.f32 %v12188_v35, %v16271_v37  ;;  %12924 = vmatprep.mubr.msk.bf16.mxu0 %vm1404_vm9, %v7262_v8  ;;  %v16392_v31 = vsel %vm1021_vm7, %v16379_v16, %v6444_v29  ;;  %v7294_v18 = vshrl.u32 %v16379_v16, 16 }
 0x45b   : > { %v12190_v40 = vpop.f32.mrf.mxu1  ;;  %v7297_v13 = vshll.u32 %v16379_v16, 16  ;;  %v7302_v30 = vshrl.u32 %v16392_v31, 16  ;;  %v7305_v19 = vshll.u32 %v16392_v31, 16  ;;  %v16438_v29 = vcombine.low %v16362_v50, %v16362_v50  ;;  %v13154_v50 = vld [vmem:[#allocation2 + $0x5c] ss:$0 sps:$4 sm:$0xff]  }
 0x45c   : > { %v11987_v39 = vpack.c.bf16 %v5827_v20, %v5827_v20  ;;  %v5732_v43 = vadd.f32 %v16312_v46, %v5571_v53  ;;  %v12191_v1 = vadd.f32 %v12190_v40, %v12189_v25  ;;  %6492 = vrot.lane.b32.xlu0 %v16346_v58, %s13283_s9  ;;  %6709 = vrot.lane.b32.xlu1 %v16382_v52, %s13283_s9  ;;  %v7296_v33 = vrot.slane %v7294_v18, 3  ;;  %v13188_v46 = vld [vmem:[%s19008_s1 + $0x128] sm:$0xff]  }
 0x45d   : > { %v12192_v5 = vpop.f32.mrf.mxu1  ;;  %v7299_v32 = vrot.slane %v7297_v13, 4  ;;  %v7304_v26 = vrot.slane %v7302_v30, 3  ;;  %v7307_v34 = vrot.slane %v7305_v19, 4  ;;  %v16411_v54 = vld [vmem:[#allocation2 + $0x48] sm:$0xf]  ;;  %12283 = vmatpush3.bf16.msra.mxu1 %v13188_v46 }
 0x45e   : > { %5987 = vst.msk [vmem:[#allocation2 + $0x58] sm:$0xf] %vm280_vm0, %v11987_v39  ;;  %v5828_v58 = vmax.f32 %v5732_v43, 0.0  ;;  %v5574_v63 = vadd.f32 %v12191_v1, %v16271_v37  ;;  %v16422_v38 = vcombine.low %v16409_v17, %v16411_v54  ;;  %12284 = vmatprep.subr.bf16.mxu1 %v13189_v42  ;;  %v16462_v20 = vld [vmem:[#allocation2 + $0x6c] ss:$0 sps:$4 sm:$0xff]   ;;  %v6450_v39 = vrot.slane %v13154_v50, 5  ;;  %v5742_v43 = vpop.f32.mrf.mxu0 }
 0x45f   : > { %v12193_v15 = vpop.f32.mrf.mxu1  ;;  %v7300_v10 = vor.u32 %v7299_v32, %v7296_v33  ;;  %v7308_v11 = vor.u32 %v7307_v34, %v7304_v26  ;;  %v6251_v32 = vshrl.u32 %v16368_v21, 16 }
 0x460   : > { %v11988_v23 = vpack.c.bf16 %v5828_v58, %v5828_v58  ;;  %v5735_v2 = vadd.f32 %v16351_v55, %v5574_v63  ;;  %v12194_v4 = vadd.f32 %v12193_v15, %v12192_v5  ;;  %6562 = vrot.lane.b32.xlu0 %v16382_v52, %s13285_s11  ;;  %6778 = vrot.lane.b32.xlu1 %v16418_v62, %s13285_s11  ;;  %v16433_v27 = vrot.slane %v16422_v38, 5  ;;  %v13190_v55 = vld [vmem:[%s19008_s1 + $0x120] sm:$0xff]  }
 0x461   : > { %v12195_v22 = vpop.f32.mrf.mxu1  ;;  %v7309_v47 = vsel %vm1807_vm8, %v7300_v10, %v7308_v11  ;;  %v16460_v51 = vld [vmem:[#allocation2 + $0x54] sm:$0xf]  ;;  %12285 = vmatpush3.bf16.msra.mxu1 %v13190_v55  ;;  %v6453_v15 = vrot.slane %v16462_v20, 5 }
 0x462   : > { %5988 = vst.msk [vmem:[#allocation2 + $0x64] sm:$0xf] %vm280_vm0, %v11988_v23  ;;  %v5829_v28 = vmax.f32 %v5735_v2, 0.0  ;;  %v5579_v41 = vadd.f32 %v12194_v4, %v16271_v37  ;;  %12925 = vmatmul.mubr.msk.bf16.vlgmr.msra.gmra.mxu0 %vm1404_vm9, %v7309_v47  ;;  %v16448_v49 = vsel %vm1021_vm7, %v16433_v27, %v6447_v6  ;;  %v7341_v61 = vshrl.u32 %v16433_v27, 16  ;;  %v16491_v4 = vpop.f32.mrf.mxu0  ;;  %v6026_v47 = vld [vmem:[#allocation2 + $0x40] sm:$0xf] }
 0x463   : > { %v12196_v7 = vpop.f32.mrf.mxu1  ;;  %v7344_v56 = vshll.u32 %v16433_v27, 16  ;;  %v7349_v9 = vshrl.u32 %v16448_v49, 16  ;;  %v7352_v35 = vshll.u32 %v16448_v49, 16 }
 0x464   : > { %v11989_v25 = vpack.c.bf16 %v5829_v28, %v5829_v28  ;;  %v5740_v8 = vadd.f32 %v5739_v24, %v5579_v41  ;;  %v12197_v45 = vadd.f32 %v12196_v7, %v12195_v22  ;;  %6358 = vrot.lane.b32.xlu0 %v16418_v62, %s13284_s10  ;;  %6564 = vrot.lane.b32.xlu1 %v16438_v29, %s13285_s11  ;;  %v7343_v36 = vrot.slane %v7341_v61, 3 }
 0x465   : > { %v12198_v53 = vpop.f32.mrf.mxu1  ;;  %v7346_v18 = vrot.slane %v7344_v56, 4  ;;  %v7351_v44 = vrot.slane %v7349_v9, 3  ;;  %v7354_v40 = vrot.slane %v7352_v35, 4  ;;  %v16464_v13 = vld [vmem:[#allocation2 + $0x58] sm:$0xf]  ;;  %v6254_v24 = vshll.u32 %v16368_v21, 16 }
 0x466   : > { %5989 = vst.msk [vmem:[#allocation2 + $0x68] sm:$0xf] %vm280_vm0, %v11989_v25  ;;  %v5830_v30 = vmax.f32 %v5740_v8, 0.0  ;;  %v5582_v19 = vadd.f32 %v12197_v45, %v16271_v37  ;;  %v16470_v6 = vcombine.low %v16460_v51, %v16464_v13  ;;  %v6253_v41 = vrot.slane %v6251_v32, 4 }
 0x467   : > { %v12199_v1 = vpop.f32.mrf.mxu1  ;;  %v7347_v33 = vor.u32 %v7346_v18, %v7343_v36  ;;  %v7355_v5 = vor.u32 %v7354_v40, %v7351_v44  ;;  %v6256_v36 = vrot.slane %v6254_v24, 5  ;;  %v16508_v18 = vcombine.low %v6026_v47, %v16409_v17  ;;  %v5755_v44 = vpop.f32.mrf.mxu0 }
 0x468   : > { %v11990_v26 = vpack.c.bf16 %v5830_v30, %v5830_v30  ;;  %v5743_v34 = vadd.f32 %v5742_v43, %v5582_v19  ;;  %v12200_v46 = vadd.f32 %v12199_v1, %v12198_v53  ;;  %6494 = vrot.lane.b32.xlu1 %v16379_v16, %s13283_s9  ;;  %6711 = vrot.lane.b32.xlu0 %v16438_v29, %s13283_s9  ;;  %v16478_v58 = vrot.slane %v16470_v6, 5 }
 0x469   : > { %v12201_v63 = vpop.f32.mrf.mxu1  ;;  %v7356_v42 = vsel %vm1807_vm8, %v7347_v33, %v7355_v5  ;;  %v16501_v9 = vld [vmem:[#allocation2 + $0x64] sm:$0xf]  ;;  %19394 = vst [vmem:[#allocation68_spill] sm:$0xff] %v16508_v18  ;;  %v16523_v32 = vor.u32 %v6256_v36, %v6253_v41 }
 0x46a   : > { %5990 = vst.msk [vmem:[#allocation2 + $0x74] sm:$0xf] %vm280_vm0, %v11990_v26  ;;  %v5831_v10 = vmax.f32 %v5743_v34, 0.0  ;;  %v5587_v11 = vadd.f32 %v12200_v46, %v16271_v37  ;;  %12928 = vmatprep.mubr.msk.bf16.mxu0 %vm1404_vm9, %v7356_v42  ;;  %v16488_v23 = vsel %vm1021_vm7, %v16478_v58, %v6450_v39  ;;  %v7388_v2 = vshrl.u32 %v16478_v58, 16  ;;  %v13158_v26 = vld [vmem:[#allocation2 + $0x7c] ss:$0 sps:$4 sm:$0xff]  }
 0x46b   : > { %v12202_v22 = vpop.f32.mrf.mxu1  ;;  %v7391_v21 = vshll.u32 %v16478_v58, 16  ;;  %v7396_v55 = vshrl.u32 %v16488_v23, 16  ;;  %v7399_v28 = vshll.u32 %v16488_v23, 16 }
 0x46c   : > { %v11991_v61 = vpack.c.bf16 %v5831_v10, %v5831_v10  ;;  %v5748_v50 = vadd.f32 %v16398_v57, %v5587_v11  ;;  %v12203_v7 = vadd.f32 %v12202_v22, %v12201_v63  ;;  %6643 = vrot.lane.b32.xlu1 %v16392_v31, %s13284_s10  ;;  %6641 = vrot.lane.b32.xlu0 %v16379_v16, %s13284_s10  ;;  %v7390_v56 = vrot.slane %v7388_v2, 3  ;;  %v16533_v63 = vpop.f32.mrf.mxu0 }
 0x46d   : > { %v12204_v35 = vpop.f32.mrf.mxu1  ;;  %v7393_v25 = vrot.slane %v7391_v21, 4  ;;  %v7398_v8 = vrot.slane %v7396_v55, 3  ;;  %v7401_v45 = vrot.slane %v7399_v28, 4  ;;  %v16503_v20 = vld [vmem:[#allocation2 + $0x68] sm:$0xf] }
 0x46e   : > { %5991 = vst.msk [vmem:[#allocation2 + $0x78] sm:$0xf] %vm280_vm0, %v11991_v61  ;;  %v5832_v57 = vmax.f32 %v5748_v50, 0.0  ;;  %v5590_v53 = vadd.f32 %v12203_v7, %v16271_v37  ;;  %v16512_v16 = vcombine.low %v16501_v9, %v16503_v20  ;;  %v6456_v7 = vrot.slane %v13158_v26, 5  ;;  %v13160_v26 = vld [vmem:[#allocation2 + $0x8c] ss:$0 sps:$4 sm:$0xff]  }
 0x46f   : > { %v12205_v40 = vpop.f32.mrf.mxu1  ;;  %v7394_v30 = vor.u32 %v7393_v25, %v7390_v56  ;;  %v7402_v19 = vor.u32 %v7401_v45, %v7398_v8  ;;  %v16550_v25 = vcombine.low %v16411_v54, %v16411_v54  ;;  %v5758_v45 = vpop.f32.mrf.mxu0 }
 0x470   : > { %v11992_v39 = vpack.c.bf16 %v5832_v57, %v5832_v57  ;;  %v5751_v43 = vadd.f32 %v16451_v60, %v5590_v53  ;;  %v12206_v1 = vadd.f32 %v12205_v40, %v12204_v35  ;;  %6713 = vrot.lane.b32.xlu1 %v16508_v18, %s13283_s9  ;;  %6496 = vrot.lane.b32.xlu0 %v16392_v31, %s13283_s9  ;;  %v16520_v17 = vrot.slane %v16512_v16, 5 }
 0x471   : > { %v12207_v33 = vpop.f32.mrf.mxu1  ;;  %v7403_v5 = vsel %vm1807_vm8, %v7394_v30, %v7402_v19  ;;  %v16542_v21 = vld [vmem:[#allocation2 + $0x74] sm:$0xf]  ;;  %19395 = vst [vmem:[#allocation9_spill] sm:$0xff] %v16550_v25 }
 0x472   : > { %5992 = vst.msk [vmem:[#allocation2 + $0x84] sm:$0xf] %vm280_vm0, %v11992_v39  ;;  %v5833_v34 = vmax.f32 %v5751_v43, 0.0  ;;  %v5595_v60 = vadd.f32 %v12206_v1, %v16271_v37  ;;  %12929 = vmatmul.mubr.msk.bf16.gmra.mxu0 %vm1404_vm9, %v7403_v5  ;;  %v16530_v46 = vsel %vm1021_vm7, %v16520_v17, %v6453_v15  ;;  %v7435_v31 = vshrl.u32 %v16520_v17, 16 }
 0x473   : > { %v12208_v42 = vpop.f32.mrf.mxu1  ;;  %v7438_v24 = vshll.u32 %v16520_v17, 16  ;;  %v7443_v10 = vshrl.u32 %v16530_v46, 16  ;;  %v7446_v11 = vshll.u32 %v16530_v46, 16 }
 0x474   : > { %v11993_v2 = vpack.c.bf16 %v5833_v34, %v5833_v34  ;;  %v5756_v22 = vadd.f32 %v5755_v44, %v5595_v60  ;;  %v12209_v47 = vadd.f32 %v12208_v42, %v12207_v33  ;;  %6780 = vrot.lane.b32.xlu1 %v16523_v32, %s13285_s11  ;;  %6566 = vrot.lane.b32.xlu0 %v16508_v18, %s13285_s11  ;;  %v7437_v15 = vrot.slane %v7435_v31, 3  ;;  %v16572_v34 = vpop.f32.mrf.mxu0 }
 0x475   : > { %v12210_v55 = vpop.f32.mrf.mxu1  ;;  %v7440_v28 = vrot.slane %v7438_v24, 4  ;;  %v7445_v41 = vrot.slane %v7443_v10, 3  ;;  %v7448_v61 = vrot.slane %v7446_v11, 4  ;;  %v16544_v50 = vld [vmem:[#allocation2 + $0x78] sm:$0xf]  ;;  %v6259_v10 = vshrl.u32 %v16422_v38, 16 }
 0x476   : > { %5993 = vst.msk [vmem:[#allocation2 + $0x88] sm:$0xf] %vm280_vm0, %v11993_v2  ;;  %v5834_v56 = vmax.f32 %v5756_v22, 0.0  ;;  %v5598_v35 = vadd.f32 %v12209_v47, %v16271_v37  ;;  %v16554_v8 = vcombine.low %v16542_v21, %v16544_v50 }
 0x477   : > { %v12211_v36 = vpop.f32.mrf.mxu1  ;;  %v7441_v57 = vor.u32 %v7440_v28, %v7437_v15  ;;  %v7449_v53 = vor.u32 %v7448_v61, %v7445_v41 }
 0x478   : > { %v11994_v44 = vpack.c.bf16 %v5834_v56, %v5834_v56  ;;  %v5759_v40 = vadd.f32 %v5758_v45, %v5598_v35  ;;  %v12212_v30 = vadd.f32 %v12211_v36, %v12210_v55  ;;  %6568 = vrot.lane.b32.xlu1 %v16550_v25, %s13285_s11  ;;  %6360 = vrot.lane.b32.xlu0 %v16523_v32, %s13284_s10  ;;  %v16561_v54 = vrot.slane %v16554_v8, 5  ;;  %v6030_v45 = vld [vmem:[#allocation2 + $0x50] sm:$0xf] }
 0x479   : > { %v12213_v19 = vpop.f32.mrf.mxu1  ;;  %v7450_v39 = vsel %vm1807_vm8, %v7441_v57, %v7449_v53  ;;  %v16583_v15 = vld [vmem:[#allocation2 + $0x84] sm:$0xf]  ;;  %v6459_v57 = vrot.slane %v13160_v26, 5  ;;  %v5771_v53 = vpop.f32.mrf.mxu0  ;;  %v16604_v26 = vcombine.low %v6030_v45, %v16460_v51 }
 0x47a   : > { %5994 = vst.msk [vmem:[#allocation2 + $0x94] sm:$0xf] %vm280_vm0, %v11994_v44  ;;  %v5835_v43 = vmax.f32 %v5759_v40, 0.0  ;;  %v5603_v1 = vadd.f32 %v12212_v30, %v16271_v37  ;;  %12932 = vmatprep.mubr.msk.bf16.mxu0 %vm1404_vm9, %v7450_v39  ;;  %v16569_v33 = vsel %vm1021_vm7, %v16561_v54, %v6456_v7  ;;  %v7482_v5 = vshrl.u32 %v16561_v54, 16 }
 0x47b   : > { %v12214_v60 = vpop.f32.mrf.mxu1  ;;  %v7485_v31 = vshll.u32 %v16561_v54, 16  ;;  %v7490_v42 = vshrl.u32 %v16569_v33, 16  ;;  %v7493_v24 = vshll.u32 %v16569_v33, 16  ;;  %v6262_v7 = vshll.u32 %v16422_v38, 16  ;;  %19396 = vst [vmem:[#allocation69_spill] sm:$0xff] %v16604_v26 }
 0x47c   : > { %v11995_v11 = vpack.c.bf16 %v5835_v43, %v5835_v43  ;;  %v5764_v2 = vadd.f32 %v16491_v4, %v5603_v1  ;;  %v12215_v22 = vadd.f32 %v12214_v60, %v12213_v19  ;;  %6498 = vrot.lane.b32.xlu1 %v16433_v27, %s13283_s9  ;;  %6715 = vrot.lane.b32.xlu0 %v16550_v25, %s13283_s9  ;;  %v7484_v47 = vrot.slane %v7482_v5, 3 }
 0x47d   : > { %v12216_v55 = vpop.f32.mrf.mxu1  ;;  %v7487_v28 = vrot.slane %v7485_v31, 4  ;;  %v7492_v41 = vrot.slane %v7490_v42, 3  ;;  %v7495_v61 = vrot.slane %v7493_v24, 4  ;;  %v16586_v56 = vld [vmem:[#allocation2 + $0x88] sm:$0xf]  ;;  %v6261_v60 = vrot.slane %v6259_v10, 4 }
 0x47e   : > { %5995 = vst.msk [vmem:[#allocation2 + $0x98] sm:$0xf] %vm280_vm0, %v11995_v11  ;;  %v5836_v4 = vmax.f32 %v5764_v2, 0.0  ;;  %v5606_v35 = vadd.f32 %v12215_v22, %v16271_v37  ;;  %v16592_v36 = vcombine.low %v16583_v15, %v16586_v56  ;;  %v6264_v31 = vrot.slane %v6262_v7, 5  ;;  %v13162_v42 = vld [vmem:[#allocation2 + $0x9c] ss:$0 sps:$4 sm:$0xff]   ;;  %v16614_v2 = vpop.f32.mrf.mxu0 }
 0x47f   : > { %v12217_v44 = vpop.f32.mrf.mxu1  ;;  %v7488_v40 = vor.u32 %v7487_v28, %v7484_v47  ;;  %v7496_v30 = vor.u32 %v7495_v61, %v7492_v41 }
 0x480   : > { %v11996_v19 = vpack.c.bf16 %v5836_v4, %v5836_v4  ;;  %v5767_v38 = vadd.f32 %v16533_v63, %v5606_v35  ;;  %v12218_v39 = vadd.f32 %v12217_v44, %v12216_v55  ;;  %6647 = vrot.lane.b32.xlu1 %v16448_v49, %s13284_s10  ;;  %6645 = vrot.lane.b32.xlu0 %v16433_v27, %s13284_s10  ;;  %v16600_v43 = vrot.slane %v16592_v36, 5 }
 0x481   : > { %v12219_v1 = vpop.f32.mrf.mxu1  ;;  %v7497_v5 = vsel %vm1807_vm8, %v7488_v40, %v7496_v30  ;;  %v16623_v7 = vld [vmem:[#allocation2 + $0x94] sm:$0xf]  ;;  %v6462_v40 = vrot.slane %v13162_v42, 5 }
 0x482   : > { %5996 = vst.msk [vmem:[#allocation2 + $0xa4] sm:$0xf] %vm280_vm0, %v11996_v19  ;;  %v5837_v63 = vmax.f32 %v5767_v38, 0.0  ;;  %v5611_v24 = vadd.f32 %v12218_v39, %v16271_v37  ;;  %12933 = vmatmul.mubr.msk.bf16.gmra.mxu0 %vm1404_vm9, %v7497_v5  ;;  %v16611_v27 = vsel %vm1021_vm7, %v16600_v43, %v6459_v57  ;;  %v7529_v11 = vshrl.u32 %v16600_v43, 16  ;;  %v5774_v38 = vpop.f32.mrf.mxu0 }
 0x483   : > { %v12220_v51 = vpop.f32.mrf.mxu1  ;;  %v7532_v10 = vshll.u32 %v16600_v43, 16  ;;  %v7537_v22 = vshrl.u32 %v16611_v27, 16  ;;  %v7540_v47 = vshll.u32 %v16611_v27, 16  ;;  %v16629_v19 = vor.u32 %v6264_v31, %v6261_v60 }
 0x484   : > { %v11997_v55 = vpack.c.bf16 %v5837_v63, %v5837_v63  ;;  %v5772_v28 = vadd.f32 %v5771_v53, %v5611_v24  ;;  %v12221_v41 = vadd.f32 %v12220_v51, %v12219_v1  ;;  %6717 = vrot.lane.b32.xlu1 %v16604_v26, %s13283_s9  ;;  %6500 = vrot.lane.b32.xlu0 %v16448_v49, %s13283_s9  ;;  %v7531_v61 = vrot.slane %v7529_v11, 3 }
 0x485   : > { %v12222_v4 = vpop.f32.mrf.mxu1  ;;  %v7534_v35 = vrot.slane %v7532_v10, 4  ;;  %v7539_v45 = vrot.slane %v7537_v22, 3  ;;  %v7542_v57 = vrot.slane %v7540_v47, 4  ;;  %v16625_v44 = vld [vmem:[#allocation2 + $0x98] sm:$0xf]  ;;  %19397 = vst [vmem:[#allocation63_spill] sm:$0xff] %v16629_v19  ;;  %v16645_v51 = vcombine.low %v16464_v13, %v16464_v13 }
 0x486   : > { %5997 = vst.msk [vmem:[#allocation2 + $0xa8] sm:$0xf] %vm280_vm0, %v11997_v55  ;;  %v5838_v53 = vmax.f32 %v5772_v28, 0.0  ;;  %v5614_v30 = vadd.f32 %v12221_v41, %v16271_v37  ;;  %v16633_v49 = vcombine.low %v16623_v7, %v16625_v44  ;;  %v13164_v28 = vld [vmem:[#allocation2 + $0xac] ss:$0 sps:$4 sm:$0xff]   ;;  %v16655_v41 = vpop.f32.mrf.mxu0 }
 0x487   : > { %v12223_v39 = vpop.f32.mrf.mxu1  ;;  %v7535_v1 = vor.u32 %v7534_v35, %v7531_v61  ;;  %v7543_v5 = vor.u32 %v7542_v57, %v7539_v45  ;;  %19398 = vst [vmem:[#allocation26_spill] sm:$0xff] %v16645_v51 }
 0x488   : > { %v11998_v63 = vpack.c.bf16 %v5838_v53, %v5838_v53  ;;  %v5775_v24 = vadd.f32 %v5774_v38, %v5614_v30  ;;  %v12224_v11 = vadd.f32 %v12223_v39, %v12222_v4  ;;  %6782 = vrot.lane.b32.xlu1 %v16629_v19, %s13285_s11  ;;  %6570 = vrot.lane.b32.xlu0 %v16604_v26, %s13285_s11  ;;  %v16640_v60 = vrot.slane %v16633_v49, 5  ;;  %v16667_v38 = vld [vmem:[#allocation2 + $0xbc] ss:$0 sps:$4 sm:$0xff]  }
 0x489   : > { %v12225_v31 = vpop.f32.mrf.mxu1  ;;  %v7544_v42 = vsel %vm1807_vm8, %v7535_v1, %v7543_v5  ;;  %v16665_v30 = vld [vmem:[#allocation2 + $0xa4] sm:$0xf] }
 0x48a   : > { %5998 = vst.msk [vmem:[#allocation2 + $0xb4] sm:$0xf] %vm280_vm0, %v11998_v63  ;;  %v5839_v10 = vmax.f32 %v5775_v24, 0.0  ;;  %v5619_v22 = vadd.f32 %v12224_v11, %v16271_v37  ;;  %12936 = vmatprep.mubr.msk.bf16.mxu0 %vm1404_vm9, %v7544_v42  ;;  %v16652_v47 = vsel %vm1021_vm7, %v16640_v60, %v6462_v40  ;;  %v7576_v55 = vshrl.u32 %v16640_v60, 16 }
 0x48b   : > { %v12226_v61 = vpop.f32.mrf.mxu1  ;;  %v7579_v13 = vshll.u32 %v16640_v60, 16  ;;  %v7584_v4 = vshrl.u32 %v16652_v47, 16  ;;  %v7587_v35 = vshll.u32 %v16652_v47, 16  ;;  %v6465_v42 = vrot.slane %v13164_v28, 5 }
 0x48c   : > { %v11999_v45 = vpack.c.bf16 %v5839_v10, %v5839_v10  ;;  %v5780_v57 = vadd.f32 %v16572_v34, %v5619_v22  ;;  %v12227_v53 = vadd.f32 %v12226_v61, %v12225_v31  ;;  %6572 = vrot.lane.b32.xlu1 %v16645_v51, %s13285_s11  ;;  %6362 = vrot.lane.b32.xlu0 %v16629_v19, %s13284_s10  ;;  %v7578_v40 = vrot.slane %v7576_v55, 3  ;;  %v5787_v10 = vpop.f32.mrf.mxu0 }
 0x48d   : > { %v12228_v39 = vpop.f32.mrf.mxu1  ;;  %v7581_v1 = vrot.slane %v7579_v13, 4  ;;  %v7586_v5 = vrot.slane %v7584_v4, 3  ;;  %v7589_v63 = vrot.slane %v7587_v35, 4  ;;  %v16669_v24 = vld [vmem:[#allocation2 + $0xa8] sm:$0xf]  ;;  %v6267_v13 = vshrl.u32 %v16470_v6, 16 }
 0x48e   : > { %5999 = vst.msk [vmem:[#allocation2 + $0xb8] sm:$0xf] %vm280_vm0, %v11999_v45  ;;  %v5840_v34 = vmax.f32 %v5780_v57, 0.0  ;;  %v5622_v11 = vadd.f32 %v12227_v53, %v16271_v37  ;;  %v16675_v31 = vcombine.low %v16665_v30, %v16669_v24  ;;  %v6270_v53 = vshll.u32 %v16470_v6, 16 }
 0x48f   : > { %v12229_v22 = vpop.f32.mrf.mxu1  ;;  %v7582_v55 = vor.u32 %v7581_v1, %v7578_v40  ;;  %v7590_v61 = vor.u32 %v7589_v63, %v7586_v5  ;;  %v6468_v40 = vrot.slane %v16667_v38, 5  ;;  %v16697_v63 = vpop.f32.mrf.mxu0 }
 0x490   : > { %v12000_v4 = vpack.c.bf16 %v5840_v34, %v5840_v34  ;;  %v5783_v35 = vadd.f32 %v16614_v2, %v5622_v11  ;;  %v12230_v26 = vadd.f32 %v12229_v22, %v12228_v39  ;;  %6502 = vrot.lane.b32.xlu1 %v16478_v58, %s13283_s9  ;;  %6719 = vrot.lane.b32.xlu0 %v16645_v51, %s13283_s9  ;;  %v16684_v45 = vrot.slane %v16675_v31, 5  ;;  %v6034_v11 = vld [vmem:[#allocation2 + $0x60] sm:$0xf] }
 0x491   : > { %v12231_v28 = vpop.f32.mrf.mxu1  ;;  %v7591_v57 = vsel %vm1807_vm8, %v7582_v55, %v7590_v61  ;;  %v6269_v55 = vrot.slane %v6267_v13, 4  ;;  %v6272_v25 = vrot.slane %v6270_v53, 5  ;;  %v16714_v13 = vld [vmem:[%s19009_s2 + $0x1] ss:$0 sm:$0xff]  ;;  %v5790_v53 = vpop.f32.mrf.mxu0 }
 0x492   : > { %6000 = vst.msk [vmem:[#allocation2 + $0xc4] sm:$0xf] %vm280_vm0, %v12000_v4  ;;  %v5841_v2 = vmax.f32 %v5783_v35, 0.0  ;;  %v5627_v39 = vadd.f32 %v12230_v26, %v16271_v37  ;;  %12937 = vmatmul.mubr.msk.bf16.gmra.mxu0 %vm1404_vm9, %v7591_v57  ;;  %v16694_v1 = vsel %vm1021_vm7, %v16684_v45, %v6465_v42  ;;  %v7623_v5 = vshrl.u32 %v16684_v45, 16  ;;  %v16706_v4 = vld [vmem:[#allocation2 + $0xb4] sm:$0xf] }
 0x493   : > { %v12232_v34 = vpop.f32.mrf.mxu1  ;;  %v7626_v6 = vshll.u32 %v16684_v45, 16  ;;  %v7631_v38 = vshrl.u32 %v16694_v1, 16  ;;  %v7634_v22 = vshll.u32 %v16694_v1, 16 }
 0x494   : > { %v12001_v37 = vpack.c.bf16 %v5841_v2, %v5841_v2  ;;  %v5788_v26 = vadd.f32 %v5787_v10, %v5627_v39  ;;  %v12233_v61 = vadd.f32 %v12232_v34, %v12231_v28  ;;  %6651 = vrot.lane.b32.xlu1 %v16488_v23, %s13284_s10  ;;  %6649 = vrot.lane.b32.xlu0 %v16478_v58, %s13284_s10  ;;  %v7625_v42 = vrot.slane %v7623_v5, 3 }
 0x495   : > { %v12234_v35 = vpop.f32.mrf.mxu1  ;;  %v7628_v57 = vrot.slane %v7626_v6, 4  ;;  %v7633_v51 = vrot.slane %v7631_v38, 3  ;;  %v7636_v59 = vrot.slane %v7634_v22, 4  ;;  %v16708_v18 = vld [vmem:[#allocation2 + $0xb8] sm:$0xf]  ;;  %v16718_v28 = vcombine.low %v6034_v11, %v16501_v9 }
 0x496   : > { %6001 = vst.msk [vmem:[#allocation2 + $0xc8] sm:$0xf] %vm280_vm0, %v12001_v37  ;;  %v5842_v10 = vmax.f32 %v5788_v26, 0.0  ;;  %v5630_v58 = vadd.f32 %v16714_v13, %v12233_v61  ;;  %v16722_v2 = vcombine.low %v16706_v4, %v16708_v18  ;;  %v16732_v26 = vor.u32 %v6272_v25, %v6269_v55  ;;  %v13168_v55 = vld [vmem:[#allocation2 + $0xcc] ss:$0 sps:$4 sm:$0xff]  }
 0x497   : > { %19399 = vst [vmem:[#allocation31_spill] sm:$0xff] %v16718_v28  ;;  %v12235_v39 = vpop.f32.mrf.mxu1  ;;  %v7629_v5 = vor.u32 %v7628_v57, %v7625_v42  ;;  %v7637_v34 = vor.u32 %v7636_v59, %v7633_v51 }
 0x498   : > { %19400 = vst [vmem:[#allocation29_spill] sm:$0xff] %v16722_v2  ;;  %v12002_v6 = vpack.c.bf16 %v5842_v10, %v5842_v10  ;;  %v5791_v38 = vadd.f32 %v5790_v53, %v5630_v58  ;;  %v12236_v22 = vadd.f32 %v12235_v39, %v12234_v35  ;;  %6721 = vrot.lane.b32.xlu1 %v16718_v28, %s13283_s9  ;;  %v16729_v9 = vrot.slane %v16722_v2, 5 }
 0x499   : > { %6504 = vrot.lane.b32.xlu0 %v16488_v23, %s13283_s9  ;;  %v12237_v11 = vpop.f32.mrf.mxu1  ;;  %v7638_v37 = vsel %vm1807_vm8, %v7629_v5, %v7637_v34  ;;  %19401 = vst [vmem:[#allocation14_spill] sm:$0xff] %v16732_v26 }
 0x49a   : > { %6002 = vst.msk [vmem:[#allocation2 + $0xd4] sm:$0xf] %vm280_vm0, %v12002_v6  ;;  %v5843_v59 = vmax.f32 %v5791_v38, 0.0  ;;  %v5635_v51 = vadd.f32 %v16714_v13, %v12236_v22  ;;  %12940 = vmatprep.mubr.msk.bf16.mxu0 %vm1404_vm9, %v7638_v37  ;;  %v16739_v61 = vsel %vm1021_vm7, %v16729_v9, %v6468_v40  ;;  %v7670_v23 = vshrl.u32 %v16729_v9, 16  ;;  %v16752_v6 = vpop.permute.xlu0 %6354  ;;  %v16759_v37 = vld [vmem:[#allocation2 + $0xc4] sm:$0xf] }
 0x49b   : > { %19402 = vst [vmem:[#allocation28_spill] sm:$0xff] %v16739_v61  ;;  %v12238_v42 = vpop.f32.mrf.mxu1  ;;  %v7673_v35 = vshll.u32 %v16729_v9, 16  ;;  %v7678_v57 = vshrl.u32 %v16739_v61, 16  ;;  %v7681_v25 = vshll.u32 %v16739_v61, 16  ;;  %19405 = vst [vmem:[#allocation30_spill] sm:$0xff] %v16759_v37 }
 0x49c   : > { %v12003_v10 = vpack.c.bf16 %v5843_v59, %v5843_v59  ;;  %v5796_v58 = vadd.f32 %v16655_v41, %v5635_v51  ;;  %6784 = vrot.lane.b32.xlu1 %v16732_v26, %s13285_s11  ;;  %v12239_v40 = vadd.f32 %v12238_v42, %v12237_v11  ;;  %v7672_v53 = vrot.slane %v7670_v23, 3  ;;  %v13170_v59 = vld [vmem:[#allocation2 + $0xdc] ss:$0 sps:$4 sm:$0xff]  }
 0x49d   : > { %6574 = vrot.lane.b32.xlu0 %v16718_v28, %s13285_s11  ;;  %v7675_v39 = vrot.slane %v7673_v35, 4  ;;  %v7680_v5 = vrot.slane %v7678_v57, 3  ;;  %v16750_v34 = vld [vmem:[#allocation2 + $0xc8] sm:$0xf]  ;;  %v16757_v41 = vcombine.low %v16503_v20, %v16503_v20  ;;  %v7683_v22 = vrot.slane %v7681_v25, 4 }
 0x49e   : > { %19403 = vst [vmem:[#allocation34_spill] sm:$0xff] %v16750_v34  ;;  %6003 = vst.msk [vmem:[#allocation2 + $0xd8] sm:$0xf] %vm280_vm0, %v12003_v10  ;;  %v5844_v38 = vmax.f32 %v5796_v58, 0.0  ;;  %v5638_v11 = vadd.f32 %v16714_v13, %v12239_v40  ;;  %v16764_v23 = vcombine.low %v16759_v37, %v16750_v34  ;;  %v6471_v42 = vrot.slane %v13168_v55, 5  ;;  %v16774_v10 = vpop.permute.xlu1 %6482 }
 0x49f   : > { %19404 = vst [vmem:[#allocation65_spill] sm:$0xff] %v16757_v41  ;;  %v7676_v51 = vor.u32 %v7675_v39, %v7672_v53  ;;  %v7684_v57 = vor.u32 %v7683_v22, %v7680_v5  ;;  %v6474_v58 = vrot.slane %v13170_v59, 5 }
 0x4a0   : > { %19406 = vst [vmem:[#allocation33_spill] sm:$0xff] %v16764_v23  ;;  %v12004_v35 = vpack.c.bf16 %v5844_v38, %v5844_v38  ;;  %6576 = vrot.lane.b32.xlu1 %v16757_v41, %s13285_s11  ;;  %v5799_v20 = vadd.f32 %v16697_v63, %v5638_v11  ;;  %v16772_v25 = vrot.slane %v16764_v23, 5  ;;  %v16783_v38 = vpop.f32.mrf.mxu0  ;;  %v16785_v63 = vpop.permute.xlu0 %6484  ;;  %v6275_v11 = vshrl.u32 %v16512_v16, 16  ;;  %v6038_v23 = vld [vmem:[#allocation2 + $0x70] sm:$0xf] }
 0x4a1   : > { %6364 = vrot.lane.b32.xlu0 %v16732_v26, %s13284_s10  ;;  %v7685_v55 = vsel %vm1807_vm8, %v7676_v51, %v7684_v57 }
 0x4a2   : > { %19407 = vst [vmem:[#allocation37_spill] sm:$0xff] %v16772_v25  ;;  %6004 = vst.msk [vmem:[#allocation2 + $0xe4] sm:$0xf] %vm280_vm0, %v12004_v35  ;;  %v5845_v40 = vmax.f32 %v5799_v20, 0.0  ;;  %v16780_v53 = vsel %vm1021_vm7, %v16772_v25, %v6471_v42  ;;  %v7717_v39 = vshrl.u32 %v16772_v25, 16  ;;  %12941 = vmatmul.mubr.msk.bf16.gmra.mxu0 %vm1404_vm9, %v7685_v55  ;;  %v7720_v5 = vshll.u32 %v16772_v25, 16  ;;  %v5803_v25 = vpop.f32.mrf.mxu0 }
 0x4a3   : > { %19408 = vst [vmem:[#allocation46_spill] sm:$0xff] %v16780_v53  ;;  %v7725_v22 = vshrl.u32 %v16780_v53, 16  ;;  %v7728_v59 = vshll.u32 %v16780_v53, 16  ;;  %v6278_v35 = vshll.u32 %v16512_v16, 16  ;;  %v16797_v20 = vld [vmem:[#allocation2 + $0xd4] sm:$0xf] }
 0x4a4   : > { %6506 = vrot.lane.b32.xlu1 %v16520_v17, %s13283_s9  ;;  %v12005_v51 = vpack.c.bf16 %v5845_v40, %v5845_v40  ;;  %v7719_v42 = vrot.slane %v7717_v39, 3  ;;  %19409 = vst [vmem:[#allocation49_spill] sm:$0xff] %v16797_v20  ;;  %v7722_v55 = vrot.slane %v7720_v5, 4 }
 0x4a5   : > { %6723 = vrot.lane.b32.xlu0 %v16757_v41, %s13283_s9  ;;  %v16799_v57 = vld [vmem:[#allocation2 + $0xd8] sm:$0xf]  ;;  %v7727_v28 = vrot.slane %v7725_v22, 3  ;;  %v7730_v26 = vrot.slane %v7728_v59, 4  ;;  %v16806_v41 = vpop.permute.xlu1 %6765  ;;  %v16816_v59 = vcombine.low %v6038_v23, %v16542_v21 }
 0x4a6   : > { %19410 = vst [vmem:[#allocation15_spill] sm:$0xff] %v16799_v57  ;;  %v16803_v53 = vcombine.low %v16797_v20, %v16799_v57  ;;  %6005 = vst.msk [vmem:[#allocation2 + $0xe8] sm:$0xf] %vm280_vm0, %v12005_v51  ;;  %v7723_v16 = vor.u32 %v7722_v55, %v7719_v42  ;;  %v6277_v51 = vrot.slane %v6275_v11, 4  ;;  %v6280_v57 = vrot.slane %v6278_v35, 5  ;;  %v16818_v20 = vpop.permute.xlu0 %6767  ;;  %v16827_v42 = vpop.f32.mrf.mxu0 }
 0x4a7   : > { %v12240_v40 = vpop.f32.mrf.mxu1  ;;  %19412 = vst [vmem:[#allocation48_spill] sm:$0xff] %v16806_v41  ;;  %v7731_v39 = vor.u32 %v7730_v26, %v7727_v28  ;;  %19414 = vst [vmem:[#allocation42_spill] sm:$0xff] %v16816_v59  ;;  %v13172_v35 = vld [vmem:[#allocation2 + $0xec] ss:$0 sps:$4 sm:$0xff]  }
 0x4a8   : > { %19411 = vst [vmem:[#allocation45_spill] sm:$0xff] %v16803_v53  ;;  %6655 = vrot.lane.b32.xlu1 %v16530_v46, %s13284_s10  ;;  %v16811_v5 = vrot.slane %v16803_v53, 5  ;;  %19415 = vst [vmem:[#allocation4_spill] sm:$0xff] %v16818_v20  ;;  %v5806_v37 = vpop.f32.mrf.mxu0 }
 0x4a9   : > { %6653 = vrot.lane.b32.xlu0 %v16520_v17, %s13284_s10  ;;  %v12241_v22 = vpop.f32.mrf.mxu1  ;;  %v7732_v34 = vsel %vm1807_vm8, %v7723_v16, %v7731_v39 }
 0x4aa   : > { %19413 = vst [vmem:[#allocation13_spill] sm:$0xff] %v16811_v5  ;;  %v12242_v41 = vadd.f32 %v12241_v22, %v12240_v40  ;;  %v16823_v28 = vsel %vm1021_vm7, %v16811_v5, %v6474_v58  ;;  %v7764_v26 = vshrl.u32 %v16811_v5, 16  ;;  %12944 = vmatprep.mubr.msk.bf16.mxu0 %vm1404_vm9, %v7732_v34  ;;  %v7767_v21 = vshll.u32 %v16811_v5, 16  ;;  %v16837_v22 = vpop.permute.xlu1 %6556 }
 0x4ab   : > { %19416 = vst [vmem:[#allocation41_spill] sm:$0xff] %v16823_v28  ;;  %v12243_v17 = vpop.f32.mrf.mxu1  ;;  %v7772_v23 = vshrl.u32 %v16823_v28, 16  ;;  %v7775_v11 = vshll.u32 %v16823_v28, 16  ;;  %v16839_v5 = vor.u32 %v6280_v57, %v6277_v51  ;;  %v16841_v28 = vld [vmem:[#allocation2 + $0xe4] sm:$0xf] }
 0x4ac   : > { %6725 = vrot.lane.b32.xlu1 %v16816_v59, %s13283_s9  ;;  %v5643_v58 = vadd.f32 %v16714_v13, %v12242_v41  ;;  %v7766_v55 = vrot.slane %v7764_v26, 3  ;;  %v7769_v40 = vrot.slane %v7767_v21, 4 }
 0x4ad   : > { %6508 = vrot.lane.b32.xlu0 %v16530_v46, %s13283_s9  ;;  %v12244_v34 = vpop.f32.mrf.mxu1  ;;  %v7774_v16 = vrot.slane %v7772_v23, 3  ;;  %v7777_v39 = vrot.slane %v7775_v11, 4  ;;  %v6068_v19 = vld [vmem:[#allocation2 + $0xe8] sm:$0xf]  ;;  %v6477_v46 = vrot.slane %v13172_v35, 5 }
 0x4ae   : > { %v12245_v20 = vadd.f32 %v12244_v34, %v12243_v17  ;;  %v5804_v53 = vadd.f32 %v5803_v25, %v5643_v58  ;;  %v7770_v61 = vor.u32 %v7769_v40, %v7766_v55  ;;  %v16844_v26 = vcombine.low %v16841_v28, %v6068_v19  ;;  %v16849_v17 = vpop.permute.xlu0 %6554 }
 0x4af   : > { %v7778_v41 = vor.u32 %v7777_v39, %v7774_v16 }
 0x4b0   : > { %v5846_v2 = vmax.f32 %v5804_v53, 0.0  ;;  %6786 = vrot.lane.b32.xlu1 %v16839_v5, %s13285_s11  ;;  %v5646_v21 = vadd.f32 %v16714_v13, %v12245_v20  ;;  %v16855_v57 = vrot.slane %v16844_v26, 5  ;;  %v16860_v53 = vcombine.low %v16544_v50, %v16544_v50 }
 0x4b1   : > { %6578 = vrot.lane.b32.xlu0 %v16816_v59, %s13285_s11  ;;  %v7779_v25 = vsel %vm1807_vm8, %v7770_v61, %v7778_v41  ;;  %v16868_v61 = vpop.permute.xlu1 %6486 }
 0x4b2   : > { %v12006_v51 = vpack.c.bf16 %v5846_v2, %v5846_v2  ;;  %v5807_v19 = vadd.f32 %v5806_v37, %v5646_v21  ;;  %12945 = vmatmul.mubr.msk.bf16.gmra.mxu0 %vm1404_vm9, %v7779_v25  ;;  %19417 = vst [vmem:[#allocation36_spill] sm:$0xff] %v16860_v53  ;;  %v16864_v20 = vsel %vm1021_vm7, %v16855_v57, %v6477_v46  ;;  %v7811_v23 = vshrl.u32 %v16855_v57, 16  ;;  %v16875_v35 = vpop.permute.xlu0 %6633 }
 0x4b3   : > { %19418 = vst [vmem:[#allocation70_spill] sm:$0xff] %v16864_v20  ;;  %v7814_v11 = vshll.u32 %v16855_v57, 16  ;;  %v7819_v37 = vshrl.u32 %v16864_v20, 16  ;;  %v7822_v50 = vshll.u32 %v16864_v20, 16  ;;  %v6283_v25 = vshrl.u32 %v16554_v8, 16 }
 0x4b4   : > { %6006 = vst.msk [vmem:[#allocation2 + $0xf4] sm:$0xf] %vm280_vm0, %v12006_v51  ;;  %v5847_v2 = vmax.f32 %v5807_v19, 0.0  ;;  %6580 = vrot.lane.b32.xlu1 %v16860_v53, %s13285_s11  ;;  %v7813_v58 = vrot.slane %v7811_v23, 3  ;;  %v6286_v51 = vshll.u32 %v16554_v8, 16 }
 0x4b5   : > { %6366 = vrot.lane.b32.xlu0 %v16839_v5, %s13284_s10  ;;  %v7816_v55 = vrot.slane %v7814_v11, 4  ;;  %v7821_v40 = vrot.slane %v7819_v37, 3  ;;  %v7824_v16 = vrot.slane %v7822_v50, 4  ;;  %v16884_v46 = vpop.permute.xlu1 %6635  ;;  %v6042_v23 = vld [vmem:[#allocation2 + $0x80] sm:$0xf]  ;;  %v6285_v8 = vrot.slane %v6283_v25, 4 }
 0x4b6   : > { %v12007_v34 = vpack.c.bf16 %v5847_v2, %v5847_v2  ;;  %v16889_v19 = vpop.permute.xlu0 %6488  ;;  %v13184_v2 = vld [vmem:[#allocation2 + $0xfc] ss:$0 sps:$4 sm:$0xff]   ;;  %v13268_v25 = vld [vmem:[#allocation2 + $0x8] sm:$0xf]  ;;  %v13269_v20 = vld [vmem:[#allocation2 + $0x4] sm:$0xf] }
 0x4b7   : > { %v7817_v39 = vor.u32 %v7816_v55, %v7813_v58  ;;  %v7825_v41 = vor.u32 %v7824_v16, %v7821_v40  ;;  %v16899_v58 = vcombine.low %v6042_v23, %v16583_v15  ;;  %v6288_v55 = vrot.slane %v6286_v51, 5 }
 0x4b8   : > { %6007 = vst.msk [vmem:[#allocation2 + $0xf8] sm:$0xf] %vm280_vm0, %v12007_v34  ;;  %6510 = vrot.lane.b32.xlu1 %v16561_v54, %s13283_s9  ;;  %v11622_v51 = vcombine.low %v13268_v25, %v13268_v25 }
 0x4b9   : > { %6727 = vrot.lane.b32.xlu0 %v16860_v53, %s13283_s9  ;;  %v7826_v21 = vsel %vm1807_vm8, %v7817_v39, %v7825_v41  ;;  %19419 = vst [vmem:[#allocation44_spill] sm:$0xff] %v16899_v58  ;;  %v6010_v53 = vld [vmem:[#allocation2] sm:$0xf] }
 0x4ba   : > { %12948 = vmatprep.mubr.msk.bf16.mxu0 %vm1404_vm9, %v7826_v21  ;;  %v6480_v21 = vrot.slane %v13184_v2, 5 }
 0x4bb   : > { %v16903_v16 = vld [vmem:[#allocation2 + $0xf4] sm:$0xf] }
 0x4bc   : > { %6659 = vrot.lane.b32.xlu1 %v16569_v33, %s13284_s10  ;;  %19420 = vst [vmem:[#allocation39_spill] sm:$0xff] %v16903_v16 }
 0x4bd   : > { %v12246_v11 = vpop.f32.mrf.mxu1  ;;  %6657 = vrot.lane.b32.xlu0 %v16561_v54, %s13284_s10 }
 0x4be   : > { %v16896_v37 = vpop.permute.xlu1 %6705  ;;  %v16901_v40 = vpop.permute.xlu0 %6558 }
 0x4bf   : > { %v12247_v50 = vpop.f32.mrf.mxu1  ;;  %v6072_v39 = vld [vmem:[#allocation2 + $0xf8] sm:$0xf] }
 0x4c0   : > { %v12248_v34 = vadd.f32 %v12247_v50, %v12246_v11  ;;  %6729 = vrot.lane.b32.xlu1 %v16899_v58, %s13283_s9  ;;  %v16908_v54 = vcombine.low %v16903_v16, %v6072_v39  ;;  %v16915_v50 = vor.u32 %v6288_v55, %v6285_v8 }
 0x4c1   : > { %v12249_v41 = vpop.f32.mrf.mxu1  ;;  %6512 = vrot.lane.b32.xlu0 %v16569_v33, %s13283_s9 }
 0x4c2   : > { %v5651_v15 = vadd.f32 %v16714_v13, %v12248_v34  ;;  %v16913_v23 = vpop.permute.xlu1 %6560  ;;  %v16918_v59 = vrot.slane %v16908_v54, 5  ;;  %v16921_v2 = vpop.permute.xlu0 %6356  ;;  %v11621_v34 = vcombine.low %v6010_v53, %v13269_v20  ;;  %v16939_v53 = vcombine.low %v16586_v56, %v16586_v56 }
 0x4c3   : > { %v12250_v11 = vpop.f32.mrf.mxu1 }
 0x4c4   : > { %19421 = vst [vmem:[#allocation43_spill] sm:$0xff] %v16918_v59  ;;  %v5812_v39 = vadd.f32 %v16783_v38, %v5651_v15  ;;  %v12251_v16 = vadd.f32 %v12250_v11, %v12249_v41  ;;  %6788 = vrot.lane.b32.xlu1 %v16915_v50, %s13285_s11  ;;  %v16927_v33 = vsel %vm1021_vm7, %v16918_v59, %v6480_v21  ;;  %v7858_v8 = vshrl.u32 %v16918_v59, 16 }
 0x4c5   : > { %19422 = vst [vmem:[#allocation47_spill] sm:$0xff] %v16927_v33  ;;  %6582 = vrot.lane.b32.xlu0 %v16899_v58, %s13285_s11  ;;  %v6820_v38 = vsel %vm1404_vm9, %v11622_v51, %v16752_v6  ;;  %v7861_v21 = vshll.u32 %v16918_v59, 16  ;;  %v6818_v51 = vsel %vm1404_vm9, %v11621_v34, %v16752_v6 }
 0x4c6   : > { %v5848_v55 = vmax.f32 %v5812_v39, 0.0  ;;  %v5654_v25 = vadd.f32 %v16714_v13, %v12251_v16  ;;  %v16935_v41 = vpop.permute.xlu1 %6490  ;;  %v7860_v20 = vrot.slane %v7858_v8, 3  ;;  %v6708_v39 = vpop.permute.xlu0 %6707  ;;  %v7866_v13 = vshrl.u32 %v16927_v33, 16 }
 0x4c7   : > { %v7869_v16 = vshll.u32 %v16927_v33, 16  ;;  %v7863_v58 = vrot.slane %v7861_v21, 4  ;;  %v6899_v56 = vsel %vm1485_vm10, %v6820_v38, %v16785_v63  ;;  %v6897_v6 = vsel %vm1485_vm10, %v6818_v51, %v16774_v10 }
 0x4c8   : > { %v12008_v15 = vpack.c.bf16 %v5848_v55, %v5848_v55  ;;  %v5815_v11 = vadd.f32 %v16827_v42, %v5654_v25  ;;  %6584 = vrot.lane.b32.xlu1 %v16939_v53, %s13285_s11  ;;  %v7868_v42 = vrot.slane %v7866_v13, 3  ;;  %v6963_v63 = vsel %vm1550_vm11, %v6899_v56, %v16837_v22 }
 0x4c9   : > { %6368 = vrot.lane.b32.xlu0 %v16915_v50, %s13284_s10  ;;  %v7871_v55 = vrot.slane %v7869_v16, 4  ;;  %v7864_v59 = vor.u32 %v7863_v58, %v7860_v20  ;;  %v6291_v38 = vshrl.u32 %v16592_v36, 16  ;;  %v6961_v58 = vsel %vm1550_vm11, %v6897_v6, %v16849_v17  ;;  %v13192_v20 = vld [vmem:[#allocation2 + $0x10c] ss:$0 sps:$4 sm:$0xff]  }
 0x4ca   : > { %6008 = vst.msk [vmem:[#allocation2 + $0x104] sm:$0xf] %vm280_vm0, %v12008_v15  ;;  %v5849_v8 = vmax.f32 %v5815_v11, 0.0  ;;  %v16954_v25 = vpop.permute.xlu1 %6639  ;;  %v16958_v33 = vpop.permute.xlu0 %6637  ;;  %v6294_v15 = vshll.u32 %v16592_v36, 16  ;;  %v7223_v11 = vshrl.u32 %v6963_v63, 16  ;;  %v7226_v13 = vshll.u32 %v6963_v63, 16 }
 0x4cb   : > { %v7872_v21 = vor.u32 %v7871_v55, %v7868_v42  ;;  %v6046_v36 = vld [vmem:[#allocation2 + $0x90] sm:$0xf]  ;;  %v6293_v51 = vrot.slane %v6291_v38, 4  ;;  %v7026_v17 = vsel %vm1404_vm9, %v16318_v12, %v16875_v35  ;;  %v7028_v42 = vsel %vm1404_vm9, %v16318_v12, %v16884_v46 }
 0x4cc   : > { %v12009_v34 = vpack.c.bf16 %v5849_v8, %v5849_v8  ;;  %6514 = vrot.lane.b32.xlu1 %v16600_v43, %s13283_s9  ;;  %v6296_v56 = vrot.slane %v6294_v15, 5  ;;  %v7216_v8 = vshrl.u32 %v6961_v58, 16  ;;  %v7105_v55 = vsel %vm1485_vm10, %v7026_v17, %v16896_v37 }
 0x4cd   : > { %6731 = vrot.lane.b32.xlu0 %v16939_v53, %s13283_s9  ;;  %v7873_v10 = vsel %vm1807_vm8, %v7864_v59, %v7872_v21  ;;  %v7219_v59 = vshll.u32 %v6961_v58, 16  ;;  %v7107_v6 = vsel %vm1485_vm10, %v7028_v42, %v6708_v39  ;;  %v16991_v21 = vcombine.low %v6046_v36, %v16623_v7 }
 0x4ce   : > { %6009 = vst.msk [vmem:[#allocation2 + $0x108] sm:$0xf] %vm280_vm0, %v12009_v34  ;;  %12949 = vmatmul.mubr.msk.bf16.gmra.mxu0 %vm1404_vm9, %v7873_v10  ;;  %v16973_v22 = vpop.permute.xlu1 %6709  ;;  %v16975_v16 = vpop.permute.xlu0 %6492  ;;  %v6631_v63 = vrot.slane %v13192_v20, 5  ;;  %v7225_v38 = vrot.slane %v7223_v11, 3  ;;  %v7228_v15 = vrot.slane %v7226_v13, 4  ;;  %v7218_v39 = vrot.slane %v7216_v8, 3 }
 0x4cf   : > { %v7221_v20 = vrot.slane %v7219_v59, 4  ;;  %v17003_v11 = vor.u32 %v6296_v56, %v6293_v51  ;;  %v6823_v59 = vsel %vm1404_vm9, %v16277_v0, %v16921_v2  ;;  %v17035_v0 = vcombine.low %v16625_v44, %v16625_v44 }
 0x4d0   : > { %6663 = vrot.lane.b32.xlu1 %v16611_v27, %s13284_s10 }
 0x4d1   : > { %6661 = vrot.lane.b32.xlu0 %v16600_v43, %s13284_s10  ;;  %v16997_v46 = vld [vmem:[#allocation2 + $0x104] sm:$0xf]  ;;  %v7222_v56 = vor.u32 %v7221_v20, %v7218_v39 }
 0x4d2   : > { %v6779_v34 = vpop.permute.xlu1 %6778  ;;  %v16995_v12 = vpop.permute.xlu0 %6562 }
 0x4d3   : > { %v7169_v35 = vsel %vm1550_vm11, %v7105_v55, %v6779_v34  ;;  %v7170_v10 = vsel %vm1550_vm11, %v7107_v6, %v6779_v34 }
 0x4d4   : > { %v7231_v43 = vshrl.u32 %v7169_v35, 16  ;;  %v7234_v58 = vshll.u32 %v7169_v35, 16  ;;  %v7238_v37 = vshrl.u32 %v7170_v10, 16  ;;  %v7241_v17 = vshll.u32 %v7170_v10, 16  ;;  %6733 = vrot.lane.b32.xlu1 %v16991_v21, %s13283_s9 }
 0x4d5   : > { %v6076_v7 = vld [vmem:[#allocation2 + $0x108] sm:$0xf]  ;;  %6516 = vrot.lane.b32.xlu0 %v16611_v27, %s13283_s9  ;;  %v7229_v35 = vor.u32 %v7228_v15, %v7225_v38 }
 0x4d6   : > { %v17006_v13 = vcombine.low %v16997_v46, %v6076_v7  ;;  %v7233_v36 = vrot.slane %v7231_v43, 3  ;;  %v7236_v42 = vrot.slane %v7234_v58, 4  ;;  %v7240_v55 = vrot.slane %v7238_v37, 3  ;;  %v17008_v34 = vpop.permute.xlu1 %6564  ;;  %v17010_v10 = vpop.permute.xlu0 %6358 }
 0x4d7   : > { %v7243_v6 = vrot.slane %v7241_v17, 4  ;;  %v6825_v43 = vsel %vm1404_vm9, %v16281_v48, %v16921_v2  ;;  %v6901_v48 = vsel %vm1485_vm10, %v6823_v59, %v16868_v61  ;;  %v6050_v59 = vld [vmem:[#allocation2 + $0xa0] sm:$0xf] }
 0x4d8   : > { %v17013_v8 = vrot.slane %v17006_v13, 5  ;;  %6790 = vrot.lane.b32.xlu1 %v17003_v11, %s13285_s11  ;;  %v7237_v27 = vor.u32 %v7236_v42, %v7233_v36  ;;  %v6903_v2 = vsel %vm1485_vm10, %v6825_v43, %v16889_v19  ;;  %v6302_v43 = vshll.u32 %v16633_v49, 16 }
 0x4d9   : > { %v7244_v51 = vor.u32 %v7243_v6, %v7240_v55  ;;  %6586 = vrot.lane.b32.xlu0 %v16991_v21, %s13285_s11 }
 0x4da   : > { %v17024_v38 = vsel %vm1021_vm7, %v17013_v8, %v6631_v63  ;;  %v7905_v15 = vshrl.u32 %v17013_v8, 16  ;;  %v17030_v58 = vpop.permute.xlu1 %6494  ;;  %v7908_v17 = vshll.u32 %v17013_v8, 16  ;;  %v6712_v7 = vpop.permute.xlu0 %6711  ;;  %v7230_v63 = vsel %vm1807_vm8, %v7222_v56, %v7229_v35 }
 0x4db   : > { %v7245_v37 = vsel %vm1807_vm8, %v7237_v27, %v7244_v51  ;;  %v7913_v20 = vshrl.u32 %v17024_v38, 16  ;;  %v7916_v36 = vshll.u32 %v17024_v38, 16  ;;  %v6965_v27 = vsel %vm1550_vm11, %v6901_v48, %v16901_v40 }
 0x4dc   : > { %8233 = vmatprep.mubr.bf16.mxu1 %v7245_v37  ;;  %v7907_v39 = vrot.slane %v7905_v15, 3  ;;  %6588 = vrot.lane.b32.xlu1 %v17035_v0, %s13285_s11  ;;  %v7910_v44 = vrot.slane %v7908_v17, 4  ;;  %v6967_v56 = vsel %vm1550_vm11, %v6903_v2, %v16913_v23  ;;  %v6299_v15 = vshrl.u32 %v16633_v49, 16 }
 0x4dd   : > { %8234 = vmatmul.mubr.bf16.vlgmr.msra.gmra.mxu1 %v7230_v63  ;;  %6370 = vrot.lane.b32.xlu0 %v17003_v11, %s13284_s10  ;;  %v7915_v42 = vrot.slane %v7913_v20, 3  ;;  %v7918_v55 = vrot.slane %v7916_v36, 4  ;;  %v7263_v37 = vshrl.u32 %v6965_v27, 16  ;;  %v7266_v17 = vshll.u32 %v6965_v27, 16 }
 0x4de   : > { %v17049_v6 = vpop.permute.xlu1 %6643  ;;  %v7911_v35 = vor.u32 %v7910_v44, %v7907_v39  ;;  %v17053_v61 = vpop.permute.xlu0 %6641  ;;  %v7270_v63 = vshrl.u32 %v6967_v56, 16  ;;  %v7273_v39 = vshll.u32 %v6967_v56, 16  ;;  %v17072_v20 = vcombine.low %v6050_v59, %v16665_v30 }
 0x4df   : > { %v7919_v51 = vor.u32 %v7918_v55, %v7915_v42  ;;  %v7033_v49 = vsel %vm1404_vm9, %v16418_v62, %v16954_v25  ;;  %v7031_v36 = vsel %vm1404_vm9, %v16418_v62, %v16958_v33  ;;  %v6301_v48 = vrot.slane %v6299_v15, 4 }
 0x4e0   : > { %6518 = vrot.lane.b32.xlu1 %v16640_v60, %s13283_s9  ;;  %v6304_v44 = vrot.slane %v6302_v43, 5  ;;  %v7109_v2 = vsel %vm1485_vm10, %v7031_v36, %v16973_v22  ;;  %v7111_v42 = vsel %vm1485_vm10, %v7033_v49, %v6712_v7  ;;  %v7265_v55 = vrot.slane %v7263_v37, 3 }
 0x4e1   : > { %6735 = vrot.lane.b32.xlu0 %v17035_v0, %s13283_s9  ;;  %v7920_v19 = vsel %vm1807_vm8, %v7911_v35, %v7919_v51  ;;  %v7268_v35 = vrot.slane %v7266_v17, 4  ;;  %v7272_v62 = vrot.slane %v7270_v63, 3  ;;  %v7275_v33 = vrot.slane %v7273_v39, 4 }
 0x4e2   : > { %12952 = vmatprep.mubr.msk.bf16.mxu0 %vm1404_vm9, %v7920_v19  ;;  %v17065_v40 = vpop.permute.xlu1 %6713  ;;  %v17067_v23 = vpop.permute.xlu0 %6496  ;;  %v17093_v22 = vor.u32 %v6304_v44, %v6301_v48  ;;  %v6830_v48 = vsel %vm1404_vm9, %v16328_v3, %v17010_v10 }
 0x4e3   : > { %v7269_v39 = vor.u32 %v7268_v35, %v7265_v55  ;;  %v7276_v49 = vor.u32 %v7275_v33, %v7272_v62  ;;  %v6907_v3 = vsel %vm1485_vm10, %v6830_v48, %v16975_v16  ;;  %v6054_v16 = vld [vmem:[#allocation2 + $0xb0] sm:$0xf]  ;;  %v6310_v62 = vshll.u32 %v16675_v31, 16 }
 0x4e4   : > { %6667 = vrot.lane.b32.xlu1 %v16652_v47, %s13284_s10 }
 0x4e5   : > { %6665 = vrot.lane.b32.xlu0 %v16640_v60, %s13284_s10  ;;  %v7277_v35 = vsel %vm1807_vm8, %v7269_v39, %v7276_v49 }
 0x4e6   : > { %v6781_v30 = vpop.permute.xlu1 %6780  ;;  %v17087_v51 = vpop.permute.xlu0 %6566 }
 0x4e7   : > { %v7172_v27 = vsel %vm1550_vm11, %v7109_v2, %v6781_v30  ;;  %v7173_v25 = vsel %vm1550_vm11, %v7111_v42, %v6781_v30  ;;  %v17114_v30 = vcombine.low %v16669_v24, %v16669_v24 }
 0x4e8   : > { %v7278_v56 = vshrl.u32 %v7172_v27, 16  ;;  %v7281_v60 = vshll.u32 %v7172_v27, 16  ;;  %v7285_v19 = vshrl.u32 %v7173_v25, 16  ;;  %v7288_v59 = vshll.u32 %v7173_v25, 16  ;;  %6737 = vrot.lane.b32.xlu1 %v17072_v20, %s13283_s9 }
 0x4e9   : > { %6520 = vrot.lane.b32.xlu0 %v16652_v47, %s13283_s9  ;;  %v6828_v47 = vsel %vm1404_vm9, %v16310_v14, %v17010_v10  ;;  %v6307_v25 = vshrl.u32 %v16675_v31, 16  ;;  %v7036_v31 = vsel %vm1404_vm9, %v16523_v32, %v17053_v61 }
 0x4ea   : > { %v7280_v7 = vrot.slane %v7278_v56, 3  ;;  %v7283_v15 = vrot.slane %v7281_v60, 4  ;;  %v7287_v43 = vrot.slane %v7285_v19, 3  ;;  %v7290_v37 = vrot.slane %v7288_v59, 4  ;;  %v17095_v17 = vpop.permute.xlu1 %6568  ;;  %v17097_v63 = vpop.permute.xlu0 %6360 }
 0x4eb   : > { %v6905_v14 = vsel %vm1485_vm10, %v6828_v47, %v16935_v41  ;;  %v6971_v41 = vsel %vm1550_vm11, %v6907_v3, %v17008_v34  ;;  %v17146_v34 = vcombine.low %v6054_v16, %v16706_v4 }
 0x4ec   : > { %6792 = vrot.lane.b32.xlu1 %v17093_v22, %s13285_s11  ;;  %v7284_v36 = vor.u32 %v7283_v15, %v7280_v7  ;;  %v7291_v2 = vor.u32 %v7290_v37, %v7287_v43  ;;  %v6969_v24 = vsel %vm1550_vm11, %v6905_v14, %v16995_v12  ;;  %v7317_v19 = vshrl.u32 %v6971_v41, 16 }
 0x4ed   : > { %6590 = vrot.lane.b32.xlu0 %v17072_v20, %s13285_s11  ;;  %v7310_v56 = vshrl.u32 %v6969_v24, 16  ;;  %v7313_v12 = vshll.u32 %v6969_v24, 16  ;;  %v7320_v59 = vshll.u32 %v6971_v41, 16  ;;  %v7038_v7 = vsel %vm1404_vm9, %v16523_v32, %v17049_v6 }
 0x4ee   : > { %v17109_v44 = vpop.permute.xlu1 %6498  ;;  %v7292_v42 = vsel %vm1807_vm8, %v7284_v36, %v7291_v2  ;;  %v6716_v55 = vpop.permute.xlu0 %6715  ;;  %v6309_v15 = vrot.slane %v6307_v25, 4  ;;  %v6312_v43 = vrot.slane %v6310_v62, 5  ;;  %v7113_v37 = vsel %vm1485_vm10, %v7036_v31, %v17065_v40 }
 0x4ef   : > { %8241 = vmatprep.mubr.bf16.mxu1 %v7292_v42  ;;  %v7115_v39 = vsel %vm1485_vm10, %v7038_v7, %v6716_v55  ;;  %v7312_v49 = vrot.slane %v7310_v56, 3  ;;  %v7315_v36 = vrot.slane %v7313_v12, 4  ;;  %v7319_v32 = vrot.slane %v7317_v19, 3 }
 0x4f0   : > { %6592 = vrot.lane.b32.xlu1 %v17114_v30, %s13285_s11  ;;  %8242 = vmatmul.mubr.bf16.gmra.mxu1 %v7277_v35  ;;  %v7322_v61 = vrot.slane %v7320_v59, 4  ;;  %v17167_v40 = vor.u32 %v6312_v43, %v6309_v15  ;;  %v6835_v19 = vsel %vm1404_vm9, %v16438_v29, %v17097_v63  ;;  %v17188_v31 = vcombine.low %v16708_v18, %v16708_v18 }
 0x4f1   : > { %6372 = vrot.lane.b32.xlu0 %v17093_v22, %s13284_s10  ;;  %v7316_v25 = vor.u32 %v7315_v36, %v7312_v49  ;;  %v6911_v29 = vsel %vm1485_vm10, %v6835_v19, %v17067_v23  ;;  %v6058_v23 = vld [vmem:[#allocation2 + $0xc0] sm:$0xf] }
 0x4f2   : > { %v17125_v10 = vpop.permute.xlu1 %6647  ;;  %v17129_v27 = vpop.permute.xlu0 %6645  ;;  %v7323_v62 = vor.u32 %v7322_v61, %v7319_v32 }
 0x4f4   : > { %6522 = vrot.lane.b32.xlu1 %v16684_v45, %s13283_s9  ;;  %v7324_v43 = vsel %vm1807_vm8, %v7316_v25, %v7323_v62 }
 0x4f5   : > { %6739 = vrot.lane.b32.xlu0 %v17114_v30, %s13283_s9 }
 0x4f6   : > { %v17139_v33 = vpop.permute.xlu1 %6717  ;;  %v17141_v60 = vpop.permute.xlu0 %6500 }
 0x4f8   : > { %6671 = vrot.lane.b32.xlu1 %v16694_v1, %s13284_s10 }
 0x4f9   : > { %6669 = vrot.lane.b32.xlu0 %v16684_v45, %s13284_s10 }
 0x4fa   : > { %v6783_v4 = vpop.permute.xlu1 %6782  ;;  %v17161_v47 = vpop.permute.xlu0 %6570 }
 0x4fb   : > { %v7175_v2 = vsel %vm1550_vm11, %v7113_v37, %v6783_v4  ;;  %v7176_v6 = vsel %vm1550_vm11, %v7115_v39, %v6783_v4  ;;  %v19423_v39 = vld [vmem:[#allocation29_spill] sm:$0xff] }
 0x4fc   : > { %v7325_v48 = vshrl.u32 %v7175_v2, 16  ;;  %v7328_v45 = vshll.u32 %v7175_v2, 16  ;;  %v7332_v42 = vshrl.u32 %v7176_v6, 16  ;;  %v7335_v35 = vshll.u32 %v7176_v6, 16  ;;  %6741 = vrot.lane.b32.xlu1 %v17146_v34, %s13283_s9 }
 0x4fd   : > { %6524 = vrot.lane.b32.xlu0 %v16694_v1, %s13283_s9  ;;  %v6833_v1 = vsel %vm1404_vm9, %v16382_v52, %v17097_v63  ;;  %v6315_v4 = vshrl.u32 %v19423_v39, 16  ;;  %v6318_v49 = vshll.u32 %v19423_v39, 16 }
 0x4fe   : > { %v7327_v55 = vrot.slane %v7325_v48, 3  ;;  %v7330_v14 = vrot.slane %v7328_v45, 4  ;;  %v7334_v3 = vrot.slane %v7332_v42, 3  ;;  %v7337_v24 = vrot.slane %v7335_v35, 4  ;;  %v17169_v41 = vpop.permute.xlu1 %6572  ;;  %v17171_v16 = vpop.permute.xlu0 %6362  ;;  %v19425_v48 = vld [vmem:[#allocation30_spill] sm:$0xff]  ;;  %v19426_v42 = vld [vmem:[#allocation63_spill] sm:$0xff] }
 0x4ff   : > { %v6909_v52 = vsel %vm1485_vm10, %v6833_v1, %v17030_v58  ;;  %v6975_v58 = vsel %vm1550_vm11, %v6911_v29, %v17095_v17  ;;  %v19424_v17 = vld [vmem:[#allocation28_spill] sm:$0xff]  ;;  %v17220_v45 = vcombine.low %v6058_v23, %v19425_v48  ;;  %v7043_v35 = vsel %vm1404_vm9, %v19426_v42, %v17125_v10  ;;  %v19428_v48 = vld [vmem:[#allocation9_spill] sm:$0xff] }
 0x500   : > { %6794 = vrot.lane.b32.xlu1 %v17167_v40, %s13285_s11  ;;  %v7331_v56 = vor.u32 %v7330_v14, %v7327_v55  ;;  %v7338_v12 = vor.u32 %v7337_v24, %v7334_v3  ;;  %v6973_v18 = vsel %vm1550_vm11, %v6909_v52, %v17087_v51  ;;  %v7364_v32 = vshrl.u32 %v6975_v58, 16 }
 0x501   : > { %6594 = vrot.lane.b32.xlu0 %v17146_v34, %s13285_s11  ;;  %v7357_v2 = vshrl.u32 %v6973_v18, 16  ;;  %v7360_v51 = vshll.u32 %v6973_v18, 16  ;;  %v7367_v61 = vshll.u32 %v6975_v58, 16  ;;  %v7041_v55 = vsel %vm1404_vm9, %v19426_v42, %v17129_v27 }
 0x502   : > { %v17183_v59 = vpop.permute.xlu1 %6502  ;;  %v7339_v7 = vsel %vm1807_vm8, %v7331_v56, %v7338_v12  ;;  %v6720_v15 = vpop.permute.xlu0 %6719  ;;  %v6317_v14 = vrot.slane %v6315_v4, 4  ;;  %v6320_v3 = vrot.slane %v6318_v49, 5  ;;  %v7117_v24 = vsel %vm1485_vm10, %v7041_v55, %v17139_v33 }
 0x503   : > { %8249 = vmatprep.mubr.bf16.mxu1 %v7339_v7  ;;  %v7119_v25 = vsel %vm1485_vm10, %v7043_v35, %v6720_v15  ;;  %v7359_v56 = vrot.slane %v7357_v2, 3  ;;  %v7362_v12 = vrot.slane %v7360_v51, 4  ;;  %v7366_v27 = vrot.slane %v7364_v32, 3 }
 0x504   : > { %6596 = vrot.lane.b32.xlu1 %v17188_v31, %s13285_s11  ;;  %8250 = vmatmul.mubr.bf16.gmra.mxu1 %v7324_v43  ;;  %v7369_v7 = vrot.slane %v7367_v61, 4  ;;  %v17241_v33 = vor.u32 %v6320_v3, %v6317_v14  ;;  %v19427_v61 = vld [vmem:[#allocation68_spill] sm:$0xff]  ;;  %v6840_v42 = vsel %vm1404_vm9, %v19428_v48, %v17171_v16  ;;  %v19429_v14 = vld [vmem:[#allocation34_spill] sm:$0xff] }
 0x505   : > { %6374 = vrot.lane.b32.xlu0 %v17167_v40, %s13284_s10  ;;  %v7363_v49 = vor.u32 %v7362_v12, %v7359_v56  ;;  %v17262_v3 = vcombine.low %v19429_v14, %v19429_v14 }
 0x506   : > { %v17199_v63 = vpop.permute.xlu1 %6651  ;;  %v17203_v37 = vpop.permute.xlu0 %6649  ;;  %v7370_v2 = vor.u32 %v7369_v7, %v7366_v27  ;;  %v19432_v27 = vld [vmem:[#allocation33_spill] sm:$0xff] }
 0x507   : > { %19430 = vst [vmem:[#allocation52_spill] sm:$0xff] %v17262_v3  ;;  %v6323_v7 = vshrl.u32 %v19432_v27, 16 }
 0x508   : > { %6526 = vrot.lane.b32.xlu1 %v16729_v9, %s13283_s9 }
 0x509   : > { %6743 = vrot.lane.b32.xlu0 %v17188_v31, %s13283_s9 }
 0x50a   : > { %v17213_v36 = vpop.permute.xlu1 %6721 }
 0x50b   : > { %v17215_v6 = vpop.permute.xlu0 %6504 }
 0x50c   : > { %6675 = vrot.lane.b32.xlu1 %v19424_v17, %s13284_s10 }
 0x50d   : > { %6673 = vrot.lane.b32.xlu0 %v16729_v9, %s13284_s10 }
 0x50e   : > { %v6785_v62 = vpop.permute.xlu1 %6784 }
 0x50f   : > { %v7178_v1 = vsel %vm1550_vm11, %v7117_v24, %v6785_v62  ;;  %v7179_v10 = vsel %vm1550_vm11, %v7119_v25, %v6785_v62  ;;  %v17235_v19 = vpop.permute.xlu0 %6574  ;;  %v7371_v25 = vsel %vm1807_vm8, %v7363_v49, %v7370_v2  ;;  %v19436_v49 = vld [vmem:[#allocation14_spill] sm:$0xff] }
 0x510   : > { %v7372_v43 = vshrl.u32 %v7178_v1, 16  ;;  %v7375_v9 = vshll.u32 %v7178_v1, 16  ;;  %v7379_v52 = vshrl.u32 %v7179_v10, 16  ;;  %v7382_v29 = vshll.u32 %v7179_v10, 16  ;;  %6745 = vrot.lane.b32.xlu1 %v17220_v45, %s13283_s9  ;;  %v19431_v10 = vld [vmem:[#allocation37_spill] sm:$0xff] }
 0x511   : > { %6528 = vrot.lane.b32.xlu0 %v19424_v17, %s13283_s9  ;;  %v6838_v17 = vsel %vm1404_vm9, %v19427_v61, %v17171_v16  ;;  %v6915_v16 = vsel %vm1485_vm10, %v6840_v42, %v17141_v60  ;;  %v6062_v60 = vld [vmem:[#allocation2 + $0xd0] sm:$0xf]  ;;  %v7048_v2 = vsel %vm1404_vm9, %v19436_v49, %v17199_v63 }
 0x512   : > { %v7374_v15 = vrot.slane %v7372_v43, 3  ;;  %v7377_v18 = vrot.slane %v7375_v9, 4  ;;  %v7381_v58 = vrot.slane %v7379_v52, 3  ;;  %v7384_v23 = vrot.slane %v7382_v29, 4  ;;  %v17243_v39 = vpop.permute.xlu1 %6576 }
 0x513   : > { %v17245_v4 = vpop.permute.xlu0 %6364  ;;  %v6913_v62 = vsel %vm1485_vm10, %v6838_v17, %v17109_v44  ;;  %v6979_v44 = vsel %vm1550_vm11, %v6915_v16, %v17169_v41  ;;  %v6326_v43 = vshll.u32 %v19432_v27, 16  ;;  %v19433_v41 = vld [vmem:[#allocation46_spill] sm:$0xff] }
 0x514   : > { %6796 = vrot.lane.b32.xlu1 %v17241_v33, %s13285_s11  ;;  %v7378_v51 = vor.u32 %v7377_v18, %v7374_v15  ;;  %v7385_v32 = vor.u32 %v7384_v23, %v7381_v58  ;;  %v6977_v12 = vsel %vm1550_vm11, %v6913_v62, %v17161_v47  ;;  %v7411_v15 = vshrl.u32 %v6979_v44, 16  ;;  %v19434_v58 = vld [vmem:[#allocation49_spill] sm:$0xff] }
 0x515   : > { %6598 = vrot.lane.b32.xlu0 %v17220_v45, %s13285_s11  ;;  %v7404_v52 = vshrl.u32 %v6977_v12, 16  ;;  %v7407_v47 = vshll.u32 %v6977_v12, 16  ;;  %v7414_v18 = vshll.u32 %v6979_v44, 16  ;;  %v17294_v23 = vcombine.low %v6062_v60, %v19434_v58  ;;  %v19437_v58 = vld [vmem:[#allocation10_spill] sm:$0xff] }
 0x516   : > { %v17257_v35 = vpop.permute.xlu1 %6506  ;;  %v7386_v55 = vsel %vm1807_vm8, %v7378_v51, %v7385_v32  ;;  %v7046_v51 = vsel %vm1404_vm9, %v19436_v49, %v17203_v37  ;;  %v6325_v32 = vrot.slane %v6323_v7, 4  ;;  %v6328_v61 = vrot.slane %v6326_v43, 5 }
 0x517   : > { %v6724_v24 = vpop.permute.xlu0 %6723  ;;  %8257 = vmatprep.mubr.bf16.mxu1 %v7386_v55  ;;  %19435 = vst [vmem:[#allocation55_spill] sm:$0xff] %v17294_v23  ;;  %v7121_v17 = vsel %vm1485_vm10, %v7046_v51, %v17213_v36  ;;  %v7406_v55 = vrot.slane %v7404_v52, 3  ;;  %v7409_v14 = vrot.slane %v7407_v47, 4  ;;  %v7413_v37 = vrot.slane %v7411_v15, 3 }
 0x518   : > { %6600 = vrot.lane.b32.xlu1 %v17262_v3, %s13285_s11  ;;  %8258 = vmatmul.mubr.bf16.gmra.mxu1 %v7371_v25  ;;  %v7123_v48 = vsel %vm1485_vm10, %v7048_v2, %v6724_v24  ;;  %v7416_v16 = vrot.slane %v7414_v18, 4  ;;  %v17315_v36 = vor.u32 %v6328_v61, %v6325_v32  ;;  %v6813_v49 = vrot.slane %v19437_v58, 5  ;;  %v19438_v2 = vld [vmem:[#allocation69_spill] sm:$0xff]  ;;  %v19439_v61 = vld [vmem:[#allocation26_spill] sm:$0xff] }
 0x519   : > { %6376 = vrot.lane.b32.xlu0 %v17241_v33, %s13284_s10  ;;  %v7410_v15 = vor.u32 %v7409_v14, %v7406_v55  ;;  %v6843_v51 = vsel %vm1404_vm9, %v19438_v2, %v17245_v4  ;;  %v19440_v55 = vld [vmem:[#allocation15_spill] sm:$0xff] }
 0x51a   : > { %v17273_v56 = vpop.permute.xlu1 %6655  ;;  %v7417_v18 = vor.u32 %v7416_v16, %v7413_v37  ;;  %v17337_v14 = vcombine.low %v19440_v55, %v19440_v55  ;;  %v13197_v16 = vld [vmem:[#allocation2 + $0x11c] ss:$0 sps:$4 sm:$0xff]   ;;  %v6066_v55 = vld [vmem:[#allocation2 + $0xe0] sm:$0xf] }
 0x51b   : > { %v17277_v1 = vpop.permute.xlu0 %6653 }
 0x51c   : > { %6530 = vrot.lane.b32.xlu1 %v19431_v10, %s13283_s9  ;;  %19441 = vst [vmem:[#allocation5_spill] sm:$0xff] %v17337_v14  ;;  %v7418_v37 = vsel %vm1807_vm8, %v7410_v15, %v7417_v18 }
 0x51d   : > { %6747 = vrot.lane.b32.xlu0 %v17262_v3, %s13283_s9 }
 0x51e   : > { %v17287_v9 = vpop.permute.xlu1 %6725 }
 0x51f   : > { %v17289_v29 = vpop.permute.xlu0 %6508 }
 0x520   : > { %6679 = vrot.lane.b32.xlu1 %v19433_v41, %s13284_s10 }
 0x521   : > { %6677 = vrot.lane.b32.xlu0 %v19431_v10, %s13284_s10 }
 0x522   : > { %v6787_v42 = vpop.permute.xlu1 %6786 }
 0x523   : > { %v7181_v25 = vsel %vm1550_vm11, %v7121_v17, %v6787_v42  ;;  %v7182_v63 = vsel %vm1550_vm11, %v7123_v48, %v6787_v42  ;;  %v17309_v62 = vpop.permute.xlu0 %6578  ;;  %v6845_v17 = vsel %vm1404_vm9, %v19439_v61, %v17245_v4 }
 0x524   : > { %v7419_v12 = vshrl.u32 %v7181_v25, 16  ;;  %v7422_v44 = vshll.u32 %v7181_v25, 16  ;;  %v7426_v10 = vshrl.u32 %v7182_v63, 16  ;;  %v7429_v60 = vshll.u32 %v7182_v63, 16  ;;  %6749 = vrot.lane.b32.xlu1 %v17294_v23, %s13283_s9 }
 0x525   : > { %6532 = vrot.lane.b32.xlu0 %v19433_v41, %s13283_s9  ;;  %v6917_v25 = vsel %vm1485_vm10, %v6843_v51, %v17183_v59  ;;  %v6919_v4 = vsel %vm1485_vm10, %v6845_v17, %v17215_v6  ;;  %v8574_v59 = vld [vmem:[%s19010_s3 + $0x60] sm:$0xff] }
 0x526   : > { %v7421_v24 = vrot.slane %v7419_v12, 3  ;;  %v7424_v27 = vrot.slane %v7422_v44, 4  ;;  %v7428_v7 = vrot.slane %v7426_v10, 3  ;;  %v7431_v43 = vrot.slane %v7429_v60, 4  ;;  %v17317_v52 = vpop.permute.xlu1 %6580  ;;  %v8573_v10 = vld [vmem:[%s19010_s3 + $0x40] sm:$0xff] }
 0x527   : > { %v17319_v47 = vpop.permute.xlu0 %6366  ;;  %v7952_v12 = vshrl.u32 %v6813_v49, 16  ;;  %v7955_v44 = vshll.u32 %v6813_v49, 16  ;;  %v6981_v6 = vsel %vm1550_vm11, %v6917_v25, %v17235_v19  ;;  %v6983_v15 = vsel %vm1550_vm11, %v6919_v4, %v17243_v39 }
 0x528   : > { %6798 = vrot.lane.b32.xlu1 %v17315_v36, %s13285_s11  ;;  %v7425_v41 = vor.u32 %v7424_v27, %v7421_v24  ;;  %v7432_v32 = vor.u32 %v7431_v43, %v7428_v7  ;;  %v6814_v24 = vrot.slane %v13197_v16, 5  ;;  %v11767_v27 = vcombine.low %v8573_v10, %v8574_v59  ;;  %v8571_v7 = vld [vmem:[%s19010_s3] sm:$0xff] }
 0x529   : > { %6602 = vrot.lane.b32.xlu0 %v17294_v23, %s13285_s11  ;;  %v8572_v43 = vld [vmem:[%s19010_s3 + $0x20] sm:$0xff]  ;;  %v7954_v2 = vrot.slane %v7952_v12, 3  ;;  %v7957_v51 = vrot.slane %v7955_v44, 4  ;;  %v11768_v19 = vcombine.high %v8573_v10, %v8574_v59  ;;  %v7451_v25 = vshrl.u32 %v6981_v6, 16 }
 0x52a   : > { %v17332_v48 = vpop.permute.xlu1 %6510  ;;  %v7433_v42 = vsel %vm1807_vm8, %v7425_v41, %v7432_v32  ;;  %v19442_v41 = vld [vmem:[#allocation13_spill] sm:$0xff]  ;;  %v11766_v4 = vcombine.high %v8571_v7, %v8572_v43  ;;  %v7454_v12 = vshll.u32 %v6981_v6, 16  ;;  %v7458_v44 = vshrl.u32 %v6983_v15, 16 }
 0x52b   : > { %v6728_v63 = vpop.permute.xlu0 %6727  ;;  %8265 = vmatprep.mubr.bf16.mxu1 %v7433_v42  ;;  %v19443_v32 = vld [vmem:[#allocation45_spill] sm:$0xff]  ;;  %v6815_v42 = vsel %vm1021_vm7, %v6813_v49, %v6814_v24  ;;  %8667 = vmatprep.subr.bf16.mxu0 %v11768_v19  ;;  %v11765_v10 = vcombine.low %v8571_v7, %v8572_v43  ;;  %v7958_v23 = vor.u32 %v7957_v51, %v7954_v2  ;;  %v7453_v7 = vrot.slane %v7451_v25, 3 }
 0x52c   : > { %6604 = vrot.lane.b32.xlu1 %v17337_v14, %s13285_s11  ;;  %8266 = vmatmul.mubr.bf16.gmra.mxu1 %v7418_v37  ;;  %v6331_v61 = vshrl.u32 %v19443_v32, 16  ;;  %v6334_v17 = vshll.u32 %v19443_v32, 16  ;;  %v7960_v39 = vshrl.u32 %v6815_v42, 16  ;;  %v7963_v37 = vshll.u32 %v6815_v42, 16 }
 0x52d   : > { %6378 = vrot.lane.b32.xlu0 %v17315_v36, %s13284_s10  ;;  %8668 = vmatpush1.bf16.msra.mxu0 %v11767_v27  ;;  %v7461_v32 = vshll.u32 %v6983_v15, 16  ;;  %v17382_v42 = vcombine.low %v6066_v55, %v16841_v28  ;;  %v7053_v6 = vsel %vm1404_vm9, %v16839_v5, %v17273_v56  ;;  %v7051_v27 = vsel %vm1404_vm9, %v16839_v5, %v17277_v1 }
 0x52e   : > { %v17356_v60 = vpop.permute.xlu1 %6659  ;;  %v7962_v49 = vrot.slane %v7960_v39, 3  ;;  %v7965_v24 = vrot.slane %v7963_v37, 4  ;;  %8669 = vmatprep.subr.bf16.mxu0 %v11766_v4  ;;  %v6333_v19 = vrot.slane %v6331_v61, 4  ;;  %v6336_v3 = vrot.slane %v6334_v17, 5 }
 0x52f   : > { %v17366_v18 = vpop.permute.xlu0 %6657  ;;  %v7125_v15 = vsel %vm1485_vm10, %v7051_v27, %v17287_v9  ;;  %v7127_v28 = vsel %vm1485_vm10, %v7053_v6, %v6728_v63  ;;  %v7456_v51 = vrot.slane %v7454_v12, 4  ;;  %v7460_v61 = vrot.slane %v7458_v44, 3 }
 0x530   : > { %6534 = vrot.lane.b32.xlu1 %v19442_v41, %s13283_s9  ;;  %v7966_v43 = vor.u32 %v7965_v24, %v7962_v49  ;;  %v7463_v5 = vrot.slane %v7461_v32, 4  ;;  %v17405_v9 = vor.u32 %v6336_v3, %v6333_v19  ;;  %v19445_v63 = vmov 0   ;;  %v19446_v3 = vld [vmem:[#allocation31_spill] sm:$0xff]  ;;  %v19447_v19 = vld [vmem:[#allocation65_spill] sm:$0xff] }
 0x531   : > { %6751 = vrot.lane.b32.xlu0 %v17337_v14, %s13283_s9  ;;  %v19444_v14 = vld [vmem:[#allocation41_spill] sm:$0xff]  ;;  %8670 = vmatpush1.bf16.msra.mxu0 %v11765_v10  ;;  %v7457_v49 = vor.u32 %v7456_v51, %v7453_v7 }
 0x532   : > { %v17375_v16 = vpop.permute.xlu1 %6729  ;;  %v7967_v1 = vsel %vm1807_vm8, %v7958_v23, %v7966_v43  ;;  %v7464_v24 = vor.u32 %v7463_v5, %v7460_v61  ;;  %v6850_v43 = vsel %vm1404_vm9, %v19447_v19, %v17319_v47 }
 0x533   : > { %v17377_v59 = vpop.permute.xlu0 %6512  ;;  %12953 = vmatmul.mubr.msk.bf16.gmra.mxu0 %vm1404_vm9, %v7967_v1 }
 0x534   : > { %6683 = vrot.lane.b32.xlu1 %v19444_v14, %s13284_s10  ;;  %8687 = vmatprep.mubr.bf16.mxu0 %v19445_v63  ;;  %v7465_v61 = vsel %vm1807_vm8, %v7457_v49, %v7464_v24  ;;  %v7058_v49 = vsel %vm1404_vm9, %v16915_v50, %v17356_v60  ;;  %v19449_v24 = vld [vmem:[#allocation39_spill] sm:$0xff] }
 0x535   : > { %6681 = vrot.lane.b32.xlu0 %v19442_v41, %s13284_s10 }
 0x536   : > { %v6789_v2 = vpop.permute.xlu1 %6788 }
 0x537   : > { %v7184_v56 = vsel %vm1550_vm11, %v7125_v15, %v6789_v2  ;;  %v7185_v17 = vsel %vm1550_vm11, %v7127_v28, %v6789_v2  ;;  %v17397_v55 = vpop.permute.xlu0 %6582  ;;  %v13270_v28 = vld [vmem:[#allocation2 + $0xe8] sm:$0xf] }
 0x538   : > { %v7466_v41 = vshrl.u32 %v7184_v56, 16  ;;  %v7469_v25 = vshll.u32 %v7184_v56, 16  ;;  %v7473_v39 = vshrl.u32 %v7185_v17, 16  ;;  %v7476_v37 = vshll.u32 %v7185_v17, 16  ;;  %6753 = vrot.lane.b32.xlu1 %v17382_v42, %s13283_s9 }
 0x539   : > { %6536 = vrot.lane.b32.xlu0 %v19444_v14, %s13283_s9  ;;  %v6848_v14 = vsel %vm1404_vm9, %v19446_v3, %v17319_v47  ;;  %v17425_v2 = vcombine.low %v13270_v28, %v13270_v28  ;;  %v6923_v47 = vsel %vm1485_vm10, %v6850_v43, %v17289_v29  ;;  %v6342_v29 = vshll.u32 %v16844_v26, 16 }
 0x53a   : > { %v7468_v4 = vrot.slane %v7466_v41, 3  ;;  %v7471_v12 = vrot.slane %v7469_v25, 4  ;;  %v7475_v44 = vrot.slane %v7473_v39, 3  ;;  %v7478_v23 = vrot.slane %v7476_v37, 4  ;;  %v17408_v10 = vpop.permute.xlu1 %6584 }
 0x53b   : > { %v17410_v32 = vpop.permute.xlu0 %6368  ;;  %v6921_v56 = vsel %vm1485_vm10, %v6848_v14, %v17257_v35  ;;  %v6987_v35 = vsel %vm1550_vm11, %v6923_v47, %v17317_v52  ;;  %v6339_v41 = vshrl.u32 %v16844_v26, 16  ;;  %v19448_v52 = vld [vmem:[#allocation70_spill] sm:$0xff]  ;;  %v7056_v26 = vsel %vm1404_vm9, %v16915_v50, %v17366_v18 }
 0x53c   : > { %v7472_v6 = vor.u32 %v7471_v12, %v7468_v4  ;;  %v7479_v27 = vor.u32 %v7478_v23, %v7475_v44  ;;  %6800 = vrot.lane.b32.xlu1 %v17405_v9, %s13285_s11  ;;  %v6985_v5 = vsel %vm1550_vm11, %v6921_v56, %v17309_v62  ;;  %v6070_v62 = vld [vmem:[#allocation2 + $0xf0] sm:$0xf]  ;;  %v7505_v4 = vshrl.u32 %v6987_v35, 16 }
 0x53d   : > { %6606 = vrot.lane.b32.xlu0 %v17382_v42, %s13285_s11  ;;  %v7498_v25 = vshrl.u32 %v6985_v5, 16  ;;  %v7501_v39 = vshll.u32 %v6985_v5, 16  ;;  %v7508_v12 = vshll.u32 %v6987_v35, 16  ;;  %v6341_v23 = vrot.slane %v6339_v41, 4 }
 0x53e   : > { %v17422_v15 = vpop.permute.xlu1 %6514  ;;  %v7480_v7 = vsel %vm1807_vm8, %v7472_v6, %v7479_v27  ;;  %v17465_v6 = vcombine.low %v6070_v62, %v19449_v24  ;;  %v6344_v27 = vrot.slane %v6342_v29, 5  ;;  %v7129_v19 = vsel %vm1485_vm10, %v7056_v26, %v17375_v16  ;;  %v8979_v62 = vld [vmem:[%s19010_s3 + $0x68] sm:$0xff] }
 0x53f   : > { %v6732_v51 = vpop.permute.xlu0 %6731  ;;  %8273 = vmatprep.mubr.bf16.mxu1 %v7480_v7  ;;  %v7500_v3 = vrot.slane %v7498_v25, 3  ;;  %v7503_v14 = vrot.slane %v7501_v39, 4  ;;  %v7507_v60 = vrot.slane %v7505_v4, 3  ;;  %v7510_v28 = vrot.slane %v7508_v12, 4  ;;  %v8978_v39 = vld [vmem:[%s19010_s3 + $0x48] sm:$0xff] }
 0x540   : > { %6608 = vrot.lane.b32.xlu1 %v17425_v2, %s13285_s11  ;;  %8274 = vmatmul.mubr.bf16.gmra.mxu1 %v7465_v61  ;;  %v7131_v43 = vsel %vm1485_vm10, %v7058_v49, %v6732_v51  ;;  %v17478_v16 = vor.u32 %v6344_v27, %v6341_v23  ;;  %v11787_v23 = vcombine.low %v8978_v39, %v8979_v62  ;;  %v19450_v27 = vld [vmem:[#allocation42_spill] sm:$0xff] }
 0x541   : > { %6380 = vrot.lane.b32.xlu0 %v17405_v9, %s13284_s10  ;;  %v7504_v12 = vor.u32 %v7503_v14, %v7500_v3  ;;  %v11788_v49 = vcombine.high %v8978_v39, %v8979_v62 }
 0x542   : > { %v17436_v17 = vpop.permute.xlu1 %6663 }
 0x543   : > { %v17440_v1 = vpop.permute.xlu0 %6661  ;;  %9024 = vmatprep.subr.bf16.mxu1 %v11788_v49 }
 0x544   : > { %6538 = vrot.lane.b32.xlu1 %v16855_v57, %s13283_s9  ;;  %9025 = vmatpush1.bf16.msra.mxu1 %v11787_v23 }
 0x545   : > { %6755 = vrot.lane.b32.xlu0 %v17425_v2, %s13283_s9 }
 0x546   : > { %v17450_v37 = vpop.permute.xlu1 %6733 }
 0x547   : > { %v17452_v44 = vpop.permute.xlu0 %6516 }
 0x548   : > { %6687 = vrot.lane.b32.xlu1 %v19448_v52, %s13284_s10 }
 0x549   : > { %6685 = vrot.lane.b32.xlu0 %v16855_v57, %s13284_s10 }
 0x54a   : > { %v6791_v7 = vpop.permute.xlu1 %6790 }
 0x54b   : > { %v7187_v61 = vsel %vm1550_vm11, %v7129_v19, %v6791_v7  ;;  %v7188_v50 = vsel %vm1550_vm11, %v7131_v43, %v6791_v7  ;;  %v17472_v18 = vpop.permute.xlu0 %6586  ;;  %v6853_v19 = vsel %vm1404_vm9, %v19450_v27, %v17410_v32  ;;  %v19451_v43 = vld [vmem:[#allocation36_spill] sm:$0xff]  ;;  %v6620_v27 = vshrl.u32 %v17006_v13, 16 }
 0x54c   : > { %v7513_v57 = vshrl.u32 %v7187_v61, 16  ;;  %v7516_v56 = vshll.u32 %v7187_v61, 16  ;;  %v7520_v47 = vshrl.u32 %v7188_v50, 16  ;;  %v7523_v5 = vshll.u32 %v7188_v50, 16  ;;  %6757 = vrot.lane.b32.xlu1 %v17465_v6, %s13283_s9 }
 0x54d   : > { %6540 = vrot.lane.b32.xlu0 %v19448_v52, %s13283_s9  ;;  %v7511_v52 = vor.u32 %v7510_v28, %v7507_v60  ;;  %v6855_v3 = vsel %vm1404_vm9, %v19451_v43, %v17410_v32  ;;  %v13271_v60 = vld [vmem:[#allocation2 + $0xf8] sm:$0xf]  ;;  %v6347_v32 = vshrl.u32 %v16908_v54, 16 }
 0x54e   : > { %v7515_v51 = vrot.slane %v7513_v57, 3  ;;  %v7518_v35 = vrot.slane %v7516_v56, 4  ;;  %v7522_v41 = vrot.slane %v7520_v47, 3  ;;  %v7525_v29 = vrot.slane %v7523_v5, 4  ;;  %v17480_v25 = vpop.permute.xlu1 %6588 }
 0x54f   : > { %v17488_v4 = vpop.permute.xlu0 %6370  ;;  %v17503_v28 = vcombine.low %v13271_v60, %v13271_v60  ;;  %v7512_v50 = vsel %vm1807_vm8, %v7504_v12, %v7511_v52  ;;  %v6925_v57 = vsel %vm1485_vm10, %v6853_v19, %v17332_v48  ;;  %v6350_v56 = vshll.u32 %v16908_v54, 16 }
 0x550   : > { %v7519_v26 = vor.u32 %v7518_v35, %v7515_v51  ;;  %v7526_v24 = vor.u32 %v7525_v29, %v7522_v41  ;;  %6802 = vrot.lane.b32.xlu1 %v17478_v16, %s13285_s11  ;;  %v6927_v47 = vsel %vm1485_vm10, %v6855_v3, %v17377_v59  ;;  %v6989_v51 = vsel %vm1550_vm11, %v6925_v57, %v17397_v55  ;;  %v6074_v35 = vld [vmem:[#allocation2 + $0x100] sm:$0xf] }
 0x551   : > { %6610 = vrot.lane.b32.xlu0 %v17465_v6, %s13285_s11  ;;  %v6991_v41 = vsel %vm1550_vm11, %v6927_v47, %v17408_v10  ;;  %v19452_v29 = vld [vmem:[#allocation47_spill] sm:$0xff]  ;;  %v6349_v54 = vrot.slane %v6347_v32, 4  ;;  %v6352_v39 = vrot.slane %v6350_v56, 5  ;;  %v7545_v59 = vshrl.u32 %v6989_v51, 16 }
 0x552   : > { %v17500_v14 = vpop.permute.xlu1 %6518  ;;  %v7527_v7 = vsel %vm1807_vm8, %v7519_v26, %v7526_v24  ;;  %v7548_v62 = vshll.u32 %v6989_v51, 16  ;;  %v17531_v55 = vcombine.low %v6074_v35, %v16997_v46  ;;  %v7552_v52 = vshrl.u32 %v6991_v41, 16  ;;  %v19453_v46 = vld [vmem:[#allocation43_spill] sm:$0xff] }
 0x553   : > { %v6736_v61 = vpop.permute.xlu0 %6735  ;;  %8281 = vmatprep.mubr.bf16.mxu1 %v7527_v7  ;;  %v7555_v23 = vshll.u32 %v6991_v41, 16  ;;  %v17537_v10 = vor.u32 %v6352_v39, %v6349_v54  ;;  %v7063_v26 = vsel %vm1404_vm9, %v17003_v11, %v17436_v17  ;;  %v7061_v24 = vsel %vm1404_vm9, %v17003_v11, %v17440_v1 }
 0x554   : > { %6612 = vrot.lane.b32.xlu1 %v17503_v28, %s13285_s11  ;;  %8282 = vmatmul.mubr.bf16.gmra.mxu1 %v7512_v50  ;;  %v6623_v19 = vshll.u32 %v17006_v13, 16  ;;  %v7547_v43 = vrot.slane %v7545_v59, 3  ;;  %v7550_v3 = vrot.slane %v7548_v62, 4  ;;  %v7133_v7 = vsel %vm1485_vm10, %v7061_v24, %v17450_v37 }
 0x555   : > { %6382 = vrot.lane.b32.xlu0 %v17478_v16, %s13284_s10  ;;  %v7135_v60 = vsel %vm1485_vm10, %v7063_v26, %v6736_v61  ;;  %v7554_v17 = vrot.slane %v7552_v52, 3  ;;  %v7557_v57 = vrot.slane %v7555_v23, 4  ;;  %v6622_v37 = vrot.slane %v6620_v27, 4  ;;  %v13272_v52 = vld [vmem:[#allocation2 + $0x108] sm:$0xf] }
 0x556   : > { %v17516_v5 = vpop.permute.xlu1 %6667  ;;  %v6625_v61 = vrot.slane %v6623_v19, 5  ;;  %v11686_v23 = vcombine.low %v13272_v52, %v13272_v52  ;;  %v7551_v26 = vor.u32 %v7550_v3, %v7547_v43  ;;  %v6771_v27 = vshrl.u32 %v19437_v58, 16 }
 0x557   : > { %v17520_v48 = vpop.permute.xlu0 %6665  ;;  %v7558_v24 = vor.u32 %v7557_v57, %v7554_v17  ;;  %v6774_v19 = vshll.u32 %v19437_v58, 16  ;;  %v6860_v43 = vsel %vm1404_vm9, %v16939_v53, %v17488_v4 }
 0x558   : > { %6691 = vrot.lane.b32.xlu1 %v19452_v29, %s13284_s10  ;;  %v17578_v57 = vor.u32 %v6625_v61, %v6622_v37  ;;  %v6931_v53 = vsel %vm1485_vm10, %v6860_v43, %v17452_v44 }
 0x559   : > { %6759 = vrot.lane.b32.xlu0 %v17503_v28, %s13283_s9  ;;  %v7559_v58 = vsel %vm1807_vm8, %v7551_v26, %v7558_v24 }
 0x55a   : > { %v17528_v12 = vpop.permute.xlu1 %6737 }
 0x55b   : > { %v17533_v49 = vpop.permute.xlu0 %6520 }
 0x55c   : > { %6761 = vrot.lane.b32.xlu1 %v17531_v55, %s13283_s9 }
 0x55d   : > { %6689 = vrot.lane.b32.xlu0 %v19453_v46, %s13284_s10 }
 0x55e   : > { %v6793_v50 = vpop.permute.xlu1 %6792 }
 0x55f   : > { %v7190_v32 = vsel %vm1550_vm11, %v7133_v7, %v6793_v50  ;;  %v7191_v11 = vsel %vm1550_vm11, %v7135_v60, %v6793_v50  ;;  %v17554_v1 = vpop.permute.xlu0 %6590  ;;  %v19454_v50 = vld [vmem:[#allocation44_spill] sm:$0xff] }
 0x560   : > { %v7560_v56 = vshrl.u32 %v7190_v32, 16  ;;  %v7563_v47 = vshll.u32 %v7190_v32, 16  ;;  %v7567_v51 = vshrl.u32 %v7191_v11, 16  ;;  %v7570_v13 = vshll.u32 %v7191_v11, 16  ;;  %6804 = vrot.lane.b32.xlu1 %v17537_v10, %s13285_s11 }
 0x561   : > { %6384 = vrot.lane.b32.xlu0 %v17537_v10, %s13284_s10  ;;  %v6858_v32 = vsel %vm1404_vm9, %v19454_v50, %v17488_v4 }
 0x562   : > { %v7562_v35 = vrot.slane %v7560_v56, 3  ;;  %v7565_v41 = vrot.slane %v7563_v47, 4  ;;  %v7569_v54 = vrot.slane %v7567_v51, 3  ;;  %v7572_v39 = vrot.slane %v7570_v13, 4  ;;  %v17560_v59 = vpop.permute.xlu1 %6592 }
 0x563   : > { %v17562_v62 = vpop.permute.xlu0 %6372  ;;  %v6929_v11 = vsel %vm1485_vm10, %v6858_v32, %v17422_v15  ;;  %v6773_v56 = vrot.slane %v6771_v27, 4  ;;  %v6776_v47 = vrot.slane %v6774_v19, 5  ;;  %v6995_v15 = vsel %vm1550_vm11, %v6931_v53, %v17480_v25 }
 0x564   : > { %v7566_v7 = vor.u32 %v7565_v41, %v7562_v35  ;;  %v7573_v60 = vor.u32 %v7572_v39, %v7569_v54  ;;  %6695 = vrot.lane.b32.xlu1 %v17024_v38, %s13284_s10  ;;  %v6993_v51 = vsel %vm1550_vm11, %v6929_v11, %v17472_v18  ;;  %v7599_v35 = vshrl.u32 %v6995_v15, 16 }
 0x565   : > { %6763 = vrot.lane.b32.xlu0 %v11686_v23, %s13283_s9  ;;  %v6777_v37 = vor.u32 %v6776_v47, %v6773_v56  ;;  %v7592_v44 = vshrl.u32 %v6993_v51, 16  ;;  %v7595_v61 = vshll.u32 %v6993_v51, 16  ;;  %v7602_v41 = vshll.u32 %v6995_v15, 16 }
 0x566   : > { %v17575_v3 = vpop.permute.xlu1 %6522  ;;  %v7574_v17 = vsel %vm1807_vm8, %v7566_v7, %v7573_v60  ;;  %v7068_v18 = vsel %vm1404_vm9, %v17093_v22, %v17516_v5  ;;  %v7066_v25 = vsel %vm1404_vm9, %v17093_v22, %v17520_v48  ;;  %v7601_v24 = vrot.slane %v7599_v35, 3 }
 0x567   : > { %v6740_v38 = vpop.permute.xlu0 %6739  ;;  %8289 = vmatprep.mubr.bf16.mxu1 %v7574_v17  ;;  %v7137_v39 = vsel %vm1485_vm10, %v7066_v25, %v17528_v12  ;;  %v7604_v7 = vrot.slane %v7602_v41, 4  ;;  %v6863_v53 = vsel %vm1404_vm9, %v16991_v21, %v17562_v62  ;;  %v6865_v51 = vsel %vm1404_vm9, %v17035_v0, %v17562_v62  ;;  %v8977_v21 = vld [vmem:[%s19010_s3 + $0x28] sm:$0xff] }
 0x568   : > { %6806 = vrot.lane.b32.xlu1 %v17578_v57, %s13285_s11  ;;  %8290 = vmatmul.mubr.bf16.gmra.mxu1 %v7559_v58  ;;  %v7139_v52 = vsel %vm1485_vm10, %v7068_v18, %v6740_v38  ;;  %v6933_v35 = vsel %vm1485_vm10, %v6863_v53, %v17500_v14  ;;  %v6935_v41 = vsel %vm1485_vm10, %v6865_v51, %v17533_v49 }
 0x569   : > { %6693 = vrot.lane.b32.xlu0 %v17013_v8, %s13284_s10  ;;  %v7605_v11 = vor.u32 %v7604_v7, %v7601_v24  ;;  %v6997_v25 = vsel %vm1550_vm11, %v6933_v35, %v17554_v1 }
 0x56a   : > { %v17589_v4 = vpop.permute.xlu1 %6671 }
 0x56b   : > { %v17593_v13 = vpop.permute.xlu0 %6669  ;;  %v7073_v49 = vsel %vm1404_vm9, %v17167_v40, %v17589_v4 }
 0x56c   : > { %6542 = vrot.lane.b32.xlu1 %v19453_v46, %s13283_s9  ;;  %v7597_v46 = vrot.slane %v7595_v61, 4  ;;  %v8976_v61 = vld [vmem:[%s19010_s3 + $0x8] sm:$0xff]  ;;  %v7071_v1 = vsel %vm1404_vm9, %v17167_v40, %v17593_v13 }
 0x56d   : > { %6544 = vrot.lane.b32.xlu0 %v19452_v29, %s13283_s9  ;;  %v7594_v29 = vrot.slane %v7592_v44, 3  ;;  %v11785_v0 = vcombine.low %v8976_v61, %v8977_v21  ;;  %v11786_v62 = vcombine.high %v8976_v61, %v8977_v21 }
 0x56e   : > { %v17601_v8 = vpop.permute.xlu1 %6741 }
 0x56f   : > { %v17603_v54 = vpop.permute.xlu0 %6524  ;;  %v7598_v58 = vor.u32 %v7597_v46, %v7594_v29  ;;  %9026 = vmatprep.subr.bf16.mxu1 %v11786_v62  ;;  %v6999_v46 = vsel %vm1550_vm11, %v6935_v41, %v17560_v59  ;;  %v7141_v59 = vsel %vm1485_vm10, %v7071_v1, %v17601_v8 }
 0x570   : > { %6808 = vrot.lane.b32.xlu1 %v6777_v37, %s13285_s11  ;;  %9027 = vmatpush1.bf16.msra.mxu1 %v11785_v0  ;;  %v7646_v14 = vshrl.u32 %v6999_v46, 16  ;;  %v7649_v24 = vshll.u32 %v6999_v46, 16 }
 0x571   : > { %6614 = vrot.lane.b32.xlu0 %v17531_v55, %s13285_s11  ;;  %v7606_v44 = vsel %vm1807_vm8, %v7598_v58, %v7605_v11 }
 0x572   : > { %v6795_v26 = vpop.permute.xlu1 %6794 }
 0x573   : > { %v7193_v60 = vsel %vm1550_vm11, %v7137_v39, %v6795_v26  ;;  %v7194_v5 = vsel %vm1550_vm11, %v7139_v52, %v6795_v26  ;;  %v17619_v27 = vpop.permute.xlu0 %6594  ;;  %v7639_v39 = vshrl.u32 %v6997_v25, 16  ;;  %v7642_v52 = vshll.u32 %v6997_v25, 16 }
 0x574   : > { %v7607_v22 = vshrl.u32 %v7193_v60, 16  ;;  %v7610_v48 = vshll.u32 %v7193_v60, 16  ;;  %v7614_v19 = vshrl.u32 %v7194_v5, 16  ;;  %v7617_v55 = vshll.u32 %v7194_v5, 16  ;;  %6616 = vrot.lane.b32.xlu1 %v11686_v23, %s13285_s11 }
 0x575   : > { %v7641_v60 = vrot.slane %v7639_v39, 3  ;;  %v7644_v5 = vrot.slane %v7642_v52, 4 }
 0x576   : > { %v7609_v50 = vrot.slane %v7607_v22, 3  ;;  %v7612_v32 = vrot.slane %v7610_v48, 4  ;;  %v7616_v12 = vrot.slane %v7614_v19, 3  ;;  %v7619_v43 = vrot.slane %v7617_v55, 4  ;;  %v17622_v17 = vpop.permute.xlu1 %6596 }
 0x577   : > { %v6375_v38 = vpop.permute.xlu0 %6374  ;;  %v7648_v19 = vrot.slane %v7646_v14, 3  ;;  %v7651_v55 = vrot.slane %v7649_v24, 4  ;;  %v7645_v51 = vor.u32 %v7644_v5, %v7641_v60 }
 0x578   : > { %v7613_v56 = vor.u32 %v7612_v32, %v7609_v50  ;;  %v7620_v47 = vor.u32 %v7619_v43, %v7616_v12  ;;  %v6868_v61 = vsel %vm1404_vm9, %v17072_v20, %v6375_v38  ;;  %v6870_v21 = vsel %vm1404_vm9, %v17114_v30, %v6375_v38 }
 0x579   : > { %v6937_v25 = vsel %vm1485_vm10, %v6868_v61, %v17575_v3  ;;  %v6939_v46 = vsel %vm1485_vm10, %v6870_v21, %v17603_v54 }
 0x57a   : > { %v17630_v23 = vpop.permute.xlu1 %6526  ;;  %v7621_v15 = vsel %vm1807_vm8, %v7613_v56, %v7620_v47  ;;  %v7001_v20 = vsel %vm1550_vm11, %v6937_v25, %v17619_v27  ;;  %v7003_v38 = vsel %vm1550_vm11, %v6939_v46, %v17622_v17 }
 0x57b   : > { %v6744_v37 = vpop.permute.xlu0 %6743  ;;  %8297 = vmatprep.mubr.bf16.mxu1 %v7621_v15  ;;  %v7652_v15 = vor.u32 %v7651_v55, %v7648_v19  ;;  %v7686_v52 = vshrl.u32 %v7001_v20, 16  ;;  %v7689_v14 = vshll.u32 %v7001_v20, 16  ;;  %v7696_v3 = vshll.u32 %v7003_v38, 16 }
 0x57c   : > { %8298 = vmatmul.mubr.bf16.gmra.mxu1 %v7606_v44  ;;  %v7143_v22 = vsel %vm1485_vm10, %v7073_v49, %v6744_v37  ;;  %v7693_v49 = vshrl.u32 %v7003_v38, 16 }
 0x57d   : > { %v7653_v41 = vsel %vm1807_vm8, %v7645_v51, %v7652_v15  ;;  %v7688_v27 = vrot.slane %v7686_v52, 3  ;;  %v7691_v5 = vrot.slane %v7689_v14, 4  ;;  %v7698_v55 = vrot.slane %v7696_v3, 4  ;;  %v17706_v15 = vld [vmem:[%s19009_s2 + $0x2] ss:$0 sm:$0xff] }
 0x57e   : > { %v6676_v18 = vpop.permute.xlu1 %6675  ;;  %v7695_v19 = vrot.slane %v7693_v49, 3 }
 0x57f   : > { %v6674_v29 = vpop.permute.xlu0 %6673  ;;  %v7078_v54 = vsel %vm1404_vm9, %v17241_v33, %v6676_v18  ;;  %v7692_v61 = vor.u32 %v7691_v5, %v7688_v27 }
 0x580   : > { %v7076_v60 = vsel %vm1404_vm9, %v17241_v33, %v6674_v29  ;;  %v7699_v21 = vor.u32 %v7698_v55, %v7695_v19 }
 0x582   : > { %v6746_v26 = vpop.permute.xlu1 %6745 }
 0x583   : > { %v17648_v7 = vpop.permute.xlu0 %6528 }
 0x586   : > { %v6797_v48 = vpop.permute.xlu1 %6796 }
 0x587   : > { %v7196_v50 = vsel %vm1550_vm11, %v7141_v59, %v6797_v48  ;;  %v7197_v32 = vsel %vm1550_vm11, %v7143_v22, %v6797_v48  ;;  %v17661_v12 = vpop.permute.xlu0 %6598  ;;  %v7145_v59 = vsel %vm1485_vm10, %v7076_v60, %v6746_v26  ;;  %v17695_v48 = vpop.f32.mrf.mxu0 }
 0x588   : > { %v7654_v4 = vshrl.u32 %v7196_v50, 16  ;;  %v7657_v43 = vshll.u32 %v7196_v50, 16  ;;  %v7661_v58 = vshrl.u32 %v7197_v32, 16  ;;  %v7664_v40 = vshll.u32 %v7197_v32, 16 }
 0x589   : > { %v8396_v51 = vpop.f32.mrf.mxu0 }
 0x58a   : > { %v7656_v13 = vrot.slane %v7654_v4, 3  ;;  %v7659_v11 = vrot.slane %v7657_v43, 4  ;;  %v7663_v56 = vrot.slane %v7661_v58, 3  ;;  %v7666_v47 = vrot.slane %v7664_v40, 4  ;;  %v17663_v8 = vpop.permute.xlu1 %6600 }
 0x58b   : > { %v6377_v53 = vpop.permute.xlu0 %6376  ;;  %v17718_v49 = vpop.f32.mrf.mxu0 }
 0x58c   : > { %v7660_v37 = vor.u32 %v7659_v11, %v7656_v13  ;;  %v7667_v44 = vor.u32 %v7666_v47, %v7663_v56  ;;  %v6873_v25 = vsel %vm1404_vm9, %v17146_v34, %v6377_v53  ;;  %v6875_v46 = vsel %vm1404_vm9, %v17188_v31, %v6377_v53 }
 0x58d   : > { %v6941_v60 = vsel %vm1485_vm10, %v6873_v25, %v17630_v23  ;;  %v6943_v31 = vsel %vm1485_vm10, %v6875_v46, %v17648_v7 }
 0x58e   : > { %v17669_v35 = vpop.permute.xlu1 %6530  ;;  %v7668_v0 = vsel %vm1807_vm8, %v7660_v37, %v7667_v44  ;;  %v7007_v19 = vsel %vm1550_vm11, %v6943_v31, %v17663_v8 }
 0x58f   : > { %v6748_v62 = vpop.permute.xlu0 %6747  ;;  %8305 = vmatprep.mubr.bf16.mxu1 %v7668_v0 }
 0x590   : > { %8306 = vmatmul.mubr.bf16.gmra.mxu1 %v7653_v41  ;;  %v7147_v17 = vsel %vm1485_vm10, %v7078_v54, %v6748_v62  ;;  %v7700_v54 = vsel %vm1807_vm8, %v7692_v61, %v7699_v21 }
 0x592   : > { %v17677_v39 = vpop.permute.xlu1 %6679 }
 0x593   : > { %v17681_v30 = vpop.permute.xlu0 %6677 }
 0x594   : > { %v7081_v8 = vsel %vm1404_vm9, %v17315_v36, %v17681_v30 }
 0x596   : > { %v17685_v24 = vpop.permute.xlu1 %6749 }
 0x597   : > { %v17687_v1 = vpop.permute.xlu0 %6532 }
 0x59a   : > { %v6799_v22 = vpop.permute.xlu1 %6798 }
 0x59b   : > { %v7199_v50 = vsel %vm1550_vm11, %v7145_v59, %v6799_v22  ;;  %v7200_v32 = vsel %vm1550_vm11, %v7147_v17, %v6799_v22  ;;  %v17699_v4 = vpop.permute.xlu0 %6602  ;;  %v8399_v59 = vpop.f32.mrf.mxu0  ;;  %v7005_v17 = vsel %vm1550_vm11, %v6941_v60, %v17661_v12  ;;  %v7083_v12 = vsel %vm1404_vm9, %v17315_v36, %v17677_v39 }
 0x59c   : > { %v7701_v18 = vshrl.u32 %v7199_v50, 16  ;;  %v7704_v43 = vshll.u32 %v7199_v50, 16  ;;  %v7708_v33 = vshrl.u32 %v7200_v32, 16  ;;  %v7711_v29 = vshll.u32 %v7200_v32, 16 }
 0x59d   : > { %v12286_v58 = vpop.f32.mrf.mxu1  ;;  %v7733_v55 = vshrl.u32 %v7005_v17, 16  ;;  %v7736_v50 = vshll.u32 %v7005_v17, 16  ;;  %v19455_v17 = vld [vmem:[#allocation52_spill] sm:$0xff] }
 0x59e   : > { %v7703_v40 = vrot.slane %v7701_v18, 3  ;;  %v7706_v26 = vrot.slane %v7704_v43, 4  ;;  %v7710_v13 = vrot.slane %v7708_v33, 3  ;;  %v7713_v11 = vrot.slane %v7711_v29, 4  ;;  %v17701_v56 = vpop.permute.xlu1 %6604 }
 0x59f   : > { %v12287_v47 = vpop.f32.mrf.mxu1  ;;  %v17708_v44 = vpop.permute.xlu0 %6378  ;;  %v7740_v43 = vshrl.u32 %v7007_v19, 16  ;;  %v7743_v33 = vshll.u32 %v7007_v19, 16 }
 0x5a0   : > { %v12288_v37 = vadd.f32 %v12287_v47, %v12286_v58  ;;  %v7707_v0 = vor.u32 %v7706_v26, %v7703_v40  ;;  %v7714_v62 = vor.u32 %v7713_v11, %v7710_v13  ;;  %v7735_v40 = vrot.slane %v7733_v55, 3 }
 0x5a1   : > { %v12289_v41 = vpop.f32.mrf.mxu1  ;;  %v7738_v26 = vrot.slane %v7736_v50, 4  ;;  %v7149_v13 = vsel %vm1485_vm10, %v7081_v8, %v17685_v24  ;;  %v6878_v31 = vsel %vm1404_vm9, %v17220_v45, %v17708_v44  ;;  %v6880_v19 = vsel %vm1404_vm9, %v19455_v17, %v17708_v44 }
 0x5a2   : > { %v8236_v20 = vadd.f32 %v12288_v37, %v17706_v15  ;;  %v17715_v38 = vpop.permute.xlu1 %6534  ;;  %v7715_v14 = vsel %vm1807_vm8, %v7707_v0, %v7714_v62  ;;  %v7745_v37 = vrot.slane %v7743_v33, 4  ;;  %v6947_v33 = vsel %vm1485_vm10, %v6880_v19, %v17687_v1 }
 0x5a3   : > { %v12290_v52 = vpop.f32.mrf.mxu1  ;;  %v6752_v3 = vpop.permute.xlu0 %6751  ;;  %8313 = vmatprep.mubr.bf16.mxu1 %v7715_v14  ;;  %v7739_v60 = vor.u32 %v7738_v26, %v7735_v40 }
 0x5a4   : > { %v12291_v34 = vadd.f32 %v12290_v52, %v12289_v41  ;;  %8314 = vmatmul.mubr.bf16.gmra.mxu1 %v7700_v54  ;;  %v8397_v53 = vadd.f32 %v8396_v51, %v8236_v20  ;;  %v7151_v11 = vsel %vm1485_vm10, %v7083_v12, %v6752_v3  ;;  %v7742_v51 = vrot.slane %v7740_v43, 3 }
 0x5a6   : > { %v8239_v27 = vadd.f32 %v12291_v34, %v17706_v15  ;;  %v17726_v5 = vpop.permute.xlu1 %6683  ;;  %v8523_v32 = vmax.f32 %v8397_v53, 0.0  ;;  %v7746_v34 = vor.u32 %v7745_v37, %v7742_v51 }
 0x5a7   : > { %v17730_v22 = vpop.permute.xlu0 %6681 }
 0x5a8   : > { %v8400_v23 = vadd.f32 %v8399_v59, %v8239_v27  ;;  %v7747_v45 = vsel %vm1807_vm8, %v7739_v60, %v7746_v34 }
 0x5aa   : > { %v8524_v18 = vmax.f32 %v8400_v23, 0.0  ;;  %v17734_v7 = vpop.permute.xlu1 %6753 }
 0x5ab   : > { %v17736_v29 = vpop.permute.xlu0 %6536 }
 0x5ac   : > { %v17738_v58 = vpack.c.bf16 %v8524_v18, %v8523_v32  ;;  %v6945_v18 = vsel %vm1485_vm10, %v6878_v31, %v17669_v35  ;;  %v7011_v35 = vsel %vm1550_vm11, %v6947_v33, %v17701_v56  ;;  %v7088_v56 = vsel %vm1404_vm9, %v17405_v9, %v17726_v5 }
 0x5ad   : > { %v7009_v44 = vsel %vm1550_vm11, %v6945_v18, %v17699_v4  ;;  %v7787_v51 = vshrl.u32 %v7011_v35, 16  ;;  %v7790_v4 = vshll.u32 %v7011_v35, 16 }
 0x5ae   : > { %11769 = vmatmul.mubr.msk.bf16.vlgmr.msra.gmra.mxu0 %vm1404_vm9, %v17738_v58  ;;  %v6801_v47 = vpop.permute.xlu1 %6800  ;;  %v7783_v1 = vshll.u32 %v7009_v44, 16 }
 0x5af   : > { %v7202_v61 = vsel %vm1550_vm11, %v7149_v13, %v6801_v47  ;;  %v7203_v39 = vsel %vm1550_vm11, %v7151_v11, %v6801_v47  ;;  %v17753_v21 = vpop.permute.xlu0 %6606  ;;  %8697 = vmatprep.mubr.bf16.mxu0 %v19445_v63  ;;  %v7780_v47 = vshrl.u32 %v7009_v44, 16  ;;  %v7792_v5 = vrot.slane %v7790_v4, 4 }
 0x5b0   : > { %v7748_v36 = vshrl.u32 %v7202_v61, 16  ;;  %v7751_v30 = vshll.u32 %v7202_v61, 16  ;;  %v7755_v0 = vshrl.u32 %v7203_v39, 16  ;;  %v7758_v24 = vshll.u32 %v7203_v39, 16  ;;  %v12292_v62 = vpop.f32.mrf.mxu1 }
 0x5b2   : > { %v7750_v41 = vrot.slane %v7748_v36, 3  ;;  %v7753_v25 = vrot.slane %v7751_v30, 4  ;;  %v7757_v46 = vrot.slane %v7755_v0, 3  ;;  %v7760_v20 = vrot.slane %v7758_v24, 4  ;;  %v17756_v52 = vpop.permute.xlu1 %6608  ;;  %v12293_v14 = vpop.f32.mrf.mxu1 }
 0x5b3   : > { %v12294_v3 = vadd.f32 %v12293_v14, %v12292_v62  ;;  %v6381_v54 = vpop.permute.xlu0 %6380  ;;  %v7782_v30 = vrot.slane %v7780_v47, 3  ;;  %v7785_v0 = vrot.slane %v7783_v1, 4  ;;  %v7789_v24 = vrot.slane %v7787_v51, 3  ;;  %v17803_v14 = vpop.f32.mrf.mxu0 }
 0x5b4   : > { %v7754_v53 = vor.u32 %v7753_v25, %v7750_v41  ;;  %v7761_v27 = vor.u32 %v7760_v20, %v7757_v46  ;;  %v12295_v59 = vpop.f32.mrf.mxu1  ;;  %v19456_v41 = vld [vmem:[#allocation55_spill] sm:$0xff] }
 0x5b5   : > { %v8244_v23 = vadd.f32 %v12294_v3, %v17706_v15  ;;  %v6883_v25 = vsel %vm1404_vm9, %v19456_v41, %v6381_v54  ;;  %v19457_v3 = vld [vmem:[#allocation5_spill] sm:$0xff]  ;;  %v7786_v44 = vor.u32 %v7785_v0, %v7782_v30 }
 0x5b6   : > { %v17765_v55 = vpop.permute.xlu1 %6538  ;;  %v12296_v50 = vpop.f32.mrf.mxu1  ;;  %v7762_v32 = vsel %vm1807_vm8, %v7754_v53, %v7761_v27  ;;  %v6885_v60 = vsel %vm1404_vm9, %v19457_v3, %v6381_v54  ;;  %v6949_v17 = vsel %vm1485_vm10, %v6883_v25, %v17715_v38 }
 0x5b7   : > { %v6756_v43 = vpop.permute.xlu0 %6755  ;;  %8321 = vmatprep.mubr.bf16.mxu1 %v7762_v32  ;;  %v12297_v12 = vadd.f32 %v12296_v50, %v12295_v59  ;;  %v8405_v8 = vadd.f32 %v17695_v48, %v8244_v23 }
 0x5b8   : > { %8322 = vmatmul.mubr.bf16.gmra.mxu1 %v7747_v45  ;;  %v7155_v46 = vsel %vm1485_vm10, %v7088_v56, %v6756_v43  ;;  %v8412_v43 = vpop.f32.mrf.mxu0  ;;  %v6951_v45 = vsel %vm1485_vm10, %v6885_v60, %v17736_v29 }
 0x5b9   : > { %v8247_v40 = vadd.f32 %v12297_v12, %v17706_v15  ;;  %v8525_v37 = vmax.f32 %v8405_v8, 0.0  ;;  %v7793_v8 = vor.u32 %v7792_v5, %v7789_v24  ;;  %v7015_v47 = vsel %vm1550_vm11, %v6951_v45, %v17756_v52 }
 0x5ba   : > { %v17777_v26 = vpop.permute.xlu1 %6687  ;;  %v17822_v4 = vpop.f32.mrf.mxu0  ;;  %v7834_v24 = vshrl.u32 %v7015_v47, 16 }
 0x5bb   : > { %v17781_v13 = vpop.permute.xlu0 %6685  ;;  %v8408_v11 = vadd.f32 %v17718_v49, %v8247_v40  ;;  %v7086_v49 = vsel %vm1404_vm9, %v17405_v9, %v17730_v22  ;;  %v7013_v40 = vsel %vm1550_vm11, %v6949_v17, %v17753_v21  ;;  %v7794_v56 = vsel %vm1807_vm8, %v7786_v44, %v7793_v8 }
 0x5bc   : > { %v7153_v62 = vsel %vm1485_vm10, %v7086_v49, %v17734_v7  ;;  %v7827_v30 = vshrl.u32 %v7013_v40, 16  ;;  %v7830_v0 = vshll.u32 %v7013_v40, 16 }
 0x5bd   : > { %v8526_v61 = vmax.f32 %v8408_v11, 0.0 }
 0x5be   : > { %v17784_v39 = vpop.permute.xlu1 %6757  ;;  %v7829_v5 = vrot.slane %v7827_v30, 3  ;;  %v7832_v3 = vrot.slane %v7830_v0, 4 }
 0x5bf   : > { %v17786_v48 = vpop.permute.xlu0 %6540  ;;  %v17788_v36 = vpack.c.bf16 %v8526_v61, %v8525_v37 }
 0x5c1   : > { %11770 = vmatmul.mubr.msk.bf16.gmra.mxu0 %vm1404_vm9, %v17788_v36 }
 0x5c2   : > { %v6803_v20 = vpop.permute.xlu1 %6802  ;;  %8707 = vmatprep.mubr.bf16.mxu0 %v19445_v63 }
 0x5c3   : > { %v7205_v9 = vsel %vm1550_vm11, %v7153_v62, %v6803_v20  ;;  %v7206_v22 = vsel %vm1550_vm11, %v7155_v46, %v6803_v20  ;;  %v6611_v7 = vpop.permute.xlu0 %6610  ;;  %v7837_v62 = vshll.u32 %v7015_v47, 16  ;;  %v8415_v20 = vpop.f32.mrf.mxu0 }
 0x5c4   : > { %v7795_v34 = vshrl.u32 %v7205_v9, 16  ;;  %v7798_v31 = vshll.u32 %v7205_v9, 16  ;;  %v7802_v53 = vshrl.u32 %v7206_v22, 16  ;;  %v7805_v27 = vshll.u32 %v7206_v22, 16  ;;  %v12298_v59 = vpop.f32.mrf.mxu1 }
 0x5c6   : > { %v7797_v19 = vrot.slane %v7795_v34, 3  ;;  %v7800_v23 = vrot.slane %v7798_v31, 4  ;;  %v7804_v50 = vrot.slane %v7802_v53, 3  ;;  %v7807_v32 = vrot.slane %v7805_v27, 4  ;;  %v6613_v54 = vpop.permute.xlu1 %6612  ;;  %v12299_v18 = vpop.f32.mrf.mxu1 }
 0x5c7   : > { %v12300_v33 = vadd.f32 %v12299_v18, %v12298_v59  ;;  %v6383_v12 = vpop.permute.xlu0 %6382  ;;  %v7836_v31 = vrot.slane %v7834_v24, 3  ;;  %v7093_v53 = vsel %vm1404_vm9, %v17478_v16, %v17777_v26  ;;  %v7833_v18 = vor.u32 %v7832_v3, %v7829_v5 }
 0x5c8   : > { %v7801_v35 = vor.u32 %v7800_v23, %v7797_v19  ;;  %v7808_v11 = vor.u32 %v7807_v32, %v7804_v50  ;;  %v12301_v38 = vpop.f32.mrf.mxu1  ;;  %v6888_v51 = vsel %vm1404_vm9, %v17382_v42, %v6383_v12  ;;  %v6890_v52 = vsel %vm1404_vm9, %v17425_v2, %v6383_v12 }
 0x5c9   : > { %v8252_v1 = vadd.f32 %v12300_v33, %v17706_v15  ;;  %v6953_v42 = vsel %vm1485_vm10, %v6888_v51, %v17765_v55  ;;  %v6955_v60 = vsel %vm1485_vm10, %v6890_v52, %v17786_v48  ;;  %v7091_v2 = vsel %vm1404_vm9, %v17478_v16, %v17781_v13 }
 0x5ca   : > { %v6692_v37 = vpop.permute.xlu1 %6691  ;;  %v12302_v29 = vpop.f32.mrf.mxu1  ;;  %v7809_v61 = vsel %vm1807_vm8, %v7801_v35, %v7808_v11  ;;  %v7017_v22 = vsel %vm1550_vm11, %v6953_v42, %v6611_v7  ;;  %v7839_v55 = vrot.slane %v7837_v62, 4  ;;  %v7157_v27 = vsel %vm1485_vm10, %v7091_v2, %v17784_v39 }
 0x5cb   : > { %v6760_v21 = vpop.permute.xlu0 %6759  ;;  %8329 = vmatprep.mubr.bf16.mxu1 %v7809_v61  ;;  %v12303_v49 = vadd.f32 %v12302_v29, %v12301_v38  ;;  %v8413_v41 = vadd.f32 %v8412_v43, %v8252_v1  ;;  %v7019_v48 = vsel %vm1550_vm11, %v6955_v60, %v6613_v54  ;;  %v7874_v13 = vshrl.u32 %v7017_v22, 16 }
 0x5cc   : > { %8330 = vmatmul.mubr.bf16.gmra.mxu1 %v7794_v56  ;;  %v7159_v19 = vsel %vm1485_vm10, %v7093_v53, %v6760_v21  ;;  %v7877_v45 = vshll.u32 %v7017_v22, 16  ;;  %v7881_v33 = vshrl.u32 %v7019_v48, 16  ;;  %v7884_v54 = vshll.u32 %v7019_v48, 16 }
 0x5cd   : > { %v8255_v25 = vadd.f32 %v12303_v49, %v17706_v15  ;;  %v8527_v59 = vmax.f32 %v8413_v41, 0.0  ;;  %v7840_v11 = vor.u32 %v7839_v55, %v7836_v31  ;;  %v7876_v51 = vrot.slane %v7874_v13, 3 }
 0x5ce   : > { %v6762_v46 = vpop.permute.xlu1 %6761  ;;  %v7098_v29 = vsel %vm1404_vm9, %v17537_v10, %v6692_v37  ;;  %v7879_v0 = vrot.slane %v7877_v45, 4  ;;  %v7883_v21 = vrot.slane %v7881_v33, 3  ;;  %v7886_v56 = vrot.slane %v7884_v54, 4 }
 0x5cf   : > { %v6690_v9 = vpop.permute.xlu0 %6689  ;;  %v8416_v34 = vadd.f32 %v8415_v20, %v8255_v25  ;;  %v7841_v41 = vsel %vm1807_vm8, %v7833_v18, %v7840_v11 }
 0x5d0   : > { %v7096_v38 = vsel %vm1404_vm9, %v17537_v10, %v6690_v9  ;;  %v7887_v31 = vor.u32 %v7886_v56, %v7883_v21 }
 0x5d1   : > { %v8528_v17 = vmax.f32 %v8416_v34, 0.0  ;;  %v7161_v62 = vsel %vm1485_vm10, %v7096_v38, %v6762_v46  ;;  %v7880_v46 = vor.u32 %v7879_v0, %v7876_v51 }
 0x5d2   : > { %v6805_v23 = vpop.permute.xlu1 %6804 }
 0x5d3   : > { %v7208_v7 = vsel %vm1550_vm11, %v7157_v27, %v6805_v23  ;;  %v7209_v50 = vsel %vm1550_vm11, %v7159_v19, %v6805_v23  ;;  %v17845_v32 = vpop.permute.xlu0 %6384  ;;  %v17847_v43 = vpack.c.bf16 %v8528_v17, %v8527_v59  ;;  %v7888_v45 = vsel %vm1807_vm8, %v7880_v46, %v7887_v31 }
 0x5d4   : > { %v7842_v16 = vshrl.u32 %v7208_v7, 16  ;;  %v7845_v26 = vshll.u32 %v7208_v7, 16  ;;  %v7849_v39 = vshrl.u32 %v7209_v50, 16  ;;  %v7852_v12 = vshll.u32 %v7209_v50, 16 }
 0x5d5   : > { %11771 = vmatmul.mubr.msk.bf16.gmra.mxu0 %vm1404_vm9, %v17847_v43  ;;  %v6895_v33 = vsel %vm1404_vm9, %v17503_v28, %v17845_v32 }
 0x5d6   : > { %v7844_v44 = vrot.slane %v7842_v16, 3  ;;  %v7847_v8 = vrot.slane %v7845_v26, 4  ;;  %v7851_v40 = vrot.slane %v7849_v39, 3  ;;  %v6696_v35 = vpop.permute.xlu1 %6695  ;;  %v7854_v47 = vrot.slane %v7852_v12, 4  ;;  %8717 = vmatprep.mubr.bf16.mxu0 %v19445_v63 }
 0x5d7   : > { %v6764_v1 = vpop.permute.xlu0 %6763  ;;  %v7103_v19 = vsel %vm1404_vm9, %v17578_v57, %v6696_v35  ;;  %v6893_v16 = vsel %vm1404_vm9, %v17465_v6, %v17845_v32 }
 0x5d8   : > { %v7848_v61 = vor.u32 %v7847_v8, %v7844_v44  ;;  %v12304_v30 = vpop.f32.mrf.mxu1  ;;  %v7855_v52 = vor.u32 %v7854_v47, %v7851_v40  ;;  %v7163_v49 = vsel %vm1485_vm10, %v7098_v29, %v6764_v1  ;;  %v19459_v44 = vld [vmem:[#allocation4_spill] sm:$0xff] }
 0x5d9   : > { %v7167_v8 = vsel %vm1485_vm10, %v7103_v19, %v19459_v44 }
 0x5da   : > { %v6807_v24 = vpop.permute.xlu1 %6806  ;;  %v12305_v42 = vpop.f32.mrf.mxu1  ;;  %v7856_v37 = vsel %vm1807_vm8, %v7848_v61, %v7855_v52 }
 0x5db   : > { %v7211_v25 = vsel %vm1550_vm11, %v7161_v62, %v6807_v24  ;;  %v7212_v20 = vsel %vm1550_vm11, %v7163_v49, %v6807_v24  ;;  %v12306_v5 = vadd.f32 %v12305_v42, %v12304_v30  ;;  %v6694_v10 = vpop.permute.xlu0 %6693  ;;  %8337 = vmatprep.mubr.bf16.mxu1 %v7856_v37 }
 0x5dc   : > { %v7889_v3 = vshrl.u32 %v7211_v25, 16  ;;  %v7892_v60 = vshll.u32 %v7211_v25, 16  ;;  %v7896_v9 = vshrl.u32 %v7212_v20, 16  ;;  %v7899_v2 = vshll.u32 %v7212_v20, 16  ;;  %v12307_v22 = vpop.f32.mrf.mxu1  ;;  %8338 = vmatmul.mubr.bf16.gmra.mxu1 %v7841_v41 }
 0x5dd   : > { %v8260_v34 = vadd.f32 %v12306_v5, %v17706_v15  ;;  %v7101_v23 = vsel %vm1404_vm9, %v17578_v57, %v6694_v10  ;;  %v19458_v57 = vld [vmem:[#allocation48_spill] sm:$0xff] }
 0x5de   : > { %v7891_v55 = vrot.slane %v7889_v3, 3  ;;  %v7894_v53 = vrot.slane %v7892_v60, 4  ;;  %v7898_v27 = vrot.slane %v7896_v9, 3  ;;  %v7901_v59 = vrot.slane %v7899_v2, 4  ;;  %v6543_v48 = vpop.permute.xlu1 %6542  ;;  %v12308_v17 = vpop.f32.mrf.mxu1 }
 0x5df   : > { %v12309_v13 = vadd.f32 %v12308_v17, %v12307_v22  ;;  %v6545_v7 = vpop.permute.xlu0 %6544  ;;  %v8421_v26 = vadd.f32 %v17803_v14, %v8260_v34  ;;  %v7165_v12 = vsel %vm1485_vm10, %v7101_v23, %v19458_v57  ;;  %v6957_v6 = vsel %vm1485_vm10, %v6893_v16, %v6543_v48  ;;  %v12934_v3 = vpop.f32.mrf.mxu0 }
 0x5e0   : > { %v7895_v50 = vor.u32 %v7894_v53, %v7891_v55  ;;  %v7902_v18 = vor.u32 %v7901_v59, %v7898_v27  ;;  %v6959_v61 = vsel %vm1485_vm10, %v6895_v33, %v6545_v7 }
 0x5e1   : > { %v8263_v39 = vadd.f32 %v12309_v13, %v17706_v15  ;;  %v8529_v51 = vmax.f32 %v8421_v26, 0.0  ;;  %v8428_v31 = vpop.f32.mrf.mxu0 }
 0x5e2   : > { %v6809_v54 = vpop.permute.xlu1 %6808  ;;  %v7903_v40 = vsel %vm1807_vm8, %v7895_v50, %v7902_v18 }
 0x5e3   : > { %v8424_v14 = vadd.f32 %v17822_v4, %v8263_v39  ;;  %v7214_v35 = vsel %vm1550_vm11, %v7165_v12, %v6809_v54  ;;  %v7215_v11 = vsel %vm1550_vm11, %v7167_v8, %v6809_v54  ;;  %v6615_v38 = vpop.permute.xlu0 %6614  ;;  %8345 = vmatprep.mubr.bf16.mxu1 %v7903_v40  ;;  %v12935_v17 = vpop.f32.mrf.mxu0 }
 0x5e4   : > { %v7936_v28 = vshrl.u32 %v7214_v35, 16  ;;  %v7939_v32 = vshll.u32 %v7214_v35, 16  ;;  %v7943_v47 = vshrl.u32 %v7215_v11, 16  ;;  %v7946_v1 = vshll.u32 %v7215_v11, 16  ;;  %8346 = vmatmul.mubr.bf16.gmra.mxu1 %v7888_v45 }
 0x5e5   : > { %v8530_v29 = vmax.f32 %v8424_v14, 0.0  ;;  %v7021_v30 = vsel %vm1550_vm11, %v6957_v6, %v6615_v38  ;;  %v8431_v50 = vpop.f32.mrf.mxu0 }
 0x5e6   : > { %v7938_v0 = vrot.slane %v7936_v28, 3  ;;  %v7941_v21 = vrot.slane %v7939_v32, 4  ;;  %v7945_v4 = vrot.slane %v7943_v47, 3  ;;  %v7948_v56 = vrot.slane %v7946_v1, 4  ;;  %v6617_v52 = vpop.permute.xlu1 %6616 }
 0x5e7   : > { %v17887_v49 = vpack.c.bf16 %v8530_v29, %v8529_v51  ;;  %v7921_v24 = vshrl.u32 %v7021_v30, 16  ;;  %v7924_v62 = vshll.u32 %v7021_v30, 16  ;;  %v7023_v42 = vsel %vm1550_vm11, %v6959_v61, %v6617_v52  ;;  %v12938_v28 = vpop.f32.mrf.mxu0 }
 0x5e8   : > { %v7942_v41 = vor.u32 %v7941_v21, %v7938_v0  ;;  %v7949_v25 = vor.u32 %v7948_v56, %v7945_v4  ;;  %v7928_v20 = vshrl.u32 %v7023_v42, 16  ;;  %v7931_v5 = vshll.u32 %v7023_v42, 16  ;;  %v13198_v4 = vld [vmem:[%s19012_s5 + $0xf8] sm:$0xff]  }
 0x5e9   : > { %v7923_v10 = vrot.slane %v7921_v24, 3  ;;  %v7926_v37 = vrot.slane %v7924_v62, 4  ;;  %11772 = vmatmul.mubr.msk.bf16.gmra.mxu0 %vm1404_vm9, %v17887_v49  ;;  %v8444_v47 = vpop.f32.mrf.mxu0  ;;  %v13199_v56 = vld [vmem:[%s19012_s5 + $0xb8] sm:$0xff]   ;;  %12400 = vmatprep.subr.bf16.mxu0 %v13198_v4  ;;  %v13222_v4 = vld [vmem:[%s19012_s5 + $0xc8] sm:$0xff]  }
 0x5ea   : > { %v7930_v60 = vrot.slane %v7928_v20, 3  ;;  %v7933_v9 = vrot.slane %v7931_v5, 4  ;;  %v7950_v2 = vsel %vm1807_vm8, %v7942_v41, %v7949_v25  ;;  %8727 = vmatprep.mubr.bf16.mxu0 %v19445_v63  ;;  %12401 = vmatpush3.bf16.msra.mxu0 %v13199_v56  ;;  %v13223_v56 = vld [vmem:[%s19012_s5 + $0x48] sm:$0xff]  }
 0x5eb   : > { %8353 = vmatprep.mubr.bf16.mxu1 %v7950_v2  ;;  %v7927_v22 = vor.u32 %v7926_v37, %v7923_v10  ;;  %v12939_v30 = vpop.f32.mrf.mxu0 }
 0x5ec   : > { %v7934_v34 = vor.u32 %v7933_v9, %v7930_v60  ;;  %v12310_v46 = vpop.f32.mrf.mxu1  ;;  %v13200_v60 = vld [vmem:[%s19012_s5 + $0xf0] sm:$0xff]  }
 0x5ed   : > { %v8447_v62 = vpop.f32.mrf.mxu0  ;;  %12402 = vmatprep.subr.bf16.mxu0 %v13200_v60  ;;  %v13229_v60 = vld [vmem:[%s19012_s5] sm:$0xff]  }
 0x5ee   : > { %v12311_v55 = vpop.f32.mrf.mxu1  ;;  %v7935_v53 = vsel %vm1807_vm8, %v7927_v22, %v7934_v34  ;;  %v13201_v22 = vld [vmem:[%s19012_s5 + $0xb0] sm:$0xff]   ;;  %v13202_v34 = vld [vmem:[%s19012_s5 + $0x78] sm:$0xff]  }
 0x5ef   : > { %v12312_v27 = vadd.f32 %v12311_v55, %v12310_v46  ;;  %8354 = vmatmul.mubr.bf16.gmra.mxu1 %v7935_v53  ;;  %v13203_v46 = vld [vmem:[%s19012_s5 + $0x38] sm:$0xff]   ;;  %12403 = vmatpush3.bf16.msra.mxu0 %v13201_v22 }
 0x5f0   : > { %v12313_v59 = vpop.f32.mrf.mxu1  ;;  %9044 = vmatprep.mubr.bf16.mxu1 %v19445_v63  ;;  %12512 = vmatprep.subr.bf16.mxu1 %v13202_v34 }
 0x5f1   : > { %v8268_v48 = vadd.f32 %v12312_v27, %v17706_v15 }
 0x5f2   : > { %v12314_v19 = vpop.f32.mrf.mxu1 }
 0x5f3   : > { %v12315_v23 = vadd.f32 %v12314_v19, %v12313_v59  ;;  %v8429_v13 = vadd.f32 %v8428_v31, %v8268_v48  ;;  %v13204_v59 = vld [vmem:[%s19012_s5 + $0x70] sm:$0xff]  }
 0x5f4   : > { %v13205_v48 = vld [vmem:[%s19012_s5 + $0x30] sm:$0xff]  }
 0x5f5   : > { %v8271_v7 = vadd.f32 %v12315_v23, %v17706_v15  ;;  %v8531_v16 = vmax.f32 %v8429_v13, 0.0  ;;  %v13207_v13 = vld [vmem:[%s19012_s5 + $0x68] sm:$0xff]  }
 0x5f7   : > { %v8432_v18 = vadd.f32 %v8431_v50, %v8271_v7  ;;  %11789 = vmatmul.mubr.msk.bf16.vlgmr.msra.gmra.mxu1 %vm1404_vm9, %v17738_v58  ;;  %v13208_v50 = vld [vmem:[%s19012_s5 + $0xa8] sm:$0xff]  }
 0x5f8   : > { %9054 = vmatprep.mubr.bf16.mxu1 %v19445_v63  ;;  %12513 = vmatpush3.bf16.msra.mxu1 %v13203_v46 }
 0x5f9   : > { %v8532_v26 = vmax.f32 %v8432_v18, 0.0  ;;  %12514 = vmatprep.subr.bf16.mxu1 %v13204_v59  ;;  %v13209_v18 = vld [vmem:[%s19012_s5 + $0x28] sm:$0xff]  }
 0x5fb   : > { %v17901_v39 = vpack.c.bf16 %v8532_v26, %v8531_v16  ;;  %v13210_v16 = vld [vmem:[%s19012_s5 + $0xe0] sm:$0xff]  }
 0x5fc   : > { %12515 = vmatpush3.bf16.msra.mxu1 %v13205_v48  ;;  %v13211_v26 = vld [vmem:[%s19012_s5 + $0x60] sm:$0xff]  }
 0x5fd   : > { %11773 = vmatmul.mubr.msk.bf16.gmra.mxu0 %vm1404_vm9, %v17901_v39  ;;  %12516 = vmatprep.subr.bf16.mxu1 %v13207_v13 }
 0x5fe   : > { %8737 = vmatprep.mubr.bf16.mxu0 %v19445_v63 }
 0x5ff   : > { %11790 = vmatmul.mubr.msk.bf16.gmra.mxu1 %vm1404_vm9, %v17788_v36 }
 0x600   : > { %v12316_v45 = vpop.f32.mrf.mxu1  ;;  %9064 = vmatprep.mubr.bf16.mxu1 %v19445_v63  ;;  %12517 = vmatpush3.bf16.msra.mxu1 %v13209_v18 }
 0x601   : > { %12518 = vmatprep.subr.bf16.mxu1 %v13211_v26 }
 0x602   : > { %v12317_v33 = vpop.f32.mrf.mxu1 }
 0x603   : > { %v12318_v54 = vadd.f32 %v12317_v33, %v12316_v45  ;;  %v17988_v45 = vpop.f32.mrf.mxu0 }
 0x604   : > { %v12319_v57 = vpop.f32.mrf.mxu1 }
 0x605   : > { %v8276_v12 = vadd.f32 %v12318_v54, %v17706_v15  ;;  %v8460_v54 = vpop.f32.mrf.mxu0 }
 0x606   : > { %v12320_v44 = vpop.f32.mrf.mxu1 }
 0x607   : > { %v12321_v8 = vadd.f32 %v12320_v44, %v12319_v57  ;;  %11791 = vmatmul.mubr.msk.bf16.gmra.mxu1 %vm1404_vm9, %v17847_v43  ;;  %v8437_v40 = vadd.f32 %v12934_v3, %v8276_v12  ;;  %v13212_v12 = vld [vmem:[%s19012_s5 + $0xa0] sm:$0xff]  }
 0x608   : > { %9074 = vmatprep.mubr.bf16.mxu1 %v19445_v63  ;;  %v13213_v44 = vld [vmem:[%s19012_s5 + $0x20] sm:$0xff]  }
 0x609   : > { %v8279_v6 = vadd.f32 %v12321_v8, %v17706_v15  ;;  %v8533_v35 = vmax.f32 %v8437_v40, 0.0  ;;  %v13214_v40 = vld [vmem:[%s19012_s5 + $0xd8] sm:$0xff]   ;;  %12519 = vmatpush3.bf16.msra.mxu1 %v13213_v44 }
 0x60b   : > { %v8440_v14 = vadd.f32 %v12935_v17, %v8279_v6  ;;  %v13206_v17 = vld [vmem:[%s19012_s5 + $0xe8] sm:$0xff]   ;;  %v13215_v6 = vld [vmem:[%s19012_s5 + $0x58] sm:$0xff]  }
 0x60c   : > { %12404 = vmatprep.subr.bf16.mxu0 %v13206_v17  ;;  %12520 = vmatprep.subr.bf16.mxu1 %v13215_v6 }
 0x60d   : > { %v8534_v11 = vmax.f32 %v8440_v14, 0.0  ;;  %12405 = vmatpush3.bf16.msra.mxu0 %v13208_v50 }
 0x60e   : > { %12406 = vmatprep.subr.bf16.mxu0 %v13210_v16 }
 0x60f   : > { %v17914_v38 = vpack.c.bf16 %v8534_v11, %v8533_v35  ;;  %11792 = vmatmul.mubr.msk.bf16.gmra.mxu1 %vm1404_vm9, %v17887_v49  ;;  %v13216_v35 = vld [vmem:[%s19012_s5 + $0x98] sm:$0xff]  }
 0x610   : > { %9084 = vmatprep.mubr.bf16.mxu1 %v19445_v63  ;;  %v13217_v11 = vld [vmem:[%s19012_s5 + $0x18] sm:$0xff]  }
 0x611   : > { %11774 = vmatmul.mubr.msk.bf16.gmra.mxu0 %vm1404_vm9, %v17914_v38  ;;  %12521 = vmatpush3.bf16.msra.mxu1 %v13217_v11 }
 0x612   : > { %8747 = vmatprep.mubr.bf16.mxu0 %v19445_v63  ;;  %12407 = vmatpush3.bf16.msra.mxu0 %v13212_v12 }
 0x613   : > { %12408 = vmatprep.subr.bf16.mxu0 %v13214_v40 }
 0x614   : > { %v12322_v32 = vpop.f32.mrf.mxu1 }
 0x616   : > { %v12323_v1 = vpop.f32.mrf.mxu1  ;;  %12409 = vmatpush3.bf16.msra.mxu0 %v13216_v35 }
 0x617   : > { %v12324_v51 = vadd.f32 %v12323_v1, %v12322_v32  ;;  %11793 = vmatmul.mubr.msk.bf16.gmra.mxu1 %vm1404_vm9, %v17901_v39  ;;  %v13218_v32 = vld [vmem:[%s19012_s5 + $0xd0] sm:$0xff]   ;;  %v12943_v1 = vpop.f32.mrf.mxu0 }
 0x618   : > { %v12325_v29 = vpop.f32.mrf.mxu1  ;;  %9094 = vmatprep.mubr.bf16.mxu1 %v19445_v63  ;;  %12410 = vmatprep.subr.bf16.mxu0 %v13218_v32 }
 0x619   : > { %v8284_v61 = vadd.f32 %v12324_v51, %v17706_v15 }
 0x61a   : > { %v12326_v0 = vpop.f32.mrf.mxu1 }
 0x61b   : > { %v12327_v21 = vadd.f32 %v12326_v0, %v12325_v29  ;;  %v8445_v52 = vadd.f32 %v8444_v47, %v8284_v61  ;;  %v13219_v47 = vld [vmem:[%s19012_s5 + $0x50] sm:$0xff]  }
 0x61c   : > { %v13220_v61 = vld [vmem:[%s19012_s5 + $0x90] sm:$0xff]   ;;  %12522 = vmatprep.subr.bf16.mxu1 %v13219_v47 }
 0x61d   : > { %v8287_v24 = vadd.f32 %v12327_v21, %v17706_v15  ;;  %v8535_v41 = vmax.f32 %v8445_v52, 0.0  ;;  %v8463_v52 = vpop.f32.mrf.mxu0  ;;  %12411 = vmatpush3.bf16.msra.mxu0 %v13220_v61 }
 0x61e   : > { %12412 = vmatprep.subr.bf16.mxu0 %v13222_v4 }
 0x61f   : > { %v8448_v42 = vadd.f32 %v8447_v62, %v8287_v24  ;;  %11794 = vmatmul.mubr.msk.bf16.gmra.mxu1 %vm1404_vm9, %v17914_v38  ;;  %v13224_v62 = vld [vmem:[%s19012_s5 + $0x88] sm:$0xff]  }
 0x620   : > { %9104 = vmatprep.mubr.bf16.mxu1 %v19445_v63 }
 0x621   : > { %v8536_v25 = vmax.f32 %v8448_v42, 0.0  ;;  %v13225_v42 = vld [vmem:[%s19012_s5 + $0x8] sm:$0xff]   ;;  %12413 = vmatpush3.bf16.msra.mxu0 %v13224_v62 }
 0x623   : > { %v17936_v20 = vpack.c.bf16 %v8536_v25, %v8535_v41 }
 0x625   : > { %11775 = vmatmul.mubr.msk.bf16.gmra.mxu0 %vm1404_vm9, %v17936_v20 }
 0x626   : > { %8757 = vmatprep.mubr.bf16.mxu0 %v19445_v63 }
 0x627   : > { %11795 = vmatmul.mubr.msk.bf16.gmra.mxu1 %vm1404_vm9, %v17936_v20 }
 0x628   : > { %v12328_v5 = vpop.f32.mrf.mxu1  ;;  %9114 = vmatprep.mubr.bf16.mxu1 %v19445_v63 }
 0x62a   : > { %v12329_v10 = vpop.f32.mrf.mxu1 }
 0x62b   : > { %v12330_v37 = vadd.f32 %v12329_v10, %v12328_v5  ;;  %v13226_v10 = vld [vmem:[%s19012_s5 + $0xc0] sm:$0xff]  }
 0x62c   : > { %v12331_v3 = vpop.f32.mrf.mxu1  ;;  %12414 = vmatprep.subr.bf16.mxu0 %v13226_v10 }
 0x62d   : > { %v8292_v9 = vadd.f32 %v12330_v37, %v17706_v15  ;;  %v13227_v37 = vld [vmem:[%s19012_s5 + $0x40] sm:$0xff]  }
 0x62e   : > { %v12332_v2 = vpop.f32.mrf.mxu1 }
 0x62f   : > { %v12333_v31 = vadd.f32 %v12332_v2, %v12331_v3  ;;  %v8453_v55 = vadd.f32 %v12938_v28, %v8292_v9  ;;  %v13228_v3 = vld [vmem:[%s19012_s5 + $0x80] sm:$0xff]  }
 0x630   : > { %12415 = vmatpush3.bf16.msra.mxu0 %v13228_v3 }
 0x631   : > { %v8295_v53 = vadd.f32 %v12333_v31, %v17706_v15  ;;  %v8537_v19 = vmax.f32 %v8453_v55, 0.0 }
 0x633   : > { %v8456_v27 = vadd.f32 %v12939_v30, %v8295_v53  ;;  %v13221_v30 = vld [vmem:[%s19012_s5 + $0x10] sm:$0xff]  }
 0x634   : > { %12523 = vmatpush3.bf16.msra.mxu1 %v13221_v30 }
 0x635   : > { %v8538_v23 = vmax.f32 %v8456_v27, 0.0  ;;  %12524 = vmatprep.subr.bf16.mxu1 %v13223_v56 }
 0x637   : > { %v17970_v7 = vpack.c.bf16 %v8538_v23, %v8537_v19  ;;  %v12946_v19 = vpop.f32.mrf.mxu0 }
 0x638   : > { %12525 = vmatpush3.bf16.msra.mxu1 %v13225_v42 }
 0x639   : > { %11776 = vmatmul.mubr.msk.bf16.gmra.mxu0 %vm1404_vm9, %v17970_v7  ;;  %11796 = vmatmul.mubr.msk.bf16.gmra.mxu1 %vm1404_vm9, %v17970_v7  ;;  %v8476_v13 = vpop.f32.mrf.mxu0 }
 0x63a   : > { %8767 = vmatprep.mubr.bf16.mxu0 %v19445_v63  ;;  %9124 = vmatprep.mubr.bf16.mxu1 %v19445_v63 }
 0x63b   : > { %12526 = vmatprep.subr.bf16.mxu1 %v13227_v37  ;;  %v12947_v16 = vpop.f32.mrf.mxu0 }
 0x63c   : > { %v12334_v33 = vpop.f32.mrf.mxu1  ;;  %12527 = vmatpush3.bf16.msra.mxu1 %v13229_v60 }
 0x63e   : > { %v12335_v57 = vpop.f32.mrf.mxu1 }
 0x63f   : > { %v12336_v8 = vadd.f32 %v12335_v57, %v12334_v33  ;;  %v8479_v57 = vpop.f32.mrf.mxu0 }
 0x640   : > { %v12337_v14 = vpop.f32.mrf.mxu1 }
 0x641   : > { %v8300_v28 = vadd.f32 %v12336_v8, %v17706_v15  ;;  %v18068_v44 = vpop.f32.mrf.mxu0 }
 0x642   : > { %v12338_v51 = vpop.f32.mrf.mxu1 }
 0x643   : > { %v12339_v29 = vadd.f32 %v12338_v51, %v12337_v14  ;;  %v8461_v0 = vadd.f32 %v8460_v54, %v8300_v28  ;;  %v8492_v14 = vpop.f32.mrf.mxu0 }
 0x645   : > { %v8303_v21 = vadd.f32 %v12339_v29, %v17706_v15  ;;  %v8539_v41 = vmax.f32 %v8461_v0, 0.0  ;;  %v18073_v32 = vpop.f32.mrf.mxu0 }
 0x647   : > { %v8464_v24 = vadd.f32 %v8463_v52, %v8303_v21 }
 0x649   : > { %v8540_v25 = vmax.f32 %v8464_v24, 0.0 }
 0x64b   : > { %v18036_v5 = vpack.c.bf16 %v8540_v25, %v8539_v41 }
 0x64d   : > { %11777 = vmatmul.mubr.msk.bf16.gmra.mxu0 %vm1404_vm9, %v18036_v5  ;;  %11797 = vmatmul.mubr.msk.bf16.gmra.mxu1 %vm1404_vm9, %v18036_v5 }
 0x64e   : > { %8777 = vmatprep.mubr.bf16.mxu0 %v19445_v63  ;;  %9134 = vmatprep.mubr.bf16.mxu1 %v19445_v63 }
 0x650   : > { %v12340_v9 = vpop.f32.mrf.mxu1 }
 0x652   : > { %v12341_v2 = vpop.f32.mrf.mxu1 }
 0x653   : > { %v12342_v22 = vadd.f32 %v12341_v2, %v12340_v9 }
 0x654   : > { %v12343_v34 = vpop.f32.mrf.mxu1 }
 0x655   : > { %v8308_v46 = vadd.f32 %v12342_v22, %v17706_v15 }
 0x656   : > { %v12344_v31 = vpop.f32.mrf.mxu1 }
 0x657   : > { %v12345_v55 = vadd.f32 %v12344_v31, %v12343_v34  ;;  %v8469_v53 = vadd.f32 %v17988_v45, %v8308_v46  ;;  %v18106_v34 = vld [vmem:[%s19009_s2 + $0x2] ss:$0 sm:$0xff] }
 0x659   : > { %v8311_v27 = vadd.f32 %v12345_v55, %v17706_v15  ;;  %v8541_v48 = vmax.f32 %v8469_v53, 0.0 }
 0x65b   : > { %v8472_v59 = vadd.f32 %v12943_v1, %v8311_v27  ;;  %v8495_v1 = vpop.f32.mrf.mxu0 }
 0x65d   : > { %v8542_v17 = vmax.f32 %v8472_v59, 0.0  ;;  %v18081_v29 = vpop.f32.mrf.mxu0 }
 0x65f   : > { %v18059_v23 = vpack.c.bf16 %v8542_v17, %v8541_v48  ;;  %v18084_v4 = vpop.f32.mrf.mxu0  ;;  %v18115_v48 = vld [vmem:[%s19010_s3 + $0x50] sm:$0xff] }
 0x660   : > { %v18120_v17 = vld [vmem:[%s19010_s3 + $0x70] sm:$0xff] }
 0x661   : > { %11778 = vmatmul.mubr.msk.bf16.gmra.mxu0 %vm1404_vm9, %v18059_v23  ;;  %11798 = vmatmul.mubr.msk.bf16.gmra.mxu1 %vm1404_vm9, %v18059_v23  ;;  %v18087_v62 = vpop.f32.mrf.mxu0 }
 0x662   : > { %8787 = vmatprep.mubr.bf16.mxu0 %v19445_v63  ;;  %9144 = vmatprep.mubr.bf16.mxu1 %v19445_v63 }
 0x663   : > { %v18089_v10 = vpop.f32.mrf.mxu0 }
 0x664   : > { %v12346_v50 = vpop.f32.mrf.mxu1 }
 0x666   : > { %v12347_v18 = vpop.f32.mrf.mxu1 }
 0x667   : > { %v12348_v26 = vadd.f32 %v12347_v18, %v12346_v50  ;;  %v11840_v50 = vcombine.high %v18115_v48, %v18120_v17 }
 0x668   : > { %v12349_v45 = vpop.f32.mrf.mxu1 }
 0x669   : > { %v8316_v33 = vadd.f32 %v12348_v26, %v17706_v15  ;;  %9895 = vmatprep.subr.bf16.mxu0 %v11840_v50 }
 0x66a   : > { %v12350_v54 = vpop.f32.mrf.mxu1 }
 0x66b   : > { %v12351_v12 = vadd.f32 %v12350_v54, %v12349_v45  ;;  %v8477_v8 = vadd.f32 %v8476_v13, %v8316_v33 }
 0x66d   : > { %v8319_v40 = vadd.f32 %v12351_v12, %v17706_v15  ;;  %v8543_v35 = vmax.f32 %v8477_v8, 0.0 }
 0x66f   : > { %v8480_v6 = vadd.f32 %v8479_v57, %v8319_v40 }
 0x671   : > { %v8544_v11 = vmax.f32 %v8480_v6, 0.0 }
 0x673   : > { %v18071_v28 = vpack.c.bf16 %v8544_v11, %v8543_v35 }
 0x675   : > { %11779 = vmatmul.mubr.msk.bf16.gmra.mxu0 %vm1404_vm9, %v18071_v28  ;;  %11799 = vmatmul.mubr.msk.bf16.gmra.mxu1 %vm1404_vm9, %v18071_v28 }
 0x676   : > { %8797 = vmatprep.mubr.bf16.mxu0 %v19445_v63  ;;  %9154 = vmatprep.mubr.bf16.mxu1 %v19445_v63 }
 0x678   : > { %v12352_v47 = vpop.f32.mrf.mxu1 }
 0x67a   : > { %v12353_v51 = vpop.f32.mrf.mxu1 }
 0x67b   : > { %v12354_v61 = vadd.f32 %v12353_v51, %v12352_v47 }
 0x67c   : > { %v12355_v30 = vpop.f32.mrf.mxu1 }
 0x67d   : > { %v8324_v0 = vadd.f32 %v12354_v61, %v17706_v15 }
 0x67e   : > { %v12356_v21 = vpop.f32.mrf.mxu1 }
 0x67f   : > { %v12357_v56 = vadd.f32 %v12356_v21, %v12355_v30  ;;  %v8485_v52 = vadd.f32 %v12946_v19, %v8324_v0 }
 0x681   : > { %v8327_v24 = vadd.f32 %v12357_v56, %v17706_v15  ;;  %v8545_v41 = vmax.f32 %v8485_v52, 0.0  ;;  %v18099_v15 = vpop.f32.mrf.mxu0 }
 0x683   : > { %v8488_v42 = vadd.f32 %v12947_v16, %v8327_v24  ;;  %v18101_v9 = vpop.f32.mrf.mxu0 }
 0x685   : > { %v8546_v25 = vmax.f32 %v8488_v42, 0.0  ;;  %v18109_v55 = vpop.f32.mrf.mxu0 }
 0x687   : > { %v18091_v37 = vpack.c.bf16 %v8546_v25, %v8545_v41  ;;  %v18122_v19 = vpop.f32.mrf.mxu0  ;;  %v8577_v41 = vlaneseq }
 0x689   : > { %11780 = vmatmul.mubr.msk.bf16.gmra.mxu0 %vm1404_vm9, %v18091_v37  ;;  %11800 = vmatmul.mubr.msk.bf16.gmra.mxu1 %vm1404_vm9, %v18091_v37  ;;  %v18126_v18 = vpop.f32.mrf.mxu0 }
 0x68a   : > { %8807 = vmatprep.mubr.bf16.mxu0 %v19445_v63  ;;  %9164 = vmatprep.mubr.bf16.mxu1 %v19445_v63 }
 0x68b   : > { %v18130_v33 = vpop.f32.mrf.mxu0 }
 0x68c   : > { %v12358_v3 = vpop.f32.mrf.mxu1 }
 0x68d   : > { %v18138_v8 = vpop.f32.mrf.mxu0 }
 0x68e   : > { %v12359_v60 = vpop.f32.mrf.mxu1 }
 0x68f   : > { %v12360_v2 = vadd.f32 %v12359_v60, %v12358_v3  ;;  %v18141_v11 = vpop.f32.mrf.mxu0 }
 0x690   : > { %v12361_v22 = vpop.f32.mrf.mxu1 }
 0x691   : > { %v8332_v46 = vadd.f32 %v18106_v34, %v12360_v2 }
 0x692   : > { %v12362_v31 = vpop.f32.mrf.mxu1 }
 0x693   : > { %v12363_v53 = vadd.f32 %v12362_v31, %v12361_v22  ;;  %v8493_v27 = vadd.f32 %v8492_v14, %v8332_v46 }
 0x695   : > { %v8335_v59 = vadd.f32 %v18106_v34, %v12363_v53  ;;  %v8547_v16 = vmax.f32 %v8493_v27, 0.0  ;;  %v18145_v61 = vpop.f32.mrf.mxu0 }
 0x697   : > { %v8496_v13 = vadd.f32 %v8495_v1, %v8335_v59  ;;  %v18149_v25 = vpop.f32.mrf.mxu0 }
 0x699   : > { %v8548_v26 = vmax.f32 %v8496_v13, 0.0  ;;  %v18159_v46 = vpop.f32.mrf.mxu0 }
 0x69b   : > { %v18128_v45 = vpack.c.bf16 %v8548_v26, %v8547_v16  ;;  %v18166_v16 = vpop.f32.mrf.mxu0 }
 0x69c   : > { %v12364_v54 = vpop.f32.mrf.mxu1 }
 0x69d   : > { %11781 = vmatmul.mubr.msk.bf16.gmra.mxu0 %vm1404_vm9, %v18128_v45  ;;  %11801 = vmatmul.mubr.msk.bf16.gmra.mxu1 %vm1404_vm9, %v18128_v45 }
 0x69e   : > { %8817 = vmatprep.mubr.bf16.mxu0 %v19445_v63  ;;  %9174 = vmatprep.mubr.bf16.mxu1 %v19445_v63  ;;  %v12365_v57 = vpop.f32.mrf.mxu1 }
 0x69f   : > { %v12366_v12 = vadd.f32 %v12365_v57, %v12364_v54  ;;  %v8575_v54 = vld [vmem:[%s19011_s4] sm:$0x3] }
 0x6a0   : > { %v12367_v40 = vpop.f32.mrf.mxu1 }
 0x6a1   : > { %v8340_v6 = vadd.f32 %v18106_v34, %v12366_v12 }
 0x6a2   : > { %v12368_v14 = vpop.f32.mrf.mxu1 }
 0x6a3   : > { %v12369_v35 = vadd.f32 %v12368_v14, %v12367_v40  ;;  %v8501_v1 = vadd.f32 %v18068_v44, %v8340_v6 }
 0x6a4   : > { %v12370_v47 = vpop.f32.mrf.mxu1 }
 0x6a5   : > { %v8343_v51 = vadd.f32 %v18106_v34, %v12369_v35  ;;  %v8549_v52 = vmax.f32 %v8501_v1, 0.0  ;;  %v8980_v1 = vld [vmem:[%s19011_s4 + $0x2] sm:$0x3] }
 0x6a6   : > { %v12371_v30 = vpop.f32.mrf.mxu1 }
 0x6a7   : > { %v8504_v0 = vadd.f32 %v18073_v32, %v8343_v51  ;;  %v12372_v21 = vadd.f32 %v12371_v30, %v12370_v47  ;;  %v8578_v32 = vshrl.u32 %v8577_v41, 7 }
 0x6a8   : > { %v12373_v56 = vpop.f32.mrf.mxu1 }
 0x6a9   : > { %v8550_v24 = vmax.f32 %v8504_v0, 0.0  ;;  %v8348_v42 = vadd.f32 %v18106_v34, %v12372_v21  ;;  %v18164_v27 = vsub.s32 1, %v8578_v32  ;;  %v18183_v35 = vsub.s32 0, %v8578_v32 }
 0x6aa   : > { %v12374_v3 = vpop.f32.mrf.mxu1 }
 0x6ab   : > { %v18151_v60 = vpack.c.bf16 %v8550_v24, %v8549_v52  ;;  %v12375_v44 = vadd.f32 %v12374_v3, %v12373_v56  ;;  %v8509_v2 = vadd.f32 %v18084_v4, %v8348_v42  ;;  %v18175_v40 = vrot.slane %v8575_v54, %v18164_v27 }
 0x6ac   : > { %v18195_v21 = vrot.slane %v8980_v1, %v18164_v27  ;;  %v18203_v42 = vrot.slane %v8575_v54, %v18183_v35 }
 0x6ad   : > { %v8351_v22 = vadd.f32 %v18106_v34, %v12375_v44  ;;  %11782 = vmatmul.mubr.msk.bf16.gmra.mxu0 %vm1404_vm9, %v18151_v60  ;;  %11802 = vmatmul.mubr.msk.bf16.gmra.mxu1 %vm1404_vm9, %v18151_v60  ;;  %v8551_v59 = vmax.f32 %v8509_v2, 0.0  ;;  %v8696_v47 = vadd.f32 %v18122_v19, %v18175_v40  ;;  %v8692_v56 = vadd.f32 %v18101_v9, %v18175_v40 }
 0x6ae   : > { %8827 = vmatprep.mubr.bf16.mxu0 %v19445_v63  ;;  %9184 = vmatprep.mubr.bf16.mxu1 %v19445_v63 }
 0x6af   : > { %v12376_v31 = vpop.f32.mrf.mxu1  ;;  %v8512_v53 = vadd.f32 %v18089_v10, %v8351_v22  ;;  %v18177_v10 = vpop.f32.mrf.mxu0  ;;  %v8851_v41 = vmax.f32 %v8696_v47, 0.0  ;;  %v8849_v22 = vmax.f32 %v8692_v56, 0.0 }
 0x6b1   : > { %v12377_v4 = vpop.f32.mrf.mxu1  ;;  %v8552_v13 = vmax.f32 %v8512_v53, 0.0  ;;  %v18199_v19 = vpop.f32.mrf.mxu0 }
 0x6b2   : > { %v12378_v50 = vadd.f32 %v12377_v4, %v12376_v31  ;;  %v8694_v31 = vadd.f32 %v18109_v55, %v18203_v42  ;;  %v8702_v55 = vadd.f32 %v18130_v33, %v18175_v40 }
 0x6b3   : > { %v12379_v26 = vpop.f32.mrf.mxu1  ;;  %v18171_v57 = vpack.c.bf16 %v8552_v13, %v8551_v59  ;;  %v18209_v32 = vpop.f32.mrf.mxu0  ;;  %v8706_v59 = vadd.f32 %v18141_v11, %v18175_v40 }
 0x6b4   : > { %v8356_v12 = vadd.f32 %v18106_v34, %v12378_v50  ;;  %v8913_v50 = vpack.c.bf16 %v8851_v41, %v8849_v22  ;;  %v8850_v47 = vmax.f32 %v8694_v31, 0.0  ;;  %v8853_v41 = vmax.f32 %v8702_v55, 0.0 }
 0x6b5   : > { %v12380_v6 = vpop.f32.mrf.mxu1  ;;  %11783 = vmatmul.mubr.msk.bf16.gmra.mxu0 %vm1404_vm9, %v18171_v57  ;;  %11803 = vmatmul.mubr.msk.bf16.gmra.mxu1 %vm1404_vm9, %v18171_v57  ;;  %v8700_v31 = vadd.f32 %v18126_v18, %v18203_v42 }
 0x6b6   : > { %v12381_v14 = vadd.f32 %v12380_v6, %v12379_v26  ;;  %8837 = vmatprep.mubr.bf16.mxu0 %v19445_v63  ;;  %9194 = vmatprep.mubr.bf16.mxu1 %v19445_v63  ;;  %v8517_v30 = vadd.f32 %v18081_v29, %v8356_v12  ;;  %v8690_v26 = vadd.f32 %v18099_v15, %v18203_v42  ;;  %v8855_v15 = vmax.f32 %v8706_v59, 0.0 }
 0x6b7   : > { %v9046_v51 = vpop.f32.mrf.mxu1 }
 0x6b8   : > { %v8359_v0 = vadd.f32 %v18106_v34, %v12381_v14  ;;  %v8553_v44 = vmax.f32 %v8517_v30, 0.0  ;;  %v18206_v34 = vrot.slane %v8980_v1, %v18183_v35  ;;  %v8725_v14 = vpop.f32.mrf.mxu0  ;;  %v8848_v56 = vmax.f32 %v8690_v26, 0.0 }
 0x6b9   : > { %v9048_v52 = vpop.f32.mrf.mxu1 }
 0x6ba   : > { %v8520_v24 = vadd.f32 %v18087_v62, %v8359_v0  ;;  %v9049_v2 = vadd.f32 %v9048_v52, %v18195_v21  ;;  %v9047_v54 = vadd.f32 %v9046_v51, %v18206_v34 }
 0x6bb   : > { %v9050_v3 = vpop.f32.mrf.mxu1 }
 0x6bc   : > { %v8554_v29 = vmax.f32 %v8520_v24, 0.0  ;;  %v9051_v53 = vadd.f32 %v9050_v3, %v18206_v34  ;;  %v9206_v12 = vmax.f32 %v9049_v2, 0.0  ;;  %v9205_v52 = vmax.f32 %v9047_v54, 0.0 }
 0x6bd   : > { %v9052_v9 = vpop.f32.mrf.mxu1  ;;  %v18228_v0 = vpop.f32.mrf.mxu0  ;;  %v8704_v3 = vadd.f32 %v18138_v8, %v18203_v42  ;;  %v8915_v8 = vpack.c.bf16 %v8855_v15, %v8853_v41  ;;  %v8712_v54 = vadd.f32 %v18149_v25, %v18175_v40  ;;  %v8714_v25 = vadd.f32 %v18159_v46, %v18203_v42 }
 0x6be   : > { %v18213_v62 = vpack.c.bf16 %v8554_v29, %v8553_v44  ;;  %v9053_v4 = vadd.f32 %v9052_v9, %v18195_v21  ;;  %v9207_v1 = vmax.f32 %v9051_v53, 0.0  ;;  %v11839_v44 = vcombine.low %v18115_v48, %v18120_v17 }
 0x6bf   : > { %v9056_v13 = vpop.f32.mrf.mxu1  ;;  %v8912_v29 = vpack.c.bf16 %v8850_v47, %v8848_v56  ;;  %v8716_v53 = vadd.f32 %v18166_v16, %v18175_v40  ;;  %v8854_v17 = vmax.f32 %v8704_v3, 0.0  ;;  %v8852_v16 = vmax.f32 %v8700_v31, 0.0 }
 0x6c0   : > { %v9208_v6 = vmax.f32 %v9053_v4, 0.0  ;;  %11784 = vmatmul.mubr.msk.bf16.gmra.mxu0 %vm1404_vm9, %v18213_v62  ;;  %11804 = vmatmul.mubr.msk.bf16.gmra.mxu1 %vm1404_vm9, %v18213_v62  ;;  %v9269_v2 = vpack.c.bf16 %v9207_v1, %v9205_v52  ;;  %v18241_v4 = vpop.f32.mrf.mxu0  ;;  %v8857_v15 = vmax.f32 %v8712_v54, 0.0  ;;  %v8726_v41 = vadd.f32 %v8725_v14, %v18175_v40 }
 0x6c1   : > { %v9058_v11 = vpop.f32.mrf.mxu1  ;;  %9718 = vmatprep.mubr.bf16.mxu1 %v8913_v50  ;;  %v9057_v50 = vadd.f32 %v9056_v13, %v18206_v34  ;;  %v8859_v55 = vmax.f32 %v8716_v53, 0.0  ;;  %v8722_v46 = vadd.f32 %v18199_v19, %v18175_v40  ;;  %v8858_v14 = vmax.f32 %v8714_v25, 0.0 }
 0x6c2   : > { %v9270_v30 = vpack.c.bf16 %v9208_v6, %v9206_v12  ;;  %v9059_v24 = vadd.f32 %v9058_v11, %v18195_v21  ;;  %v18246_v11 = vpop.f32.mrf.mxu0 }
 0x6c3   : > { %v9060_v51 = vpop.f32.mrf.mxu1  ;;  %v9209_v1 = vmax.f32 %v9057_v50, 0.0 }
 0x6c4   : > { %9461 = vmatprep.mubr.bf16.mxu0 %v9270_v30  ;;  %v9061_v22 = vadd.f32 %v9060_v51, %v18206_v34  ;;  %v9210_v26 = vmax.f32 %v9059_v24, 0.0  ;;  %v8914_v30 = vpack.c.bf16 %v8854_v17, %v8852_v16  ;;  %v8735_v3 = vpop.f32.mrf.mxu0  ;;  %v8861_v16 = vmax.f32 %v8722_v46, 0.0 }
 0x6c5   : > { %v9062_v33 = vpop.f32.mrf.mxu1  ;;  %v8736_v25 = vadd.f32 %v8735_v3, %v18175_v40 }
 0x6c6   : > { %v9063_v9 = vadd.f32 %v9062_v33, %v18195_v21  ;;  %v9211_v18 = vmax.f32 %v9061_v22, 0.0 }
 0x6c7   : > { %v9066_v59 = vpop.f32.mrf.mxu1 }
 0x6c8   : > { %v9212_v48 = vmax.f32 %v9063_v9, 0.0  ;;  %9462 = vmatmul.mubr.bf16.vlgmr.msra.gmra.mxu0 %v9269_v2  ;;  %9719 = vmatmul.mubr.bf16.vlgmr.msra.gmra.mxu1 %v8912_v29  ;;  %v9271_v56 = vpack.c.bf16 %v9211_v18, %v9209_v1  ;;  %v8710_v29 = vadd.f32 %v18145_v61, %v18203_v42  ;;  %v9067_v2 = vadd.f32 %v9066_v59, %v18206_v34  ;;  %v9847_v61 = vld [vmem:[%s19010_s3 + $0x10] sm:$0xff] }
 0x6c9   : > { %v9068_v12 = vpop.f32.mrf.mxu1  ;;  %9726 = vmatprep.mubr.bf16.mxu1 %v8915_v8  ;;  %9896 = vmatpush1.bf16.msra.mxu0 %v11839_v44  ;;  %v8917_v44 = vpack.c.bf16 %v8859_v55, %v8857_v15  ;;  %v9848_v59 = vld [vmem:[%s19010_s3 + $0x30] sm:$0xff]  ;;  %v8724_v55 = vadd.f32 %v18209_v32, %v18203_v42 }
 0x6ca   : > { %v9272_v6 = vpack.c.bf16 %v9212_v48, %v9210_v26  ;;  %v9069_v13 = vadd.f32 %v9068_v12, %v18195_v21  ;;  %v8863_v26 = vmax.f32 %v8726_v41, 0.0  ;;  %v11837_v17 = vcombine.low %v9847_v61, %v9848_v59 }
 0x6cb   : > { %v9070_v47 = vpop.f32.mrf.mxu1  ;;  %v11838_v54 = vcombine.high %v9847_v61, %v9848_v59  ;;  %v8856_v19 = vmax.f32 %v8710_v29, 0.0  ;;  %v9213_v12 = vmax.f32 %v9067_v2, 0.0  ;;  %v8862_v29 = vmax.f32 %v8724_v55, 0.0 }
 0x6cc   : > { %9469 = vmatprep.mubr.bf16.mxu0 %v9272_v6  ;;  %v9071_v52 = vadd.f32 %v9070_v47, %v18206_v34  ;;  %v9214_v22 = vmax.f32 %v9069_v13, 0.0  ;;  %v8732_v2 = vadd.f32 %v18241_v4, %v18175_v40 }
 0x6cd   : > { %v9072_v51 = vpop.f32.mrf.mxu1  ;;  %9897 = vmatprep.subr.bf16.mxu0 %v11838_v54  ;;  %v8916_v1 = vpack.c.bf16 %v8858_v14, %v8856_v19 }
 0x6ce   : > { %v9073_v24 = vadd.f32 %v9072_v51, %v18195_v21  ;;  %v9215_v8 = vmax.f32 %v9071_v52, 0.0  ;;  %9898 = vmatpush1.bf16.msra.mxu0 %v11837_v17  ;;  %v8720_v51 = vadd.f32 %v18177_v10, %v18203_v42  ;;  %v8919_v52 = vpack.c.bf16 %v8863_v26, %v8861_v16 }
 0x6cf   : > { %v9076_v33 = vpop.f32.mrf.mxu1  ;;  %v8865_v61 = vmax.f32 %v8732_v2, 0.0  ;;  %v8734_v26 = vadd.f32 %v18246_v11, %v18203_v42 }
 0x6d0   : > { %v9216_v9 = vmax.f32 %v9073_v24, 0.0  ;;  %9470 = vmatmul.mubr.bf16.gmra.mxu0 %v9271_v56  ;;  %9727 = vmatmul.mubr.bf16.gmra.mxu1 %v8914_v30  ;;  %v9273_v13 = vpack.c.bf16 %v9215_v8, %v9213_v12  ;;  %v9077_v24 = vadd.f32 %v9076_v33, %v18206_v34  ;;  %v8860_v10 = vmax.f32 %v8720_v51, 0.0 }
 0x6d1   : > { %v18259_v31 = vpop.f32.mrf.mxu0  ;;  %v9078_v53 = vpop.f32.mrf.mxu1  ;;  %9734 = vmatprep.mubr.bf16.mxu1 %v8917_v44 }
 0x6d2   : > { %v9274_v50 = vpack.c.bf16 %v9216_v9, %v9214_v22  ;;  %v9079_v18 = vadd.f32 %v9078_v53, %v18195_v21  ;;  %v8867_v53 = vmax.f32 %v8736_v25, 0.0  ;;  %v9217_v14 = vmax.f32 %v9077_v24, 0.0 }
 0x6d3   : > { %v9080_v48 = vpop.f32.mrf.mxu1  ;;  %v8741_v6 = vpop.f32.mrf.mxu0 }
 0x6d4   : > { %9477 = vmatprep.mubr.bf16.mxu0 %v9274_v50  ;;  %v9081_v30 = vadd.f32 %v9080_v48, %v18206_v34  ;;  %v9218_v41 = vmax.f32 %v9079_v18, 0.0  ;;  %v8918_v50 = vpack.c.bf16 %v8862_v29, %v8860_v10  ;;  %v8921_v12 = vpack.c.bf16 %v8867_v53, %v8865_v61 }
 0x6d5   : > { %v9082_v47 = vpop.f32.mrf.mxu1  ;;  %v8743_v32 = vpop.f32.mrf.mxu0  ;;  %v8730_v18 = vadd.f32 %v18228_v0, %v18203_v42  ;;  %v8742_v11 = vadd.f32 %v8741_v6, %v18175_v40 }
 0x6d6   : > { %v9083_v15 = vadd.f32 %v9082_v47, %v18195_v21  ;;  %v9219_v9 = vmax.f32 %v9081_v30, 0.0 }
 0x6d7   : > { %v9086_v56 = vpop.f32.mrf.mxu1  ;;  %v8745_v8 = vpop.f32.mrf.mxu0  ;;  %v8869_v0 = vmax.f32 %v8742_v11, 0.0 }
 0x6d8   : > { %v9220_v44 = vmax.f32 %v9083_v15, 0.0  ;;  %9478 = vmatmul.mubr.bf16.gmra.mxu0 %v9273_v13  ;;  %9735 = vmatmul.mubr.bf16.gmra.mxu1 %v8916_v1  ;;  %v9275_v48 = vpack.c.bf16 %v9219_v9, %v9217_v14  ;;  %v8746_v54 = vadd.f32 %v8745_v8, %v18175_v40  ;;  %v9087_v16 = vadd.f32 %v9086_v56, %v18206_v34 }
 0x6d9   : > { %v9088_v22 = vpop.f32.mrf.mxu1  ;;  %9742 = vmatprep.mubr.bf16.mxu1 %v8919_v52  ;;  %v8866_v13 = vmax.f32 %v8734_v26, 0.0  ;;  %v8864_v52 = vmax.f32 %v8730_v18, 0.0  ;;  %v8744_v56 = vadd.f32 %v8743_v32, %v18203_v42 }
 0x6da   : > { %v9276_v46 = vpack.c.bf16 %v9220_v44, %v9218_v41  ;;  %v9089_v33 = vadd.f32 %v9088_v22, %v18195_v21  ;;  %v8871_v51 = vmax.f32 %v8746_v54, 0.0  ;;  %v9221_v24 = vmax.f32 %v9087_v16, 0.0 }
 0x6db   : > { %v9090_v3 = vpop.f32.mrf.mxu1  ;;  %v8920_v6 = vpack.c.bf16 %v8866_v13, %v8864_v52  ;;  %v8870_v32 = vmax.f32 %v8744_v56, 0.0 }
 0x6dc   : > { %9485 = vmatprep.mubr.bf16.mxu0 %v9276_v46  ;;  %v9091_v4 = vadd.f32 %v9090_v3, %v18206_v34  ;;  %v9222_v55 = vmax.f32 %v9089_v33, 0.0  ;;  %v8740_v46 = vadd.f32 %v18259_v31, %v18203_v42  ;;  %v8923_v14 = vpack.c.bf16 %v8871_v51, %v8869_v0 }
 0x6dd   : > { %v9092_v59 = vpop.f32.mrf.mxu1 }
 0x6de   : > { %v9093_v17 = vadd.f32 %v9092_v59, %v18195_v21  ;;  %v9223_v30 = vmax.f32 %v9091_v4, 0.0  ;;  %v8868_v4 = vmax.f32 %v8740_v46, 0.0 }
 0x6df   : > { %v9096_v19 = vpop.f32.mrf.mxu1 }
 0x6e0   : > { %v9224_v47 = vmax.f32 %v9093_v17, 0.0  ;;  %9486 = vmatmul.mubr.bf16.gmra.mxu0 %v9275_v48  ;;  %9743 = vmatmul.mubr.bf16.gmra.mxu1 %v8918_v50  ;;  %v9277_v22 = vpack.c.bf16 %v9223_v30, %v9221_v24  ;;  %v9097_v10 = vadd.f32 %v9096_v19, %v18206_v34  ;;  %v8922_v18 = vpack.c.bf16 %v8870_v32, %v8868_v4 }
 0x6e1   : > { %v9098_v1 = vpop.f32.mrf.mxu1  ;;  %9750 = vmatprep.mubr.bf16.mxu1 %v8921_v12 }
 0x6e2   : > { %v9278_v15 = vpack.c.bf16 %v9224_v47, %v9222_v55  ;;  %v9099_v41 = vadd.f32 %v9098_v1, %v18195_v21  ;;  %v9225_v17 = vmax.f32 %v9097_v10, 0.0 }
 0x6e3   : > { %v9100_v25 = vpop.f32.mrf.mxu1 }
 0x6e4   : > { %9493 = vmatprep.mubr.bf16.mxu0 %v9278_v15  ;;  %v9101_v44 = vadd.f32 %v9100_v25, %v18206_v34  ;;  %v9226_v8 = vmax.f32 %v9099_v41, 0.0 }
 0x6e5   : > { %v8749_v29 = vpop.f32.mrf.mxu0  ;;  %v9102_v2 = vpop.f32.mrf.mxu1 }
 0x6e6   : > { %v9103_v9 = vadd.f32 %v9102_v2, %v18195_v21  ;;  %v9227_v50 = vmax.f32 %v9101_v44, 0.0  ;;  %v8750_v15 = vadd.f32 %v8749_v29, %v18203_v42 }
 0x6e7   : > { %v8751_v53 = vpop.f32.mrf.mxu0  ;;  %v9106_v3 = vpop.f32.mrf.mxu1 }
 0x6e8   : > { %v9228_v33 = vmax.f32 %v9103_v9, 0.0  ;;  %9494 = vmatmul.mubr.bf16.gmra.mxu0 %v9277_v22  ;;  %9751 = vmatmul.mubr.bf16.gmra.mxu1 %v8920_v6  ;;  %v8752_v61 = vadd.f32 %v8751_v53, %v18175_v40  ;;  %v9279_v16 = vpack.c.bf16 %v9227_v50, %v9225_v17  ;;  %v9107_v51 = vadd.f32 %v9106_v3, %v18206_v34 }
 0x6e9   : > { %v8753_v59 = vpop.f32.mrf.mxu0  ;;  %v9108_v26 = vpop.f32.mrf.mxu1  ;;  %9758 = vmatprep.mubr.bf16.mxu1 %v8923_v14  ;;  %v8872_v44 = vmax.f32 %v8750_v15, 0.0 }
 0x6ea   : > { %v9280_v48 = vpack.c.bf16 %v9228_v33, %v9226_v8  ;;  %v9109_v19 = vadd.f32 %v9108_v26, %v18195_v21  ;;  %v8873_v55 = vmax.f32 %v8752_v61, 0.0  ;;  %v8754_v11 = vadd.f32 %v8753_v59, %v18203_v42 }
 0x6eb   : > { %v8755_v31 = vpop.f32.mrf.mxu0  ;;  %v9110_v54 = vpop.f32.mrf.mxu1  ;;  %v9229_v2 = vmax.f32 %v9107_v51, 0.0 }
 0x6ec   : > { %v8756_v12 = vadd.f32 %v8755_v31, %v18175_v40  ;;  %9501 = vmatprep.mubr.bf16.mxu0 %v9280_v48  ;;  %v9111_v13 = vadd.f32 %v9110_v54, %v18206_v34  ;;  %v9230_v25 = vmax.f32 %v9109_v19, 0.0  ;;  %v8874_v41 = vmax.f32 %v8754_v11, 0.0 }
 0x6ed   : > { %v9112_v47 = vpop.f32.mrf.mxu1 }
 0x6ee   : > { %v8875_v1 = vmax.f32 %v8756_v12, 0.0  ;;  %v9113_v30 = vadd.f32 %v9112_v47, %v18195_v21  ;;  %v9231_v0 = vmax.f32 %v9111_v13, 0.0  ;;  %v8924_v6 = vpack.c.bf16 %v8874_v41, %v8872_v44 }
 0x6f0   : > { %v9232_v52 = vmax.f32 %v9113_v30, 0.0  ;;  %9502 = vmatmul.mubr.bf16.gmra.mxu0 %v9279_v16  ;;  %9759 = vmatmul.mubr.bf16.gmra.mxu1 %v8922_v18  ;;  %v8925_v24 = vpack.c.bf16 %v8875_v1, %v8873_v55  ;;  %v9281_v22 = vpack.c.bf16 %v9231_v0, %v9229_v2 }
 0x6f2   : > { %9766 = vmatprep.mubr.bf16.mxu1 %v8925_v24  ;;  %v9282_v56 = vpack.c.bf16 %v9232_v52, %v9230_v25 }
 0x6f4   : > { %9509 = vmatprep.mubr.bf16.mxu0 %v9282_v56 }
 0x6f8   : > { %9510 = vmatmul.mubr.bf16.gmra.mxu0 %v9281_v22  ;;  %9767 = vmatmul.mubr.bf16.gmra.mxu1 %v8924_v6 }
 0x6f9   : > { %v8759_v9 = vpop.f32.mrf.mxu0  ;;  %v9116_v29 = vpop.f32.mrf.mxu1 }
 0x6fa   : > { %v8760_v50 = vadd.f32 %v8759_v9, %v18203_v42  ;;  %v9117_v61 = vadd.f32 %v9116_v29, %v18206_v34 }
 0x6fb   : > { %v8761_v46 = vpop.f32.mrf.mxu0  ;;  %v9118_v10 = vpop.f32.mrf.mxu1 }
 0x6fc   : > { %v8762_v14 = vadd.f32 %v8761_v46, %v18175_v40  ;;  %v9119_v8 = vadd.f32 %v9118_v10, %v18195_v21  ;;  %v8876_v16 = vmax.f32 %v8760_v50, 0.0  ;;  %v9233_v55 = vmax.f32 %v9117_v61, 0.0 }
 0x6fd   : > { %v8763_v53 = vpop.f32.mrf.mxu0  ;;  %v9120_v3 = vpop.f32.mrf.mxu1 }
 0x6fe   : > { %v8764_v33 = vadd.f32 %v8763_v53, %v18203_v42  ;;  %v9121_v32 = vadd.f32 %v9120_v3, %v18206_v34  ;;  %v8877_v54 = vmax.f32 %v8762_v14, 0.0  ;;  %v9234_v19 = vmax.f32 %v9119_v8, 0.0  ;;  %v18322_v3 = vld [vmem:[%s19010_s3 + $0x58] sm:$0xff] }
 0x6ff   : > { %v8765_v59 = vpop.f32.mrf.mxu0  ;;  %v9122_v26 = vpop.f32.mrf.mxu1  ;;  %v18327_v14 = vld [vmem:[%s19010_s3 + $0x78] sm:$0xff] }
 0x700   : > { %v8766_v48 = vadd.f32 %v8765_v59, %v18175_v40  ;;  %v9123_v4 = vadd.f32 %v9122_v26, %v18195_v21  ;;  %v8878_v17 = vmax.f32 %v8764_v33, 0.0  ;;  %v9235_v31 = vmax.f32 %v9121_v32, 0.0 }
 0x701   : > { %v11875_v26 = vcombine.low %v18322_v3, %v18327_v14 }
 0x702   : > { %v8879_v12 = vmax.f32 %v8766_v48, 0.0  ;;  %v9236_v18 = vmax.f32 %v9123_v4, 0.0  ;;  %v8926_v1 = vpack.c.bf16 %v8878_v17, %v8876_v16  ;;  %v9283_v13 = vpack.c.bf16 %v9235_v31, %v9233_v55 }
 0x703   : > { %v11876_v48 = vcombine.high %v18322_v3, %v18327_v14 }
 0x704   : > { %v9284_v47 = vpack.c.bf16 %v9236_v18, %v9234_v19  ;;  %v8927_v11 = vpack.c.bf16 %v8879_v12, %v8877_v54 }
 0x705   : > { %10541 = vmatprep.subr.bf16.mxu0 %v11876_v48 }
 0x706   : > { %9517 = vmatprep.mubr.bf16.mxu0 %v9284_v47  ;;  %9774 = vmatprep.mubr.bf16.mxu1 %v8927_v11 }
 0x707   : > { %9518 = vmatmul.mubr.bf16.gmra.mxu0 %v9283_v13  ;;  %9775 = vmatmul.mubr.bf16.gmra.mxu1 %v8926_v1 }
 0x70d   : > { %v8769_v30 = vpop.f32.mrf.mxu0  ;;  %v9126_v15 = vpop.f32.mrf.mxu1 }
 0x70e   : > { %v8770_v2 = vadd.f32 %v8769_v30, %v18203_v42  ;;  %v9127_v6 = vadd.f32 %v9126_v15, %v18206_v34 }
 0x70f   : > { %v8771_v51 = vpop.f32.mrf.mxu0  ;;  %v9128_v25 = vpop.f32.mrf.mxu1 }
 0x710   : > { %v8772_v41 = vadd.f32 %v8771_v51, %v18175_v40  ;;  %v9129_v0 = vadd.f32 %v9128_v25, %v18195_v21  ;;  %v8880_v61 = vmax.f32 %v8770_v2, 0.0  ;;  %v9237_v59 = vmax.f32 %v9127_v6, 0.0 }
 0x711   : > { %v8773_v52 = vpop.f32.mrf.mxu0  ;;  %v9130_v24 = vpop.f32.mrf.mxu1 }
 0x712   : > { %v8774_v56 = vadd.f32 %v8773_v52, %v18203_v42  ;;  %v9131_v44 = vadd.f32 %v9130_v24, %v18206_v34  ;;  %v8881_v8 = vmax.f32 %v8772_v41, 0.0  ;;  %v9238_v33 = vmax.f32 %v9129_v0, 0.0 }
 0x713   : > { %v8775_v22 = vpop.f32.mrf.mxu0  ;;  %v9132_v9 = vpop.f32.mrf.mxu1 }
 0x714   : > { %v8776_v29 = vadd.f32 %v8775_v22, %v18175_v40  ;;  %v9133_v46 = vadd.f32 %v9132_v9, %v18195_v21  ;;  %v8882_v10 = vmax.f32 %v8774_v56, 0.0  ;;  %v9239_v53 = vmax.f32 %v9131_v44, 0.0 }
 0x716   : > { %v8883_v32 = vmax.f32 %v8776_v29, 0.0  ;;  %v9240_v50 = vmax.f32 %v9133_v46, 0.0  ;;  %v8928_v31 = vpack.c.bf16 %v8882_v10, %v8880_v61  ;;  %v9285_v54 = vpack.c.bf16 %v9239_v53, %v9237_v59 }
 0x718   : > { %v9286_v4 = vpack.c.bf16 %v9240_v50, %v9238_v33  ;;  %v8929_v17 = vpack.c.bf16 %v8883_v32, %v8881_v8 }
 0x71a   : > { %9525 = vmatprep.mubr.bf16.mxu0 %v9286_v4  ;;  %9782 = vmatprep.mubr.bf16.mxu1 %v8929_v17 }
 0x71b   : > { %9526 = vmatmul.mubr.bf16.gmra.mxu0 %v9285_v54  ;;  %9783 = vmatmul.mubr.bf16.gmra.mxu1 %v8928_v31 }
 0x721   : > { %v8779_v19 = vpop.f32.mrf.mxu0  ;;  %v9136_v12 = vpop.f32.mrf.mxu1 }
 0x722   : > { %v8780_v15 = vadd.f32 %v8779_v19, %v18203_v42  ;;  %v9137_v51 = vadd.f32 %v9136_v12, %v18206_v34 }
 0x723   : > { %v8781_v18 = vpop.f32.mrf.mxu0  ;;  %v9138_v16 = vpop.f32.mrf.mxu1 }
 0x724   : > { %v8782_v11 = vadd.f32 %v8781_v18, %v18175_v40  ;;  %v9139_v1 = vadd.f32 %v9138_v16, %v18195_v21  ;;  %v8884_v9 = vmax.f32 %v8780_v15, 0.0  ;;  %v9241_v29 = vmax.f32 %v9137_v51, 0.0 }
 0x725   : > { %v8783_v55 = vpop.f32.mrf.mxu0  ;;  %v9140_v47 = vpop.f32.mrf.mxu1 }
 0x726   : > { %v8784_v13 = vadd.f32 %v8783_v55, %v18203_v42  ;;  %v9141_v30 = vadd.f32 %v9140_v47, %v18206_v34  ;;  %v8885_v44 = vmax.f32 %v8782_v11, 0.0  ;;  %v9242_v2 = vmax.f32 %v9139_v1, 0.0 }
 0x727   : > { %v8785_v25 = vpop.f32.mrf.mxu0  ;;  %v9142_v52 = vpop.f32.mrf.mxu1 }
 0x728   : > { %v8786_v24 = vadd.f32 %v8785_v25, %v18175_v40  ;;  %v9143_v41 = vadd.f32 %v9142_v52, %v18195_v21  ;;  %v8886_v0 = vmax.f32 %v8784_v13, 0.0  ;;  %v9243_v56 = vmax.f32 %v9141_v30, 0.0 }
 0x72a   : > { %v8887_v6 = vmax.f32 %v8786_v24, 0.0  ;;  %v9244_v22 = vmax.f32 %v9143_v41, 0.0  ;;  %v8930_v53 = vpack.c.bf16 %v8886_v0, %v8884_v9  ;;  %v9287_v8 = vpack.c.bf16 %v9243_v56, %v9241_v29 }
 0x72c   : > { %v9288_v46 = vpack.c.bf16 %v9244_v22, %v9242_v2  ;;  %v8931_v10 = vpack.c.bf16 %v8887_v6, %v8885_v44 }
 0x72e   : > { %9533 = vmatprep.mubr.bf16.mxu0 %v9288_v46  ;;  %9790 = vmatprep.mubr.bf16.mxu1 %v8931_v10 }
 0x72f   : > { %9534 = vmatmul.mubr.bf16.gmra.mxu0 %v9287_v8  ;;  %9791 = vmatmul.mubr.bf16.gmra.mxu1 %v8930_v53 }
 0x735   : > { %v8789_v33 = vpop.f32.mrf.mxu0  ;;  %v9146_v32 = vpop.f32.mrf.mxu1 }
 0x736   : > { %v8790_v19 = vadd.f32 %v8789_v33, %v18203_v42  ;;  %v9147_v12 = vadd.f32 %v9146_v32, %v18206_v34 }
 0x737   : > { %v8791_v50 = vpop.f32.mrf.mxu0  ;;  %v9148_v61 = vpop.f32.mrf.mxu1 }
 0x738   : > { %v8792_v4 = vadd.f32 %v8791_v50, %v18175_v40  ;;  %v9149_v17 = vadd.f32 %v9148_v61, %v18195_v21  ;;  %v8888_v25 = vmax.f32 %v8790_v19, 0.0  ;;  %v9245_v52 = vmax.f32 %v9147_v12, 0.0 }
 0x739   : > { %v8793_v59 = vpop.f32.mrf.mxu0  ;;  %v9150_v48 = vpop.f32.mrf.mxu1 }
 0x73a   : > { %v8794_v31 = vadd.f32 %v8793_v59, %v18203_v42  ;;  %v9151_v54 = vadd.f32 %v9150_v48, %v18206_v34  ;;  %v8889_v13 = vmax.f32 %v8792_v4, 0.0  ;;  %v9246_v30 = vmax.f32 %v9149_v17, 0.0 }
 0x73b   : > { %v8795_v18 = vpop.f32.mrf.mxu0  ;;  %v9152_v16 = vpop.f32.mrf.mxu1 }
 0x73c   : > { %v8796_v55 = vadd.f32 %v8795_v18, %v18175_v40  ;;  %v9153_v47 = vadd.f32 %v9152_v16, %v18195_v21  ;;  %v8890_v11 = vmax.f32 %v8794_v31, 0.0  ;;  %v9247_v1 = vmax.f32 %v9151_v54, 0.0 }
 0x73e   : > { %v8891_v15 = vmax.f32 %v8796_v55, 0.0  ;;  %v9248_v51 = vmax.f32 %v9153_v47, 0.0  ;;  %v8932_v0 = vpack.c.bf16 %v8890_v11, %v8888_v25  ;;  %v9289_v56 = vpack.c.bf16 %v9247_v1, %v9245_v52 }
 0x740   : > { %v9290_v24 = vpack.c.bf16 %v9248_v51, %v9246_v30  ;;  %v8933_v41 = vpack.c.bf16 %v8891_v15, %v8889_v13 }
 0x742   : > { %9541 = vmatprep.mubr.bf16.mxu0 %v9290_v24  ;;  %9798 = vmatprep.mubr.bf16.mxu1 %v8933_v41 }
 0x743   : > { %9542 = vmatmul.mubr.bf16.gmra.mxu0 %v9289_v56  ;;  %9799 = vmatmul.mubr.bf16.gmra.mxu1 %v8932_v0 }
 0x749   : > { %v8799_v44 = vpop.f32.mrf.mxu0  ;;  %v9156_v2 = vpop.f32.mrf.mxu1 }
 0x74a   : > { %v8800_v33 = vadd.f32 %v8799_v44, %v18203_v42  ;;  %v9157_v32 = vadd.f32 %v9156_v2, %v18206_v34 }
 0x74b   : > { %v8801_v6 = vpop.f32.mrf.mxu0  ;;  %v9158_v22 = vpop.f32.mrf.mxu1 }
 0x74c   : > { %v8802_v46 = vadd.f32 %v8801_v6, %v18175_v40  ;;  %v9159_v10 = vadd.f32 %v9158_v22, %v18195_v21  ;;  %v8892_v18 = vmax.f32 %v8800_v33, 0.0  ;;  %v9249_v16 = vmax.f32 %v9157_v32, 0.0 }
 0x74d   : > { %v8803_v9 = vpop.f32.mrf.mxu0  ;;  %v9160_v29 = vpop.f32.mrf.mxu1 }
 0x74e   : > { %v8804_v53 = vadd.f32 %v8803_v9, %v18203_v42  ;;  %v9161_v8 = vadd.f32 %v9160_v29, %v18206_v34  ;;  %v8893_v31 = vmax.f32 %v8802_v46, 0.0  ;;  %v9250_v54 = vmax.f32 %v9159_v10, 0.0  ;;  %v13230_v46 = vld [vmem:[%s19012_s5 + $0x178] sm:$0xff]  }
 0x74f   : > { %v8805_v50 = vpop.f32.mrf.mxu0  ;;  %v9162_v61 = vpop.f32.mrf.mxu1  ;;  %v13231_v10 = vld [vmem:[%s19012_s5 + $0x138] sm:$0xff]   ;;  %12624 = vmatprep.subr.bf16.mxu1 %v13230_v46 }
 0x750   : > { %v8806_v59 = vadd.f32 %v8805_v50, %v18175_v40  ;;  %v9163_v48 = vadd.f32 %v9162_v61, %v18195_v21  ;;  %v8894_v4 = vmax.f32 %v8804_v53, 0.0  ;;  %v9251_v17 = vmax.f32 %v9161_v8, 0.0  ;;  %12625 = vmatpush3.bf16.msra.mxu1 %v13231_v10 }
 0x752   : > { %v8895_v19 = vmax.f32 %v8806_v59, 0.0  ;;  %v9252_v12 = vmax.f32 %v9163_v48, 0.0  ;;  %v8934_v11 = vpack.c.bf16 %v8894_v4, %v8892_v18  ;;  %v9291_v1 = vpack.c.bf16 %v9251_v17, %v9249_v16 }
 0x754   : > { %v9292_v55 = vpack.c.bf16 %v9252_v12, %v9250_v54  ;;  %v8935_v47 = vpack.c.bf16 %v8895_v19, %v8893_v31 }
 0x756   : > { %9549 = vmatprep.mubr.bf16.mxu0 %v9292_v55  ;;  %9806 = vmatprep.mubr.bf16.mxu1 %v8935_v47 }
 0x757   : > { %9550 = vmatmul.mubr.bf16.gmra.mxu0 %v9291_v1  ;;  %9807 = vmatmul.mubr.bf16.gmra.mxu1 %v8934_v11 }
 0x75d   : > { %v8809_v13 = vpop.f32.mrf.mxu0  ;;  %v9166_v30 = vpop.f32.mrf.mxu1 }
 0x75e   : > { %v8810_v44 = vadd.f32 %v8809_v13, %v18203_v42  ;;  %v9167_v2 = vadd.f32 %v9166_v30, %v18206_v34 }
 0x75f   : > { %v8811_v15 = vpop.f32.mrf.mxu0  ;;  %v9168_v51 = vpop.f32.mrf.mxu1 }
 0x760   : > { %v8812_v24 = vadd.f32 %v8811_v15, %v18175_v40  ;;  %v9169_v41 = vadd.f32 %v9168_v51, %v18195_v21  ;;  %v8896_v59 = vmax.f32 %v8810_v44, 0.0  ;;  %v9253_v48 = vmax.f32 %v9167_v2, 0.0 }
 0x761   : > { %v8813_v25 = vpop.f32.mrf.mxu0  ;;  %v9170_v52 = vpop.f32.mrf.mxu1 }
 0x762   : > { %v8814_v0 = vadd.f32 %v8813_v25, %v18203_v42  ;;  %v9171_v56 = vadd.f32 %v9170_v52, %v18206_v34  ;;  %v8897_v33 = vmax.f32 %v8812_v24, 0.0  ;;  %v9254_v32 = vmax.f32 %v9169_v41, 0.0  ;;  %v13232_v24 = vld [vmem:[%s19012_s5 + $0x170] sm:$0xff]  }
 0x763   : > { %v8815_v6 = vpop.f32.mrf.mxu0  ;;  %v9172_v22 = vpop.f32.mrf.mxu1  ;;  %v13233_v41 = vld [vmem:[%s19012_s5 + $0x130] sm:$0xff]   ;;  %12626 = vmatprep.subr.bf16.mxu1 %v13232_v24 }
 0x764   : > { %v8816_v9 = vadd.f32 %v8815_v6, %v18175_v40  ;;  %v9173_v29 = vadd.f32 %v9172_v22, %v18195_v21  ;;  %v8898_v53 = vmax.f32 %v8814_v0, 0.0  ;;  %v9255_v8 = vmax.f32 %v9171_v56, 0.0  ;;  %12627 = vmatpush3.bf16.msra.mxu1 %v13233_v41 }
 0x766   : > { %v8899_v50 = vmax.f32 %v8816_v9, 0.0  ;;  %v9256_v61 = vmax.f32 %v9173_v29, 0.0  ;;  %v8936_v31 = vpack.c.bf16 %v8898_v53, %v8896_v59  ;;  %v9293_v54 = vpack.c.bf16 %v9255_v8, %v9253_v48 }
 0x768   : > { %v9294_v4 = vpack.c.bf16 %v9256_v61, %v9254_v32  ;;  %v8937_v17 = vpack.c.bf16 %v8899_v50, %v8897_v33 }
 0x76a   : > { %9557 = vmatprep.mubr.bf16.mxu0 %v9294_v4  ;;  %9814 = vmatprep.mubr.bf16.mxu1 %v8937_v17 }
 0x76b   : > { %9558 = vmatmul.mubr.bf16.gmra.mxu0 %v9293_v54  ;;  %9815 = vmatmul.mubr.bf16.gmra.mxu1 %v8936_v31 }
 0x76d   : > { %v8819_v19 = vpop.f32.mrf.mxu0  ;;  %v9176_v12 = vpop.f32.mrf.mxu1 }
 0x76e   : > { %v8820_v15 = vadd.f32 %v8819_v19, %v18203_v42  ;;  %v9177_v51 = vadd.f32 %v9176_v12, %v18206_v34 }
 0x76f   : > { %v8821_v18 = vpop.f32.mrf.mxu0  ;;  %v9178_v16 = vpop.f32.mrf.mxu1 }
 0x770   : > { %v8822_v11 = vadd.f32 %v8821_v18, %v18175_v40  ;;  %v9179_v1 = vadd.f32 %v9178_v16, %v18195_v21  ;;  %v8900_v53 = vmax.f32 %v8820_v15, 0.0  ;;  %v9257_v8 = vmax.f32 %v9177_v51, 0.0 }
 0x771   : > { %v8823_v55 = vpop.f32.mrf.mxu0  ;;  %v9180_v47 = vpop.f32.mrf.mxu1 }
 0x772   : > { %v8824_v13 = vadd.f32 %v8823_v55, %v18203_v42  ;;  %v9181_v30 = vadd.f32 %v9180_v47, %v18206_v34  ;;  %v8901_v9 = vmax.f32 %v8822_v11, 0.0  ;;  %v9258_v29 = vmax.f32 %v9179_v1, 0.0 }
 0x773   : > { %v8825_v25 = vpop.f32.mrf.mxu0  ;;  %v9182_v52 = vpop.f32.mrf.mxu1 }
 0x774   : > { %v8826_v0 = vadd.f32 %v8825_v25, %v18175_v40  ;;  %v9183_v56 = vadd.f32 %v9182_v52, %v18195_v21  ;;  %v8902_v44 = vmax.f32 %v8824_v13, 0.0  ;;  %v9259_v2 = vmax.f32 %v9181_v30, 0.0 }
 0x775   : > { %v8829_v6 = vpop.f32.mrf.mxu0  ;;  %v9186_v22 = vpop.f32.mrf.mxu1 }
 0x776   : > { %v8903_v46 = vmax.f32 %v8826_v0, 0.0  ;;  %v9260_v10 = vmax.f32 %v9183_v56, 0.0  ;;  %v8938_v59 = vpack.c.bf16 %v8902_v44, %v8900_v53  ;;  %v9295_v48 = vpack.c.bf16 %v9259_v2, %v9257_v8 }
 0x777   : > { %v8831_v33 = vpop.f32.mrf.mxu0  ;;  %v9188_v32 = vpop.f32.mrf.mxu1  ;;  %v8830_v18 = vadd.f32 %v8829_v6, %v18203_v42  ;;  %v9187_v16 = vadd.f32 %v9186_v22, %v18206_v34 }
 0x778   : > { %v9296_v50 = vpack.c.bf16 %v9260_v10, %v9258_v29  ;;  %v8939_v61 = vpack.c.bf16 %v8903_v46, %v8901_v9  ;;  %v8832_v4 = vadd.f32 %v8831_v33, %v18175_v40  ;;  %v9189_v54 = vadd.f32 %v9188_v32, %v18195_v21  ;;  %v13234_v46 = vld [vmem:[%s19012_s5 + $0x168] sm:$0xff]  }
 0x779   : > { %v8833_v17 = vpop.f32.mrf.mxu0  ;;  %v9190_v31 = vpop.f32.mrf.mxu1  ;;  %v8904_v24 = vmax.f32 %v8830_v18, 0.0  ;;  %v9261_v41 = vmax.f32 %v9187_v16, 0.0  ;;  %v13235_v10 = vld [vmem:[%s19012_s5 + $0x128] sm:$0xff]   ;;  %12628 = vmatprep.subr.bf16.mxu1 %v13234_v46 }
 0x77a   : > { %v8834_v19 = vadd.f32 %v8833_v17, %v18203_v42  ;;  %v9191_v12 = vadd.f32 %v9190_v31, %v18206_v34  ;;  %9565 = vmatprep.mubr.bf16.mxu0 %v9296_v50  ;;  %9822 = vmatprep.mubr.bf16.mxu1 %v8939_v61  ;;  %v8905_v15 = vmax.f32 %v8832_v4, 0.0  ;;  %v9262_v51 = vmax.f32 %v9189_v54, 0.0 }
 0x77b   : > { %v8835_v55 = vpop.f32.mrf.mxu0  ;;  %v9192_v47 = vpop.f32.mrf.mxu1  ;;  %9566 = vmatmul.mubr.bf16.gmra.mxu0 %v9295_v48  ;;  %9823 = vmatmul.mubr.bf16.gmra.mxu1 %v8938_v59 }
 0x77c   : > { %v8836_v11 = vadd.f32 %v8835_v55, %v18175_v40  ;;  %v9193_v1 = vadd.f32 %v9192_v47, %v18195_v21  ;;  %v8906_v13 = vmax.f32 %v8834_v19, 0.0  ;;  %v9263_v30 = vmax.f32 %v9191_v12, 0.0  ;;  %12629 = vmatpush3.bf16.msra.mxu1 %v13235_v10 }
 0x77e   : > { %v8907_v25 = vmax.f32 %v8836_v11, 0.0  ;;  %v9264_v52 = vmax.f32 %v9193_v1, 0.0  ;;  %v8940_v6 = vpack.c.bf16 %v8906_v13, %v8904_v24  ;;  %v9297_v22 = vpack.c.bf16 %v9263_v30, %v9261_v41 }
 0x780   : > { %v8839_v0 = vpop.f32.mrf.mxu0  ;;  %v9196_v56 = vpop.f32.mrf.mxu1  ;;  %v9298_v44 = vpack.c.bf16 %v9264_v52, %v9262_v51  ;;  %v8941_v2 = vpack.c.bf16 %v8907_v25, %v8905_v15 }
 0x781   : > { %v8840_v59 = vadd.f32 %v8839_v0, %v18203_v42  ;;  %v9197_v48 = vadd.f32 %v9196_v56, %v18206_v34 }
 0x782   : > { %v8841_v9 = vpop.f32.mrf.mxu0  ;;  %v9198_v29 = vpop.f32.mrf.mxu1  ;;  %9573 = vmatprep.mubr.bf16.mxu0 %v9298_v44  ;;  %9830 = vmatprep.mubr.bf16.mxu1 %v8941_v2  ;;  %v13236_v2 = vld [vmem:[%s19012_s5 + $0x160] sm:$0xff]  }
 0x783   : > { %9574 = vmatmul.mubr.bf16.gmra.mxu0 %v9297_v22  ;;  %9831 = vmatmul.mubr.bf16.gmra.mxu1 %v8940_v6  ;;  %v8842_v33 = vadd.f32 %v8841_v9, %v18175_v40  ;;  %v9199_v32 = vadd.f32 %v9198_v29, %v18195_v21  ;;  %v8908_v13 = vmax.f32 %v8840_v59, 0.0  ;;  %v9265_v30 = vmax.f32 %v9197_v48, 0.0  ;;  %v13237_v6 = vld [vmem:[%s19012_s5 + $0x120] sm:$0xff]  }
 0x784   : > { %v8843_v53 = vpop.f32.mrf.mxu0  ;;  %v9200_v8 = vpop.f32.mrf.mxu1  ;;  %12630 = vmatprep.subr.bf16.mxu1 %v13236_v2 }
 0x785   : > { %v8844_v50 = vadd.f32 %v8843_v53, %v18203_v42  ;;  %v9201_v61 = vadd.f32 %v9200_v8, %v18206_v34  ;;  %v8909_v55 = vmax.f32 %v8842_v33, 0.0  ;;  %v9266_v47 = vmax.f32 %v9199_v32, 0.0  ;;  %v10493_v53 = vld [vmem:[%s19010_s3 + $0x18] sm:$0xff]  ;;  %12631 = vmatpush3.bf16.msra.mxu1 %v13237_v6 }
 0x786   : > { %v8845_v4 = vpop.f32.mrf.mxu0  ;;  %v9202_v17 = vpop.f32.mrf.mxu1  ;;  %v10494_v8 = vld [vmem:[%s19010_s3 + $0x38] sm:$0xff] }
 0x787   : > { %v8846_v31 = vadd.f32 %v8845_v4, %v18175_v40  ;;  %v9203_v54 = vadd.f32 %v9202_v17, %v18195_v21  ;;  %v8910_v19 = vmax.f32 %v8844_v50, 0.0  ;;  %v9267_v12 = vmax.f32 %v9201_v61, 0.0 }
 0x788   : > { %v12416_v18 = vpop.f32.mrf.mxu0  ;;  %v12528_v16 = vpop.f32.mrf.mxu1  ;;  %v11874_v4 = vcombine.high %v10493_v53, %v10494_v8 }
 0x789   : > { %v8911_v11 = vmax.f32 %v8846_v31, 0.0  ;;  %v9268_v1 = vmax.f32 %v9203_v54, 0.0  ;;  %v8942_v24 = vpack.c.bf16 %v8910_v19, %v8908_v13  ;;  %v9299_v40 = vpack.c.bf16 %v9267_v12, %v9265_v30 }
 0x78a   : > { %v12417_v42 = vpop.f32.mrf.mxu0  ;;  %v12529_v15 = vpop.f32.mrf.mxu1 }
 0x78b   : > { %v12418_v34 = vadd.f32 %v12417_v42, %v12416_v18  ;;  %v12530_v51 = vadd.f32 %v12529_v15, %v12528_v16  ;;  %v9300_v25 = vpack.c.bf16 %v9268_v1, %v9266_v47  ;;  %v8943_v52 = vpack.c.bf16 %v8911_v11, %v8909_v55 }
 0x78c   : > { %v12419_v41 = vpop.f32.mrf.mxu0  ;;  %v12531_v21 = vpop.f32.mrf.mxu1  ;;  %v11873_v18 = vcombine.low %v10493_v53, %v10494_v8 }
 0x78d   : > { %v18407_v0 = vadd.f32 %v12530_v51, %v12418_v34  ;;  %9581 = vmatprep.mubr.bf16.mxu0 %v9300_v25  ;;  %9838 = vmatprep.mubr.bf16.mxu1 %v8943_v52 }
 0x78e   : > { %v12420_v56 = vpop.f32.mrf.mxu0  ;;  %9582 = vmatmul.mubr.bf16.gmra.mxu0 %v9299_v40  ;;  %v12532_v44 = vpop.f32.mrf.mxu1  ;;  %9839 = vmatmul.mubr.bf16.gmra.mxu1 %v8942_v24  ;;  %v13238_v24 = vld [vmem:[%s19012_s5 + $0x158] sm:$0xff]  }
 0x78f   : > { %v12421_v22 = vadd.f32 %v12420_v56, %v12419_v41  ;;  %v12533_v9 = vadd.f32 %v12532_v44, %v12531_v21  ;;  %9915 = vmatprep.mubr.bf16.mxu0 %v19445_v63  ;;  %v13239_v40 = vld [vmem:[%s19012_s5 + $0x118] sm:$0xff]   ;;  %12632 = vmatprep.subr.bf16.mxu1 %v13238_v24 }
 0x790   : > { %v12422_v29 = vpop.f32.mrf.mxu0  ;;  %v12534_v46 = vpop.f32.mrf.mxu1  ;;  %12633 = vmatpush3.bf16.msra.mxu1 %v13239_v40 }
 0x791   : > { %v18416_v10 = vadd.f32 %v12533_v9, %v12421_v22 }
 0x792   : > { %v12423_v33 = vpop.f32.mrf.mxu0  ;;  %v12535_v32 = vpop.f32.mrf.mxu1 }
 0x793   : > { %v12424_v50 = vadd.f32 %v12423_v33, %v12422_v29  ;;  %v12536_v61 = vadd.f32 %v12535_v32, %v12534_v46 }
 0x794   : > { %v12425_v59 = vpop.f32.mrf.mxu0  ;;  %v12537_v48 = vpop.f32.mrf.mxu1 }
 0x795   : > { %v18424_v17 = vadd.f32 %v12536_v61, %v12424_v50 }
 0x796   : > { %v12426_v31 = vpop.f32.mrf.mxu0  ;;  %v12538_v54 = vpop.f32.mrf.mxu1  ;;  %11841 = vmatmul.mubr.msk.bf16.vlgmr.msra.gmra.mxu0 %vm1404_vm9, %v17738_v58 }
 0x797   : > { %v12427_v19 = vadd.f32 %v12426_v31, %v12425_v59  ;;  %v12539_v12 = vadd.f32 %v12538_v54, %v12537_v48  ;;  %10542 = vmatpush1.bf16.msra.mxu0 %v11875_v26  ;;  %9925 = vmatprep.mubr.bf16.mxu0 %v19445_v63 }
 0x798   : > { %v12428_v16 = vpop.f32.mrf.mxu0  ;;  %v12540_v55 = vpop.f32.mrf.mxu1  ;;  %10543 = vmatprep.subr.bf16.mxu0 %v11874_v4 }
 0x799   : > { %v18432_v47 = vadd.f32 %v12539_v12, %v12427_v19 }
 0x79a   : > { %v12429_v11 = vpop.f32.mrf.mxu0  ;;  %v12541_v1 = vpop.f32.mrf.mxu1 }
 0x79b   : > { %v12430_v13 = vadd.f32 %v12429_v11, %v12428_v16  ;;  %v12542_v30 = vadd.f32 %v12541_v1, %v12540_v55  ;;  %10544 = vmatpush1.bf16.msra.mxu0 %v11873_v18 }
 0x79c   : > { %v12431_v42 = vpop.f32.mrf.mxu0  ;;  %v12543_v15 = vpop.f32.mrf.mxu1 }
 0x79d   : > { %v18434_v34 = vadd.f32 %v12542_v30, %v12430_v13 }
 0x79e   : > { %v12432_v51 = vpop.f32.mrf.mxu0  ;;  %v12544_v3 = vpop.f32.mrf.mxu1  ;;  %11842 = vmatmul.mubr.msk.bf16.gmra.mxu0 %vm1404_vm9, %v17788_v36 }
 0x79f   : > { %v12433_v14 = vadd.f32 %v12432_v51, %v12431_v42  ;;  %v12545_v26 = vadd.f32 %v12544_v3, %v12543_v15  ;;  %9935 = vmatprep.mubr.bf16.mxu0 %v19445_v63 }
 0x7a0   : > { %v12434_v25 = vpop.f32.mrf.mxu0  ;;  %v12546_v52 = vpop.f32.mrf.mxu1 }
 0x7a1   : > { %v18445_v41 = vadd.f32 %v12545_v26, %v12433_v14  ;;  %v13240_v26 = vld [vmem:[%s19012_s5 + $0x150] sm:$0xff]  }
 0x7a2   : > { %v12435_v21 = vpop.f32.mrf.mxu0  ;;  %v12547_v56 = vpop.f32.mrf.mxu1  ;;  %12634 = vmatprep.subr.bf16.mxu1 %v13240_v26 }
 0x7a3   : > { %v12436_v44 = vadd.f32 %v12435_v21, %v12434_v25  ;;  %v12548_v2 = vadd.f32 %v12547_v56, %v12546_v52  ;;  %v13241_v25 = vld [vmem:[%s19012_s5 + $0x110] sm:$0xff]  }
 0x7a4   : > { %v12437_v6 = vpop.f32.mrf.mxu0  ;;  %v12549_v22 = vpop.f32.mrf.mxu1  ;;  %12635 = vmatpush3.bf16.msra.mxu1 %v13241_v25 }
 0x7a5   : > { %v18447_v9 = vadd.f32 %v12548_v2, %v12436_v44 }
 0x7a6   : > { %v12438_v29 = vpop.f32.mrf.mxu0  ;;  %v12550_v46 = vpop.f32.mrf.mxu1  ;;  %11843 = vmatmul.mubr.msk.bf16.gmra.mxu0 %vm1404_vm9, %v17847_v43 }
 0x7a7   : > { %v12439_v53 = vadd.f32 %v12438_v29, %v12437_v6  ;;  %v12551_v8 = vadd.f32 %v12550_v46, %v12549_v22  ;;  %9945 = vmatprep.mubr.bf16.mxu0 %v19445_v63 }
 0x7a8   : > { %v12440_v33 = vpop.f32.mrf.mxu0  ;;  %v12552_v32 = vpop.f32.mrf.mxu1 }
 0x7a9   : > { %v18452_v50 = vadd.f32 %v12551_v8, %v12439_v53 }
 0x7aa   : > { %v12441_v61 = vpop.f32.mrf.mxu0  ;;  %v12553_v59 = vpop.f32.mrf.mxu1 }
 0x7ab   : > { %v12442_v48 = vadd.f32 %v12441_v61, %v12440_v33  ;;  %v12554_v4 = vadd.f32 %v12553_v59, %v12552_v32 }
 0x7ac   : > { %v12443_v31 = vpop.f32.mrf.mxu0  ;;  %v12555_v54 = vpop.f32.mrf.mxu1 }
 0x7ad   : > { %v18454_v19 = vadd.f32 %v12554_v4, %v12442_v48 }
 0x7ae   : > { %v12444_v12 = vpop.f32.mrf.mxu0  ;;  %v12556_v18 = vpop.f32.mrf.mxu1  ;;  %11844 = vmatmul.mubr.msk.bf16.gmra.mxu0 %vm1404_vm9, %v17887_v49 }
 0x7af   : > { %v12445_v16 = vadd.f32 %v12444_v12, %v12443_v31  ;;  %v12557_v55 = vadd.f32 %v12556_v18, %v12555_v54  ;;  %9955 = vmatprep.mubr.bf16.mxu0 %v19445_v63  ;;  %v13242_v54 = vld [vmem:[%s19012_s5 + $0x148] sm:$0xff]  }
 0x7b0   : > { %v12446_v11 = vpop.f32.mrf.mxu0  ;;  %v12558_v1 = vpop.f32.mrf.mxu1  ;;  %v13243_v12 = vld [vmem:[%s19012_s5 + $0x108] sm:$0xff]   ;;  %12636 = vmatprep.subr.bf16.mxu1 %v13242_v54 }
 0x7b1   : > { %v18459_v13 = vadd.f32 %v12557_v55, %v12445_v16  ;;  %12637 = vmatpush3.bf16.msra.mxu1 %v13243_v12  ;;  %v13246_v12 = vld [vmem:[%s19012_s5 + $0x1f8] sm:$0xff]  }
 0x7b2   : > { %v12447_v30 = vpop.f32.mrf.mxu0  ;;  %v12559_v42 = vpop.f32.mrf.mxu1 }
 0x7b3   : > { %v12448_v15 = vadd.f32 %v12447_v30, %v12446_v11  ;;  %v12560_v51 = vadd.f32 %v12559_v42, %v12558_v1 }
 0x7b4   : > { %v12449_v3 = vpop.f32.mrf.mxu0  ;;  %v12561_v14 = vpop.f32.mrf.mxu1 }
 0x7b5   : > { %v18467_v52 = vadd.f32 %v12560_v51, %v12448_v15 }
 0x7b6   : > { %v12450_v24 = vpop.f32.mrf.mxu0  ;;  %v12562_v40 = vpop.f32.mrf.mxu1  ;;  %11845 = vmatmul.mubr.msk.bf16.gmra.mxu0 %vm1404_vm9, %v17901_v39 }
 0x7b7   : > { %v12451_v21 = vadd.f32 %v12450_v24, %v12449_v3  ;;  %v12563_v56 = vadd.f32 %v12562_v40, %v12561_v14  ;;  %9965 = vmatprep.mubr.bf16.mxu0 %v19445_v63  ;;  %v13244_v40 = vld [vmem:[%s19012_s5 + $0x140] sm:$0xff]  }
 0x7b8   : > { %v12452_v44 = vpop.f32.mrf.mxu0  ;;  %v12564_v2 = vpop.f32.mrf.mxu1  ;;  %12638 = vmatprep.subr.bf16.mxu1 %v13244_v40 }
 0x7b9   : > { %v18472_v6 = vadd.f32 %v12563_v56, %v12451_v21  ;;  %v13245_v21 = vld [vmem:[%s19012_s5 + $0x100] sm:$0xff]  }
 0x7ba   : > { %v12453_v22 = vpop.f32.mrf.mxu0  ;;  %v12565_v29 = vpop.f32.mrf.mxu1  ;;  %12639 = vmatpush3.bf16.msra.mxu1 %v13245_v21 }
 0x7bb   : > { %v12454_v46 = vadd.f32 %v12453_v22, %v12452_v44  ;;  %v12566_v53 = vadd.f32 %v12565_v29, %v12564_v2  ;;  %12736 = vmatprep.subr.bf16.mxu1 %v13246_v12 }
 0x7bc   : > { %v12455_v8 = vpop.f32.mrf.mxu0  ;;  %v12567_v33 = vpop.f32.mrf.mxu1 }
 0x7bd   : > { %v18474_v32 = vadd.f32 %v12566_v53, %v12454_v46 }
 0x7be   : > { %v12456_v61 = vpop.f32.mrf.mxu0  ;;  %v12568_v59 = vpop.f32.mrf.mxu1  ;;  %11846 = vmatmul.mubr.msk.bf16.gmra.mxu0 %vm1404_vm9, %v17914_v38 }
 0x7bf   : > { %v12457_v48 = vadd.f32 %v12456_v61, %v12455_v8  ;;  %v12569_v4 = vadd.f32 %v12568_v59, %v12567_v33  ;;  %9975 = vmatprep.mubr.bf16.mxu0 %v19445_v63 }
 0x7c1   : > { %v18479_v31 = vadd.f32 %v12569_v4, %v12457_v48 }
 0x7c6   : > { %11847 = vmatmul.mubr.msk.bf16.gmra.mxu0 %vm1404_vm9, %v17936_v20 }
 0x7c7   : > { %v12458_v18 = vpop.f32.mrf.mxu0  ;;  %v12570_v16 = vpop.f32.mrf.mxu1  ;;  %9985 = vmatprep.mubr.bf16.mxu0 %v19445_v63 }
 0x7c9   : > { %v12459_v55 = vpop.f32.mrf.mxu0  ;;  %v12571_v11 = vpop.f32.mrf.mxu1 }
 0x7ca   : > { %v12460_v1 = vadd.f32 %v12459_v55, %v12458_v18  ;;  %v12572_v30 = vadd.f32 %v12571_v11, %v12570_v16 }
 0x7cb   : > { %v12461_v42 = vpop.f32.mrf.mxu0  ;;  %v12573_v15 = vpop.f32.mrf.mxu1 }
 0x7cc   : > { %v18490_v51 = vadd.f32 %v12572_v30, %v12460_v1 }
 0x7cd   : > { %v12462_v3 = vpop.f32.mrf.mxu0  ;;  %v12574_v14 = vpop.f32.mrf.mxu1 }
 0x7ce   : > { %v12463_v26 = vadd.f32 %v12462_v3, %v12461_v42  ;;  %v12575_v25 = vadd.f32 %v12574_v14, %v12573_v15  ;;  %11848 = vmatmul.mubr.msk.bf16.gmra.mxu0 %vm1404_vm9, %v17970_v7 }
 0x7cf   : > { %9995 = vmatprep.mubr.bf16.mxu0 %v19445_v63 }
 0x7d0   : > { %v18495_v24 = vadd.f32 %v12575_v25, %v12463_v26 }
 0x7d6   : > { %11849 = vmatmul.mubr.msk.bf16.gmra.mxu0 %vm1404_vm9, %v18036_v5 }
 0x7d7   : > { %10005 = vmatprep.mubr.bf16.mxu0 %v19445_v63 }
 0x7db   : > { %v12464_v56 = vpop.f32.mrf.mxu0  ;;  %v12576_v44 = vpop.f32.mrf.mxu1 }
 0x7dd   : > { %v12465_v2 = vpop.f32.mrf.mxu0  ;;  %v12577_v22 = vpop.f32.mrf.mxu1 }
 0x7de   : > { %v12466_v29 = vadd.f32 %v12465_v2, %v12464_v56  ;;  %v12578_v46 = vadd.f32 %v12577_v22, %v12576_v44  ;;  %11850 = vmatmul.mubr.msk.bf16.gmra.mxu0 %vm1404_vm9, %v18059_v23 }
 0x7df   : > { %v12467_v53 = vpop.f32.mrf.mxu0  ;;  %v12579_v8 = vpop.f32.mrf.mxu1  ;;  %10015 = vmatprep.mubr.bf16.mxu0 %v19445_v63 }
 0x7e0   : > { %v18509_v33 = vadd.f32 %v12578_v46, %v12466_v29 }
 0x7e1   : > { %v12468_v61 = vpop.f32.mrf.mxu0  ;;  %v12580_v59 = vpop.f32.mrf.mxu1 }
 0x7e2   : > { %v12469_v48 = vadd.f32 %v12468_v61, %v12467_v53  ;;  %v12581_v4 = vadd.f32 %v12580_v59, %v12579_v8 }
 0x7e4   : > { %v18511_v54 = vadd.f32 %v12581_v4, %v12469_v48 }
 0x7e6   : > { %11851 = vmatmul.mubr.msk.bf16.gmra.mxu0 %vm1404_vm9, %v18071_v28 }
 0x7e7   : > { %10025 = vmatprep.mubr.bf16.mxu0 %v19445_v63 }
 0x7ee   : > { %11852 = vmatmul.mubr.msk.bf16.gmra.mxu0 %vm1404_vm9, %v18091_v37 }
 0x7ef   : > { %v12470_v18 = vpop.f32.mrf.mxu0  ;;  %v12582_v16 = vpop.f32.mrf.mxu1  ;;  %10035 = vmatprep.mubr.bf16.mxu0 %v19445_v63 }
 0x7f1   : > { %v12471_v55 = vpop.f32.mrf.mxu0  ;;  %v12583_v11 = vpop.f32.mrf.mxu1 }
 0x7f2   : > { %v12472_v1 = vadd.f32 %v12471_v55, %v12470_v18  ;;  %v12584_v30 = vadd.f32 %v12583_v11, %v12582_v16 }
 0x7f3   : > { %v12473_v42 = vpop.f32.mrf.mxu0  ;;  %v12585_v15 = vpop.f32.mrf.mxu1 }
 0x7f4   : > { %v18522_v3 = vadd.f32 %v12584_v30, %v12472_v1 }
 0x7f5   : > { %v12474_v14 = vpop.f32.mrf.mxu0  ;;  %v12586_v26 = vpop.f32.mrf.mxu1 }
 0x7f6   : > { %v12475_v25 = vadd.f32 %v12474_v14, %v12473_v42  ;;  %v12587_v40 = vadd.f32 %v12586_v26, %v12585_v15  ;;  %11853 = vmatmul.mubr.msk.bf16.gmra.mxu0 %vm1404_vm9, %v18128_v45 }
 0x7f7   : > { %10045 = vmatprep.mubr.bf16.mxu0 %v19445_v63 }
 0x7f8   : > { %v18527_v21 = vadd.f32 %v12587_v40, %v12475_v25 }
 0x7fe   : > { %11854 = vmatmul.mubr.msk.bf16.gmra.mxu0 %vm1404_vm9, %v18151_v60 }
 0x7ff   : > { %10055 = vmatprep.mubr.bf16.mxu0 %v19445_v63 }
 0x803   : > { %v12476_v56 = vpop.f32.mrf.mxu0  ;;  %v12588_v44 = vpop.f32.mrf.mxu1 }
 0x805   : > { %v12477_v2 = vpop.f32.mrf.mxu0  ;;  %v12589_v22 = vpop.f32.mrf.mxu1 }
 0x806   : > { %v12478_v29 = vadd.f32 %v12477_v2, %v12476_v56  ;;  %v12590_v46 = vadd.f32 %v12589_v22, %v12588_v44  ;;  %11855 = vmatmul.mubr.msk.bf16.gmra.mxu0 %vm1404_vm9, %v18171_v57 }
 0x807   : > { %v12479_v53 = vpop.f32.mrf.mxu0  ;;  %v12591_v8 = vpop.f32.mrf.mxu1  ;;  %10065 = vmatprep.mubr.bf16.mxu0 %v19445_v63 }
 0x808   : > { %v18535_v61 = vadd.f32 %v12590_v46, %v12478_v29 }
 0x809   : > { %v12480_v59 = vpop.f32.mrf.mxu0  ;;  %v12592_v48 = vpop.f32.mrf.mxu1 }
 0x80a   : > { %v12481_v4 = vadd.f32 %v12480_v59, %v12479_v53  ;;  %v12593_v12 = vadd.f32 %v12592_v48, %v12591_v8 }
 0x80c   : > { %v18537_v18 = vadd.f32 %v12593_v12, %v12481_v4 }
 0x80e   : > { %11856 = vmatmul.mubr.msk.bf16.gmra.mxu0 %vm1404_vm9, %v18213_v62 }
 0x80f   : > { %10561 = vmatprep.mubr.bf16.mxu0 %v19445_v63 }
 0x816   : > { %11877 = vmatmul.mubr.msk.bf16.vlgmr.msra.gmra.mxu0 %vm1404_vm9, %v17738_v58 }
 0x817   : > { %v12482_v16 = vpop.f32.mrf.mxu0  ;;  %v12594_v55 = vpop.f32.mrf.mxu1  ;;  %10571 = vmatprep.mubr.bf16.mxu0 %v19445_v63 }
 0x819   : > { %v12483_v11 = vpop.f32.mrf.mxu0  ;;  %v12595_v1 = vpop.f32.mrf.mxu1 }
 0x81a   : > { %v12484_v30 = vadd.f32 %v12483_v11, %v12482_v16  ;;  %v12596_v42 = vadd.f32 %v12595_v1, %v12594_v55 }
 0x81b   : > { %v12485_v15 = vpop.f32.mrf.mxu0  ;;  %v12597_v14 = vpop.f32.mrf.mxu1 }
 0x81c   : > { %v18545_v26 = vadd.f32 %v12596_v42, %v12484_v30 }
 0x81d   : > { %v12486_v25 = vpop.f32.mrf.mxu0  ;;  %v12598_v40 = vpop.f32.mrf.mxu1 }
 0x81e   : > { %v12487_v56 = vadd.f32 %v12486_v25, %v12485_v15  ;;  %v12599_v44 = vadd.f32 %v12598_v40, %v12597_v14  ;;  %11878 = vmatmul.mubr.msk.bf16.gmra.mxu0 %vm1404_vm9, %v17788_v36 }
 0x81f   : > { %10581 = vmatprep.mubr.bf16.mxu0 %v19445_v63 }
 0x820   : > { %v18550_v58 = vadd.f32 %v12599_v44, %v12487_v56 }
 0x826   : > { %11879 = vmatmul.mubr.msk.bf16.gmra.mxu0 %vm1404_vm9, %v17847_v43 }
 0x827   : > { %10591 = vmatprep.mubr.bf16.mxu0 %v19445_v63 }
 0x82b   : > { %v12488_v2 = vpop.f32.mrf.mxu0  ;;  %v12600_v22 = vpop.f32.mrf.mxu1 }
 0x82d   : > { %v12489_v29 = vpop.f32.mrf.mxu0  ;;  %v12601_v46 = vpop.f32.mrf.mxu1 }
 0x82e   : > { %v12490_v53 = vadd.f32 %v12489_v29, %v12488_v2  ;;  %v12602_v8 = vadd.f32 %v12601_v46, %v12600_v22  ;;  %11880 = vmatmul.mubr.msk.bf16.gmra.mxu0 %vm1404_vm9, %v17887_v49 }
 0x82f   : > { %v12491_v59 = vpop.f32.mrf.mxu0  ;;  %v12603_v36 = vpop.f32.mrf.mxu1  ;;  %10601 = vmatprep.mubr.bf16.mxu0 %v19445_v63 }
 0x830   : > { %v18558_v48 = vadd.f32 %v12602_v8, %v12490_v53 }
 0x831   : > { %v12492_v4 = vpop.f32.mrf.mxu0  ;;  %v12604_v12 = vpop.f32.mrf.mxu1 }
 0x832   : > { %v12493_v43 = vadd.f32 %v12492_v4, %v12491_v59  ;;  %v12605_v16 = vadd.f32 %v12604_v12, %v12603_v36 }
 0x834   : > { %v18560_v55 = vadd.f32 %v12605_v16, %v12493_v43 }
 0x836   : > { %11881 = vmatmul.mubr.msk.bf16.gmra.mxu0 %vm1404_vm9, %v17901_v39 }
 0x837   : > { %10611 = vmatprep.mubr.bf16.mxu0 %v19445_v63 }
 0x83b   : > { %v12494_v11 = vpop.f32.mrf.mxu0  ;;  %v12606_v1 = vpop.f32.mrf.mxu1 }
 0x83d   : > { %v12495_v49 = vpop.f32.mrf.mxu0  ;;  %v12607_v30 = vpop.f32.mrf.mxu1 }
 0x83e   : > { %11882 = vmatmul.mubr.msk.bf16.gmra.mxu0 %vm1404_vm9, %v17914_v38  ;;  %v12496_v42 = vadd.f32 %v12495_v49, %v12494_v11  ;;  %v12608_v15 = vadd.f32 %v12607_v30, %v12606_v1 }
 0x83f   : > { %10621 = vmatprep.mubr.bf16.mxu0 %v19445_v63  ;;  %v12497_v14 = vpop.f32.mrf.mxu0  ;;  %v12609_v25 = vpop.f32.mrf.mxu1 }
 0x840   : > { %v18568_v40 = vadd.f32 %v12608_v15, %v12496_v42 }
 0x841   : > { %v12498_v56 = vpop.f32.mrf.mxu0  ;;  %v12610_v44 = vpop.f32.mrf.mxu1 }
 0x842   : > { %v12499_v39 = vadd.f32 %v12498_v56, %v12497_v14  ;;  %v12611_v2 = vadd.f32 %v12610_v44, %v12609_v25 }
 0x843   : > { %v12500_v22 = vpop.f32.mrf.mxu0  ;;  %v12612_v29 = vpop.f32.mrf.mxu1 }
 0x844   : > { %v18570_v46 = vadd.f32 %v12611_v2, %v12499_v39 }
 0x845   : > { %v12501_v53 = vpop.f32.mrf.mxu0  ;;  %v12613_v8 = vpop.f32.mrf.mxu1 }
 0x846   : > { %11883 = vmatmul.mubr.msk.bf16.gmra.mxu0 %vm1404_vm9, %v17936_v20  ;;  %v12502_v38 = vadd.f32 %v12501_v53, %v12500_v22  ;;  %v12614_v59 = vadd.f32 %v12613_v8, %v12612_v29  ;;  %v9851_v8 = vld [vmem:[%s19011_s4 + $0x4] sm:$0x3] }
 0x847   : > { %10631 = vmatprep.mubr.bf16.mxu0 %v19445_v63  ;;  %v12503_v36 = vpop.f32.mrf.mxu0  ;;  %v12615_v4 = vpop.f32.mrf.mxu1 }
 0x848   : > { %v18575_v12 = vadd.f32 %v12614_v59, %v12502_v38  ;;  %v18592_v59 = vrot.slane %v9851_v8, %v18164_v27 }
 0x849   : > { %v12504_v43 = vpop.f32.mrf.mxu0  ;;  %v12616_v16 = vpop.f32.mrf.mxu1 }
 0x84a   : > { %v12505_v11 = vadd.f32 %v12504_v43, %v12503_v36  ;;  %v12617_v1 = vadd.f32 %v12616_v16, %v12615_v4  ;;  %v18596_v36 = vrot.slane %v9851_v8, %v18183_v35 }
 0x84c   : > { %v18577_v49 = vadd.f32 %v12617_v1, %v12505_v11 }
 0x84e   : > { %v12506_v30 = vpop.f32.mrf.mxu0  ;;  %v12618_v42 = vpop.f32.mrf.mxu1  ;;  %11884 = vmatmul.mubr.msk.bf16.gmra.mxu0 %vm1404_vm9, %v17970_v7 }
 0x84f   : > { %10641 = vmatprep.mubr.bf16.mxu0 %v19445_v63 }
 0x850   : > { %v12507_v20 = vpop.f32.mrf.mxu0  ;;  %v12619_v15 = vpop.f32.mrf.mxu1 }
 0x851   : > { %v12508_v14 = vadd.f32 %v12507_v20, %v12506_v30  ;;  %v12620_v25 = vadd.f32 %v12619_v15, %v12618_v42 }
 0x852   : > { %v12509_v56 = vpop.f32.mrf.mxu0  ;;  %v12621_v44 = vpop.f32.mrf.mxu1 }
 0x853   : > { %v18582_v39 = vadd.f32 %v12620_v25, %v12508_v14 }
 0x854   : > { %v12510_v2 = vpop.f32.mrf.mxu0  ;;  %v12622_v22 = vpop.f32.mrf.mxu1 }
 0x855   : > { %v12511_v29 = vadd.f32 %v12510_v2, %v12509_v56  ;;  %v12623_v53 = vadd.f32 %v12622_v22, %v12621_v44  ;;  %v13247_v2 = vld [vmem:[%s19012_s5 + $0x1b8] sm:$0xff]  }
 0x856   : > { %v9917_v38 = vpop.f32.mrf.mxu0  ;;  %11885 = vmatmul.mubr.msk.bf16.gmra.mxu0 %vm1404_vm9, %v18036_v5 }
 0x857   : > { %v18589_v7 = vadd.f32 %v12623_v53, %v12511_v29  ;;  %10651 = vmatprep.mubr.bf16.mxu0 %v19445_v63  ;;  %v9918_v1 = vadd.f32 %v9917_v38, %v18596_v36  ;;  %v13248_v53 = vld [vmem:[%s19012_s5 + $0x1f0] sm:$0xff]  }
 0x858   : > { %v9919_v4 = vpop.f32.mrf.mxu0 }
 0x859   : > { %v9920_v16 = vadd.f32 %v9919_v4, %v18592_v59  ;;  %v10076_v25 = vmax.f32 %v9918_v1, 0.0 }
 0x85a   : > { %v9921_v43 = vpop.f32.mrf.mxu0 }
 0x85b   : > { %v9922_v11 = vadd.f32 %v9921_v43, %v18596_v36  ;;  %v10077_v15 = vmax.f32 %v9920_v16, 0.0  ;;  %v13249_v16 = vld [vmem:[%s19012_s5 + $0x1b0] sm:$0xff]  }
 0x85c   : > { %v9923_v30 = vpop.f32.mrf.mxu0 }
 0x85d   : > { %v9924_v5 = vadd.f32 %v9923_v30, %v18592_v59  ;;  %v10078_v42 = vmax.f32 %v9922_v11, 0.0  ;;  %v13250_v30 = vld [vmem:[%s19012_s5 + $0x1e8] sm:$0xff]  }
 0x85e   : > { %v9927_v20 = vpop.f32.mrf.mxu0  ;;  %11886 = vmatmul.mubr.msk.bf16.gmra.mxu0 %vm1404_vm9, %v18059_v23 }
 0x85f   : > { %v10079_v14 = vmax.f32 %v9924_v5, 0.0  ;;  %10661 = vmatprep.mubr.bf16.mxu0 %v19445_v63  ;;  %v10140_v22 = vpack.c.bf16 %v10078_v42, %v10076_v25  ;;  %v9928_v38 = vadd.f32 %v9927_v20, %v18596_v36  ;;  %v13251_v25 = vld [vmem:[%s19012_s5 + $0x1a8] sm:$0xff]  }
 0x860   : > { %v9929_v56 = vpop.f32.mrf.mxu0 }
 0x861   : > { %v10141_v44 = vpack.c.bf16 %v10079_v14, %v10077_v15  ;;  %v9930_v8 = vadd.f32 %v9929_v56, %v18592_v59  ;;  %v10080_v20 = vmax.f32 %v9928_v38, 0.0 }
 0x862   : > { %v9931_v29 = vpop.f32.mrf.mxu0 }
 0x863   : > { %v9932_v23 = vadd.f32 %v9931_v29, %v18596_v36  ;;  %10332 = vmatprep.mubr.bf16.mxu1 %v10141_v44  ;;  %v10081_v5 = vmax.f32 %v9930_v8, 0.0 }
 0x864   : > { %v9933_v4 = vpop.f32.mrf.mxu0  ;;  %10333 = vmatmul.mubr.bf16.vlgmr.msra.gmra.mxu1 %v10140_v22 }
 0x865   : > { %v9934_v43 = vadd.f32 %v9933_v4, %v18592_v59  ;;  %12737 = vmatpush3.bf16.msra.mxu1 %v13247_v2  ;;  %v10082_v11 = vmax.f32 %v9932_v23, 0.0  ;;  %v13253_v23 = vld [vmem:[%s19012_s5 + $0x1a0] sm:$0xff]  }
 0x866   : > { %v9937_v1 = vpop.f32.mrf.mxu0  ;;  %11887 = vmatmul.mubr.msk.bf16.gmra.mxu0 %vm1404_vm9, %v18071_v28  ;;  %12738 = vmatprep.subr.bf16.mxu1 %v13248_v53  ;;  %v13252_v28 = vld [vmem:[%s19012_s5 + $0x1e0] sm:$0xff]  }
 0x867   : > { %v10083_v42 = vmax.f32 %v9934_v43, 0.0  ;;  %10671 = vmatprep.mubr.bf16.mxu0 %v19445_v63  ;;  %v10142_v56 = vpack.c.bf16 %v10082_v11, %v10080_v20  ;;  %v9938_v29 = vadd.f32 %v9937_v1, %v18596_v36  ;;  %v13254_v43 = vld [vmem:[%s19012_s5 + $0x1d8] sm:$0xff]  }
 0x868   : > { %v9939_v15 = vpop.f32.mrf.mxu0 }
 0x869   : > { %v10143_v14 = vpack.c.bf16 %v10083_v42, %v10081_v5  ;;  %12739 = vmatpush3.bf16.msra.mxu1 %v13249_v16  ;;  %v9940_v2 = vadd.f32 %v9939_v15, %v18592_v59  ;;  %v10084_v1 = vmax.f32 %v9938_v29, 0.0  ;;  %v13255_v42 = vld [vmem:[%s19012_s5 + $0x198] sm:$0xff]  }
 0x86a   : > { %v9941_v44 = vpop.f32.mrf.mxu0  ;;  %12740 = vmatprep.subr.bf16.mxu1 %v13250_v30 }
 0x86b   : > { %v9942_v22 = vadd.f32 %v9941_v44, %v18596_v36  ;;  %10340 = vmatprep.mubr.bf16.mxu1 %v10143_v14  ;;  %v10085_v16 = vmax.f32 %v9940_v2, 0.0  ;;  %v13257_v2 = vld [vmem:[%s19012_s5 + $0x190] sm:$0xff]  }
 0x86c   : > { %v9943_v53 = vpop.f32.mrf.mxu0  ;;  %10341 = vmatmul.mubr.bf16.gmra.mxu1 %v10142_v56 }
 0x86d   : > { %v9944_v8 = vadd.f32 %v9943_v53, %v18592_v59  ;;  %12741 = vmatpush3.bf16.msra.mxu1 %v13251_v25  ;;  %v10086_v38 = vmax.f32 %v9942_v22, 0.0  ;;  %v13258_v53 = vld [vmem:[%s19012_s5 + $0x1c8] sm:$0xff]  }
 0x86e   : > { %v9947_v4 = vpop.f32.mrf.mxu0  ;;  %11888 = vmatmul.mubr.msk.bf16.gmra.mxu0 %vm1404_vm9, %v18091_v37  ;;  %12742 = vmatprep.subr.bf16.mxu1 %v13252_v28  ;;  %v13256_v37 = vld [vmem:[%s19012_s5 + $0x1d0] sm:$0xff]  }
 0x86f   : > { %v10087_v11 = vmax.f32 %v9944_v8, 0.0  ;;  %10681 = vmatprep.mubr.bf16.mxu0 %v19445_v63  ;;  %v10144_v20 = vpack.c.bf16 %v10086_v38, %v10084_v1  ;;  %v9948_v56 = vadd.f32 %v9947_v4, %v18596_v36 }
 0x870   : > { %v9949_v30 = vpop.f32.mrf.mxu0 }
 0x871   : > { %v10145_v5 = vpack.c.bf16 %v10087_v11, %v10085_v16  ;;  %12743 = vmatpush3.bf16.msra.mxu1 %v13253_v23  ;;  %v9950_v14 = vadd.f32 %v9949_v30, %v18592_v59  ;;  %v10088_v38 = vmax.f32 %v9948_v56, 0.0  ;;  %v13259_v16 = vld [vmem:[%s19012_s5 + $0x188] sm:$0xff]  }
 0x872   : > { %v9951_v15 = vpop.f32.mrf.mxu0  ;;  %12744 = vmatprep.subr.bf16.mxu1 %v13254_v43 }
 0x873   : > { %v9952_v25 = vadd.f32 %v9951_v15, %v18596_v36  ;;  %10348 = vmatprep.mubr.bf16.mxu1 %v10145_v5  ;;  %v10089_v8 = vmax.f32 %v9950_v14, 0.0 }
 0x874   : > { %v9953_v44 = vpop.f32.mrf.mxu0  ;;  %10349 = vmatmul.mubr.bf16.gmra.mxu1 %v10144_v20 }
 0x875   : > { %v9954_v28 = vadd.f32 %v9953_v44, %v18592_v59  ;;  %12745 = vmatpush3.bf16.msra.mxu1 %v13255_v42  ;;  %v10090_v22 = vmax.f32 %v9952_v25, 0.0 }
 0x876   : > { %v9957_v29 = vpop.f32.mrf.mxu0  ;;  %11889 = vmatmul.mubr.msk.bf16.gmra.mxu0 %vm1404_vm9, %v18128_v45  ;;  %12746 = vmatprep.subr.bf16.mxu1 %v13256_v37  ;;  %v13260_v45 = vld [vmem:[%s19012_s5 + $0x1c0] sm:$0xff]  }
 0x877   : > { %v10091_v23 = vmax.f32 %v9954_v28, 0.0  ;;  %10691 = vmatprep.mubr.bf16.mxu0 %v19445_v63  ;;  %v10146_v11 = vpack.c.bf16 %v10090_v22, %v10088_v38  ;;  %v9958_v42 = vadd.f32 %v9957_v29, %v18596_v36  ;;  %v13261_v37 = vld [vmem:[%s19012_s5 + $0x180] sm:$0xff]  }
 0x878   : > { %v9959_v4 = vpop.f32.mrf.mxu0 }
 0x879   : > { %v10147_v43 = vpack.c.bf16 %v10091_v23, %v10089_v8  ;;  %12747 = vmatpush3.bf16.msra.mxu1 %v13257_v2  ;;  %v9960_v30 = vadd.f32 %v9959_v4, %v18592_v59  ;;  %v10092_v28 = vmax.f32 %v9958_v42, 0.0 }
 0x87a   : > { %v9961_v1 = vpop.f32.mrf.mxu0  ;;  %12748 = vmatprep.subr.bf16.mxu1 %v13258_v53 }
 0x87b   : > { %v9962_v5 = vadd.f32 %v9961_v1, %v18596_v36  ;;  %10356 = vmatprep.mubr.bf16.mxu1 %v10147_v43  ;;  %v10093_v56 = vmax.f32 %v9960_v30, 0.0 }
 0x87c   : > { %v9963_v20 = vpop.f32.mrf.mxu0  ;;  %10357 = vmatmul.mubr.bf16.gmra.mxu1 %v10146_v11 }
 0x87d   : > { %v9964_v15 = vadd.f32 %v9963_v20, %v18592_v59  ;;  %12749 = vmatpush3.bf16.msra.mxu1 %v13259_v16  ;;  %v10094_v14 = vmax.f32 %v9962_v5, 0.0 }
 0x87e   : > { %v9967_v25 = vpop.f32.mrf.mxu0  ;;  %11890 = vmatmul.mubr.msk.bf16.gmra.mxu0 %vm1404_vm9, %v18151_v60  ;;  %12750 = vmatprep.subr.bf16.mxu1 %v13260_v45 }
 0x87f   : > { %v10095_v44 = vmax.f32 %v9964_v15, 0.0  ;;  %10701 = vmatprep.mubr.bf16.mxu0 %v19445_v63  ;;  %v10148_v29 = vpack.c.bf16 %v10094_v14, %v10092_v28  ;;  %v9968_v38 = vadd.f32 %v9967_v25, %v18596_v36 }
 0x880   : > { %v9969_v2 = vpop.f32.mrf.mxu0 }
 0x881   : > { %v10149_v22 = vpack.c.bf16 %v10095_v44, %v10093_v56  ;;  %12751 = vmatpush3.bf16.msra.mxu1 %v13261_v37  ;;  %v9970_v8 = vadd.f32 %v9969_v2, %v18592_v59  ;;  %v10096_v45 = vmax.f32 %v9968_v38, 0.0 }
 0x882   : > { %v9971_v53 = vpop.f32.mrf.mxu0 }
 0x883   : > { %v9972_v23 = vadd.f32 %v9971_v53, %v18596_v36  ;;  %10364 = vmatprep.mubr.bf16.mxu1 %v10149_v22  ;;  %v10097_v11 = vmax.f32 %v9970_v8, 0.0 }
 0x884   : > { %v9973_v4 = vpop.f32.mrf.mxu0  ;;  %10365 = vmatmul.mubr.bf16.gmra.mxu1 %v10148_v29 }
 0x885   : > { %v9974_v60 = vadd.f32 %v9973_v4, %v18592_v59  ;;  %v10098_v43 = vmax.f32 %v9972_v23, 0.0 }
 0x886   : > { %v9977_v16 = vpop.f32.mrf.mxu0  ;;  %11891 = vmatmul.mubr.msk.bf16.gmra.mxu0 %vm1404_vm9, %v18171_v57 }
 0x887   : > { %v10099_v1 = vmax.f32 %v9974_v60, 0.0  ;;  %10711 = vmatprep.mubr.bf16.mxu0 %v19445_v63  ;;  %v10150_v42 = vpack.c.bf16 %v10098_v43, %v10096_v45  ;;  %v9978_v14 = vadd.f32 %v9977_v16, %v18596_v36 }
 0x888   : > { %v9979_v30 = vpop.f32.mrf.mxu0 }
 0x889   : > { %v10151_v5 = vpack.c.bf16 %v10099_v1, %v10097_v11  ;;  %v9980_v15 = vadd.f32 %v9979_v30, %v18592_v59  ;;  %v10100_v2 = vmax.f32 %v9978_v14, 0.0 }
 0x88a   : > { %v9981_v20 = vpop.f32.mrf.mxu0 }
 0x88b   : > { %v9982_v37 = vadd.f32 %v9981_v20, %v18596_v36  ;;  %10372 = vmatprep.mubr.bf16.mxu1 %v10151_v5  ;;  %v10101_v63 = vmax.f32 %v9980_v15, 0.0 }
 0x88c   : > { %v9983_v25 = vpop.f32.mrf.mxu0  ;;  %10373 = vmatmul.mubr.bf16.gmra.mxu1 %v10150_v42 }
 0x88d   : > { %v9984_v57 = vadd.f32 %v9983_v25, %v18592_v59  ;;  %v10102_v56 = vmax.f32 %v9982_v37, 0.0 }
 0x88e   : > { %v9987_v44 = vpop.f32.mrf.mxu0  ;;  %11892 = vmatmul.mubr.msk.bf16.gmra.mxu0 %vm1404_vm9, %v18213_v62 }
 0x88f   : > { %v10103_v28 = vmax.f32 %v9984_v57, 0.0  ;;  %v10152_v53 = vpack.c.bf16 %v10102_v56, %v10100_v2  ;;  %v9988_v4 = vadd.f32 %v9987_v44, %v18596_v36 }
 0x890   : > { %v9989_v22 = vpop.f32.mrf.mxu0 }
 0x891   : > { %v10153_v29 = vpack.c.bf16 %v10103_v28, %v10101_v63  ;;  %v9990_v23 = vadd.f32 %v9989_v22, %v18592_v59  ;;  %v10104_v45 = vmax.f32 %v9988_v4, 0.0 }
 0x892   : > { %v9991_v8 = vpop.f32.mrf.mxu0 }
 0x893   : > { %v9992_v38 = vadd.f32 %v9991_v8, %v18596_v36  ;;  %10380 = vmatprep.mubr.bf16.mxu1 %v10153_v29  ;;  %v10105_v11 = vmax.f32 %v9990_v23, 0.0 }
 0x894   : > { %v9993_v60 = vpop.f32.mrf.mxu0  ;;  %10381 = vmatmul.mubr.bf16.gmra.mxu1 %v10152_v53 }
 0x895   : > { %v9994_v43 = vadd.f32 %v9993_v60, %v18592_v59  ;;  %v10106_v16 = vmax.f32 %v9992_v38, 0.0 }
 0x896   : > { %v9997_v62 = vpop.f32.mrf.mxu0 }
 0x897   : > { %v10107_v1 = vmax.f32 %v9994_v43, 0.0  ;;  %v10154_v42 = vpack.c.bf16 %v10106_v16, %v10104_v45  ;;  %v9998_v14 = vadd.f32 %v9997_v62, %v18596_v36 }
 0x898   : > { %v9999_v30 = vpop.f32.mrf.mxu0 }
 0x899   : > { %v10155_v5 = vpack.c.bf16 %v10107_v1, %v10105_v11  ;;  %v10000_v15 = vadd.f32 %v9999_v30, %v18592_v59  ;;  %v10108_v2 = vmax.f32 %v9998_v14, 0.0 }
 0x89a   : > { %v10001_v20 = vpop.f32.mrf.mxu0 }
 0x89b   : > { %v10002_v37 = vadd.f32 %v10001_v20, %v18596_v36  ;;  %10388 = vmatprep.mubr.bf16.mxu1 %v10155_v5  ;;  %v10109_v63 = vmax.f32 %v10000_v15, 0.0 }
 0x89c   : > { %v10003_v25 = vpop.f32.mrf.mxu0  ;;  %10389 = vmatmul.mubr.bf16.gmra.mxu1 %v10154_v42 }
 0x89d   : > { %v10004_v57 = vadd.f32 %v10003_v25, %v18592_v59  ;;  %v10110_v56 = vmax.f32 %v10002_v37, 0.0 }
 0x89e   : > { %v10007_v44 = vpop.f32.mrf.mxu0 }
 0x89f   : > { %v10111_v28 = vmax.f32 %v10004_v57, 0.0  ;;  %v10156_v53 = vpack.c.bf16 %v10110_v56, %v10108_v2  ;;  %v10008_v4 = vadd.f32 %v10007_v44, %v18596_v36 }
 0x8a0   : > { %v10009_v22 = vpop.f32.mrf.mxu0 }
 0x8a1   : > { %v10157_v29 = vpack.c.bf16 %v10111_v28, %v10109_v63  ;;  %v10010_v23 = vadd.f32 %v10009_v22, %v18592_v59  ;;  %v10112_v45 = vmax.f32 %v10008_v4, 0.0 }
 0x8a2   : > { %v10011_v8 = vpop.f32.mrf.mxu0 }
 0x8a3   : > { %v10012_v38 = vadd.f32 %v10011_v8, %v18596_v36  ;;  %10396 = vmatprep.mubr.bf16.mxu1 %v10157_v29  ;;  %v10113_v11 = vmax.f32 %v10010_v23, 0.0 }
 0x8a4   : > { %v10013_v60 = vpop.f32.mrf.mxu0  ;;  %10397 = vmatmul.mubr.bf16.gmra.mxu1 %v10156_v53 }
 0x8a5   : > { %v10014_v43 = vadd.f32 %v10013_v60, %v18592_v59  ;;  %v10114_v16 = vmax.f32 %v10012_v38, 0.0 }
 0x8a6   : > { %v10017_v62 = vpop.f32.mrf.mxu0 }
 0x8a7   : > { %v10115_v1 = vmax.f32 %v10014_v43, 0.0  ;;  %v10158_v42 = vpack.c.bf16 %v10114_v16, %v10112_v45  ;;  %v10018_v14 = vadd.f32 %v10017_v62, %v18596_v36 }
 0x8a8   : > { %v10019_v30 = vpop.f32.mrf.mxu0 }
 0x8a9   : > { %v10159_v5 = vpack.c.bf16 %v10115_v1, %v10113_v11  ;;  %v10020_v15 = vadd.f32 %v10019_v30, %v18592_v59  ;;  %v10116_v2 = vmax.f32 %v10018_v14, 0.0 }
 0x8aa   : > { %v10021_v20 = vpop.f32.mrf.mxu0 }
 0x8ab   : > { %v10022_v37 = vadd.f32 %v10021_v20, %v18596_v36  ;;  %10404 = vmatprep.mubr.bf16.mxu1 %v10159_v5  ;;  %v10117_v63 = vmax.f32 %v10020_v15, 0.0 }
 0x8ac   : > { %v10023_v25 = vpop.f32.mrf.mxu0  ;;  %10405 = vmatmul.mubr.bf16.gmra.mxu1 %v10158_v42 }
 0x8ad   : > { %v10024_v57 = vadd.f32 %v10023_v25, %v18592_v59  ;;  %v10118_v56 = vmax.f32 %v10022_v37, 0.0 }
 0x8ae   : > { %v10027_v44 = vpop.f32.mrf.mxu0 }
 0x8af   : > { %v10119_v28 = vmax.f32 %v10024_v57, 0.0  ;;  %v10160_v53 = vpack.c.bf16 %v10118_v56, %v10116_v2  ;;  %v10028_v4 = vadd.f32 %v10027_v44, %v18596_v36 }
 0x8b0   : > { %v10029_v22 = vpop.f32.mrf.mxu0 }
 0x8b1   : > { %v10161_v29 = vpack.c.bf16 %v10119_v28, %v10117_v63  ;;  %v10030_v23 = vadd.f32 %v10029_v22, %v18592_v59  ;;  %v10120_v45 = vmax.f32 %v10028_v4, 0.0 }
 0x8b2   : > { %v10031_v8 = vpop.f32.mrf.mxu0 }
 0x8b3   : > { %v10032_v38 = vadd.f32 %v10031_v8, %v18596_v36  ;;  %10412 = vmatprep.mubr.bf16.mxu1 %v10161_v29  ;;  %v10121_v11 = vmax.f32 %v10030_v23, 0.0 }
 0x8b4   : > { %v10033_v60 = vpop.f32.mrf.mxu0  ;;  %10413 = vmatmul.mubr.bf16.gmra.mxu1 %v10160_v53 }
 0x8b5   : > { %v10034_v43 = vadd.f32 %v10033_v60, %v18592_v59  ;;  %v10122_v16 = vmax.f32 %v10032_v38, 0.0 }
 0x8b6   : > { %v10037_v62 = vpop.f32.mrf.mxu0 }
 0x8b7   : > { %v10123_v1 = vmax.f32 %v10034_v43, 0.0  ;;  %v10162_v42 = vpack.c.bf16 %v10122_v16, %v10120_v45  ;;  %v10038_v14 = vadd.f32 %v10037_v62, %v18596_v36 }
 0x8b8   : > { %v10039_v30 = vpop.f32.mrf.mxu0 }
 0x8b9   : > { %v10163_v5 = vpack.c.bf16 %v10123_v1, %v10121_v11  ;;  %v10040_v15 = vadd.f32 %v10039_v30, %v18592_v59  ;;  %v10124_v2 = vmax.f32 %v10038_v14, 0.0 }
 0x8ba   : > { %v10041_v20 = vpop.f32.mrf.mxu0 }
 0x8bb   : > { %v10042_v37 = vadd.f32 %v10041_v20, %v18596_v36  ;;  %10420 = vmatprep.mubr.bf16.mxu1 %v10163_v5  ;;  %v10125_v63 = vmax.f32 %v10040_v15, 0.0 }
 0x8bc   : > { %v10043_v25 = vpop.f32.mrf.mxu0  ;;  %10421 = vmatmul.mubr.bf16.gmra.mxu1 %v10162_v42 }
 0x8bd   : > { %v10044_v57 = vadd.f32 %v10043_v25, %v18592_v59  ;;  %v10126_v56 = vmax.f32 %v10042_v37, 0.0 }
 0x8be   : > { %v10047_v44 = vpop.f32.mrf.mxu0 }
 0x8bf   : > { %v10127_v28 = vmax.f32 %v10044_v57, 0.0  ;;  %v10164_v53 = vpack.c.bf16 %v10126_v56, %v10124_v2  ;;  %v10048_v4 = vadd.f32 %v10047_v44, %v18596_v36 }
 0x8c0   : > { %v10049_v22 = vpop.f32.mrf.mxu0 }
 0x8c1   : > { %v10165_v29 = vpack.c.bf16 %v10127_v28, %v10125_v63  ;;  %v10050_v23 = vadd.f32 %v10049_v22, %v18592_v59  ;;  %v10128_v45 = vmax.f32 %v10048_v4, 0.0 }
 0x8c2   : > { %v10051_v8 = vpop.f32.mrf.mxu0 }
 0x8c3   : > { %v10052_v38 = vadd.f32 %v10051_v8, %v18596_v36  ;;  %10428 = vmatprep.mubr.bf16.mxu1 %v10165_v29  ;;  %v10129_v11 = vmax.f32 %v10050_v23, 0.0 }
 0x8c4   : > { %v10053_v60 = vpop.f32.mrf.mxu0  ;;  %10429 = vmatmul.mubr.bf16.gmra.mxu1 %v10164_v53 }
 0x8c5   : > { %v10054_v43 = vadd.f32 %v10053_v60, %v18592_v59  ;;  %v10130_v16 = vmax.f32 %v10052_v38, 0.0 }
 0x8c6   : > { %v10057_v62 = vpop.f32.mrf.mxu0 }
 0x8c7   : > { %v10131_v1 = vmax.f32 %v10054_v43, 0.0  ;;  %v10166_v42 = vpack.c.bf16 %v10130_v16, %v10128_v45  ;;  %v10058_v14 = vadd.f32 %v10057_v62, %v18596_v36  ;;  %v10497_v16 = vld [vmem:[%s19011_s4 + $0x6] sm:$0x3] }
 0x8c8   : > { %v10059_v30 = vpop.f32.mrf.mxu0 }
 0x8c9   : > { %v10167_v5 = vpack.c.bf16 %v10131_v1, %v10129_v11  ;;  %v10060_v15 = vadd.f32 %v10059_v30, %v18592_v59  ;;  %v10132_v2 = vmax.f32 %v10058_v14, 0.0  ;;  %v18731_v30 = vrot.slane %v10497_v16, %v18164_v27 }
 0x8ca   : > { %v10061_v20 = vpop.f32.mrf.mxu0 }
 0x8cb   : > { %v10062_v37 = vadd.f32 %v10061_v20, %v18596_v36  ;;  %10436 = vmatprep.mubr.bf16.mxu1 %v10167_v5  ;;  %v10133_v63 = vmax.f32 %v10060_v15, 0.0 }
 0x8cc   : > { %v10063_v25 = vpop.f32.mrf.mxu0  ;;  %10437 = vmatmul.mubr.bf16.gmra.mxu1 %v10166_v42  ;;  %v18734_v42 = vrot.slane %v10497_v16, %v18183_v35 }
 0x8cd   : > { %v10064_v57 = vadd.f32 %v10063_v25, %v18592_v59  ;;  %v10134_v56 = vmax.f32 %v10062_v37, 0.0 }
 0x8ce   : > { %v10067_v44 = vpop.f32.mrf.mxu0 }
 0x8cf   : > { %v10135_v28 = vmax.f32 %v10064_v57, 0.0  ;;  %v10168_v53 = vpack.c.bf16 %v10134_v56, %v10132_v2  ;;  %v10068_v4 = vadd.f32 %v10067_v44, %v18596_v36 }
 0x8d0   : > { %v10069_v22 = vpop.f32.mrf.mxu0 }
 0x8d1   : > { %v10169_v29 = vpack.c.bf16 %v10135_v28, %v10133_v63  ;;  %v10070_v23 = vadd.f32 %v10069_v22, %v18592_v59  ;;  %v10136_v5 = vmax.f32 %v10068_v4, 0.0 }
 0x8d2   : > { %v10071_v8 = vpop.f32.mrf.mxu0 }
 0x8d3   : > { %v10072_v38 = vadd.f32 %v10071_v8, %v18596_v36  ;;  %10444 = vmatprep.mubr.bf16.mxu1 %v10169_v29  ;;  %v10137_v1 = vmax.f32 %v10070_v23, 0.0 }
 0x8d4   : > { %v10073_v60 = vpop.f32.mrf.mxu0  ;;  %10445 = vmatmul.mubr.bf16.gmra.mxu1 %v10168_v53 }
 0x8d5   : > { %v10074_v43 = vadd.f32 %v10073_v60, %v18592_v59  ;;  %v10138_v62 = vmax.f32 %v10072_v38, 0.0 }
 0x8d6   : > { %v10563_v11 = vpop.f32.mrf.mxu0 }
 0x8d7   : > { %v10139_v45 = vmax.f32 %v10074_v43, 0.0  ;;  %v10170_v15 = vpack.c.bf16 %v10138_v62, %v10136_v5  ;;  %v10564_v25 = vadd.f32 %v10563_v11, %v18734_v42 }
 0x8d8   : > { %v10565_v36 = vpop.f32.mrf.mxu0 }
 0x8d9   : > { %v10171_v20 = vpack.c.bf16 %v10139_v45, %v10137_v1  ;;  %v10566_v59 = vadd.f32 %v10565_v36, %v18731_v30  ;;  %v10722_v28 = vmax.f32 %v10564_v25, 0.0 }
 0x8da   : > { %v10567_v37 = vpop.f32.mrf.mxu0 }
 0x8db   : > { %v10568_v14 = vadd.f32 %v10567_v37, %v18734_v42  ;;  %10452 = vmatprep.mubr.bf16.mxu1 %v10171_v20  ;;  %v10723_v63 = vmax.f32 %v10566_v59, 0.0 }
 0x8dc   : > { %10453 = vmatmul.mubr.bf16.gmra.mxu1 %v10170_v15  ;;  %v10569_v57 = vpop.f32.mrf.mxu0 }
 0x8dd   : > { %v10570_v27 = vadd.f32 %v10569_v57, %v18731_v30  ;;  %v10724_v56 = vmax.f32 %v10568_v14, 0.0 }
 0x8de   : > { %v10573_v44 = vpop.f32.mrf.mxu0 }
 0x8df   : > { %v10725_v35 = vmax.f32 %v10570_v27, 0.0  ;;  %v10786_v29 = vpack.c.bf16 %v10724_v56, %v10722_v28  ;;  %v10574_v38 = vadd.f32 %v10573_v44, %v18734_v42 }
 0x8e0   : > { %v10575_v2 = vpop.f32.mrf.mxu0 }
 0x8e1   : > { %v10787_v22 = vpack.c.bf16 %v10725_v35, %v10723_v63  ;;  %v10576_v8 = vadd.f32 %v10575_v2, %v18731_v30  ;;  %v10726_v1 = vmax.f32 %v10574_v38, 0.0 }
 0x8e2   : > { %v10577_v53 = vpop.f32.mrf.mxu0 }
 0x8e3   : > { %v10578_v23 = vadd.f32 %v10577_v53, %v18734_v42  ;;  %10978 = vmatprep.mubr.bf16.mxu1 %v10787_v22  ;;  %v10727_v62 = vmax.f32 %v10576_v8, 0.0 }
 0x8e4   : > { %v10579_v4 = vpop.f32.mrf.mxu0  ;;  %10979 = vmatmul.mubr.bf16.vlgmr.msra.gmra.mxu1 %v10786_v29 }
 0x8e5   : > { %v10580_v60 = vadd.f32 %v10579_v4, %v18731_v30  ;;  %v10728_v43 = vmax.f32 %v10578_v23, 0.0 }
 0x8e6   : > { %v10583_v16 = vpop.f32.mrf.mxu0 }
 0x8e7   : > { %v10729_v11 = vmax.f32 %v10580_v60, 0.0  ;;  %v10788_v36 = vpack.c.bf16 %v10728_v43, %v10726_v1  ;;  %v10584_v59 = vadd.f32 %v10583_v16, %v18734_v42 }
 0x8e8   : > { %v10585_v45 = vpop.f32.mrf.mxu0 }
 0x8e9   : > { %v10789_v5 = vpack.c.bf16 %v10729_v11, %v10727_v62  ;;  %v10586_v15 = vadd.f32 %v10585_v45, %v18731_v30  ;;  %v10730_v63 = vmax.f32 %v10584_v59, 0.0 }
 0x8ea   : > { %v10587_v20 = vpop.f32.mrf.mxu0 }
 0x8eb   : > { %v10588_v37 = vadd.f32 %v10587_v20, %v18734_v42  ;;  %10986 = vmatprep.mubr.bf16.mxu1 %v10789_v5  ;;  %v10731_v56 = vmax.f32 %v10586_v15, 0.0 }
 0x8ec   : > { %v10589_v14 = vpop.f32.mrf.mxu0  ;;  %10987 = vmatmul.mubr.bf16.gmra.mxu1 %v10788_v36 }
 0x8ed   : > { %v10590_v25 = vadd.f32 %v10589_v14, %v18731_v30  ;;  %v10732_v57 = vmax.f32 %v10588_v37, 0.0 }
 0x8ee   : > { %v10593_v27 = vpop.f32.mrf.mxu0 }
 0x8ef   : > { %v10733_v44 = vmax.f32 %v10590_v25, 0.0  ;;  %v10790_v2 = vpack.c.bf16 %v10732_v57, %v10730_v63  ;;  %v10594_v8 = vadd.f32 %v10593_v27, %v18734_v42 }
 0x8f0   : > { %v10595_v35 = vpop.f32.mrf.mxu0 }
 0x8f1   : > { %v10791_v28 = vpack.c.bf16 %v10733_v44, %v10731_v56  ;;  %v10596_v29 = vadd.f32 %v10595_v35, %v18731_v30  ;;  %v10734_v62 = vmax.f32 %v10594_v8, 0.0 }
 0x8f2   : > { %v10597_v22 = vpop.f32.mrf.mxu0 }
 0x8f3   : > { %v10598_v53 = vadd.f32 %v10597_v22, %v18734_v42  ;;  %10994 = vmatprep.mubr.bf16.mxu1 %v10791_v28  ;;  %v10735_v43 = vmax.f32 %v10596_v29, 0.0 }
 0x8f4   : > { %v10599_v23 = vpop.f32.mrf.mxu0  ;;  %10995 = vmatmul.mubr.bf16.gmra.mxu1 %v10790_v2 }
 0x8f5   : > { %v10600_v38 = vadd.f32 %v10599_v23, %v18731_v30  ;;  %v10736_v4 = vmax.f32 %v10598_v53, 0.0 }
 0x8f6   : > { %v10603_v60 = vpop.f32.mrf.mxu0 }
 0x8f7   : > { %v10737_v16 = vmax.f32 %v10600_v38, 0.0  ;;  %v10792_v45 = vpack.c.bf16 %v10736_v4, %v10734_v62  ;;  %v10604_v15 = vadd.f32 %v10603_v60, %v18734_v42 }
 0x8f8   : > { %v10605_v11 = vpop.f32.mrf.mxu0 }
 0x8f9   : > { %v10793_v1 = vpack.c.bf16 %v10737_v16, %v10735_v43  ;;  %v10606_v36 = vadd.f32 %v10605_v11, %v18731_v30  ;;  %v10738_v56 = vmax.f32 %v10604_v15, 0.0 }
 0x8fa   : > { %v10607_v5 = vpop.f32.mrf.mxu0 }
 0x8fb   : > { %v10608_v20 = vadd.f32 %v10607_v5, %v18734_v42  ;;  %11002 = vmatprep.mubr.bf16.mxu1 %v10793_v1  ;;  %v10739_v57 = vmax.f32 %v10606_v36, 0.0 }
 0x8fc   : > { %v10609_v37 = vpop.f32.mrf.mxu0  ;;  %11003 = vmatmul.mubr.bf16.gmra.mxu1 %v10792_v45 }
 0x8fd   : > { %v10610_v59 = vadd.f32 %v10609_v37, %v18731_v30  ;;  %v10740_v14 = vmax.f32 %v10608_v20, 0.0 }
 0x8fe   : > { %v10613_v25 = vpop.f32.mrf.mxu0 }
 0x8ff   : > { %v10741_v27 = vmax.f32 %v10610_v59, 0.0  ;;  %v10794_v35 = vpack.c.bf16 %v10740_v14, %v10738_v56  ;;  %v10614_v29 = vadd.f32 %v10613_v25, %v18734_v42 }
 0x900   : > { %v10615_v44 = vpop.f32.mrf.mxu0 }
 0x901   : > { %v10795_v63 = vpack.c.bf16 %v10741_v27, %v10739_v57  ;;  %v10616_v2 = vadd.f32 %v10615_v44, %v18731_v30  ;;  %v10742_v43 = vmax.f32 %v10614_v29, 0.0 }
 0x902   : > { %v10617_v28 = vpop.f32.mrf.mxu0 }
 0x903   : > { %v10618_v22 = vadd.f32 %v10617_v28, %v18734_v42  ;;  %11010 = vmatprep.mubr.bf16.mxu1 %v10795_v63  ;;  %v10743_v4 = vmax.f32 %v10616_v2, 0.0 }
 0x904   : > { %v10619_v53 = vpop.f32.mrf.mxu0  ;;  %11011 = vmatmul.mubr.bf16.gmra.mxu1 %v10794_v35 }
 0x905   : > { %v10620_v8 = vadd.f32 %v10619_v53, %v18731_v30  ;;  %v10744_v23 = vmax.f32 %v10618_v22, 0.0 }
 0x906   : > { %v10623_v38 = vpop.f32.mrf.mxu0 }
 0x907   : > { %v10745_v60 = vmax.f32 %v10620_v8, 0.0  ;;  %v10796_v11 = vpack.c.bf16 %v10744_v23, %v10742_v43  ;;  %v10624_v36 = vadd.f32 %v10623_v38, %v18734_v42 }
 0x908   : > { %v10625_v16 = vpop.f32.mrf.mxu0 }
 0x909   : > { %v10797_v62 = vpack.c.bf16 %v10745_v60, %v10743_v4  ;;  %v10626_v45 = vadd.f32 %v10625_v16, %v18731_v30  ;;  %v10746_v57 = vmax.f32 %v10624_v36, 0.0 }
 0x90a   : > { %v10627_v1 = vpop.f32.mrf.mxu0 }
 0x90b   : > { %v10628_v5 = vadd.f32 %v10627_v1, %v18734_v42  ;;  %11018 = vmatprep.mubr.bf16.mxu1 %v10797_v62  ;;  %v10747_v14 = vmax.f32 %v10626_v45, 0.0 }
 0x90c   : > { %v10629_v20 = vpop.f32.mrf.mxu0  ;;  %11019 = vmatmul.mubr.bf16.gmra.mxu1 %v10796_v11 }
 0x90d   : > { %v10630_v15 = vadd.f32 %v10629_v20, %v18731_v30  ;;  %v10748_v37 = vmax.f32 %v10628_v5, 0.0 }
 0x90e   : > { %v10633_v59 = vpop.f32.mrf.mxu0 }
 0x90f   : > { %v10749_v25 = vmax.f32 %v10630_v15, 0.0  ;;  %v10798_v44 = vpack.c.bf16 %v10748_v37, %v10746_v57  ;;  %v10634_v2 = vadd.f32 %v10633_v59, %v18734_v42 }
 0x910   : > { %v10635_v27 = vpop.f32.mrf.mxu0 }
 0x911   : > { %v10799_v56 = vpack.c.bf16 %v10749_v25, %v10747_v14  ;;  %v10636_v35 = vadd.f32 %v10635_v27, %v18731_v30  ;;  %v10750_v4 = vmax.f32 %v10634_v2, 0.0 }
 0x912   : > { %v10637_v63 = vpop.f32.mrf.mxu0 }
 0x913   : > { %v10638_v28 = vadd.f32 %v10637_v63, %v18734_v42  ;;  %11026 = vmatprep.mubr.bf16.mxu1 %v10799_v56  ;;  %v10751_v23 = vmax.f32 %v10636_v35, 0.0 }
 0x914   : > { %v10639_v22 = vpop.f32.mrf.mxu0  ;;  %11027 = vmatmul.mubr.bf16.gmra.mxu1 %v10798_v44 }
 0x915   : > { %v10640_v29 = vadd.f32 %v10639_v22, %v18731_v30  ;;  %v10752_v53 = vmax.f32 %v10638_v28, 0.0 }
 0x916   : > { %v10643_v8 = vpop.f32.mrf.mxu0 }
 0x917   : > { %v10753_v38 = vmax.f32 %v10640_v29, 0.0  ;;  %v10800_v16 = vpack.c.bf16 %v10752_v53, %v10750_v4  ;;  %v10644_v45 = vadd.f32 %v10643_v8, %v18734_v42 }
 0x918   : > { %v10645_v60 = vpop.f32.mrf.mxu0 }
 0x919   : > { %v10801_v43 = vpack.c.bf16 %v10753_v38, %v10751_v23  ;;  %v10646_v11 = vadd.f32 %v10645_v60, %v18731_v30  ;;  %v10754_v14 = vmax.f32 %v10644_v45, 0.0 }
 0x91a   : > { %v10647_v62 = vpop.f32.mrf.mxu0 }
 0x91b   : > { %v10648_v1 = vadd.f32 %v10647_v62, %v18734_v42  ;;  %11034 = vmatprep.mubr.bf16.mxu1 %v10801_v43  ;;  %v10755_v37 = vmax.f32 %v10646_v11, 0.0 }
 0x91c   : > { %v10649_v5 = vpop.f32.mrf.mxu0  ;;  %11035 = vmatmul.mubr.bf16.gmra.mxu1 %v10800_v16 }
 0x91d   : > { %v10650_v36 = vadd.f32 %v10649_v5, %v18731_v30  ;;  %v10756_v20 = vmax.f32 %v10648_v1, 0.0 }
 0x91e   : > { %v10653_v15 = vpop.f32.mrf.mxu0 }
 0x91f   : > { %v10757_v59 = vmax.f32 %v10650_v36, 0.0  ;;  %v10802_v27 = vpack.c.bf16 %v10756_v20, %v10754_v14  ;;  %v10654_v35 = vadd.f32 %v10653_v15, %v18734_v42 }
 0x920   : > { %v10655_v25 = vpop.f32.mrf.mxu0 }
 0x921   : > { %v10803_v57 = vpack.c.bf16 %v10757_v59, %v10755_v37  ;;  %v10656_v44 = vadd.f32 %v10655_v25, %v18731_v30  ;;  %v10758_v60 = vmax.f32 %v10654_v35, 0.0 }
 0x922   : > { %v10657_v56 = vpop.f32.mrf.mxu0 }
 0x923   : > { %v10658_v63 = vadd.f32 %v10657_v56, %v18734_v42  ;;  %11042 = vmatprep.mubr.bf16.mxu1 %v10803_v57  ;;  %v10759_v23 = vmax.f32 %v10656_v44, 0.0 }
 0x924   : > { %v12640_v28 = vpop.f32.mrf.mxu1  ;;  %v10659_v2 = vpop.f32.mrf.mxu0  ;;  %11043 = vmatmul.mubr.bf16.gmra.mxu1 %v10802_v27 }
 0x925   : > { %v10660_v22 = vadd.f32 %v10659_v2, %v18731_v30  ;;  %v10760_v29 = vmax.f32 %v10658_v63, 0.0 }
 0x926   : > { %v12641_v53 = vpop.f32.mrf.mxu1  ;;  %v10663_v8 = vpop.f32.mrf.mxu0 }
 0x927   : > { %v10761_v38 = vmax.f32 %v10660_v22, 0.0  ;;  %v12642_v4 = vadd.f32 %v12641_v53, %v12640_v28  ;;  %v10804_v1 = vpack.c.bf16 %v10760_v29, %v10758_v60  ;;  %v10664_v37 = vadd.f32 %v10663_v8, %v18734_v42 }
 0x928   : > { %v12643_v43 = vpop.f32.mrf.mxu1  ;;  %v10665_v16 = vpop.f32.mrf.mxu0 }
 0x929   : > { %v10805_v62 = vpack.c.bf16 %v10761_v38, %v10759_v23  ;;  %v18777_v11 = vadd.f32 %v12642_v4, %v18407_v0  ;;  %v10666_v36 = vadd.f32 %v10665_v16, %v18731_v30  ;;  %v10762_v28 = vmax.f32 %v10664_v37, 0.0 }
 0x92a   : > { %v12644_v45 = vpop.f32.mrf.mxu1  ;;  %v10667_v5 = vpop.f32.mrf.mxu0 }
 0x92b   : > { %v12645_v20 = vadd.f32 %v12644_v45, %v12643_v43  ;;  %v10668_v15 = vadd.f32 %v10667_v5, %v18734_v42  ;;  %11050 = vmatprep.mubr.bf16.mxu1 %v10805_v62  ;;  %v10763_v44 = vmax.f32 %v10666_v36, 0.0 }
 0x92c   : > { %v12646_v59 = vpop.f32.mrf.mxu1  ;;  %v10669_v14 = vpop.f32.mrf.mxu0  ;;  %11051 = vmatmul.mubr.bf16.gmra.mxu1 %v10804_v1 }
 0x92d   : > { %v18783_v25 = vadd.f32 %v12645_v20, %v18416_v10  ;;  %v10670_v0 = vadd.f32 %v10669_v14, %v18731_v30  ;;  %v10764_v57 = vmax.f32 %v10668_v15, 0.0 }
 0x92e   : > { %v12647_v27 = vpop.f32.mrf.mxu1  ;;  %v10673_v56 = vpop.f32.mrf.mxu0 }
 0x92f   : > { %v10765_v63 = vmax.f32 %v10670_v0, 0.0  ;;  %v12648_v35 = vadd.f32 %v12647_v27, %v12646_v59  ;;  %v10806_v8 = vpack.c.bf16 %v10764_v57, %v10762_v28  ;;  %v10674_v43 = vadd.f32 %v10673_v56, %v18734_v42 }
 0x930   : > { %v12649_v2 = vpop.f32.mrf.mxu1  ;;  %v10675_v22 = vpop.f32.mrf.mxu0 }
 0x931   : > { %v10807_v29 = vpack.c.bf16 %v10765_v63, %v10763_v44  ;;  %v18787_v53 = vadd.f32 %v12648_v35, %v18424_v17  ;;  %v10676_v10 = vadd.f32 %v10675_v22, %v18731_v30  ;;  %v10766_v59 = vmax.f32 %v10674_v43, 0.0 }
 0x932   : > { %v12650_v23 = vpop.f32.mrf.mxu1  ;;  %v10677_v38 = vpop.f32.mrf.mxu0 }
 0x933   : > { %v12651_v4 = vadd.f32 %v12650_v23, %v12649_v2  ;;  %v10678_v60 = vadd.f32 %v10677_v38, %v18734_v42  ;;  %11058 = vmatprep.mubr.bf16.mxu1 %v10807_v29  ;;  %v10767_v20 = vmax.f32 %v10676_v10, 0.0 }
 0x934   : > { %v12652_v16 = vpop.f32.mrf.mxu1  ;;  %v10679_v62 = vpop.f32.mrf.mxu0  ;;  %11059 = vmatmul.mubr.bf16.gmra.mxu1 %v10806_v8 }
 0x935   : > { %v18793_v1 = vadd.f32 %v12651_v4, %v18432_v47  ;;  %v10680_v17 = vadd.f32 %v10679_v62, %v18731_v30  ;;  %v10768_v45 = vmax.f32 %v10678_v60, 0.0 }
 0x936   : > { %v12653_v5 = vpop.f32.mrf.mxu1  ;;  %v10683_v36 = vpop.f32.mrf.mxu0 }
 0x937   : > { %v10769_v15 = vmax.f32 %v10680_v17, 0.0  ;;  %v12654_v37 = vadd.f32 %v12653_v5, %v12652_v16  ;;  %v10808_v56 = vpack.c.bf16 %v10768_v45, %v10766_v59  ;;  %v10684_v2 = vadd.f32 %v10683_v36, %v18734_v42 }
 0x938   : > { %v12655_v14 = vpop.f32.mrf.mxu1  ;;  %v10685_v0 = vpop.f32.mrf.mxu0 }
 0x939   : > { %v10809_v57 = vpack.c.bf16 %v10769_v15, %v10767_v20  ;;  %v18797_v27 = vadd.f32 %v12654_v37, %v18434_v34  ;;  %v10686_v47 = vadd.f32 %v10685_v0, %v18731_v30  ;;  %v10770_v16 = vmax.f32 %v10684_v2, 0.0 }
 0x93a   : > { %v12656_v44 = vpop.f32.mrf.mxu1  ;;  %v10687_v63 = vpop.f32.mrf.mxu0 }
 0x93b   : > { %v12657_v35 = vadd.f32 %v12656_v44, %v12655_v14  ;;  %v10688_v28 = vadd.f32 %v10687_v63, %v18734_v42  ;;  %11066 = vmatprep.mubr.bf16.mxu1 %v10809_v57  ;;  %v10771_v4 = vmax.f32 %v10686_v47, 0.0 }
 0x93c   : > { %v12658_v22 = vpop.f32.mrf.mxu1  ;;  %v10689_v29 = vpop.f32.mrf.mxu0  ;;  %11067 = vmatmul.mubr.bf16.gmra.mxu1 %v10808_v56 }
 0x93d   : > { %v18803_v8 = vadd.f32 %v12657_v35, %v18445_v41  ;;  %v10690_v34 = vadd.f32 %v10689_v29, %v18731_v30  ;;  %v10772_v23 = vmax.f32 %v10688_v28, 0.0 }
 0x93e   : > { %v12659_v38 = vpop.f32.mrf.mxu1  ;;  %v10693_v10 = vpop.f32.mrf.mxu0 }
 0x93f   : > { %v10773_v60 = vmax.f32 %v10690_v34, 0.0  ;;  %v12660_v43 = vadd.f32 %v12659_v38, %v12658_v22  ;;  %v10810_v36 = vpack.c.bf16 %v10772_v23, %v10770_v16  ;;  %v10694_v14 = vadd.f32 %v10693_v10, %v18734_v42 }
 0x940   : > { %v12661_v62 = vpop.f32.mrf.mxu1  ;;  %v10695_v17 = vpop.f32.mrf.mxu0 }
 0x941   : > { %v10811_v45 = vpack.c.bf16 %v10773_v60, %v10771_v4  ;;  %v18807_v5 = vadd.f32 %v12660_v43, %v18447_v9  ;;  %v10696_v41 = vadd.f32 %v10695_v17, %v18731_v30  ;;  %v10774_v22 = vmax.f32 %v10694_v14, 0.0 }
 0x942   : > { %v12662_v20 = vpop.f32.mrf.mxu1  ;;  %v10697_v15 = vpop.f32.mrf.mxu0 }
 0x943   : > { %v12663_v37 = vadd.f32 %v12662_v20, %v12661_v62  ;;  %v10698_v59 = vadd.f32 %v10697_v15, %v18734_v42  ;;  %11074 = vmatprep.mubr.bf16.mxu1 %v10811_v45  ;;  %v10775_v35 = vmax.f32 %v10696_v41, 0.0 }
 0x944   : > { %v12664_v0 = vpop.f32.mrf.mxu1  ;;  %v10699_v57 = vpop.f32.mrf.mxu0  ;;  %11075 = vmatmul.mubr.bf16.gmra.mxu1 %v10810_v36 }
 0x945   : > { %v18813_v56 = vadd.f32 %v12663_v37, %v18452_v50  ;;  %v10700_v9 = vadd.f32 %v10699_v57, %v18731_v30  ;;  %v10776_v44 = vmax.f32 %v10698_v59, 0.0 }
 0x946   : > { %v12665_v63 = vpop.f32.mrf.mxu1  ;;  %v10703_v47 = vpop.f32.mrf.mxu0 }
 0x947   : > { %v10777_v28 = vmax.f32 %v10700_v9, 0.0  ;;  %v12666_v2 = vadd.f32 %v12665_v63, %v12664_v0  ;;  %v10812_v10 = vpack.c.bf16 %v10776_v44, %v10774_v22  ;;  %v10704_v62 = vadd.f32 %v10703_v47, %v18734_v42 }
 0x948   : > { %v12667_v29 = vpop.f32.mrf.mxu1  ;;  %v10705_v34 = vpop.f32.mrf.mxu0 }
 0x949   : > { %v10813_v23 = vpack.c.bf16 %v10777_v28, %v10775_v35  ;;  %v18817_v38 = vadd.f32 %v12666_v2, %v18454_v19  ;;  %v10706_v50 = vadd.f32 %v10705_v34, %v18731_v30  ;;  %v10778_v0 = vmax.f32 %v10704_v62, 0.0 }
 0x94a   : > { %v12668_v4 = vpop.f32.mrf.mxu1  ;;  %v10707_v60 = vpop.f32.mrf.mxu0 }
 0x94b   : > { %v12669_v43 = vadd.f32 %v12668_v4, %v12667_v29  ;;  %v10708_v16 = vadd.f32 %v10707_v60, %v18734_v42  ;;  %11082 = vmatprep.mubr.bf16.mxu1 %v10813_v23  ;;  %v10779_v37 = vmax.f32 %v10706_v50, 0.0 }
 0x94c   : > { %v12670_v17 = vpop.f32.mrf.mxu1  ;;  %v10709_v45 = vpop.f32.mrf.mxu0  ;;  %11083 = vmatmul.mubr.bf16.gmra.mxu1 %v10812_v10 }
 0x94d   : > { %v18823_v36 = vadd.f32 %v12669_v43, %v18459_v13  ;;  %v10710_v19 = vadd.f32 %v10709_v45, %v18731_v30  ;;  %v10780_v20 = vmax.f32 %v10708_v16, 0.0 }
 0x94e   : > { %v12671_v15 = vpop.f32.mrf.mxu1  ;;  %v10713_v41 = vpop.f32.mrf.mxu0 }
 0x94f   : > { %v10781_v59 = vmax.f32 %v10710_v19, 0.0  ;;  %v12672_v14 = vadd.f32 %v12671_v15, %v12670_v17  ;;  %v10814_v47 = vpack.c.bf16 %v10780_v20, %v10778_v0  ;;  %v10714_v29 = vadd.f32 %v10713_v41, %v18734_v42 }
 0x950   : > { %v12673_v57 = vpop.f32.mrf.mxu1  ;;  %v10715_v9 = vpop.f32.mrf.mxu0 }
 0x951   : > { %v10815_v44 = vpack.c.bf16 %v10781_v59, %v10779_v37  ;;  %v18827_v63 = vadd.f32 %v12672_v14, %v18467_v52  ;;  %v10716_v13 = vadd.f32 %v10715_v9, %v18731_v30  ;;  %v10782_v62 = vmax.f32 %v10714_v29, 0.0 }
 0x952   : > { %v12674_v35 = vpop.f32.mrf.mxu1  ;;  %v10717_v28 = vpop.f32.mrf.mxu0 }
 0x953   : > { %v12675_v2 = vadd.f32 %v12674_v35, %v12673_v57  ;;  %v10718_v22 = vadd.f32 %v10717_v28, %v18734_v42  ;;  %11090 = vmatprep.mubr.bf16.mxu1 %v10815_v44  ;;  %v10783_v50 = vmax.f32 %v10716_v13, 0.0 }
 0x954   : > { %v12676_v34 = vpop.f32.mrf.mxu1  ;;  %v10719_v23 = vpop.f32.mrf.mxu0  ;;  %11091 = vmatmul.mubr.bf16.gmra.mxu1 %v10814_v47 }
 0x955   : > { %v18833_v10 = vadd.f32 %v12675_v2, %v18472_v6  ;;  %v10720_v52 = vadd.f32 %v10719_v23, %v18731_v30  ;;  %v10784_v4 = vmax.f32 %v10718_v22, 0.0 }
 0x956   : > { %v12677_v60 = vpop.f32.mrf.mxu1 }
 0x957   : > { %v10785_v43 = vmax.f32 %v10720_v52, 0.0  ;;  %v12678_v16 = vadd.f32 %v12677_v60, %v12676_v34  ;;  %v10816_v42 = vpack.c.bf16 %v10784_v4, %v10782_v62 }
 0x958   : > { %v12679_v17 = vpop.f32.mrf.mxu1 }
 0x959   : > { %v10817_v45 = vpack.c.bf16 %v10785_v43, %v10783_v50  ;;  %v18837_v19 = vadd.f32 %v12678_v16, %v18474_v32 }
 0x95a   : > { %v12680_v20 = vpop.f32.mrf.mxu1 }
 0x95b   : > { %v12681_v15 = vadd.f32 %v12680_v20, %v12679_v17  ;;  %11098 = vmatprep.mubr.bf16.mxu1 %v10817_v45 }
 0x95c   : > { %v12682_v41 = vpop.f32.mrf.mxu1  ;;  %11099 = vmatmul.mubr.bf16.gmra.mxu1 %v10816_v42 }
 0x95d   : > { %v18840_v6 = vadd.f32 %v12681_v15, %v18479_v31 }
 0x95e   : > { %v12683_v30 = vpop.f32.mrf.mxu1 }
 0x95f   : > { %v12684_v37 = vadd.f32 %v12683_v30, %v12682_v41 }
 0x960   : > { %v12685_v59 = vpop.f32.mrf.mxu1 }
 0x961   : > { %v18843_v14 = vadd.f32 %v12684_v37, %v18490_v51 }
 0x962   : > { %v12686_v0 = vpop.f32.mrf.mxu1 }
 0x963   : > { %v12687_v57 = vadd.f32 %v12686_v0, %v12685_v59 }
 0x964   : > { %v12688_v9 = vpop.f32.mrf.mxu1 }
 0x965   : > { %v18846_v32 = vadd.f32 %v12687_v57, %v18495_v24 }
 0x966   : > { %v12689_v44 = vpop.f32.mrf.mxu1 }
 0x967   : > { %v12690_v47 = vadd.f32 %v12689_v44, %v12688_v9 }
 0x968   : > { %v12691_v35 = vpop.f32.mrf.mxu1 }
 0x969   : > { %v18849_v28 = vadd.f32 %v12690_v47, %v18509_v33 }
 0x96a   : > { %v12692_v31 = vpop.f32.mrf.mxu1 }
 0x96b   : > { %v12693_v13 = vadd.f32 %v12692_v31, %v12691_v35 }
 0x96c   : > { %v12694_v2 = vpop.f32.mrf.mxu1 }
 0x96d   : > { %v18852_v22 = vadd.f32 %v12693_v13, %v18511_v54 }
 0x96e   : > { %v12695_v51 = vpop.f32.mrf.mxu1 }
 0x96f   : > { %v12696_v29 = vadd.f32 %v12695_v51, %v12694_v2 }
 0x970   : > { %v12697_v34 = vpop.f32.mrf.mxu1 }
 0x971   : > { %v18855_v23 = vadd.f32 %v12696_v29, %v18522_v3 }
 0x972   : > { %v12698_v24 = vpop.f32.mrf.mxu1 }
 0x973   : > { %v12699_v52 = vadd.f32 %v12698_v24, %v12697_v34 }
 0x974   : > { %v12700_v4 = vpop.f32.mrf.mxu1 }
 0x975   : > { %v18858_v60 = vadd.f32 %v12699_v52, %v18527_v21 }
 0x976   : > { %v12701_v33 = vpop.f32.mrf.mxu1 }
 0x977   : > { %v12702_v50 = vadd.f32 %v12701_v33, %v12700_v4 }
 0x978   : > { %v12703_v43 = vpop.f32.mrf.mxu1 }
 0x979   : > { %v18861_v16 = vadd.f32 %v12702_v50, %v18535_v61 }
 0x97a   : > { %v12704_v54 = vpop.f32.mrf.mxu1 }
 0x97b   : > { %v12705_v62 = vadd.f32 %v12704_v54, %v12703_v43 }
 0x97c   : > { %v12706_v17 = vpop.f32.mrf.mxu1 }
 0x97d   : > { %v18864_v45 = vadd.f32 %v12705_v62, %v18537_v18 }
 0x97e   : > { %v12707_v3 = vpop.f32.mrf.mxu1 }
 0x97f   : > { %v12708_v42 = vadd.f32 %v12707_v3, %v12706_v17 }
 0x980   : > { %v12709_v20 = vpop.f32.mrf.mxu1 }
 0x981   : > { %v18867_v15 = vadd.f32 %v12708_v42, %v18545_v26 }
 0x982   : > { %v12710_v21 = vpop.f32.mrf.mxu1 }
 0x983   : > { %v12711_v41 = vadd.f32 %v12710_v21, %v12709_v20  ;;  %v18899_v21 = vld [vmem:[%s19013_s6] ss:$0 sm:$0xff] }
 0x984   : > { %v12712_v30 = vpop.f32.mrf.mxu1 }
 0x985   : > { %v18870_v37 = vadd.f32 %v12711_v41, %v18550_v58 }
 0x986   : > { %v12713_v61 = vpop.f32.mrf.mxu1 }
 0x987   : > { %v12714_v59 = vadd.f32 %v12713_v61, %v12712_v30 }
 0x988   : > { %v12715_v0 = vpop.f32.mrf.mxu1 }
 0x989   : > { %v18873_v57 = vadd.f32 %v12714_v59, %v18558_v48 }
 0x98a   : > { %v12716_v18 = vpop.f32.mrf.mxu1 }
 0x98b   : > { %v12717_v9 = vadd.f32 %v12716_v18, %v12715_v0 }
 0x98c   : > { %v12718_v44 = vpop.f32.mrf.mxu1 }
 0x98d   : > { %v18876_v47 = vadd.f32 %v12717_v9, %v18560_v55 }
 0x98e   : > { %v12719_v26 = vpop.f32.mrf.mxu1 }
 0x98f   : > { %v12720_v35 = vadd.f32 %v12719_v26, %v12718_v44 }
 0x990   : > { %v12721_v31 = vpop.f32.mrf.mxu1 }
 0x991   : > { %v18879_v13 = vadd.f32 %v12720_v35, %v18568_v40 }
 0x992   : > { %v12722_v58 = vpop.f32.mrf.mxu1 }
 0x993   : > { %v12723_v2 = vadd.f32 %v12722_v58, %v12721_v31 }
 0x994   : > { %v12724_v51 = vpop.f32.mrf.mxu1 }
 0x995   : > { %v18882_v29 = vadd.f32 %v12723_v2, %v18570_v46 }
 0x996   : > { %v12725_v48 = vpop.f32.mrf.mxu1 }
 0x997   : > { %v12726_v34 = vadd.f32 %v12725_v48, %v12724_v51 }
 0x998   : > { %v12727_v24 = vpop.f32.mrf.mxu1 }
 0x999   : > { %v18885_v52 = vadd.f32 %v12726_v34, %v18575_v12 }
 0x99a   : > { %v12728_v55 = vpop.f32.mrf.mxu1 }
 0x99b   : > { %v12729_v4 = vadd.f32 %v12728_v55, %v12727_v24 }
 0x99c   : > { %v12730_v33 = vpop.f32.mrf.mxu1 }
 0x99d   : > { %v18888_v50 = vadd.f32 %v12729_v4, %v18577_v49 }
 0x99e   : > { %v12731_v40 = vpop.f32.mrf.mxu1 }
 0x99f   : > { %v12732_v43 = vadd.f32 %v12731_v40, %v12730_v33 }
 0x9a0   : > { %v12733_v54 = vpop.f32.mrf.mxu1 }
 0x9a1   : > { %v18891_v62 = vadd.f32 %v12732_v43, %v18582_v39 }
 0x9a2   : > { %v12734_v46 = vpop.f32.mrf.mxu1 }
 0x9a3   : > { %v12735_v17 = vadd.f32 %v12734_v46, %v12733_v54 }
 0x9a4   : > { %v12752_v3 = vpop.f32.mrf.mxu1 }
 0x9a5   : > { %v18894_v42 = vadd.f32 %v12735_v17, %v18589_v7 }
 0x9a6   : > { %v12753_v12 = vpop.f32.mrf.mxu1 }
 0x9a7   : > { %v12754_v20 = vadd.f32 %v12753_v12, %v12752_v3 }
 0x9a8   : > { %v12755_v49 = vpop.f32.mrf.mxu1 }
 0x9a9   : > { %v11107_v41 = vadd.f32 %v12754_v20, %v18777_v11 }
 0x9aa   : > { %v12756_v39 = vpop.f32.mrf.mxu1 }
 0x9ab   : > { %v11146_v7 = vadd.f32 %v18899_v21, %v11107_v41  ;;  %v12757_v30 = vadd.f32 %v12756_v39, %v12755_v49 }
 0x9ac   : > { %v12758_v61 = vpop.f32.mrf.mxu1 }
 0x9ad   : > { %11178 = vst [vmem:[%s18907_s21] sm:$0xff] %v11146_v7  ;;  %v11108_v59 = vadd.f32 %v12757_v30, %v18783_v25 }
 0x9ae   : > { %v12759_v0 = vpop.f32.mrf.mxu1 }
 0x9af   : > { %v11147_v11 = vadd.f32 %v18899_v21, %v11108_v59  ;;  %v12760_v18 = vadd.f32 %v12759_v0, %v12758_v61 }
 0x9b0   : > { %v12761_v9 = vpop.f32.mrf.mxu1 }
 0x9b1   : > { %11179 = vst [vmem:[%s18907_s21 + $0x8] sm:$0xff] %v11147_v11  ;;  %v11109_v44 = vadd.f32 %v12760_v18, %v18787_v53 }
 0x9b2   : > { %v12762_v26 = vpop.f32.mrf.mxu1 }
 0x9b3   : > { %v11148_v35 = vadd.f32 %v18899_v21, %v11109_v44  ;;  %v12763_v31 = vadd.f32 %v12762_v26, %v12761_v9 }
 0x9b4   : > { %v12764_v58 = vpop.f32.mrf.mxu1 }
 0x9b5   : > { %11180 = vst [vmem:[%s18907_s21 + $0x10] sm:$0xff] %v11148_v35  ;;  %v11110_v2 = vadd.f32 %v12763_v31, %v18793_v1 }
 0x9b6   : > { %v12765_v51 = vpop.f32.mrf.mxu1 }
 0x9b7   : > { %v11149_v25 = vadd.f32 %v18899_v21, %v11110_v2  ;;  %v12766_v48 = vadd.f32 %v12765_v51, %v12764_v58 }
 0x9b8   : > { %v12767_v34 = vpop.f32.mrf.mxu1 }
 0x9b9   : > { %11181 = vst [vmem:[%s18907_s21 + $0x18] sm:$0xff] %v11149_v25  ;;  %v11111_v24 = vadd.f32 %v12766_v48, %v18797_v27 }
 0x9ba   : > { %v12768_v55 = vpop.f32.mrf.mxu1 }
 0x9bb   : > { %v11150_v53 = vadd.f32 %v18899_v21, %v11111_v24  ;;  %v12769_v4 = vadd.f32 %v12768_v55, %v12767_v34 }
 0x9bc   : > { %v12770_v33 = vpop.f32.mrf.mxu1 }
 0x9bd   : > { %11182 = vst [vmem:[%s18907_s21 + $0x20] sm:$0xff] %v11150_v53  ;;  %v11112_v40 = vadd.f32 %v12769_v4, %v18803_v8 }
 0x9be   : > { %v12771_v43 = vpop.f32.mrf.mxu1 }
 0x9bf   : > { %v11151_v1 = vadd.f32 %v18899_v21, %v11112_v40  ;;  %v12772_v54 = vadd.f32 %v12771_v43, %v12770_v33 }
 0x9c0   : > { %v12773_v46 = vpop.f32.mrf.mxu1 }
 0x9c1   : > { %11183 = vst [vmem:[%s18907_s21 + $0x28] sm:$0xff] %v11151_v1  ;;  %v11113_v17 = vadd.f32 %v12772_v54, %v18807_v5 }
 0x9c2   : > { %v12774_v3 = vpop.f32.mrf.mxu1 }
 0x9c3   : > { %v11152_v27 = vadd.f32 %v18899_v21, %v11113_v17  ;;  %v12775_v12 = vadd.f32 %v12774_v3, %v12773_v46 }
 0x9c4   : > { %v12776_v20 = vpop.f32.mrf.mxu1 }
 0x9c5   : > { %11184 = vst [vmem:[%s18907_s21 + $0x30] sm:$0xff] %v11152_v27  ;;  %v11114_v49 = vadd.f32 %v12775_v12, %v18813_v56 }
 0x9c6   : > { %v12777_v41 = vpop.f32.mrf.mxu1 }
 0x9c7   : > { %v11153_v8 = vadd.f32 %v18899_v21, %v11114_v49  ;;  %v12778_v39 = vadd.f32 %v12777_v41, %v12776_v20 }
 0x9c8   : > { %v12779_v7 = vpop.f32.mrf.mxu1 }
 0x9c9   : > { %11185 = vst [vmem:[%s18907_s21 + $0x38] sm:$0xff] %v11153_v8  ;;  %v11115_v30 = vadd.f32 %v12778_v39, %v18817_v38 }
 0x9ca   : > { %v12780_v61 = vpop.f32.mrf.mxu1 }
 0x9cb   : > { %v11154_v5 = vadd.f32 %v18899_v21, %v11115_v30  ;;  %v12781_v59 = vadd.f32 %v12780_v61, %v12779_v7 }
 0x9cc   : > { %v12782_v0 = vpop.f32.mrf.mxu1 }
 0x9cd   : > { %11186 = vst [vmem:[%s18907_s21 + $0x40] sm:$0xff] %v11154_v5  ;;  %v11116_v11 = vadd.f32 %v12781_v59, %v18823_v36 }
 0x9ce   : > { %v12783_v18 = vpop.f32.mrf.mxu1 }
 0x9cf   : > { %v11155_v56 = vadd.f32 %v18899_v21, %v11116_v11  ;;  %v12784_v9 = vadd.f32 %v12783_v18, %v12782_v0 }
 0x9d0   : > { %v12785_v44 = vpop.f32.mrf.mxu1 }
 0x9d1   : > { %11187 = vst [vmem:[%s18907_s21 + $0x48] sm:$0xff] %v11155_v56  ;;  %v11117_v26 = vadd.f32 %v12784_v9, %v18827_v63 }
 0x9d2   : > { %v12786_v35 = vpop.f32.mrf.mxu1 }
 0x9d3   : > { %v11156_v38 = vadd.f32 %v18899_v21, %v11117_v26  ;;  %v12787_v31 = vadd.f32 %v12786_v35, %v12785_v44 }
 0x9d4   : > { %v12788_v58 = vpop.f32.mrf.mxu1 }
 0x9d5   : > { %11188 = vst [vmem:[%s18907_s21 + $0x50] sm:$0xff] %v11156_v38  ;;  %v11118_v2 = vadd.f32 %v12787_v31, %v18833_v10 }
 0x9d6   : > { %v12789_v51 = vpop.f32.mrf.mxu1 }
 0x9d7   : > { %v11157_v36 = vadd.f32 %v18899_v21, %v11118_v2  ;;  %v12790_v25 = vadd.f32 %v12789_v51, %v12788_v58 }
 0x9d8   : > { %v12791_v48 = vpop.f32.mrf.mxu1 }
 0x9d9   : > { %11189 = vst [vmem:[%s18907_s21 + $0x58] sm:$0xff] %v11157_v36  ;;  %v11119_v34 = vadd.f32 %v12790_v25, %v18837_v19 }
 0x9da   : > { %v12792_v24 = vpop.f32.mrf.mxu1 }
 0x9db   : > { %v11158_v63 = vadd.f32 %v18899_v21, %v11119_v34  ;;  %v12793_v55 = vadd.f32 %v12792_v24, %v12791_v48 }
 0x9dc   : > { %v12794_v53 = vpop.f32.mrf.mxu1 }
 0x9dd   : > { %11190 = vst [vmem:[%s18907_s21 + $0x60] sm:$0xff] %v11158_v63  ;;  %v11120_v4 = vadd.f32 %v12793_v55, %v18840_v6 }
 0x9de   : > { %v12795_v33 = vpop.f32.mrf.mxu1 }
 0x9df   : > { %v11159_v10 = vadd.f32 %v18899_v21, %v11120_v4  ;;  %v12796_v40 = vadd.f32 %v12795_v33, %v12794_v53 }
 0x9e0   : > { %v12797_v43 = vpop.f32.mrf.mxu1 }
 0x9e1   : > { %11191 = vst [vmem:[%s18907_s21 + $0x68] sm:$0xff] %v11159_v10  ;;  %v11121_v1 = vadd.f32 %v12796_v40, %v18843_v14 }
 0x9e2   : > { %v12798_v54 = vpop.f32.mrf.mxu1 }
 0x9e3   : > { %v11160_v19 = vadd.f32 %v18899_v21, %v11121_v1  ;;  %v12799_v46 = vadd.f32 %v12798_v54, %v12797_v43 }
 0x9e4   : > { %v12800_v17 = vpop.f32.mrf.mxu1 }
 0x9e5   : > { %11192 = vst [vmem:[%s18907_s21 + $0x70] sm:$0xff] %v11160_v19  ;;  %v11122_v3 = vadd.f32 %v12799_v46, %v18846_v32 }
 0x9e6   : > { %v12801_v27 = vpop.f32.mrf.mxu1 }
 0x9e7   : > { %v11161_v6 = vadd.f32 %v18899_v21, %v11122_v3  ;;  %v12802_v12 = vadd.f32 %v12801_v27, %v12800_v17 }
 0x9e8   : > { %v12803_v20 = vpop.f32.mrf.mxu1 }
 0x9e9   : > { %11193 = vst [vmem:[%s18907_s21 + $0x78] sm:$0xff] %v11161_v6  ;;  %v11123_v49 = vadd.f32 %v12802_v12, %v18849_v28 }
 0x9ea   : > { %v12804_v41 = vpop.f32.mrf.mxu1 }
 0x9eb   : > { %v11162_v14 = vadd.f32 %v18899_v21, %v11123_v49  ;;  %v12805_v8 = vadd.f32 %v12804_v41, %v12803_v20 }
 0x9ec   : > { %v12806_v39 = vpop.f32.mrf.mxu1 }
 0x9ed   : > { %11194 = vst [vmem:[%s18907_s21 + $0x80] sm:$0xff] %v11162_v14  ;;  %v11124_v7 = vadd.f32 %v12805_v8, %v18852_v22 }
 0x9ee   : > { %v12807_v30 = vpop.f32.mrf.mxu1 }
 0x9ef   : > { %v11163_v32 = vadd.f32 %v18899_v21, %v11124_v7  ;;  %v12808_v61 = vadd.f32 %v12807_v30, %v12806_v39 }
 0x9f0   : > { %v12809_v5 = vpop.f32.mrf.mxu1 }
 0x9f1   : > { %11195 = vst [vmem:[%s18907_s21 + $0x88] sm:$0xff] %v11163_v32  ;;  %v11125_v59 = vadd.f32 %v12808_v61, %v18855_v23 }
 0x9f2   : > { %v12810_v0 = vpop.f32.mrf.mxu1 }
 0x9f3   : > { %v11164_v28 = vadd.f32 %v18899_v21, %v11125_v59  ;;  %v12811_v11 = vadd.f32 %v12810_v0, %v12809_v5 }
 0x9f4   : > { %v12812_v18 = vpop.f32.mrf.mxu1 }
 0x9f5   : > { %11196 = vst [vmem:[%s18907_s21 + $0x90] sm:$0xff] %v11164_v28  ;;  %v11126_v56 = vadd.f32 %v12811_v11, %v18858_v60 }
 0x9f6   : > { %v12813_v9 = vpop.f32.mrf.mxu1 }
 0x9f7   : > { %v11165_v22 = vadd.f32 %v18899_v21, %v11126_v56  ;;  %v12814_v44 = vadd.f32 %v12813_v9, %v12812_v18 }
 0x9f8   : > { %v12815_v26 = vpop.f32.mrf.mxu1 }
 0x9f9   : > { %11197 = vst [vmem:[%s18907_s21 + $0x98] sm:$0xff] %v11165_v22  ;;  %v11127_v35 = vadd.f32 %v12814_v44, %v18861_v16 }
 0x9fa   : > { %v12816_v38 = vpop.f32.mrf.mxu1 }
 0x9fb   : > { %v11166_v23 = vadd.f32 %v18899_v21, %v11127_v35  ;;  %v12817_v31 = vadd.f32 %v12816_v38, %v12815_v26 }
 0x9fc   : > { %v12818_v58 = vpop.f32.mrf.mxu1 }
 0x9fd   : > { %11198 = vst [vmem:[%s18907_s21 + $0xa0] sm:$0xff] %v11166_v23  ;;  %v11128_v2 = vadd.f32 %v12817_v31, %v18864_v45 }
 0x9fe   : > { %v12819_v51 = vpop.f32.mrf.mxu1 }
 0x9ff   : > { %v11167_v60 = vadd.f32 %v18899_v21, %v11128_v2  ;;  %v12820_v36 = vadd.f32 %v12819_v51, %v12818_v58 }
 0xa00   : > { %v12821_v25 = vpop.f32.mrf.mxu1 }
 0xa01   : > { %11199 = vst [vmem:[%s18907_s21 + $0xa8] sm:$0xff] %v11167_v60  ;;  %v11129_v48 = vadd.f32 %v12820_v36, %v18867_v15 }
 0xa02   : > { %v12822_v34 = vpop.f32.mrf.mxu1 }
 0xa03   : > { %v11168_v16 = vadd.f32 %v18899_v21, %v11129_v48  ;;  %v12823_v24 = vadd.f32 %v12822_v34, %v12821_v25 }
 0xa04   : > { %v12824_v63 = vpop.f32.mrf.mxu1 }
 0xa05   : > { %11200 = vst [vmem:[%s18907_s21 + $0xb0] sm:$0xff] %v11168_v16  ;;  %v11130_v55 = vadd.f32 %v12823_v24, %v18870_v37 }
 0xa06   : > { %v12825_v53 = vpop.f32.mrf.mxu1 }
 0xa07   : > { %v11169_v45 = vadd.f32 %v18899_v21, %v11130_v55  ;;  %v12826_v4 = vadd.f32 %v12825_v53, %v12824_v63 }
 0xa08   : > { %v12827_v33 = vpop.f32.mrf.mxu1 }
 0xa09   : > { %11201 = vst [vmem:[%s18907_s21 + $0xb8] sm:$0xff] %v11169_v45  ;;  %v11131_v10 = vadd.f32 %v12826_v4, %v18873_v57 }
 0xa0a   : > { %v12828_v40 = vpop.f32.mrf.mxu1 }
 0xa0b   : > { %v11170_v15 = vadd.f32 %v18899_v21, %v11131_v10  ;;  %v12829_v43 = vadd.f32 %v12828_v40, %v12827_v33 }
 0xa0c   : > { %v12830_v1 = vpop.f32.mrf.mxu1 }
 0xa0d   : > { %11202 = vst [vmem:[%s18907_s21 + $0xc0] sm:$0xff] %v11170_v15  ;;  %v11132_v54 = vadd.f32 %v12829_v43, %v18876_v47 }
 0xa0e   : > { %v12831_v19 = vpop.f32.mrf.mxu1 }
 0xa0f   : > { %v11171_v37 = vadd.f32 %v18899_v21, %v11132_v54  ;;  %v12832_v46 = vadd.f32 %v12831_v19, %v12830_v1 }
 0xa10   : > { %v12833_v17 = vpop.f32.mrf.mxu1 }
 0xa11   : > { %11203 = vst [vmem:[%s18907_s21 + $0xc8] sm:$0xff] %v11171_v37  ;;  %v11133_v3 = vadd.f32 %v12832_v46, %v18879_v13 }
 0xa12   : > { %v12834_v27 = vpop.f32.mrf.mxu1 }
 0xa13   : > { %v11172_v57 = vadd.f32 %v18899_v21, %v11133_v3  ;;  %v12835_v6 = vadd.f32 %v12834_v27, %v12833_v17 }
 0xa14   : > { %v12836_v12 = vpop.f32.mrf.mxu1 }
 0xa15   : > { %11204 = vst [vmem:[%s18907_s21 + $0xd0] sm:$0xff] %v11172_v57  ;;  %v11134_v20 = vadd.f32 %v12835_v6, %v18882_v29 }
 0xa16   : > { %v12837_v49 = vpop.f32.mrf.mxu1 }
 0xa17   : > { %v11173_v47 = vadd.f32 %v18899_v21, %v11134_v20  ;;  %v12838_v41 = vadd.f32 %v12837_v49, %v12836_v12 }
 0xa18   : > { %v12839_v14 = vpop.f32.mrf.mxu1 }
 0xa19   : > { %11205 = vst [vmem:[%s18907_s21 + $0xd8] sm:$0xff] %v11173_v47  ;;  %v11135_v8 = vadd.f32 %v12838_v41, %v18885_v52 }
 0xa1a   : > { %v12840_v13 = vpop.f32.mrf.mxu1 }
 0xa1b   : > { %v11174_v39 = vadd.f32 %v18899_v21, %v11135_v8  ;;  %v12841_v7 = vadd.f32 %v12840_v13, %v12839_v14 }
 0xa1c   : > { %v12842_v30 = vpop.f32.mrf.mxu1 }
 0xa1d   : > { %11206 = vst [vmem:[%s18907_s21 + $0xe0] sm:$0xff] %v11174_v39  ;;  %v11136_v32 = vadd.f32 %v12841_v7, %v18888_v50 }
 0xa1e   : > { %v12843_v29 = vpop.f32.mrf.mxu1 }
 0xa1f   : > { %v11175_v61 = vadd.f32 %v18899_v21, %v11136_v32  ;;  %v12844_v5 = vadd.f32 %v12843_v29, %v12842_v30 }
 0xa20   : > { %v12845_v59 = vpop.f32.mrf.mxu1 }
 0xa21   : > { %11207 = vst [vmem:[%s18907_s21 + $0xe8] sm:$0xff] %v11175_v61  ;;  %v11137_v0 = vadd.f32 %v12844_v5, %v18891_v62 }
 0xa22   : > { %v12846_v28 = vpop.f32.mrf.mxu1 }
 0xa23   : > { %v11176_v52 = vadd.f32 %v18899_v21, %v11137_v0  ;;  %v12847_v11 = vadd.f32 %v12846_v28, %v12845_v59 }
 0xa25   : > { %11208 = vst [vmem:[%s18907_s21 + $0xf0] sm:$0xff] %v11176_v52  ;;  %v11138_v18 = vadd.f32 %v12847_v11, %v18894_v42 }
 0xa27   : > { %v11177_v56 = vadd.f32 %v18899_v21, %v11138_v18 }
 0xa29   : > { %11209 = vst [vmem:[%s18907_s21 + $0xf8] sm:$0xff] %v11177_v56 }
 0xa2a PF: > { %s17_s24 = sadd.s32 1, %s13280_s24  }
 0xa2b   : > { %p14_p4 = scmp.ge.s32.totalorder %s17_s24, 4  }
 0xa2d   :  { %16 = sbr.rel (!%p14_p4) target bundleno = 1 (0x1), region = 84 }

</bundles_post_ra>
